<compile_context>
chip_gen: v7x
topology: tpu7x:2x2x1
jax: 0.10.0
libtpu: 0.0.40
codegen_flags: <defaults>
</compile_context>

<pallas_src>
import functools

import jax
import jax.numpy as jnp
from jax.experimental import pallas as pl
from jax.experimental.pallas import tpu as pltpu


def _round_up(n, m):
    return -(-n // m) * m


def _vec_layout(C1, C2, H, OUT_PAD=128):
    """128-lane-aligned layout of the consolidated (1, W) parameter vector."""
    c1p, c2p = _round_up(C1, 128), _round_up(C2, 128)
    G = 8 * H
    names_widths_pads = [("b1", C1, c1p), ("s1", C1, c1p), ("t1", C1, c1p),
                         ("b2", C2, c2p), ("s2", C2, c2p), ("t2", C2, c2p),
                         ("bl1", G, G), ("bl2", G, G), ("bfc", OUT_PAD, OUT_PAD)]
    off, cur = {}, 0
    for name, _w, pad in names_widths_pads:
        off[name] = cur
        cur += pad
    return off, cur


# ----------------------------------------------------------------------------
# Fused kernel: conv1 -> conv2 -> BiLSTM layer1 -> BiLSTM layer2 -> fc
# All rows are time-major with the PADDED batch: row index = t * BP + b.
# ----------------------------------------------------------------------------
def _make_fused_kernel(BP, T, CIN, C1, C2, H, OUT_PAD):
    TWO_H = 2 * H          # fwd|bwd hidden width (lane-dense: 128)
    G = 8 * H              # 4 gates x 2 directions (512), gate order (i,f,o,g)
    TB = T * BP
    OFF, _ = _vec_layout(C1, C2, H, OUT_PAD)

    def kernel(xcol_ref, w1_ref, w2_ref,
               wih1_ref, whh1_ref, wih2_ref, whh2_ref,
               wfc_ref, vec_ref,
               o_ref,
               h1pad_ref, gx_ref, gxm_ref, seqf_ref, seqm_ref):
        f32 = jnp.float32
        bf16 = jnp.bfloat16

        # Lane masks (built once). Inside every 128-lane block: lanes [0, H)
        # belong to the forward direction, lanes [H, 2H) to the backward one.
        fwd_g = (jax.lax.broadcasted_iota(jnp.int32, (BP, G), 1) % TWO_H) < H
        fwd_h = jax.lax.broadcasted_iota(jnp.int32, (BP, TWO_H), 1) < H

        # ---- conv1: single im2col matmul (T*BP, 3*CIN) @ (3*CIN, C1) ---------
        y1 = jnp.dot(xcol_ref[...].astype(bf16), w1_ref[...],
                     preferred_element_type=f32) + vec_ref[:, OFF["b1"]:OFF["b1"] + C1]
        h1 = (jnp.maximum(y1, 0.0) * vec_ref[:, OFF["s1"]:OFF["s1"] + C1]
              + vec_ref[:, OFF["t1"]:OFF["t1"] + C1])        # ReLU -> BN(eval)

        # ---- conv2: zero the two pad row-blocks only, then 3 aligned taps ----
        h1pad_ref[0:BP, :] = jnp.zeros((BP, C1), f32)
        h1pad_ref[(T + 1) * BP:(T + 2) * BP, :] = jnp.zeros((BP, C1), f32)
        h1pad_ref[BP:BP + TB, :] = h1
        acc2 = jnp.zeros((TB, C2), f32)
        for k in range(3):                                   # offsets 0/BP/2BP
            acc2 = acc2 + jnp.dot(
                h1pad_ref[k * BP:k * BP + TB, :].astype(bf16), w2_ref[k],
                preferred_element_type=f32)
        h2 = (jnp.maximum(acc2 + vec_ref[:, OFF["b2"]:OFF["b2"] + C2], 0.0)
              * vec_ref[:, OFF["s2"]:OFF["s2"] + C2]
              + vec_ref[:, OFF["t2"]:OFF["t2"] + C2])

        # ---- fused bidirectional LSTM layer ----------------------------------
        # Weights are gate-major with [fwd H | bwd H] inside every 128-lane gate
        # block (gate order i, f, o, g); Whh is block-diagonal over directions,
        # so one (BP, 2H) @ (2H, 8H) matmul advances both directions per step.
        def bilstm(seq2d_bf16, wih_ref, whh_ref, bias, want_seq):
            # Input projection + bias, hoisted out of the recurrence.
            gx_ref[...] = jnp.dot(seq2d_bf16, wih_ref[...],
                                  preferred_element_type=f32) + bias
            # Hoisted fwd/bwd time-merge of the gate inputs (off the chain):
            # forward lanes read x[t]'s projection, backward lanes x[T-1-t]'s.
            for t in range(T):
                r = T - 1 - t
                gxm_ref[t * BP:(t + 1) * BP, :] = jnp.where(
                    fwd_g,
                    gx_ref[t * BP:(t + 1) * BP, :],
                    gx_ref[r * BP:(r + 1) * BP, :])

            h = jnp.zeros((BP, TWO_H), f32)
            c = jnp.zeros((BP, TWO_H), f32)
            h_first = None
            for t in range(T):                    # static unroll (T is small)
                gates = gxm_ref[t * BP:(t + 1) * BP, :] + jnp.dot(
                    h.astype(bf16), whh_ref[...], preferred_element_type=f32)
                sg = jax.nn.sigmoid(gates[:, :3 * TWO_H])   # i, f, o
                gg = jnp.tanh(gates[:, 3 * TWO_H:])         # g (cell candidate)
                i_g = sg[:, 0 * TWO_H:1 * TWO_H]            # 128-lane aligned
                f_g = sg[:, 1 * TWO_H:2 * TWO_H]
                o_g = sg[:, 2 * TWO_H:3 * TWO_H]
                c = f_g * c + i_g * gg
                h = o_g * jnp.tanh(c)
                if want_seq:
                    seqf_ref[t * BP:(t + 1) * BP, :] = h    # one aligned store
                if t == 0:
                    h_first = h
            return h, h_first

        bl1 = vec_ref[:, OFF["bl1"]:OFF["bl1"] + G]
        bl2 = vec_ref[:, OFF["bl2"]:OFF["bl2"] + G]

        # Layer 1: need the full output sequence.
        bilstm(h2.astype(bf16), wih1_ref, whh1_ref, bl1, want_seq=True)

        # Assemble layer-1 output: seq1[t] = [fwd h(t) | bwd h(t)]; the bwd half
        # lives in the time-reversed row-block.  Off the serial chain.
        for t in range(T):
            r = T - 1 - t
            seqm_ref[t * BP:(t + 1) * BP, :] = jnp.where(
                fwd_h,
                seqf_ref[t * BP:(t + 1) * BP, :],
                seqf_ref[r * BP:(r + 1) * BP, :])

        # Layer 2: only the last timestep is needed.
        h_last, h_first = bilstm(seqm_ref[...].astype(bf16),
                                 wih2_ref, whh2_ref, bl2, want_seq=False)
        # out[:, -1, :] = [fwd h(T-1) | bwd h(T-1)]
        last = jnp.where(fwd_h, h_last, h_first)             # (BP, 2H)

        # ---- fc (lane-dense padded output) -----------------------------------
        o_ref[...] = (jnp.dot(last.astype(bf16), wfc_ref[...],
                              preferred_element_type=f32)
                      + vec_ref[:, OFF["bfc"]:OFF["bfc"] + OUT_PAD]
                      ).astype(o_ref.dtype)

    return kernel


# ----------------------------------------------------------------------------
# Parameter construction (deterministic, synthetic) and packing for the kernel.
# ----------------------------------------------------------------------------
def init_params(key, input_size=21, conv_channels=(64, 128), hidden_size=64,
                out_size=21):
    keys = iter(jax.random.split(key, 64))

    def nrm(shape, scale=0.1):
        return scale * jax.random.normal(next(keys), shape, jnp.float32)

    def conv_block(cin, cout):
        return dict(
            w=nrm((3, cin, cout)),                 # PyTorch (cout,cin,3) transposed
            b=nrm((1, cout)),
            gamma=1.0 + nrm((1, cout)),
            beta=nrm((1, cout)),
            mean=nrm((1, cout)),
            var=1.0 + jnp.abs(nrm((1, cout))),
        )

    def lstm_dir(din, h):
        return dict(
            wih=nrm((din, 4 * h)),                 # PyTorch (4h,din) transposed
            whh=nrm((h, 4 * h)),
            b=nrm((1, 4 * h)),                     # b_ih + b_hh combined
        )

    c0, c1 = conv_channels
    return dict(
        conv1=conv_block(input_size, c0),
        conv2=conv_block(c0, c1),
        l1f=lstm_dir(c1, hidden_size),
        l1b=lstm_dir(c1, hidden_size),
        l2f=lstm_dir(2 * hidden_size, hidden_size),
        l2b=lstm_dir(2 * hidden_size, hidden_size),
        fc_w=nrm((2 * hidden_size, out_size)),     # PyTorch (21, 2h) transposed
        fc_b=nrm((1, out_size)),
    )


def _fold_bn(cb, eps=1e-5):
    scale = cb["gamma"] * jax.lax.rsqrt(cb["var"] + eps)
    shift = cb["beta"] - cb["mean"] * scale
    return scale, shift


# Gate order in the packed layout: (i, f, o, g).  PyTorch order is (i, f, g, o).
_GATE_ORDER = (0, 1, 3, 2)


def _fuse_bidir(fwd, bwd, H):
    """Pack fwd/bwd LSTM weights into the interleaved gate-major (i,f,o,g) layout."""
    def gate(w, g):
        return w[:, g * H:(g + 1) * H]

    wih = jnp.concatenate(
        [jnp.concatenate([gate(fwd["wih"], g), gate(bwd["wih"], g)], axis=1)
         for g in _GATE_ORDER], axis=1)                               # (Din, 8H)
    zero = jnp.zeros((H, H), jnp.float32)
    blocks = []
    for g in _GATE_ORDER:
        top = jnp.concatenate([gate(fwd["whh"], g), zero], axis=1)    # fwd rows
        bot = jnp.concatenate([zero, gate(bwd["whh"], g)], axis=1)    # bwd rows
        blocks.append(jnp.concatenate([top, bot], axis=0))            # (2H, 2H)
    whh = jnp.concatenate(blocks, axis=1)                             # (2H, 8H)
    bias = jnp.concatenate(
        [jnp.concatenate([gate(fwd["b"], g), gate(bwd["b"], g)], axis=1)
         for g in _GATE_ORDER], axis=1)                               # (1, 8H)
    return wih, whh, bias


def pack_params(p, hidden_size=64, out_pad=128):
    H = hidden_size
    bf16 = jnp.bfloat16
    s1, t1 = _fold_bn(p["conv1"])
    s2, t2 = _fold_bn(p["conv2"])
    wih1, whh1, bias1 = _fuse_bidir(p["l1f"], p["l1b"], H)
    wih2, whh2, bias2 = _fuse_bidir(p["l2f"], p["l2b"], H)
    cin, c1 = p["conv1"]["w"].shape[1], p["conv1"]["w"].shape[2]
    c2 = p["conv2"]["w"].shape[2]

    # fc padded to a lane-dense 128-wide output.
    out = p["fc_w"].shape[1]
    fc_w = jnp.zeros((2 * H, out_pad), jnp.float32).at[:, :out].set(p["fc_w"])
    fc_b = jnp.zeros((1, out_pad), jnp.float32).at[:, :out].set(p["fc_b"])

    # Consolidated (1, W) parameter vector with 128-aligned segments.
    def pad128(v):
        w = v.shape[1]
        return jnp.pad(v, ((0, 0), (0, _round_up(w, 128) - w)))

    vec = jnp.concatenate(
        [pad128(p["conv1"]["b"]), pad128(s1), pad128(t1),
         pad128(p["conv2"]["b"]), pad128(s2), pad128(t2),
         bias1, bias2, fc_b], axis=1)                                 # (1, 1920)

    return dict(
        w1=p["conv1"]["w"].reshape(3 * cin, c1).astype(bf16),
        w2=p["conv2"]["w"].astype(bf16),
        wih1=wih1.astype(bf16), whh1=whh1.astype(bf16),
        wih2=wih2.astype(bf16), whh2=whh2.astype(bf16),
        fc_w=fc_w.astype(bf16),
        vec=vec,                                                      # stays f32
    )


# ----------------------------------------------------------------------------
# Full forward pass: batch padded to 8, one XLA im2col, then one pallas_call.
# ----------------------------------------------------------------------------
@functools.partial(jax.jit, static_argnames=("out_size",))
def cnn_bilstm_forward(x, packed, out_size=21):
    # x: (B, T, 21)  -- matches PyTorch input before its internal transpose(1,2)
    B, T, CIN = x.shape
    BP = max(8, _round_up(B, 8))          # pad batch to a full sublane tile
    C1 = packed["w1"].shape[1]
    C2 = packed["w2"].shape[2]
    H = packed["whh1"].shape[0] // 2
    OUT_PAD = packed["fc_w"].shape[1]

    # Pad batch, then im2col for conv1 (k=3, pad=1), time-major row order (t, b).
    x_p = jnp.pad(x, ((0, BP - B), (0, 0), (0, 0)))
    x_tpad = jnp.pad(x_p, ((0, 0), (1, 1), (0, 0)))
    xcol = jnp.concatenate([x_tpad[:, k:k + T, :] for k in range(3)], axis=-1)
    xcol = jnp.transpose(xcol, (1, 0, 2)).reshape(T * BP, 3 * CIN)

    kernel = _make_fused_kernel(BP, T, CIN, C1, C2, H, OUT_PAD)

    def full(shape):
        return pl.BlockSpec(shape, lambda i: (0,) * len(shape))

    args = (xcol,
            packed["w1"], packed["w2"],
            packed["wih1"], packed["whh1"], packed["wih2"], packed["whh2"],
            packed["fc_w"], packed["vec"])

    out_padded = pl.pallas_call(
        kernel,
        out_shape=jax.ShapeDtypeStruct((BP, OUT_PAD), jnp.float32),
        grid=(1,),
        in_specs=[full(a.shape) for a in args],
        out_specs=full((BP, OUT_PAD)),
        scratch_shapes=[
            pltpu.VMEM(((T + 2) * BP, C1), jnp.float32),  # zero-padded conv1 out
            pltpu.VMEM((T * BP, 8 * H), jnp.float32),     # gate projections
            pltpu.VMEM((T * BP, 8 * H), jnp.float32),     # fwd/bwd-merged gates
            pltpu.VMEM((T * BP, 2 * H), jnp.float32),     # layer-1 per-step h
            pltpu.VMEM((T * BP, 2 * H), jnp.float32),     # layer-1 merged seq
        ],
        compiler_params=pltpu.CompilerParams(
            dimension_semantics=("arbitrary",)),
    )(*args)

    return out_padded[:B, :out_size]


if __name__ == "__main__":
    key = jax.random.PRNGKey(0)
    k_x, k_p = jax.random.split(key)

    B, T, D_IN = 2, 16, 21
    x = jax.random.normal(k_x, (B, T, D_IN), jnp.float32)
    params = init_params(k_p, input_size=D_IN, conv_channels=(64, 128),
                         hidden_size=64, out_size=21)
    packed = pack_params(params, hidden_size=64)

    out = cnn_bilstm_forward(x, packed, out_size=21)
    out = jax.block_until_ready(out)

    assert out.shape == (B, 21), out.shape
    assert bool(jnp.all(jnp.isfinite(out)))
    print("KERNEL_OK")
</pallas_src>

<mosaic_0001>
module attributes {stable_mosaic.version = 11 : i64} {
  func.func @kernel(%arg0: i32, %arg1: memref<128x63xf32, #tpu.memory_space<vmem>>, %arg2: memref<63x64xbf16, #tpu.memory_space<vmem>>, %arg3: memref<3x64x128xbf16, #tpu.memory_space<vmem>>, %arg4: memref<128x512xbf16, #tpu.memory_space<vmem>>, %arg5: memref<128x512xbf16, #tpu.memory_space<vmem>>, %arg6: memref<128x512xbf16, #tpu.memory_space<vmem>>, %arg7: memref<128x512xbf16, #tpu.memory_space<vmem>>, %arg8: memref<128x128xbf16, #tpu.memory_space<vmem>>, %arg9: memref<1x1920xf32, #tpu.memory_space<vmem>>, %arg10: memref<8x128xf32, #tpu.memory_space<vmem>>, %arg11: memref<144x64xf32, #tpu.memory_space<vmem>>, %arg12: memref<128x512xf32, #tpu.memory_space<vmem>>, %arg13: memref<128x512xf32, #tpu.memory_space<vmem>>, %arg14: memref<128x128xf32, #tpu.memory_space<vmem>>, %arg15: memref<128x128xf32, #tpu.memory_space<vmem>>) attributes {dimension_semantics = [#tpu.dimension_semantics<arbitrary>], iteration_bounds = array<i64: 1>, scalar_prefetch = 0 : i64, scratch_operands = 5 : i64, tpu.core_type = #tpu.core_type<tc>, window_params = [{pipeline_mode = #tpu.pipeline_mode<synchronous>, transform_indices = @transform_0, window_bounds = array<i64: 128, 63>}, {pipeline_mode = #tpu.pipeline_mode<synchronous>, transform_indices = @transform_1, window_bounds = array<i64: 63, 64>}, {pipeline_mode = #tpu.pipeline_mode<synchronous>, transform_indices = @transform_2, window_bounds = array<i64: 3, 64, 128>}, {pipeline_mode = #tpu.pipeline_mode<synchronous>, transform_indices = @transform_3, window_bounds = array<i64: 128, 512>}, {pipeline_mode = #tpu.pipeline_mode<synchronous>, transform_indices = @transform_4, window_bounds = array<i64: 128, 512>}, {pipeline_mode = #tpu.pipeline_mode<synchronous>, transform_indices = @transform_5, window_bounds = array<i64: 128, 512>}, {pipeline_mode = #tpu.pipeline_mode<synchronous>, transform_indices = @transform_6, window_bounds = array<i64: 128, 512>}, {pipeline_mode = #tpu.pipeline_mode<synchronous>, transform_indices = @transform_7, window_bounds = array<i64: 128, 128>}, {pipeline_mode = #tpu.pipeline_mode<synchronous>, transform_indices = @transform_8, window_bounds = array<i64: 1, 1920>}, {pipeline_mode = #tpu.pipeline_mode<synchronous>, transform_indices = @transform_9, window_bounds = array<i64: 8, 128>}]} {
    %0 = tpu.iota {dimensions = array<i32: 1>} : vector<8x512xi32>
    %c128_i32 = arith.constant 128 : i32
    %c0_i32 = arith.constant 0 : i32
    %1 = arith.cmpi eq, %c128_i32, %c0_i32 : i32
    %c1_i32 = arith.constant 1 : i32
    %2 = arith.select %1, %c1_i32, %c128_i32 : i32
    %3 = vector.broadcast %2 : i32 to vector<8x512xi32>
    %4 = arith.remsi %0, %3 : vector<8x512xi32>
    %c0_i32_0 = arith.constant 0 : i32
    %5 = vector.broadcast %c0_i32_0 : i32 to vector<8x512xi32>
    %6 = arith.cmpi ne, %4, %5 : vector<8x512xi32>
    %c0_i32_1 = arith.constant 0 : i32
    %7 = vector.broadcast %c0_i32_1 : i32 to vector<8x512xi32>
    %8 = arith.cmpi slt, %4, %7 : vector<8x512xi32>
    %c0_i32_2 = arith.constant 0 : i32
    %9 = arith.cmpi slt, %2, %c0_i32_2 : i32
    %10 = vector.broadcast %9 : i1 to vector<8x512xi1>
    %11 = vector.broadcast %10 : vector<8x512xi1> to vector<8x512xi1>
    %12 = arith.xori %8, %11 : vector<8x512xi1>
    %13 = arith.andi %12, %6 : vector<8x512xi1>
    %14 = vector.broadcast %2 : i32 to vector<8x512xi32>
    %15 = arith.addi %4, %14 : vector<8x512xi32>
    %16 = arith.select %13, %15, %4 : vector<8x512xi1>, vector<8x512xi32>
    %c64_i32 = arith.constant 64 : i32
    %17 = vector.broadcast %c64_i32 : i32 to vector<8x512xi32>
    %18 = arith.cmpi slt, %16, %17 : vector<8x512xi32>
    %19 = tpu.iota {dimensions = array<i32: 1>} : vector<8x128xi32>
    %c64_i32_3 = arith.constant 64 : i32
    %20 = vector.broadcast %c64_i32_3 : i32 to vector<8x128xi32>
    %21 = arith.cmpi slt, %19, %20 : vector<8x128xi32>
    %c0 = arith.constant 0 : index
    %c0_4 = arith.constant 0 : index
    %22 = vector.load %arg1[%c0, %c0_4] : memref<128x63xf32, #tpu.memory_space<vmem>>, vector<128x63xf32>
    %23 = arith.truncf %22 : vector<128x63xf32> to vector<128x63xbf16>
    %c0_5 = arith.constant 0 : index
    %c0_6 = arith.constant 0 : index
    %24 = vector.load %arg2[%c0_5, %c0_6] : memref<63x64xbf16, #tpu.memory_space<vmem>>, vector<63x64xbf16>
    %cst = arith.constant dense<0.000000e+00> : vector<128x64xf32>
    %25 = tpu.matmul %23, %24, %cst {dimension_numbers = #tpu.dot_dimension_numbers<[1], [0], [0], [1], [0, 0, 1, 1], [], []>} : vector<128x63xbf16>, vector<63x64xbf16>, vector<128x64xf32> -> vector<128x64xf32>
    %c0_7 = arith.constant 0 : index
    %c0_8 = arith.constant 0 : index
    %26 = vector.load %arg9[%c0_7, %c0_8] : memref<1x1920xf32, #tpu.memory_space<vmem>>, vector<1x64xf32>
    %27 = vector.broadcast %26 : vector<1x64xf32> to vector<128x64xf32>
    %28 = arith.addf %25, %27 : vector<128x64xf32>
    %cst_9 = arith.constant 0.000000e+00 : f32
    %29 = vector.broadcast %cst_9 : f32 to vector<128x64xf32>
    %30 = arith.maximumf %28, %29 : vector<128x64xf32>
    %c0_10 = arith.constant 0 : index
    %c128 = arith.constant 128 : index
    %31 = vector.load %arg9[%c0_10, %c128] : memref<1x1920xf32, #tpu.memory_space<vmem>>, vector<1x64xf32>
    %32 = vector.broadcast %31 : vector<1x64xf32> to vector<128x64xf32>
    %33 = arith.mulf %30, %32 : vector<128x64xf32>
    %c0_11 = arith.constant 0 : index
    %c256 = arith.constant 256 : index
    %34 = vector.load %arg9[%c0_11, %c256] : memref<1x1920xf32, #tpu.memory_space<vmem>>, vector<1x64xf32>
    %35 = vector.broadcast %34 : vector<1x64xf32> to vector<128x64xf32>
    %36 = arith.addf %33, %35 : vector<128x64xf32>
    %cst_12 = arith.constant 0.000000e+00 : f32
    %37 = vector.broadcast %cst_12 : f32 to vector<8x64xf32>
    %c0_13 = arith.constant 0 : index
    %c0_14 = arith.constant 0 : index
    %38 = vector.load %arg11[%c0_13, %c0_14] : memref<144x64xf32, #tpu.memory_space<vmem>>, vector<8x64xf32>
    tpu.vector_store %arg11[%c0_13, %c0_14], %37 {strides = array<i32>} : memref<144x64xf32, #tpu.memory_space<vmem>>, vector<8x64xf32>,
    %cst_15 = arith.constant 0.000000e+00 : f32
    %39 = vector.broadcast %cst_15 : f32 to vector<8x64xf32>
    %c136 = arith.constant 136 : index
    %c0_16 = arith.constant 0 : index
    %40 = vector.load %arg11[%c136, %c0_16] : memref<144x64xf32, #tpu.memory_space<vmem>>, vector<8x64xf32>
    tpu.vector_store %arg11[%c136, %c0_16], %39 {strides = array<i32>} : memref<144x64xf32, #tpu.memory_space<vmem>>, vector<8x64xf32>,
    %c8 = arith.constant 8 : index
    %c0_17 = arith.constant 0 : index
    %41 = vector.load %arg11[%c8, %c0_17] : memref<144x64xf32, #tpu.memory_space<vmem>>, vector<128x64xf32>
    tpu.vector_store %arg11[%c8, %c0_17], %36 {strides = array<i32>} : memref<144x64xf32, #tpu.memory_space<vmem>>, vector<128x64xf32>,
    %cst_18 = arith.constant 0.000000e+00 : f32
    %42 = vector.broadcast %cst_18 : f32 to vector<128x128xf32>
    %c0_19 = arith.constant 0 : index
    %c0_20 = arith.constant 0 : index
    %43 = vector.load %arg11[%c0_19, %c0_20] : memref<144x64xf32, #tpu.memory_space<vmem>>, vector<128x64xf32>
    %44 = arith.truncf %43 : vector<128x64xf32> to vector<128x64xbf16>
    %c0_21 = arith.constant 0 : index
    %c0_22 = arith.constant 0 : index
    %c0_23 = arith.constant 0 : index
    %45 = vector.load %arg3[%c0_21, %c0_22, %c0_23] : memref<3x64x128xbf16, #tpu.memory_space<vmem>>, vector<1x64x128xbf16>
    %46 = vector.shape_cast %45 : vector<1x64x128xbf16> to vector<64x128xbf16>
    %cst_24 = arith.constant dense<0.000000e+00> : vector<128x128xf32>
    %47 = tpu.matmul %44, %46, %cst_24 {dimension_numbers = #tpu.dot_dimension_numbers<[1], [0], [0], [1], [0, 0, 1, 1], [], []>} : vector<128x64xbf16>, vector<64x128xbf16>, vector<128x128xf32> -> vector<128x128xf32>
    %48 = arith.addf %42, %47 : vector<128x128xf32>
    %c8_25 = arith.constant 8 : index
    %c0_26 = arith.constant 0 : index
    %49 = vector.load %arg11[%c8_25, %c0_26] : memref<144x64xf32, #tpu.memory_space<vmem>>, vector<128x64xf32>
    %50 = arith.truncf %49 : vector<128x64xf32> to vector<128x64xbf16>
    %c1 = arith.constant 1 : index
    %c0_27 = arith.constant 0 : index
    %c0_28 = arith.constant 0 : index
    %51 = vector.load %arg3[%c1, %c0_27, %c0_28] : memref<3x64x128xbf16, #tpu.memory_space<vmem>>, vector<1x64x128xbf16>
    %52 = vector.shape_cast %51 : vector<1x64x128xbf16> to vector<64x128xbf16>
    %cst_29 = arith.constant dense<0.000000e+00> : vector<128x128xf32>
    %53 = tpu.matmul %50, %52, %cst_29 {dimension_numbers = #tpu.dot_dimension_numbers<[1], [0], [0], [1], [0, 0, 1, 1], [], []>} : vector<128x64xbf16>, vector<64x128xbf16>, vector<128x128xf32> -> vector<128x128xf32>
    %54 = arith.addf %48, %53 : vector<128x128xf32>
    %c16 = arith.constant 16 : index
    %c0_30 = arith.constant 0 : index
    %55 = vector.load %arg11[%c16, %c0_30] : memref<144x64xf32, #tpu.memory_space<vmem>>, vector<128x64xf32>
    %56 = arith.truncf %55 : vector<128x64xf32> to vector<128x64xbf16>
    %c2 = arith.constant 2 : index
    %c0_31 = arith.constant 0 : index
    %c0_32 = arith.constant 0 : index
    %57 = vector.load %arg3[%c2, %c0_31, %c0_32] : memref<3x64x128xbf16, #tpu.memory_space<vmem>>, vector<1x64x128xbf16>
    %58 = vector.shape_cast %57 : vector<1x64x128xbf16> to vector<64x128xbf16>
    %cst_33 = arith.constant dense<0.000000e+00> : vector<128x128xf32>
    %59 = tpu.matmul %56, %58, %cst_33 {dimension_numbers = #tpu.dot_dimension_numbers<[1], [0], [0], [1], [0, 0, 1, 1], [], []>} : vector<128x64xbf16>, vector<64x128xbf16>, vector<128x128xf32> -> vector<128x128xf32>
    %60 = arith.addf %54, %59 : vector<128x128xf32>
    %c0_34 = arith.constant 0 : index
    %c384 = arith.constant 384 : index
    %61 = vector.load %arg9[%c0_34, %c384] : memref<1x1920xf32, #tpu.memory_space<vmem>>, vector<1x128xf32>
    %62 = vector.broadcast %61 : vector<1x128xf32> to vector<128x128xf32>
    %63 = arith.addf %60, %62 : vector<128x128xf32>
    %cst_35 = arith.constant 0.000000e+00 : f32
    %64 = vector.broadcast %cst_35 : f32 to vector<128x128xf32>
    %65 = arith.maximumf %63, %64 : vector<128x128xf32>
    %c0_36 = arith.constant 0 : index
    %c512 = arith.constant 512 : index
    %66 = vector.load %arg9[%c0_36, %c512] : memref<1x1920xf32, #tpu.memory_space<vmem>>, vector<1x128xf32>
    %67 = vector.broadcast %66 : vector<1x128xf32> to vector<128x128xf32>
    %68 = arith.mulf %65, %67 : vector<128x128xf32>
    %c0_37 = arith.constant 0 : index
    %c640 = arith.constant 640 : index
    %69 = vector.load %arg9[%c0_37, %c640] : memref<1x1920xf32, #tpu.memory_space<vmem>>, vector<1x128xf32>
    %70 = vector.broadcast %69 : vector<1x128xf32> to vector<128x128xf32>
    %71 = arith.addf %68, %70 : vector<128x128xf32>
    %c0_38 = arith.constant 0 : index
    %c768 = arith.constant 768 : index
    %72 = vector.load %arg9[%c0_38, %c768] : memref<1x1920xf32, #tpu.memory_space<vmem>>, vector<1x512xf32>
    %c0_39 = arith.constant 0 : index
    %c1280 = arith.constant 1280 : index
    %73 = vector.load %arg9[%c0_39, %c1280] : memref<1x1920xf32, #tpu.memory_space<vmem>>, vector<1x512xf32>
    %74 = arith.truncf %71 : vector<128x128xf32> to vector<128x128xbf16>
    %c0_40 = arith.constant 0 : index
    %c0_41 = arith.constant 0 : index
    %75 = vector.load %arg4[%c0_40, %c0_41] : memref<128x512xbf16, #tpu.memory_space<vmem>>, vector<128x512xbf16>
    %cst_42 = arith.constant dense<0.000000e+00> : vector<128x512xf32>
    %76 = tpu.matmul %74, %75, %cst_42 {dimension_numbers = #tpu.dot_dimension_numbers<[1], [0], [0], [1], [0, 0, 1, 1], [], []>} : vector<128x128xbf16>, vector<128x512xbf16>, vector<128x512xf32> -> vector<128x512xf32>
    %77 = vector.broadcast %72 : vector<1x512xf32> to vector<128x512xf32>
    %78 = arith.addf %76, %77 : vector<128x512xf32>
    %c0_43 = arith.constant 0 : index
    %c0_44 = arith.constant 0 : index
    %79 = vector.load %arg12[%c0_43, %c0_44] : memref<128x512xf32, #tpu.memory_space<vmem>>, vector<128x512xf32>
    tpu.vector_store %arg12[%c0_43, %c0_44], %78 {strides = array<i32>} : memref<128x512xf32, #tpu.memory_space<vmem>>, vector<128x512xf32>,
    %c0_45 = arith.constant 0 : index
    %c0_46 = arith.constant 0 : index
    %80 = vector.load %arg12[%c0_45, %c0_46] : memref<128x512xf32, #tpu.memory_space<vmem>>, vector<8x512xf32>
    %c120 = arith.constant 120 : index
    %c0_47 = arith.constant 0 : index
    %81 = vector.load %arg12[%c120, %c0_47] : memref<128x512xf32, #tpu.memory_space<vmem>>, vector<8x512xf32>
    %82 = arith.select %18, %80, %81 : vector<8x512xi1>, vector<8x512xf32>
    %c0_48 = arith.constant 0 : index
    %c0_49 = arith.constant 0 : index
    %83 = vector.load %arg13[%c0_48, %c0_49] : memref<128x512xf32, #tpu.memory_space<vmem>>, vector<8x512xf32>
    tpu.vector_store %arg13[%c0_48, %c0_49], %82 {strides = array<i32>} : memref<128x512xf32, #tpu.memory_space<vmem>>, vector<8x512xf32>,
    %c8_50 = arith.constant 8 : index
    %c0_51 = arith.constant 0 : index
    %84 = vector.load %arg12[%c8_50, %c0_51] : memref<128x512xf32, #tpu.memory_space<vmem>>, vector<8x512xf32>
    %c112 = arith.constant 112 : index
    %c0_52 = arith.constant 0 : index
    %85 = vector.load %arg12[%c112, %c0_52] : memref<128x512xf32, #tpu.memory_space<vmem>>, vector<8x512xf32>
    %86 = arith.select %18, %84, %85 : vector<8x512xi1>, vector<8x512xf32>
    %c8_53 = arith.constant 8 : index
    %c0_54 = arith.constant 0 : index
    %87 = vector.load %arg13[%c8_53, %c0_54] : memref<128x512xf32, #tpu.memory_space<vmem>>, vector<8x512xf32>
    tpu.vector_store %arg13[%c8_53, %c0_54], %86 {strides = array<i32>} : memref<128x512xf32, #tpu.memory_space<vmem>>, vector<8x512xf32>,
    %c16_55 = arith.constant 16 : index
    %c0_56 = arith.constant 0 : index
    %88 = vector.load %arg12[%c16_55, %c0_56] : memref<128x512xf32, #tpu.memory_space<vmem>>, vector<8x512xf32>
    %c104 = arith.constant 104 : index
    %c0_57 = arith.constant 0 : index
    %89 = vector.load %arg12[%c104, %c0_57] : memref<128x512xf32, #tpu.memory_space<vmem>>, vector<8x512xf32>
    %90 = arith.select %18, %88, %89 : vector<8x512xi1>, vector<8x512xf32>
    %c16_58 = arith.constant 16 : index
    %c0_59 = arith.constant 0 : index
    %91 = vector.load %arg13[%c16_58, %c0_59] : memref<128x512xf32, #tpu.memory_space<vmem>>, vector<8x512xf32>
    tpu.vector_store %arg13[%c16_58, %c0_59], %90 {strides = array<i32>} : memref<128x512xf32, #tpu.memory_space<vmem>>, vector<8x512xf32>,
    %c24 = arith.constant 24 : index
    %c0_60 = arith.constant 0 : index
    %92 = vector.load %arg12[%c24, %c0_60] : memref<128x512xf32, #tpu.memory_space<vmem>>, vector<8x512xf32>
    %c96 = arith.constant 96 : index
    %c0_61 = arith.constant 0 : index
    %93 = vector.load %arg12[%c96, %c0_61] : memref<128x512xf32, #tpu.memory_space<vmem>>, vector<8x512xf32>
    %94 = arith.select %18, %92, %93 : vector<8x512xi1>, vector<8x512xf32>
    %c24_62 = arith.constant 24 : index
    %c0_63 = arith.constant 0 : index
    %95 = vector.load %arg13[%c24_62, %c0_63] : memref<128x512xf32, #tpu.memory_space<vmem>>, vector<8x512xf32>
    tpu.vector_store %arg13[%c24_62, %c0_63], %94 {strides = array<i32>} : memref<128x512xf32, #tpu.memory_space<vmem>>, vector<8x512xf32>,
    %c32 = arith.constant 32 : index
    %c0_64 = arith.constant 0 : index
    %96 = vector.load %arg12[%c32, %c0_64] : memref<128x512xf32, #tpu.memory_space<vmem>>, vector<8x512xf32>
    %c88 = arith.constant 88 : index
    %c0_65 = arith.constant 0 : index
    %97 = vector.load %arg12[%c88, %c0_65] : memref<128x512xf32, #tpu.memory_space<vmem>>, vector<8x512xf32>
    %98 = arith.select %18, %96, %97 : vector<8x512xi1>, vector<8x512xf32>
    %c32_66 = arith.constant 32 : index
    %c0_67 = arith.constant 0 : index
    %99 = vector.load %arg13[%c32_66, %c0_67] : memref<128x512xf32, #tpu.memory_space<vmem>>, vector<8x512xf32>
    tpu.vector_store %arg13[%c32_66, %c0_67], %98 {strides = array<i32>} : memref<128x512xf32, #tpu.memory_space<vmem>>, vector<8x512xf32>,
    %c40 = arith.constant 40 : index
    %c0_68 = arith.constant 0 : index
    %100 = vector.load %arg12[%c40, %c0_68] : memref<128x512xf32, #tpu.memory_space<vmem>>, vector<8x512xf32>
    %c80 = arith.constant 80 : index
    %c0_69 = arith.constant 0 : index
    %101 = vector.load %arg12[%c80, %c0_69] : memref<128x512xf32, #tpu.memory_space<vmem>>, vector<8x512xf32>
    %102 = arith.select %18, %100, %101 : vector<8x512xi1>, vector<8x512xf32>
    %c40_70 = arith.constant 40 : index
    %c0_71 = arith.constant 0 : index
    %103 = vector.load %arg13[%c40_70, %c0_71] : memref<128x512xf32, #tpu.memory_space<vmem>>, vector<8x512xf32>
    tpu.vector_store %arg13[%c40_70, %c0_71], %102 {strides = array<i32>} : memref<128x512xf32, #tpu.memory_space<vmem>>, vector<8x512xf32>,
    %c48 = arith.constant 48 : index
    %c0_72 = arith.constant 0 : index
    %104 = vector.load %arg12[%c48, %c0_72] : memref<128x512xf32, #tpu.memory_space<vmem>>, vector<8x512xf32>
    %c72 = arith.constant 72 : index
    %c0_73 = arith.constant 0 : index
    %105 = vector.load %arg12[%c72, %c0_73] : memref<128x512xf32, #tpu.memory_space<vmem>>, vector<8x512xf32>
    %106 = arith.select %18, %104, %105 : vector<8x512xi1>, vector<8x512xf32>
    %c48_74 = arith.constant 48 : index
    %c0_75 = arith.constant 0 : index
    %107 = vector.load %arg13[%c48_74, %c0_75] : memref<128x512xf32, #tpu.memory_space<vmem>>, vector<8x512xf32>
    tpu.vector_store %arg13[%c48_74, %c0_75], %106 {strides = array<i32>} : memref<128x512xf32, #tpu.memory_space<vmem>>, vector<8x512xf32>,
    %c56 = arith.constant 56 : index
    %c0_76 = arith.constant 0 : index
    %108 = vector.load %arg12[%c56, %c0_76] : memref<128x512xf32, #tpu.memory_space<vmem>>, vector<8x512xf32>
    %c64 = arith.constant 64 : index
    %c0_77 = arith.constant 0 : index
    %109 = vector.load %arg12[%c64, %c0_77] : memref<128x512xf32, #tpu.memory_space<vmem>>, vector<8x512xf32>
    %110 = arith.select %18, %108, %109 : vector<8x512xi1>, vector<8x512xf32>
    %c56_78 = arith.constant 56 : index
    %c0_79 = arith.constant 0 : index
    %111 = vector.load %arg13[%c56_78, %c0_79] : memref<128x512xf32, #tpu.memory_space<vmem>>, vector<8x512xf32>
    tpu.vector_store %arg13[%c56_78, %c0_79], %110 {strides = array<i32>} : memref<128x512xf32, #tpu.memory_space<vmem>>, vector<8x512xf32>,
    %c64_80 = arith.constant 64 : index
    %c0_81 = arith.constant 0 : index
    %112 = vector.load %arg12[%c64_80, %c0_81] : memref<128x512xf32, #tpu.memory_space<vmem>>, vector<8x512xf32>
    %c56_82 = arith.constant 56 : index
    %c0_83 = arith.constant 0 : index
    %113 = vector.load %arg12[%c56_82, %c0_83] : memref<128x512xf32, #tpu.memory_space<vmem>>, vector<8x512xf32>
    %114 = arith.select %18, %112, %113 : vector<8x512xi1>, vector<8x512xf32>
    %c64_84 = arith.constant 64 : index
    %c0_85 = arith.constant 0 : index
    %115 = vector.load %arg13[%c64_84, %c0_85] : memref<128x512xf32, #tpu.memory_space<vmem>>, vector<8x512xf32>
    tpu.vector_store %arg13[%c64_84, %c0_85], %114 {strides = array<i32>} : memref<128x512xf32, #tpu.memory_space<vmem>>, vector<8x512xf32>,
    %c72_86 = arith.constant 72 : index
    %c0_87 = arith.constant 0 : index
    %116 = vector.load %arg12[%c72_86, %c0_87] : memref<128x512xf32, #tpu.memory_space<vmem>>, vector<8x512xf32>
    %c48_88 = arith.constant 48 : index
    %c0_89 = arith.constant 0 : index
    %117 = vector.load %arg12[%c48_88, %c0_89] : memref<128x512xf32, #tpu.memory_space<vmem>>, vector<8x512xf32>
    %118 = arith.select %18, %116, %117 : vector<8x512xi1>, vector<8x512xf32>
    %c72_90 = arith.constant 72 : index
    %c0_91 = arith.constant 0 : index
    %119 = vector.load %arg13[%c72_90, %c0_91] : memref<128x512xf32, #tpu.memory_space<vmem>>, vector<8x512xf32>
    tpu.vector_store %arg13[%c72_90, %c0_91], %118 {strides = array<i32>} : memref<128x512xf32, #tpu.memory_space<vmem>>, vector<8x512xf32>,
    %c80_92 = arith.constant 80 : index
    %c0_93 = arith.constant 0 : index
    %120 = vector.load %arg12[%c80_92, %c0_93] : memref<128x512xf32, #tpu.memory_space<vmem>>, vector<8x512xf32>
    %c40_94 = arith.constant 40 : index
    %c0_95 = arith.constant 0 : index
    %121 = vector.load %arg12[%c40_94, %c0_95] : memref<128x512xf32, #tpu.memory_space<vmem>>, vector<8x512xf32>
    %122 = arith.select %18, %120, %121 : vector<8x512xi1>, vector<8x512xf32>
    %c80_96 = arith.constant 80 : index
    %c0_97 = arith.constant 0 : index
    %123 = vector.load %arg13[%c80_96, %c0_97] : memref<128x512xf32, #tpu.memory_space<vmem>>, vector<8x512xf32>
    tpu.vector_store %arg13[%c80_96, %c0_97], %122 {strides = array<i32>} : memref<128x512xf32, #tpu.memory_space<vmem>>, vector<8x512xf32>,
    %c88_98 = arith.constant 88 : index
    %c0_99 = arith.constant 0 : index
    %124 = vector.load %arg12[%c88_98, %c0_99] : memref<128x512xf32, #tpu.memory_space<vmem>>, vector<8x512xf32>
    %c32_100 = arith.constant 32 : index
    %c0_101 = arith.constant 0 : index
    %125 = vector.load %arg12[%c32_100, %c0_101] : memref<128x512xf32, #tpu.memory_space<vmem>>, vector<8x512xf32>
    %126 = arith.select %18, %124, %125 : vector<8x512xi1>, vector<8x512xf32>
    %c88_102 = arith.constant 88 : index
    %c0_103 = arith.constant 0 : index
    %127 = vector.load %arg13[%c88_102, %c0_103] : memref<128x512xf32, #tpu.memory_space<vmem>>, vector<8x512xf32>
    tpu.vector_store %arg13[%c88_102, %c0_103], %126 {strides = array<i32>} : memref<128x512xf32, #tpu.memory_space<vmem>>, vector<8x512xf32>,
    %c96_104 = arith.constant 96 : index
    %c0_105 = arith.constant 0 : index
    %128 = vector.load %arg12[%c96_104, %c0_105] : memref<128x512xf32, #tpu.memory_space<vmem>>, vector<8x512xf32>
    %c24_106 = arith.constant 24 : index
    %c0_107 = arith.constant 0 : index
    %129 = vector.load %arg12[%c24_106, %c0_107] : memref<128x512xf32, #tpu.memory_space<vmem>>, vector<8x512xf32>
    %130 = arith.select %18, %128, %129 : vector<8x512xi1>, vector<8x512xf32>
    %c96_108 = arith.constant 96 : index
    %c0_109 = arith.constant 0 : index
    %131 = vector.load %arg13[%c96_108, %c0_109] : memref<128x512xf32, #tpu.memory_space<vmem>>, vector<8x512xf32>
    tpu.vector_store %arg13[%c96_108, %c0_109], %130 {strides = array<i32>} : memref<128x512xf32, #tpu.memory_space<vmem>>, vector<8x512xf32>,
    %c104_110 = arith.constant 104 : index
    %c0_111 = arith.constant 0 : index
    %132 = vector.load %arg12[%c104_110, %c0_111] : memref<128x512xf32, #tpu.memory_space<vmem>>, vector<8x512xf32>
    %c16_112 = arith.constant 16 : index
    %c0_113 = arith.constant 0 : index
    %133 = vector.load %arg12[%c16_112, %c0_113] : memref<128x512xf32, #tpu.memory_space<vmem>>, vector<8x512xf32>
    %134 = arith.select %18, %132, %133 : vector<8x512xi1>, vector<8x512xf32>
    %c104_114 = arith.constant 104 : index
    %c0_115 = arith.constant 0 : index
    %135 = vector.load %arg13[%c104_114, %c0_115] : memref<128x512xf32, #tpu.memory_space<vmem>>, vector<8x512xf32>
    tpu.vector_store %arg13[%c104_114, %c0_115], %134 {strides = array<i32>} : memref<128x512xf32, #tpu.memory_space<vmem>>, vector<8x512xf32>,
    %c112_116 = arith.constant 112 : index
    %c0_117 = arith.constant 0 : index
    %136 = vector.load %arg12[%c112_116, %c0_117] : memref<128x512xf32, #tpu.memory_space<vmem>>, vector<8x512xf32>
    %c8_118 = arith.constant 8 : index
    %c0_119 = arith.constant 0 : index
    %137 = vector.load %arg12[%c8_118, %c0_119] : memref<128x512xf32, #tpu.memory_space<vmem>>, vector<8x512xf32>
    %138 = arith.select %18, %136, %137 : vector<8x512xi1>, vector<8x512xf32>
    %c112_120 = arith.constant 112 : index
    %c0_121 = arith.constant 0 : index
    %139 = vector.load %arg13[%c112_120, %c0_121] : memref<128x512xf32, #tpu.memory_space<vmem>>, vector<8x512xf32>
    tpu.vector_store %arg13[%c112_120, %c0_121], %138 {strides = array<i32>} : memref<128x512xf32, #tpu.memory_space<vmem>>, vector<8x512xf32>,
    %c120_122 = arith.constant 120 : index
    %c0_123 = arith.constant 0 : index
    %140 = vector.load %arg12[%c120_122, %c0_123] : memref<128x512xf32, #tpu.memory_space<vmem>>, vector<8x512xf32>
    %c0_124 = arith.constant 0 : index
    %c0_125 = arith.constant 0 : index
    %141 = vector.load %arg12[%c0_124, %c0_125] : memref<128x512xf32, #tpu.memory_space<vmem>>, vector<8x512xf32>
    %142 = arith.select %18, %140, %141 : vector<8x512xi1>, vector<8x512xf32>
    %c120_126 = arith.constant 120 : index
    %c0_127 = arith.constant 0 : index
    %143 = vector.load %arg13[%c120_126, %c0_127] : memref<128x512xf32, #tpu.memory_space<vmem>>, vector<8x512xf32>
    tpu.vector_store %arg13[%c120_126, %c0_127], %142 {strides = array<i32>} : memref<128x512xf32, #tpu.memory_space<vmem>>, vector<8x512xf32>,
    %cst_128 = arith.constant 0.000000e+00 : f32
    %144 = vector.broadcast %cst_128 : f32 to vector<8x128xf32>
    %cst_129 = arith.constant 0.000000e+00 : f32
    %145 = vector.broadcast %cst_129 : f32 to vector<8x128xf32>
    %c0_130 = arith.constant 0 : index
    %c0_131 = arith.constant 0 : index
    %146 = vector.load %arg13[%c0_130, %c0_131] : memref<128x512xf32, #tpu.memory_space<vmem>>, vector<8x512xf32>
    %147 = arith.truncf %144 : vector<8x128xf32> to vector<8x128xbf16>
    %c0_132 = arith.constant 0 : index
    %c0_133 = arith.constant 0 : index
    %148 = vector.load %arg5[%c0_132, %c0_133] : memref<128x512xbf16, #tpu.memory_space<vmem>>, vector<128x512xbf16>
    %cst_134 = arith.constant dense<0.000000e+00> : vector<8x512xf32>
    %149 = tpu.matmul %147, %148, %cst_134 {dimension_numbers = #tpu.dot_dimension_numbers<[1], [0], [0], [1], [0, 0, 1, 1], [], []>} : vector<8x128xbf16>, vector<128x512xbf16>, vector<8x512xf32> -> vector<8x512xf32>
    %150 = arith.addf %146, %149 : vector<8x512xf32>
    %151 = vector.extract_strided_slice %150 {offsets = [0, 0], sizes = [8, 384], strides = [1, 1]} : vector<8x512xf32> to vector<8x384xf32>
    %152 = arith.negf %151 : vector<8x384xf32>
    %153 = math.exp %152 : vector<8x384xf32>
    %cst_135 = arith.constant 1.000000e+00 : f32
    %154 = vector.broadcast %cst_135 : f32 to vector<8x384xf32>
    %155 = arith.addf %154, %153 : vector<8x384xf32>
    %156 = arith.divf %154, %155 : vector<8x384xf32>
    %157 = vector.extract_strided_slice %150 {offsets = [0, 384], sizes = [8, 128], strides = [1, 1]} : vector<8x512xf32> to vector<8x128xf32>
    %158 = math.tanh %157 : vector<8x128xf32>
    %159 = vector.extract_strided_slice %156 {offsets = [0, 0], sizes = [8, 128], strides = [1, 1]} : vector<8x384xf32> to vector<8x128xf32>
    %160 = vector.extract_strided_slice %156 {offsets = [0, 128], sizes = [8, 128], strides = [1, 1]} : vector<8x384xf32> to vector<8x128xf32>
    %161 = vector.extract_strided_slice %156 {offsets = [0, 256], sizes = [8, 128], strides = [1, 1]} : vector<8x384xf32> to vector<8x128xf32>
    %162 = arith.mulf %160, %145 : vector<8x128xf32>
    %163 = arith.mulf %159, %158 : vector<8x128xf32>
    %164 = arith.addf %162, %163 : vector<8x128xf32>
    %165 = math.tanh %164 : vector<8x128xf32>
    %166 = arith.mulf %161, %165 : vector<8x128xf32>
    %c0_136 = arith.constant 0 : index
    %c0_137 = arith.constant 0 : index
    %167 = vector.load %arg14[%c0_136, %c0_137] : memref<128x128xf32, #tpu.memory_space<vmem>>, vector<8x128xf32>
    tpu.vector_store %arg14[%c0_136, %c0_137], %166 {strides = array<i32>} : memref<128x128xf32, #tpu.memory_space<vmem>>, vector<8x128xf32>,
    %c8_138 = arith.constant 8 : index
    %c0_139 = arith.constant 0 : index
    %168 = vector.load %arg13[%c8_138, %c0_139] : memref<128x512xf32, #tpu.memory_space<vmem>>, vector<8x512xf32>
    %169 = arith.truncf %166 : vector<8x128xf32> to vector<8x128xbf16>
    %c0_140 = arith.constant 0 : index
    %c0_141 = arith.constant 0 : index
    %170 = vector.load %arg5[%c0_140, %c0_141] : memref<128x512xbf16, #tpu.memory_space<vmem>>, vector<128x512xbf16>
    %cst_142 = arith.constant dense<0.000000e+00> : vector<8x512xf32>
    %171 = tpu.matmul %169, %170, %cst_142 {dimension_numbers = #tpu.dot_dimension_numbers<[1], [0], [0], [1], [0, 0, 1, 1], [], []>} : vector<8x128xbf16>, vector<128x512xbf16>, vector<8x512xf32> -> vector<8x512xf32>
    %172 = arith.addf %168, %171 : vector<8x512xf32>
    %173 = vector.extract_strided_slice %172 {offsets = [0, 0], sizes = [8, 384], strides = [1, 1]} : vector<8x512xf32> to vector<8x384xf32>
    %174 = arith.negf %173 : vector<8x384xf32>
    %175 = math.exp %174 : vector<8x384xf32>
    %cst_143 = arith.constant 1.000000e+00 : f32
    %176 = vector.broadcast %cst_143 : f32 to vector<8x384xf32>
    %177 = arith.addf %176, %175 : vector<8x384xf32>
    %178 = arith.divf %176, %177 : vector<8x384xf32>
    %179 = vector.extract_strided_slice %172 {offsets = [0, 384], sizes = [8, 128], strides = [1, 1]} : vector<8x512xf32> to vector<8x128xf32>
    %180 = math.tanh %179 : vector<8x128xf32>
    %181 = vector.extract_strided_slice %178 {offsets = [0, 0], sizes = [8, 128], strides = [1, 1]} : vector<8x384xf32> to vector<8x128xf32>
    %182 = vector.extract_strided_slice %178 {offsets = [0, 128], sizes = [8, 128], strides = [1, 1]} : vector<8x384xf32> to vector<8x128xf32>
    %183 = vector.extract_strided_slice %178 {offsets = [0, 256], sizes = [8, 128], strides = [1, 1]} : vector<8x384xf32> to vector<8x128xf32>
    %184 = arith.mulf %182, %164 : vector<8x128xf32>
    %185 = arith.mulf %181, %180 : vector<8x128xf32>
    %186 = arith.addf %184, %185 : vector<8x128xf32>
    %187 = math.tanh %186 : vector<8x128xf32>
    %188 = arith.mulf %183, %187 : vector<8x128xf32>
    %c8_144 = arith.constant 8 : index
    %c0_145 = arith.constant 0 : index
    %189 = vector.load %arg14[%c8_144, %c0_145] : memref<128x128xf32, #tpu.memory_space<vmem>>, vector<8x128xf32>
    tpu.vector_store %arg14[%c8_144, %c0_145], %188 {strides = array<i32>} : memref<128x128xf32, #tpu.memory_space<vmem>>, vector<8x128xf32>,
    %c16_146 = arith.constant 16 : index
    %c0_147 = arith.constant 0 : index
    %190 = vector.load %arg13[%c16_146, %c0_147] : memref<128x512xf32, #tpu.memory_space<vmem>>, vector<8x512xf32>
    %191 = arith.truncf %188 : vector<8x128xf32> to vector<8x128xbf16>
    %c0_148 = arith.constant 0 : index
    %c0_149 = arith.constant 0 : index
    %192 = vector.load %arg5[%c0_148, %c0_149] : memref<128x512xbf16, #tpu.memory_space<vmem>>, vector<128x512xbf16>
    %cst_150 = arith.constant dense<0.000000e+00> : vector<8x512xf32>
    %193 = tpu.matmul %191, %192, %cst_150 {dimension_numbers = #tpu.dot_dimension_numbers<[1], [0], [0], [1], [0, 0, 1, 1], [], []>} : vector<8x128xbf16>, vector<128x512xbf16>, vector<8x512xf32> -> vector<8x512xf32>
    %194 = arith.addf %190, %193 : vector<8x512xf32>
    %195 = vector.extract_strided_slice %194 {offsets = [0, 0], sizes = [8, 384], strides = [1, 1]} : vector<8x512xf32> to vector<8x384xf32>
    %196 = arith.negf %195 : vector<8x384xf32>
    %197 = math.exp %196 : vector<8x384xf32>
    %cst_151 = arith.constant 1.000000e+00 : f32
    %198 = vector.broadcast %cst_151 : f32 to vector<8x384xf32>
    %199 = arith.addf %198, %197 : vector<8x384xf32>
    %200 = arith.divf %198, %199 : vector<8x384xf32>
    %201 = vector.extract_strided_slice %194 {offsets = [0, 384], sizes = [8, 128], strides = [1, 1]} : vector<8x512xf32> to vector<8x128xf32>
    %202 = math.tanh %201 : vector<8x128xf32>
    %203 = vector.extract_strided_slice %200 {offsets = [0, 0], sizes = [8, 128], strides = [1, 1]} : vector<8x384xf32> to vector<8x128xf32>
    %204 = vector.extract_strided_slice %200 {offsets = [0, 128], sizes = [8, 128], strides = [1, 1]} : vector<8x384xf32> to vector<8x128xf32>
    %205 = vector.extract_strided_slice %200 {offsets = [0, 256], sizes = [8, 128], strides = [1, 1]} : vector<8x384xf32> to vector<8x128xf32>
    %206 = arith.mulf %204, %186 : vector<8x128xf32>
    %207 = arith.mulf %203, %202 : vector<8x128xf32>
    %208 = arith.addf %206, %207 : vector<8x128xf32>
    %209 = math.tanh %208 : vector<8x128xf32>
    %210 = arith.mulf %205, %209 : vector<8x128xf32>
    %c16_152 = arith.constant 16 : index
    %c0_153 = arith.constant 0 : index
    %211 = vector.load %arg14[%c16_152, %c0_153] : memref<128x128xf32, #tpu.memory_space<vmem>>, vector<8x128xf32>
    tpu.vector_store %arg14[%c16_152, %c0_153], %210 {strides = array<i32>} : memref<128x128xf32, #tpu.memory_space<vmem>>, vector<8x128xf32>,
    %c24_154 = arith.constant 24 : index
    %c0_155 = arith.constant 0 : index
    %212 = vector.load %arg13[%c24_154, %c0_155] : memref<128x512xf32, #tpu.memory_space<vmem>>, vector<8x512xf32>
    %213 = arith.truncf %210 : vector<8x128xf32> to vector<8x128xbf16>
    %c0_156 = arith.constant 0 : index
    %c0_157 = arith.constant 0 : index
    %214 = vector.load %arg5[%c0_156, %c0_157] : memref<128x512xbf16, #tpu.memory_space<vmem>>, vector<128x512xbf16>
    %cst_158 = arith.constant dense<0.000000e+00> : vector<8x512xf32>
    %215 = tpu.matmul %213, %214, %cst_158 {dimension_numbers = #tpu.dot_dimension_numbers<[1], [0], [0], [1], [0, 0, 1, 1], [], []>} : vector<8x128xbf16>, vector<128x512xbf16>, vector<8x512xf32> -> vector<8x512xf32>
    %216 = arith.addf %212, %215 : vector<8x512xf32>
    %217 = vector.extract_strided_slice %216 {offsets = [0, 0], sizes = [8, 384], strides = [1, 1]} : vector<8x512xf32> to vector<8x384xf32>
    %218 = arith.negf %217 : vector<8x384xf32>
    %219 = math.exp %218 : vector<8x384xf32>
    %cst_159 = arith.constant 1.000000e+00 : f32
    %220 = vector.broadcast %cst_159 : f32 to vector<8x384xf32>
    %221 = arith.addf %220, %219 : vector<8x384xf32>
    %222 = arith.divf %220, %221 : vector<8x384xf32>
    %223 = vector.extract_strided_slice %216 {offsets = [0, 384], sizes = [8, 128], strides = [1, 1]} : vector<8x512xf32> to vector<8x128xf32>
    %224 = math.tanh %223 : vector<8x128xf32>
    %225 = vector.extract_strided_slice %222 {offsets = [0, 0], sizes = [8, 128], strides = [1, 1]} : vector<8x384xf32> to vector<8x128xf32>
    %226 = vector.extract_strided_slice %222 {offsets = [0, 128], sizes = [8, 128], strides = [1, 1]} : vector<8x384xf32> to vector<8x128xf32>
    %227 = vector.extract_strided_slice %222 {offsets = [0, 256], sizes = [8, 128], strides = [1, 1]} : vector<8x384xf32> to vector<8x128xf32>
    %228 = arith.mulf %226, %208 : vector<8x128xf32>
    %229 = arith.mulf %225, %224 : vector<8x128xf32>
    %230 = arith.addf %228, %229 : vector<8x128xf32>
    %231 = math.tanh %230 : vector<8x128xf32>
    %232 = arith.mulf %227, %231 : vector<8x128xf32>
    %c24_160 = arith.constant 24 : index
    %c0_161 = arith.constant 0 : index
    %233 = vector.load %arg14[%c24_160, %c0_161] : memref<128x128xf32, #tpu.memory_space<vmem>>, vector<8x128xf32>
    tpu.vector_store %arg14[%c24_160, %c0_161], %232 {strides = array<i32>} : memref<128x128xf32, #tpu.memory_space<vmem>>, vector<8x128xf32>,
    %c32_162 = arith.constant 32 : index
    %c0_163 = arith.constant 0 : index
    %234 = vector.load %arg13[%c32_162, %c0_163] : memref<128x512xf32, #tpu.memory_space<vmem>>, vector<8x512xf32>
    %235 = arith.truncf %232 : vector<8x128xf32> to vector<8x128xbf16>
    %c0_164 = arith.constant 0 : index
    %c0_165 = arith.constant 0 : index
    %236 = vector.load %arg5[%c0_164, %c0_165] : memref<128x512xbf16, #tpu.memory_space<vmem>>, vector<128x512xbf16>
    %cst_166 = arith.constant dense<0.000000e+00> : vector<8x512xf32>
    %237 = tpu.matmul %235, %236, %cst_166 {dimension_numbers = #tpu.dot_dimension_numbers<[1], [0], [0], [1], [0, 0, 1, 1], [], []>} : vector<8x128xbf16>, vector<128x512xbf16>, vector<8x512xf32> -> vector<8x512xf32>
    %238 = arith.addf %234, %237 : vector<8x512xf32>
    %239 = vector.extract_strided_slice %238 {offsets = [0, 0], sizes = [8, 384], strides = [1, 1]} : vector<8x512xf32> to vector<8x384xf32>
    %240 = arith.negf %239 : vector<8x384xf32>
    %241 = math.exp %240 : vector<8x384xf32>
    %cst_167 = arith.constant 1.000000e+00 : f32
    %242 = vector.broadcast %cst_167 : f32 to vector<8x384xf32>
    %243 = arith.addf %242, %241 : vector<8x384xf32>
    %244 = arith.divf %242, %243 : vector<8x384xf32>
    %245 = vector.extract_strided_slice %238 {offsets = [0, 384], sizes = [8, 128], strides = [1, 1]} : vector<8x512xf32> to vector<8x128xf32>
    %246 = math.tanh %245 : vector<8x128xf32>
    %247 = vector.extract_strided_slice %244 {offsets = [0, 0], sizes = [8, 128], strides = [1, 1]} : vector<8x384xf32> to vector<8x128xf32>
    %248 = vector.extract_strided_slice %244 {offsets = [0, 128], sizes = [8, 128], strides = [1, 1]} : vector<8x384xf32> to vector<8x128xf32>
    %249 = vector.extract_strided_slice %244 {offsets = [0, 256], sizes = [8, 128], strides = [1, 1]} : vector<8x384xf32> to vector<8x128xf32>
    %250 = arith.mulf %248, %230 : vector<8x128xf32>
    %251 = arith.mulf %247, %246 : vector<8x128xf32>
    %252 = arith.addf %250, %251 : vector<8x128xf32>
    %253 = math.tanh %252 : vector<8x128xf32>
    %254 = arith.mulf %249, %253 : vector<8x128xf32>
    %c32_168 = arith.constant 32 : index
    %c0_169 = arith.constant 0 : index
    %255 = vector.load %arg14[%c32_168, %c0_169] : memref<128x128xf32, #tpu.memory_space<vmem>>, vector<8x128xf32>
    tpu.vector_store %arg14[%c32_168, %c0_169], %254 {strides = array<i32>} : memref<128x128xf32, #tpu.memory_space<vmem>>, vector<8x128xf32>,
    %c40_170 = arith.constant 40 : index
    %c0_171 = arith.constant 0 : index
    %256 = vector.load %arg13[%c40_170, %c0_171] : memref<128x512xf32, #tpu.memory_space<vmem>>, vector<8x512xf32>
    %257 = arith.truncf %254 : vector<8x128xf32> to vector<8x128xbf16>
    %c0_172 = arith.constant 0 : index
    %c0_173 = arith.constant 0 : index
    %258 = vector.load %arg5[%c0_172, %c0_173] : memref<128x512xbf16, #tpu.memory_space<vmem>>, vector<128x512xbf16>
    %cst_174 = arith.constant dense<0.000000e+00> : vector<8x512xf32>
    %259 = tpu.matmul %257, %258, %cst_174 {dimension_numbers = #tpu.dot_dimension_numbers<[1], [0], [0], [1], [0, 0, 1, 1], [], []>} : vector<8x128xbf16>, vector<128x512xbf16>, vector<8x512xf32> -> vector<8x512xf32>
    %260 = arith.addf %256, %259 : vector<8x512xf32>
    %261 = vector.extract_strided_slice %260 {offsets = [0, 0], sizes = [8, 384], strides = [1, 1]} : vector<8x512xf32> to vector<8x384xf32>
    %262 = arith.negf %261 : vector<8x384xf32>
    %263 = math.exp %262 : vector<8x384xf32>
    %cst_175 = arith.constant 1.000000e+00 : f32
    %264 = vector.broadcast %cst_175 : f32 to vector<8x384xf32>
    %265 = arith.addf %264, %263 : vector<8x384xf32>
    %266 = arith.divf %264, %265 : vector<8x384xf32>
    %267 = vector.extract_strided_slice %260 {offsets = [0, 384], sizes = [8, 128], strides = [1, 1]} : vector<8x512xf32> to vector<8x128xf32>
    %268 = math.tanh %267 : vector<8x128xf32>
    %269 = vector.extract_strided_slice %266 {offsets = [0, 0], sizes = [8, 128], strides = [1, 1]} : vector<8x384xf32> to vector<8x128xf32>
    %270 = vector.extract_strided_slice %266 {offsets = [0, 128], sizes = [8, 128], strides = [1, 1]} : vector<8x384xf32> to vector<8x128xf32>
    %271 = vector.extract_strided_slice %266 {offsets = [0, 256], sizes = [8, 128], strides = [1, 1]} : vector<8x384xf32> to vector<8x128xf32>
    %272 = arith.mulf %270, %252 : vector<8x128xf32>
    %273 = arith.mulf %269, %268 : vector<8x128xf32>
    %274 = arith.addf %272, %273 : vector<8x128xf32>
    %275 = math.tanh %274 : vector<8x128xf32>
    %276 = arith.mulf %271, %275 : vector<8x128xf32>
    %c40_176 = arith.constant 40 : index
    %c0_177 = arith.constant 0 : index
    %277 = vector.load %arg14[%c40_176, %c0_177] : memref<128x128xf32, #tpu.memory_space<vmem>>, vector<8x128xf32>
    tpu.vector_store %arg14[%c40_176, %c0_177], %276 {strides = array<i32>} : memref<128x128xf32, #tpu.memory_space<vmem>>, vector<8x128xf32>,
    %c48_178 = arith.constant 48 : index
    %c0_179 = arith.constant 0 : index
    %278 = vector.load %arg13[%c48_178, %c0_179] : memref<128x512xf32, #tpu.memory_space<vmem>>, vector<8x512xf32>
    %279 = arith.truncf %276 : vector<8x128xf32> to vector<8x128xbf16>
    %c0_180 = arith.constant 0 : index
    %c0_181 = arith.constant 0 : index
    %280 = vector.load %arg5[%c0_180, %c0_181] : memref<128x512xbf16, #tpu.memory_space<vmem>>, vector<128x512xbf16>
    %cst_182 = arith.constant dense<0.000000e+00> : vector<8x512xf32>
    %281 = tpu.matmul %279, %280, %cst_182 {dimension_numbers = #tpu.dot_dimension_numbers<[1], [0], [0], [1], [0, 0, 1, 1], [], []>} : vector<8x128xbf16>, vector<128x512xbf16>, vector<8x512xf32> -> vector<8x512xf32>
    %282 = arith.addf %278, %281 : vector<8x512xf32>
    %283 = vector.extract_strided_slice %282 {offsets = [0, 0], sizes = [8, 384], strides = [1, 1]} : vector<8x512xf32> to vector<8x384xf32>
    %284 = arith.negf %283 : vector<8x384xf32>
    %285 = math.exp %284 : vector<8x384xf32>
    %cst_183 = arith.constant 1.000000e+00 : f32
    %286 = vector.broadcast %cst_183 : f32 to vector<8x384xf32>
    %287 = arith.addf %286, %285 : vector<8x384xf32>
    %288 = arith.divf %286, %287 : vector<8x384xf32>
    %289 = vector.extract_strided_slice %282 {offsets = [0, 384], sizes = [8, 128], strides = [1, 1]} : vector<8x512xf32> to vector<8x128xf32>
    %290 = math.tanh %289 : vector<8x128xf32>
    %291 = vector.extract_strided_slice %288 {offsets = [0, 0], sizes = [8, 128], strides = [1, 1]} : vector<8x384xf32> to vector<8x128xf32>
    %292 = vector.extract_strided_slice %288 {offsets = [0, 128], sizes = [8, 128], strides = [1, 1]} : vector<8x384xf32> to vector<8x128xf32>
    %293 = vector.extract_strided_slice %288 {offsets = [0, 256], sizes = [8, 128], strides = [1, 1]} : vector<8x384xf32> to vector<8x128xf32>
    %294 = arith.mulf %292, %274 : vector<8x128xf32>
    %295 = arith.mulf %291, %290 : vector<8x128xf32>
    %296 = arith.addf %294, %295 : vector<8x128xf32>
    %297 = math.tanh %296 : vector<8x128xf32>
    %298 = arith.mulf %293, %297 : vector<8x128xf32>
    %c48_184 = arith.constant 48 : index
    %c0_185 = arith.constant 0 : index
    %299 = vector.load %arg14[%c48_184, %c0_185] : memref<128x128xf32, #tpu.memory_space<vmem>>, vector<8x128xf32>
    tpu.vector_store %arg14[%c48_184, %c0_185], %298 {strides = array<i32>} : memref<128x128xf32, #tpu.memory_space<vmem>>, vector<8x128xf32>,
    %c56_186 = arith.constant 56 : index
    %c0_187 = arith.constant 0 : index
    %300 = vector.load %arg13[%c56_186, %c0_187] : memref<128x512xf32, #tpu.memory_space<vmem>>, vector<8x512xf32>
    %301 = arith.truncf %298 : vector<8x128xf32> to vector<8x128xbf16>
    %c0_188 = arith.constant 0 : index
    %c0_189 = arith.constant 0 : index
    %302 = vector.load %arg5[%c0_188, %c0_189] : memref<128x512xbf16, #tpu.memory_space<vmem>>, vector<128x512xbf16>
    %cst_190 = arith.constant dense<0.000000e+00> : vector<8x512xf32>
    %303 = tpu.matmul %301, %302, %cst_190 {dimension_numbers = #tpu.dot_dimension_numbers<[1], [0], [0], [1], [0, 0, 1, 1], [], []>} : vector<8x128xbf16>, vector<128x512xbf16>, vector<8x512xf32> -> vector<8x512xf32>
    %304 = arith.addf %300, %303 : vector<8x512xf32>
    %305 = vector.extract_strided_slice %304 {offsets = [0, 0], sizes = [8, 384], strides = [1, 1]} : vector<8x512xf32> to vector<8x384xf32>
    %306 = arith.negf %305 : vector<8x384xf32>
    %307 = math.exp %306 : vector<8x384xf32>
    %cst_191 = arith.constant 1.000000e+00 : f32
    %308 = vector.broadcast %cst_191 : f32 to vector<8x384xf32>
    %309 = arith.addf %308, %307 : vector<8x384xf32>
    %310 = arith.divf %308, %309 : vector<8x384xf32>
    %311 = vector.extract_strided_slice %304 {offsets = [0, 384], sizes = [8, 128], strides = [1, 1]} : vector<8x512xf32> to vector<8x128xf32>
    %312 = math.tanh %311 : vector<8x128xf32>
    %313 = vector.extract_strided_slice %310 {offsets = [0, 0], sizes = [8, 128], strides = [1, 1]} : vector<8x384xf32> to vector<8x128xf32>
    %314 = vector.extract_strided_slice %310 {offsets = [0, 128], sizes = [8, 128], strides = [1, 1]} : vector<8x384xf32> to vector<8x128xf32>
    %315 = vector.extract_strided_slice %310 {offsets = [0, 256], sizes = [8, 128], strides = [1, 1]} : vector<8x384xf32> to vector<8x128xf32>
    %316 = arith.mulf %314, %296 : vector<8x128xf32>
    %317 = arith.mulf %313, %312 : vector<8x128xf32>
    %318 = arith.addf %316, %317 : vector<8x128xf32>
    %319 = math.tanh %318 : vector<8x128xf32>
    %320 = arith.mulf %315, %319 : vector<8x128xf32>
    %c56_192 = arith.constant 56 : index
    %c0_193 = arith.constant 0 : index
    %321 = vector.load %arg14[%c56_192, %c0_193] : memref<128x128xf32, #tpu.memory_space<vmem>>, vector<8x128xf32>
    tpu.vector_store %arg14[%c56_192, %c0_193], %320 {strides = array<i32>} : memref<128x128xf32, #tpu.memory_space<vmem>>, vector<8x128xf32>,
    %c64_194 = arith.constant 64 : index
    %c0_195 = arith.constant 0 : index
    %322 = vector.load %arg13[%c64_194, %c0_195] : memref<128x512xf32, #tpu.memory_space<vmem>>, vector<8x512xf32>
    %323 = arith.truncf %320 : vector<8x128xf32> to vector<8x128xbf16>
    %c0_196 = arith.constant 0 : index
    %c0_197 = arith.constant 0 : index
    %324 = vector.load %arg5[%c0_196, %c0_197] : memref<128x512xbf16, #tpu.memory_space<vmem>>, vector<128x512xbf16>
    %cst_198 = arith.constant dense<0.000000e+00> : vector<8x512xf32>
    %325 = tpu.matmul %323, %324, %cst_198 {dimension_numbers = #tpu.dot_dimension_numbers<[1], [0], [0], [1], [0, 0, 1, 1], [], []>} : vector<8x128xbf16>, vector<128x512xbf16>, vector<8x512xf32> -> vector<8x512xf32>
    %326 = arith.addf %322, %325 : vector<8x512xf32>
    %327 = vector.extract_strided_slice %326 {offsets = [0, 0], sizes = [8, 384], strides = [1, 1]} : vector<8x512xf32> to vector<8x384xf32>
    %328 = arith.negf %327 : vector<8x384xf32>
    %329 = math.exp %328 : vector<8x384xf32>
    %cst_199 = arith.constant 1.000000e+00 : f32
    %330 = vector.broadcast %cst_199 : f32 to vector<8x384xf32>
    %331 = arith.addf %330, %329 : vector<8x384xf32>
    %332 = arith.divf %330, %331 : vector<8x384xf32>
    %333 = vector.extract_strided_slice %326 {offsets = [0, 384], sizes = [8, 128], strides = [1, 1]} : vector<8x512xf32> to vector<8x128xf32>
    %334 = math.tanh %333 : vector<8x128xf32>
    %335 = vector.extract_strided_slice %332 {offsets = [0, 0], sizes = [8, 128], strides = [1, 1]} : vector<8x384xf32> to vector<8x128xf32>
    %336 = vector.extract_strided_slice %332 {offsets = [0, 128], sizes = [8, 128], strides = [1, 1]} : vector<8x384xf32> to vector<8x128xf32>
    %337 = vector.extract_strided_slice %332 {offsets = [0, 256], sizes = [8, 128], strides = [1, 1]} : vector<8x384xf32> to vector<8x128xf32>
    %338 = arith.mulf %336, %318 : vector<8x128xf32>
    %339 = arith.mulf %335, %334 : vector<8x128xf32>
    %340 = arith.addf %338, %339 : vector<8x128xf32>
    %341 = math.tanh %340 : vector<8x128xf32>
    %342 = arith.mulf %337, %341 : vector<8x128xf32>
    %c64_200 = arith.constant 64 : index
    %c0_201 = arith.constant 0 : index
    %343 = vector.load %arg14[%c64_200, %c0_201] : memref<128x128xf32, #tpu.memory_space<vmem>>, vector<8x128xf32>
    tpu.vector_store %arg14[%c64_200, %c0_201], %342 {strides = array<i32>} : memref<128x128xf32, #tpu.memory_space<vmem>>, vector<8x128xf32>,
    %c72_202 = arith.constant 72 : index
    %c0_203 = arith.constant 0 : index
    %344 = vector.load %arg13[%c72_202, %c0_203] : memref<128x512xf32, #tpu.memory_space<vmem>>, vector<8x512xf32>
    %345 = arith.truncf %342 : vector<8x128xf32> to vector<8x128xbf16>
    %c0_204 = arith.constant 0 : index
    %c0_205 = arith.constant 0 : index
    %346 = vector.load %arg5[%c0_204, %c0_205] : memref<128x512xbf16, #tpu.memory_space<vmem>>, vector<128x512xbf16>
    %cst_206 = arith.constant dense<0.000000e+00> : vector<8x512xf32>
    %347 = tpu.matmul %345, %346, %cst_206 {dimension_numbers = #tpu.dot_dimension_numbers<[1], [0], [0], [1], [0, 0, 1, 1], [], []>} : vector<8x128xbf16>, vector<128x512xbf16>, vector<8x512xf32> -> vector<8x512xf32>
    %348 = arith.addf %344, %347 : vector<8x512xf32>
    %349 = vector.extract_strided_slice %348 {offsets = [0, 0], sizes = [8, 384], strides = [1, 1]} : vector<8x512xf32> to vector<8x384xf32>
    %350 = arith.negf %349 : vector<8x384xf32>
    %351 = math.exp %350 : vector<8x384xf32>
    %cst_207 = arith.constant 1.000000e+00 : f32
    %352 = vector.broadcast %cst_207 : f32 to vector<8x384xf32>
    %353 = arith.addf %352, %351 : vector<8x384xf32>
    %354 = arith.divf %352, %353 : vector<8x384xf32>
    %355 = vector.extract_strided_slice %348 {offsets = [0, 384], sizes = [8, 128], strides = [1, 1]} : vector<8x512xf32> to vector<8x128xf32>
    %356 = math.tanh %355 : vector<8x128xf32>
    %357 = vector.extract_strided_slice %354 {offsets = [0, 0], sizes = [8, 128], strides = [1, 1]} : vector<8x384xf32> to vector<8x128xf32>
    %358 = vector.extract_strided_slice %354 {offsets = [0, 128], sizes = [8, 128], strides = [1, 1]} : vector<8x384xf32> to vector<8x128xf32>
    %359 = vector.extract_strided_slice %354 {offsets = [0, 256], sizes = [8, 128], strides = [1, 1]} : vector<8x384xf32> to vector<8x128xf32>
    %360 = arith.mulf %358, %340 : vector<8x128xf32>
    %361 = arith.mulf %357, %356 : vector<8x128xf32>
    %362 = arith.addf %360, %361 : vector<8x128xf32>
    %363 = math.tanh %362 : vector<8x128xf32>
    %364 = arith.mulf %359, %363 : vector<8x128xf32>
    %c72_208 = arith.constant 72 : index
    %c0_209 = arith.constant 0 : index
    %365 = vector.load %arg14[%c72_208, %c0_209] : memref<128x128xf32, #tpu.memory_space<vmem>>, vector<8x128xf32>
    tpu.vector_store %arg14[%c72_208, %c0_209], %364 {strides = array<i32>} : memref<128x128xf32, #tpu.memory_space<vmem>>, vector<8x128xf32>,
    %c80_210 = arith.constant 80 : index
    %c0_211 = arith.constant 0 : index
    %366 = vector.load %arg13[%c80_210, %c0_211] : memref<128x512xf32, #tpu.memory_space<vmem>>, vector<8x512xf32>
    %367 = arith.truncf %364 : vector<8x128xf32> to vector<8x128xbf16>
    %c0_212 = arith.constant 0 : index
    %c0_213 = arith.constant 0 : index
    %368 = vector.load %arg5[%c0_212, %c0_213] : memref<128x512xbf16, #tpu.memory_space<vmem>>, vector<128x512xbf16>
    %cst_214 = arith.constant dense<0.000000e+00> : vector<8x512xf32>
    %369 = tpu.matmul %367, %368, %cst_214 {dimension_numbers = #tpu.dot_dimension_numbers<[1], [0], [0], [1], [0, 0, 1, 1], [], []>} : vector<8x128xbf16>, vector<128x512xbf16>, vector<8x512xf32> -> vector<8x512xf32>
    %370 = arith.addf %366, %369 : vector<8x512xf32>
    %371 = vector.extract_strided_slice %370 {offsets = [0, 0], sizes = [8, 384], strides = [1, 1]} : vector<8x512xf32> to vector<8x384xf32>
    %372 = arith.negf %371 : vector<8x384xf32>
    %373 = math.exp %372 : vector<8x384xf32>
    %cst_215 = arith.constant 1.000000e+00 : f32
    %374 = vector.broadcast %cst_215 : f32 to vector<8x384xf32>
    %375 = arith.addf %374, %373 : vector<8x384xf32>
    %376 = arith.divf %374, %375 : vector<8x384xf32>
    %377 = vector.extract_strided_slice %370 {offsets = [0, 384], sizes = [8, 128], strides = [1, 1]} : vector<8x512xf32> to vector<8x128xf32>
    %378 = math.tanh %377 : vector<8x128xf32>
    %379 = vector.extract_strided_slice %376 {offsets = [0, 0], sizes = [8, 128], strides = [1, 1]} : vector<8x384xf32> to vector<8x128xf32>
    %380 = vector.extract_strided_slice %376 {offsets = [0, 128], sizes = [8, 128], strides = [1, 1]} : vector<8x384xf32> to vector<8x128xf32>
    %381 = vector.extract_strided_slice %376 {offsets = [0, 256], sizes = [8, 128], strides = [1, 1]} : vector<8x384xf32> to vector<8x128xf32>
    %382 = arith.mulf %380, %362 : vector<8x128xf32>
    %383 = arith.mulf %379, %378 : vector<8x128xf32>
    %384 = arith.addf %382, %383 : vector<8x128xf32>
    %385 = math.tanh %384 : vector<8x128xf32>
    %386 = arith.mulf %381, %385 : vector<8x128xf32>
    %c80_216 = arith.constant 80 : index
    %c0_217 = arith.constant 0 : index
    %387 = vector.load %arg14[%c80_216, %c0_217] : memref<128x128xf32, #tpu.memory_space<vmem>>, vector<8x128xf32>
    tpu.vector_store %arg14[%c80_216, %c0_217], %386 {strides = array<i32>} : memref<128x128xf32, #tpu.memory_space<vmem>>, vector<8x128xf32>,
    %c88_218 = arith.constant 88 : index
    %c0_219 = arith.constant 0 : index
    %388 = vector.load %arg13[%c88_218, %c0_219] : memref<128x512xf32, #tpu.memory_space<vmem>>, vector<8x512xf32>
    %389 = arith.truncf %386 : vector<8x128xf32> to vector<8x128xbf16>
    %c0_220 = arith.constant 0 : index
    %c0_221 = arith.constant 0 : index
    %390 = vector.load %arg5[%c0_220, %c0_221] : memref<128x512xbf16, #tpu.memory_space<vmem>>, vector<128x512xbf16>
    %cst_222 = arith.constant dense<0.000000e+00> : vector<8x512xf32>
    %391 = tpu.matmul %389, %390, %cst_222 {dimension_numbers = #tpu.dot_dimension_numbers<[1], [0], [0], [1], [0, 0, 1, 1], [], []>} : vector<8x128xbf16>, vector<128x512xbf16>, vector<8x512xf32> -> vector<8x512xf32>
    %392 = arith.addf %388, %391 : vector<8x512xf32>
    %393 = vector.extract_strided_slice %392 {offsets = [0, 0], sizes = [8, 384], strides = [1, 1]} : vector<8x512xf32> to vector<8x384xf32>
    %394 = arith.negf %393 : vector<8x384xf32>
    %395 = math.exp %394 : vector<8x384xf32>
    %cst_223 = arith.constant 1.000000e+00 : f32
    %396 = vector.broadcast %cst_223 : f32 to vector<8x384xf32>
    %397 = arith.addf %396, %395 : vector<8x384xf32>
    %398 = arith.divf %396, %397 : vector<8x384xf32>
    %399 = vector.extract_strided_slice %392 {offsets = [0, 384], sizes = [8, 128], strides = [1, 1]} : vector<8x512xf32> to vector<8x128xf32>
    %400 = math.tanh %399 : vector<8x128xf32>
    %401 = vector.extract_strided_slice %398 {offsets = [0, 0], sizes = [8, 128], strides = [1, 1]} : vector<8x384xf32> to vector<8x128xf32>
    %402 = vector.extract_strided_slice %398 {offsets = [0, 128], sizes = [8, 128], strides = [1, 1]} : vector<8x384xf32> to vector<8x128xf32>
    %403 = vector.extract_strided_slice %398 {offsets = [0, 256], sizes = [8, 128], strides = [1, 1]} : vector<8x384xf32> to vector<8x128xf32>
    %404 = arith.mulf %402, %384 : vector<8x128xf32>
    %405 = arith.mulf %401, %400 : vector<8x128xf32>
    %406 = arith.addf %404, %405 : vector<8x128xf32>
    %407 = math.tanh %406 : vector<8x128xf32>
    %408 = arith.mulf %403, %407 : vector<8x128xf32>
    %c88_224 = arith.constant 88 : index
    %c0_225 = arith.constant 0 : index
    %409 = vector.load %arg14[%c88_224, %c0_225] : memref<128x128xf32, #tpu.memory_space<vmem>>, vector<8x128xf32>
    tpu.vector_store %arg14[%c88_224, %c0_225], %408 {strides = array<i32>} : memref<128x128xf32, #tpu.memory_space<vmem>>, vector<8x128xf32>,
    %c96_226 = arith.constant 96 : index
    %c0_227 = arith.constant 0 : index
    %410 = vector.load %arg13[%c96_226, %c0_227] : memref<128x512xf32, #tpu.memory_space<vmem>>, vector<8x512xf32>
    %411 = arith.truncf %408 : vector<8x128xf32> to vector<8x128xbf16>
    %c0_228 = arith.constant 0 : index
    %c0_229 = arith.constant 0 : index
    %412 = vector.load %arg5[%c0_228, %c0_229] : memref<128x512xbf16, #tpu.memory_space<vmem>>, vector<128x512xbf16>
    %cst_230 = arith.constant dense<0.000000e+00> : vector<8x512xf32>
    %413 = tpu.matmul %411, %412, %cst_230 {dimension_numbers = #tpu.dot_dimension_numbers<[1], [0], [0], [1], [0, 0, 1, 1], [], []>} : vector<8x128xbf16>, vector<128x512xbf16>, vector<8x512xf32> -> vector<8x512xf32>
    %414 = arith.addf %410, %413 : vector<8x512xf32>
    %415 = vector.extract_strided_slice %414 {offsets = [0, 0], sizes = [8, 384], strides = [1, 1]} : vector<8x512xf32> to vector<8x384xf32>
    %416 = arith.negf %415 : vector<8x384xf32>
    %417 = math.exp %416 : vector<8x384xf32>
    %cst_231 = arith.constant 1.000000e+00 : f32
    %418 = vector.broadcast %cst_231 : f32 to vector<8x384xf32>
    %419 = arith.addf %418, %417 : vector<8x384xf32>
    %420 = arith.divf %418, %419 : vector<8x384xf32>
    %421 = vector.extract_strided_slice %414 {offsets = [0, 384], sizes = [8, 128], strides = [1, 1]} : vector<8x512xf32> to vector<8x128xf32>
    %422 = math.tanh %421 : vector<8x128xf32>
    %423 = vector.extract_strided_slice %420 {offsets = [0, 0], sizes = [8, 128], strides = [1, 1]} : vector<8x384xf32> to vector<8x128xf32>
    %424 = vector.extract_strided_slice %420 {offsets = [0, 128], sizes = [8, 128], strides = [1, 1]} : vector<8x384xf32> to vector<8x128xf32>
    %425 = vector.extract_strided_slice %420 {offsets = [0, 256], sizes = [8, 128], strides = [1, 1]} : vector<8x384xf32> to vector<8x128xf32>
    %426 = arith.mulf %424, %406 : vector<8x128xf32>
    %427 = arith.mulf %423, %422 : vector<8x128xf32>
    %428 = arith.addf %426, %427 : vector<8x128xf32>
    %429 = math.tanh %428 : vector<8x128xf32>
    %430 = arith.mulf %425, %429 : vector<8x128xf32>
    %c96_232 = arith.constant 96 : index
    %c0_233 = arith.constant 0 : index
    %431 = vector.load %arg14[%c96_232, %c0_233] : memref<128x128xf32, #tpu.memory_space<vmem>>, vector<8x128xf32>
    tpu.vector_store %arg14[%c96_232, %c0_233], %430 {strides = array<i32>} : memref<128x128xf32, #tpu.memory_space<vmem>>, vector<8x128xf32>,
    %c104_234 = arith.constant 104 : index
    %c0_235 = arith.constant 0 : index
    %432 = vector.load %arg13[%c104_234, %c0_235] : memref<128x512xf32, #tpu.memory_space<vmem>>, vector<8x512xf32>
    %433 = arith.truncf %430 : vector<8x128xf32> to vector<8x128xbf16>
    %c0_236 = arith.constant 0 : index
    %c0_237 = arith.constant 0 : index
    %434 = vector.load %arg5[%c0_236, %c0_237] : memref<128x512xbf16, #tpu.memory_space<vmem>>, vector<128x512xbf16>
    %cst_238 = arith.constant dense<0.000000e+00> : vector<8x512xf32>
    %435 = tpu.matmul %433, %434, %cst_238 {dimension_numbers = #tpu.dot_dimension_numbers<[1], [0], [0], [1], [0, 0, 1, 1], [], []>} : vector<8x128xbf16>, vector<128x512xbf16>, vector<8x512xf32> -> vector<8x512xf32>
    %436 = arith.addf %432, %435 : vector<8x512xf32>
    %437 = vector.extract_strided_slice %436 {offsets = [0, 0], sizes = [8, 384], strides = [1, 1]} : vector<8x512xf32> to vector<8x384xf32>
    %438 = arith.negf %437 : vector<8x384xf32>
    %439 = math.exp %438 : vector<8x384xf32>
    %cst_239 = arith.constant 1.000000e+00 : f32
    %440 = vector.broadcast %cst_239 : f32 to vector<8x384xf32>
    %441 = arith.addf %440, %439 : vector<8x384xf32>
    %442 = arith.divf %440, %441 : vector<8x384xf32>
    %443 = vector.extract_strided_slice %436 {offsets = [0, 384], sizes = [8, 128], strides = [1, 1]} : vector<8x512xf32> to vector<8x128xf32>
    %444 = math.tanh %443 : vector<8x128xf32>
    %445 = vector.extract_strided_slice %442 {offsets = [0, 0], sizes = [8, 128], strides = [1, 1]} : vector<8x384xf32> to vector<8x128xf32>
    %446 = vector.extract_strided_slice %442 {offsets = [0, 128], sizes = [8, 128], strides = [1, 1]} : vector<8x384xf32> to vector<8x128xf32>
    %447 = vector.extract_strided_slice %442 {offsets = [0, 256], sizes = [8, 128], strides = [1, 1]} : vector<8x384xf32> to vector<8x128xf32>
    %448 = arith.mulf %446, %428 : vector<8x128xf32>
    %449 = arith.mulf %445, %444 : vector<8x128xf32>
    %450 = arith.addf %448, %449 : vector<8x128xf32>
    %451 = math.tanh %450 : vector<8x128xf32>
    %452 = arith.mulf %447, %451 : vector<8x128xf32>
    %c104_240 = arith.constant 104 : index
    %c0_241 = arith.constant 0 : index
    %453 = vector.load %arg14[%c104_240, %c0_241] : memref<128x128xf32, #tpu.memory_space<vmem>>, vector<8x128xf32>
    tpu.vector_store %arg14[%c104_240, %c0_241], %452 {strides = array<i32>} : memref<128x128xf32, #tpu.memory_space<vmem>>, vector<8x128xf32>,
    %c112_242 = arith.constant 112 : index
    %c0_243 = arith.constant 0 : index
    %454 = vector.load %arg13[%c112_242, %c0_243] : memref<128x512xf32, #tpu.memory_space<vmem>>, vector<8x512xf32>
    %455 = arith.truncf %452 : vector<8x128xf32> to vector<8x128xbf16>
    %c0_244 = arith.constant 0 : index
    %c0_245 = arith.constant 0 : index
    %456 = vector.load %arg5[%c0_244, %c0_245] : memref<128x512xbf16, #tpu.memory_space<vmem>>, vector<128x512xbf16>
    %cst_246 = arith.constant dense<0.000000e+00> : vector<8x512xf32>
    %457 = tpu.matmul %455, %456, %cst_246 {dimension_numbers = #tpu.dot_dimension_numbers<[1], [0], [0], [1], [0, 0, 1, 1], [], []>} : vector<8x128xbf16>, vector<128x512xbf16>, vector<8x512xf32> -> vector<8x512xf32>
    %458 = arith.addf %454, %457 : vector<8x512xf32>
    %459 = vector.extract_strided_slice %458 {offsets = [0, 0], sizes = [8, 384], strides = [1, 1]} : vector<8x512xf32> to vector<8x384xf32>
    %460 = arith.negf %459 : vector<8x384xf32>
    %461 = math.exp %460 : vector<8x384xf32>
    %cst_247 = arith.constant 1.000000e+00 : f32
    %462 = vector.broadcast %cst_247 : f32 to vector<8x384xf32>
    %463 = arith.addf %462, %461 : vector<8x384xf32>
    %464 = arith.divf %462, %463 : vector<8x384xf32>
    %465 = vector.extract_strided_slice %458 {offsets = [0, 384], sizes = [8, 128], strides = [1, 1]} : vector<8x512xf32> to vector<8x128xf32>
    %466 = math.tanh %465 : vector<8x128xf32>
    %467 = vector.extract_strided_slice %464 {offsets = [0, 0], sizes = [8, 128], strides = [1, 1]} : vector<8x384xf32> to vector<8x128xf32>
    %468 = vector.extract_strided_slice %464 {offsets = [0, 128], sizes = [8, 128], strides = [1, 1]} : vector<8x384xf32> to vector<8x128xf32>
    %469 = vector.extract_strided_slice %464 {offsets = [0, 256], sizes = [8, 128], strides = [1, 1]} : vector<8x384xf32> to vector<8x128xf32>
    %470 = arith.mulf %468, %450 : vector<8x128xf32>
    %471 = arith.mulf %467, %466 : vector<8x128xf32>
    %472 = arith.addf %470, %471 : vector<8x128xf32>
    %473 = math.tanh %472 : vector<8x128xf32>
    %474 = arith.mulf %469, %473 : vector<8x128xf32>
    %c112_248 = arith.constant 112 : index
    %c0_249 = arith.constant 0 : index
    %475 = vector.load %arg14[%c112_248, %c0_249] : memref<128x128xf32, #tpu.memory_space<vmem>>, vector<8x128xf32>
    tpu.vector_store %arg14[%c112_248, %c0_249], %474 {strides = array<i32>} : memref<128x128xf32, #tpu.memory_space<vmem>>, vector<8x128xf32>,
    %c120_250 = arith.constant 120 : index
    %c0_251 = arith.constant 0 : index
    %476 = vector.load %arg13[%c120_250, %c0_251] : memref<128x512xf32, #tpu.memory_space<vmem>>, vector<8x512xf32>
    %477 = arith.truncf %474 : vector<8x128xf32> to vector<8x128xbf16>
    %c0_252 = arith.constant 0 : index
    %c0_253 = arith.constant 0 : index
    %478 = vector.load %arg5[%c0_252, %c0_253] : memref<128x512xbf16, #tpu.memory_space<vmem>>, vector<128x512xbf16>
    %cst_254 = arith.constant dense<0.000000e+00> : vector<8x512xf32>
    %479 = tpu.matmul %477, %478, %cst_254 {dimension_numbers = #tpu.dot_dimension_numbers<[1], [0], [0], [1], [0, 0, 1, 1], [], []>} : vector<8x128xbf16>, vector<128x512xbf16>, vector<8x512xf32> -> vector<8x512xf32>
    %480 = arith.addf %476, %479 : vector<8x512xf32>
    %481 = vector.extract_strided_slice %480 {offsets = [0, 0], sizes = [8, 384], strides = [1, 1]} : vector<8x512xf32> to vector<8x384xf32>
    %482 = arith.negf %481 : vector<8x384xf32>
    %483 = math.exp %482 : vector<8x384xf32>
    %cst_255 = arith.constant 1.000000e+00 : f32
    %484 = vector.broadcast %cst_255 : f32 to vector<8x384xf32>
    %485 = arith.addf %484, %483 : vector<8x384xf32>
    %486 = arith.divf %484, %485 : vector<8x384xf32>
    %487 = vector.extract_strided_slice %480 {offsets = [0, 384], sizes = [8, 128], strides = [1, 1]} : vector<8x512xf32> to vector<8x128xf32>
    %488 = math.tanh %487 : vector<8x128xf32>
    %489 = vector.extract_strided_slice %486 {offsets = [0, 0], sizes = [8, 128], strides = [1, 1]} : vector<8x384xf32> to vector<8x128xf32>
    %490 = vector.extract_strided_slice %486 {offsets = [0, 128], sizes = [8, 128], strides = [1, 1]} : vector<8x384xf32> to vector<8x128xf32>
    %491 = vector.extract_strided_slice %486 {offsets = [0, 256], sizes = [8, 128], strides = [1, 1]} : vector<8x384xf32> to vector<8x128xf32>
    %492 = arith.mulf %490, %472 : vector<8x128xf32>
    %493 = arith.mulf %489, %488 : vector<8x128xf32>
    %494 = arith.addf %492, %493 : vector<8x128xf32>
    %495 = math.tanh %494 : vector<8x128xf32>
    %496 = arith.mulf %491, %495 : vector<8x128xf32>
    %c120_256 = arith.constant 120 : index
    %c0_257 = arith.constant 0 : index
    %497 = vector.load %arg14[%c120_256, %c0_257] : memref<128x128xf32, #tpu.memory_space<vmem>>, vector<8x128xf32>
    tpu.vector_store %arg14[%c120_256, %c0_257], %496 {strides = array<i32>} : memref<128x128xf32, #tpu.memory_space<vmem>>, vector<8x128xf32>,
    %c0_258 = arith.constant 0 : index
    %c0_259 = arith.constant 0 : index
    %498 = vector.load %arg14[%c0_258, %c0_259] : memref<128x128xf32, #tpu.memory_space<vmem>>, vector<8x128xf32>
    %c120_260 = arith.constant 120 : index
    %c0_261 = arith.constant 0 : index
    %499 = vector.load %arg14[%c120_260, %c0_261] : memref<128x128xf32, #tpu.memory_space<vmem>>, vector<8x128xf32>
    %500 = arith.select %21, %498, %499 : vector<8x128xi1>, vector<8x128xf32>
    %c0_262 = arith.constant 0 : index
    %c0_263 = arith.constant 0 : index
    %501 = vector.load %arg15[%c0_262, %c0_263] : memref<128x128xf32, #tpu.memory_space<vmem>>, vector<8x128xf32>
    tpu.vector_store %arg15[%c0_262, %c0_263], %500 {strides = array<i32>} : memref<128x128xf32, #tpu.memory_space<vmem>>, vector<8x128xf32>,
    %c8_264 = arith.constant 8 : index
    %c0_265 = arith.constant 0 : index
    %502 = vector.load %arg14[%c8_264, %c0_265] : memref<128x128xf32, #tpu.memory_space<vmem>>, vector<8x128xf32>
    %c112_266 = arith.constant 112 : index
    %c0_267 = arith.constant 0 : index
    %503 = vector.load %arg14[%c112_266, %c0_267] : memref<128x128xf32, #tpu.memory_space<vmem>>, vector<8x128xf32>
    %504 = arith.select %21, %502, %503 : vector<8x128xi1>, vector<8x128xf32>
    %c8_268 = arith.constant 8 : index
    %c0_269 = arith.constant 0 : index
    %505 = vector.load %arg15[%c8_268, %c0_269] : memref<128x128xf32, #tpu.memory_space<vmem>>, vector<8x128xf32>
    tpu.vector_store %arg15[%c8_268, %c0_269], %504 {strides = array<i32>} : memref<128x128xf32, #tpu.memory_space<vmem>>, vector<8x128xf32>,
    %c16_270 = arith.constant 16 : index
    %c0_271 = arith.constant 0 : index
    %506 = vector.load %arg14[%c16_270, %c0_271] : memref<128x128xf32, #tpu.memory_space<vmem>>, vector<8x128xf32>
    %c104_272 = arith.constant 104 : index
    %c0_273 = arith.constant 0 : index
    %507 = vector.load %arg14[%c104_272, %c0_273] : memref<128x128xf32, #tpu.memory_space<vmem>>, vector<8x128xf32>
    %508 = arith.select %21, %506, %507 : vector<8x128xi1>, vector<8x128xf32>
    %c16_274 = arith.constant 16 : index
    %c0_275 = arith.constant 0 : index
    %509 = vector.load %arg15[%c16_274, %c0_275] : memref<128x128xf32, #tpu.memory_space<vmem>>, vector<8x128xf32>
    tpu.vector_store %arg15[%c16_274, %c0_275], %508 {strides = array<i32>} : memref<128x128xf32, #tpu.memory_space<vmem>>, vector<8x128xf32>,
    %c24_276 = arith.constant 24 : index
    %c0_277 = arith.constant 0 : index
    %510 = vector.load %arg14[%c24_276, %c0_277] : memref<128x128xf32, #tpu.memory_space<vmem>>, vector<8x128xf32>
    %c96_278 = arith.constant 96 : index
    %c0_279 = arith.constant 0 : index
    %511 = vector.load %arg14[%c96_278, %c0_279] : memref<128x128xf32, #tpu.memory_space<vmem>>, vector<8x128xf32>
    %512 = arith.select %21, %510, %511 : vector<8x128xi1>, vector<8x128xf32>
    %c24_280 = arith.constant 24 : index
    %c0_281 = arith.constant 0 : index
    %513 = vector.load %arg15[%c24_280, %c0_281] : memref<128x128xf32, #tpu.memory_space<vmem>>, vector<8x128xf32>
    tpu.vector_store %arg15[%c24_280, %c0_281], %512 {strides = array<i32>} : memref<128x128xf32, #tpu.memory_space<vmem>>, vector<8x128xf32>,
    %c32_282 = arith.constant 32 : index
    %c0_283 = arith.constant 0 : index
    %514 = vector.load %arg14[%c32_282, %c0_283] : memref<128x128xf32, #tpu.memory_space<vmem>>, vector<8x128xf32>
    %c88_284 = arith.constant 88 : index
    %c0_285 = arith.constant 0 : index
    %515 = vector.load %arg14[%c88_284, %c0_285] : memref<128x128xf32, #tpu.memory_space<vmem>>, vector<8x128xf32>
    %516 = arith.select %21, %514, %515 : vector<8x128xi1>, vector<8x128xf32>
    %c32_286 = arith.constant 32 : index
    %c0_287 = arith.constant 0 : index
    %517 = vector.load %arg15[%c32_286, %c0_287] : memref<128x128xf32, #tpu.memory_space<vmem>>, vector<8x128xf32>
    tpu.vector_store %arg15[%c32_286, %c0_287], %516 {strides = array<i32>} : memref<128x128xf32, #tpu.memory_space<vmem>>, vector<8x128xf32>,
    %c40_288 = arith.constant 40 : index
    %c0_289 = arith.constant 0 : index
    %518 = vector.load %arg14[%c40_288, %c0_289] : memref<128x128xf32, #tpu.memory_space<vmem>>, vector<8x128xf32>
    %c80_290 = arith.constant 80 : index
    %c0_291 = arith.constant 0 : index
    %519 = vector.load %arg14[%c80_290, %c0_291] : memref<128x128xf32, #tpu.memory_space<vmem>>, vector<8x128xf32>
    %520 = arith.select %21, %518, %519 : vector<8x128xi1>, vector<8x128xf32>
    %c40_292 = arith.constant 40 : index
    %c0_293 = arith.constant 0 : index
    %521 = vector.load %arg15[%c40_292, %c0_293] : memref<128x128xf32, #tpu.memory_space<vmem>>, vector<8x128xf32>
    tpu.vector_store %arg15[%c40_292, %c0_293], %520 {strides = array<i32>} : memref<128x128xf32, #tpu.memory_space<vmem>>, vector<8x128xf32>,
    %c48_294 = arith.constant 48 : index
    %c0_295 = arith.constant 0 : index
    %522 = vector.load %arg14[%c48_294, %c0_295] : memref<128x128xf32, #tpu.memory_space<vmem>>, vector<8x128xf32>
    %c72_296 = arith.constant 72 : index
    %c0_297 = arith.constant 0 : index
    %523 = vector.load %arg14[%c72_296, %c0_297] : memref<128x128xf32, #tpu.memory_space<vmem>>, vector<8x128xf32>
    %524 = arith.select %21, %522, %523 : vector<8x128xi1>, vector<8x128xf32>
    %c48_298 = arith.constant 48 : index
    %c0_299 = arith.constant 0 : index
    %525 = vector.load %arg15[%c48_298, %c0_299] : memref<128x128xf32, #tpu.memory_space<vmem>>, vector<8x128xf32>
    tpu.vector_store %arg15[%c48_298, %c0_299], %524 {strides = array<i32>} : memref<128x128xf32, #tpu.memory_space<vmem>>, vector<8x128xf32>,
    %c56_300 = arith.constant 56 : index
    %c0_301 = arith.constant 0 : index
    %526 = vector.load %arg14[%c56_300, %c0_301] : memref<128x128xf32, #tpu.memory_space<vmem>>, vector<8x128xf32>
    %c64_302 = arith.constant 64 : index
    %c0_303 = arith.constant 0 : index
    %527 = vector.load %arg14[%c64_302, %c0_303] : memref<128x128xf32, #tpu.memory_space<vmem>>, vector<8x128xf32>
    %528 = arith.select %21, %526, %527 : vector<8x128xi1>, vector<8x128xf32>
    %c56_304 = arith.constant 56 : index
    %c0_305 = arith.constant 0 : index
    %529 = vector.load %arg15[%c56_304, %c0_305] : memref<128x128xf32, #tpu.memory_space<vmem>>, vector<8x128xf32>
    tpu.vector_store %arg15[%c56_304, %c0_305], %528 {strides = array<i32>} : memref<128x128xf32, #tpu.memory_space<vmem>>, vector<8x128xf32>,
    %c64_306 = arith.constant 64 : index
    %c0_307 = arith.constant 0 : index
    %530 = vector.load %arg14[%c64_306, %c0_307] : memref<128x128xf32, #tpu.memory_space<vmem>>, vector<8x128xf32>
    %c56_308 = arith.constant 56 : index
    %c0_309 = arith.constant 0 : index
    %531 = vector.load %arg14[%c56_308, %c0_309] : memref<128x128xf32, #tpu.memory_space<vmem>>, vector<8x128xf32>
    %532 = arith.select %21, %530, %531 : vector<8x128xi1>, vector<8x128xf32>
    %c64_310 = arith.constant 64 : index
    %c0_311 = arith.constant 0 : index
    %533 = vector.load %arg15[%c64_310, %c0_311] : memref<128x128xf32, #tpu.memory_space<vmem>>, vector<8x128xf32>
    tpu.vector_store %arg15[%c64_310, %c0_311], %532 {strides = array<i32>} : memref<128x128xf32, #tpu.memory_space<vmem>>, vector<8x128xf32>,
    %c72_312 = arith.constant 72 : index
    %c0_313 = arith.constant 0 : index
    %534 = vector.load %arg14[%c72_312, %c0_313] : memref<128x128xf32, #tpu.memory_space<vmem>>, vector<8x128xf32>
    %c48_314 = arith.constant 48 : index
    %c0_315 = arith.constant 0 : index
    %535 = vector.load %arg14[%c48_314, %c0_315] : memref<128x128xf32, #tpu.memory_space<vmem>>, vector<8x128xf32>
    %536 = arith.select %21, %534, %535 : vector<8x128xi1>, vector<8x128xf32>
    %c72_316 = arith.constant 72 : index
    %c0_317 = arith.constant 0 : index
    %537 = vector.load %arg15[%c72_316, %c0_317] : memref<128x128xf32, #tpu.memory_space<vmem>>, vector<8x128xf32>
    tpu.vector_store %arg15[%c72_316, %c0_317], %536 {strides = array<i32>} : memref<128x128xf32, #tpu.memory_space<vmem>>, vector<8x128xf32>,
    %c80_318 = arith.constant 80 : index
    %c0_319 = arith.constant 0 : index
    %538 = vector.load %arg14[%c80_318, %c0_319] : memref<128x128xf32, #tpu.memory_space<vmem>>, vector<8x128xf32>
    %c40_320 = arith.constant 40 : index
    %c0_321 = arith.constant 0 : index
    %539 = vector.load %arg14[%c40_320, %c0_321] : memref<128x128xf32, #tpu.memory_space<vmem>>, vector<8x128xf32>
    %540 = arith.select %21, %538, %539 : vector<8x128xi1>, vector<8x128xf32>
    %c80_322 = arith.constant 80 : index
    %c0_323 = arith.constant 0 : index
    %541 = vector.load %arg15[%c80_322, %c0_323] : memref<128x128xf32, #tpu.memory_space<vmem>>, vector<8x128xf32>
    tpu.vector_store %arg15[%c80_322, %c0_323], %540 {strides = array<i32>} : memref<128x128xf32, #tpu.memory_space<vmem>>, vector<8x128xf32>,
    %c88_324 = arith.constant 88 : index
    %c0_325 = arith.constant 0 : index
    %542 = vector.load %arg14[%c88_324, %c0_325] : memref<128x128xf32, #tpu.memory_space<vmem>>, vector<8x128xf32>
    %c32_326 = arith.constant 32 : index
    %c0_327 = arith.constant 0 : index
    %543 = vector.load %arg14[%c32_326, %c0_327] : memref<128x128xf32, #tpu.memory_space<vmem>>, vector<8x128xf32>
    %544 = arith.select %21, %542, %543 : vector<8x128xi1>, vector<8x128xf32>
    %c88_328 = arith.constant 88 : index
    %c0_329 = arith.constant 0 : index
    %545 = vector.load %arg15[%c88_328, %c0_329] : memref<128x128xf32, #tpu.memory_space<vmem>>, vector<8x128xf32>
    tpu.vector_store %arg15[%c88_328, %c0_329], %544 {strides = array<i32>} : memref<128x128xf32, #tpu.memory_space<vmem>>, vector<8x128xf32>,
    %c96_330 = arith.constant 96 : index
    %c0_331 = arith.constant 0 : index
    %546 = vector.load %arg14[%c96_330, %c0_331] : memref<128x128xf32, #tpu.memory_space<vmem>>, vector<8x128xf32>
    %c24_332 = arith.constant 24 : index
    %c0_333 = arith.constant 0 : index
    %547 = vector.load %arg14[%c24_332, %c0_333] : memref<128x128xf32, #tpu.memory_space<vmem>>, vector<8x128xf32>
    %548 = arith.select %21, %546, %547 : vector<8x128xi1>, vector<8x128xf32>
    %c96_334 = arith.constant 96 : index
    %c0_335 = arith.constant 0 : index
    %549 = vector.load %arg15[%c96_334, %c0_335] : memref<128x128xf32, #tpu.memory_space<vmem>>, vector<8x128xf32>
    tpu.vector_store %arg15[%c96_334, %c0_335], %548 {strides = array<i32>} : memref<128x128xf32, #tpu.memory_space<vmem>>, vector<8x128xf32>,
    %c104_336 = arith.constant 104 : index
    %c0_337 = arith.constant 0 : index
    %550 = vector.load %arg14[%c104_336, %c0_337] : memref<128x128xf32, #tpu.memory_space<vmem>>, vector<8x128xf32>
    %c16_338 = arith.constant 16 : index
    %c0_339 = arith.constant 0 : index
    %551 = vector.load %arg14[%c16_338, %c0_339] : memref<128x128xf32, #tpu.memory_space<vmem>>, vector<8x128xf32>
    %552 = arith.select %21, %550, %551 : vector<8x128xi1>, vector<8x128xf32>
    %c104_340 = arith.constant 104 : index
    %c0_341 = arith.constant 0 : index
    %553 = vector.load %arg15[%c104_340, %c0_341] : memref<128x128xf32, #tpu.memory_space<vmem>>, vector<8x128xf32>
    tpu.vector_store %arg15[%c104_340, %c0_341], %552 {strides = array<i32>} : memref<128x128xf32, #tpu.memory_space<vmem>>, vector<8x128xf32>,
    %c112_342 = arith.constant 112 : index
    %c0_343 = arith.constant 0 : index
    %554 = vector.load %arg14[%c112_342, %c0_343] : memref<128x128xf32, #tpu.memory_space<vmem>>, vector<8x128xf32>
    %c8_344 = arith.constant 8 : index
    %c0_345 = arith.constant 0 : index
    %555 = vector.load %arg14[%c8_344, %c0_345] : memref<128x128xf32, #tpu.memory_space<vmem>>, vector<8x128xf32>
    %556 = arith.select %21, %554, %555 : vector<8x128xi1>, vector<8x128xf32>
    %c112_346 = arith.constant 112 : index
    %c0_347 = arith.constant 0 : index
    %557 = vector.load %arg15[%c112_346, %c0_347] : memref<128x128xf32, #tpu.memory_space<vmem>>, vector<8x128xf32>
    tpu.vector_store %arg15[%c112_346, %c0_347], %556 {strides = array<i32>} : memref<128x128xf32, #tpu.memory_space<vmem>>, vector<8x128xf32>,
    %c120_348 = arith.constant 120 : index
    %c0_349 = arith.constant 0 : index
    %558 = vector.load %arg14[%c120_348, %c0_349] : memref<128x128xf32, #tpu.memory_space<vmem>>, vector<8x128xf32>
    %c0_350 = arith.constant 0 : index
    %c0_351 = arith.constant 0 : index
    %559 = vector.load %arg14[%c0_350, %c0_351] : memref<128x128xf32, #tpu.memory_space<vmem>>, vector<8x128xf32>
    %560 = arith.select %21, %558, %559 : vector<8x128xi1>, vector<8x128xf32>
    %c120_352 = arith.constant 120 : index
    %c0_353 = arith.constant 0 : index
    %561 = vector.load %arg15[%c120_352, %c0_353] : memref<128x128xf32, #tpu.memory_space<vmem>>, vector<8x128xf32>
    tpu.vector_store %arg15[%c120_352, %c0_353], %560 {strides = array<i32>} : memref<128x128xf32, #tpu.memory_space<vmem>>, vector<8x128xf32>,
    %c0_354 = arith.constant 0 : index
    %c0_355 = arith.constant 0 : index
    %562 = vector.load %arg15[%c0_354, %c0_355] : memref<128x128xf32, #tpu.memory_space<vmem>>, vector<128x128xf32>
    %563 = arith.truncf %562 : vector<128x128xf32> to vector<128x128xbf16>
    %c0_356 = arith.constant 0 : index
    %c0_357 = arith.constant 0 : index
    %564 = vector.load %arg6[%c0_356, %c0_357] : memref<128x512xbf16, #tpu.memory_space<vmem>>, vector<128x512xbf16>
    %cst_358 = arith.constant dense<0.000000e+00> : vector<128x512xf32>
    %565 = tpu.matmul %563, %564, %cst_358 {dimension_numbers = #tpu.dot_dimension_numbers<[1], [0], [0], [1], [0, 0, 1, 1], [], []>} : vector<128x128xbf16>, vector<128x512xbf16>, vector<128x512xf32> -> vector<128x512xf32>
    %566 = vector.broadcast %73 : vector<1x512xf32> to vector<128x512xf32>
    %567 = arith.addf %565, %566 : vector<128x512xf32>
    %c0_359 = arith.constant 0 : index
    %c0_360 = arith.constant 0 : index
    %568 = vector.load %arg12[%c0_359, %c0_360] : memref<128x512xf32, #tpu.memory_space<vmem>>, vector<128x512xf32>
    tpu.vector_store %arg12[%c0_359, %c0_360], %567 {strides = array<i32>} : memref<128x512xf32, #tpu.memory_space<vmem>>, vector<128x512xf32>,
    %c0_361 = arith.constant 0 : index
    %c0_362 = arith.constant 0 : index
    %569 = vector.load %arg12[%c0_361, %c0_362] : memref<128x512xf32, #tpu.memory_space<vmem>>, vector<8x512xf32>
    %c120_363 = arith.constant 120 : index
    %c0_364 = arith.constant 0 : index
    %570 = vector.load %arg12[%c120_363, %c0_364] : memref<128x512xf32, #tpu.memory_space<vmem>>, vector<8x512xf32>
    %571 = arith.select %18, %569, %570 : vector<8x512xi1>, vector<8x512xf32>
    %c0_365 = arith.constant 0 : index
    %c0_366 = arith.constant 0 : index
    %572 = vector.load %arg13[%c0_365, %c0_366] : memref<128x512xf32, #tpu.memory_space<vmem>>, vector<8x512xf32>
    tpu.vector_store %arg13[%c0_365, %c0_366], %571 {strides = array<i32>} : memref<128x512xf32, #tpu.memory_space<vmem>>, vector<8x512xf32>,
    %c8_367 = arith.constant 8 : index
    %c0_368 = arith.constant 0 : index
    %573 = vector.load %arg12[%c8_367, %c0_368] : memref<128x512xf32, #tpu.memory_space<vmem>>, vector<8x512xf32>
    %c112_369 = arith.constant 112 : index
    %c0_370 = arith.constant 0 : index
    %574 = vector.load %arg12[%c112_369, %c0_370] : memref<128x512xf32, #tpu.memory_space<vmem>>, vector<8x512xf32>
    %575 = arith.select %18, %573, %574 : vector<8x512xi1>, vector<8x512xf32>
    %c8_371 = arith.constant 8 : index
    %c0_372 = arith.constant 0 : index
    %576 = vector.load %arg13[%c8_371, %c0_372] : memref<128x512xf32, #tpu.memory_space<vmem>>, vector<8x512xf32>
    tpu.vector_store %arg13[%c8_371, %c0_372], %575 {strides = array<i32>} : memref<128x512xf32, #tpu.memory_space<vmem>>, vector<8x512xf32>,
    %c16_373 = arith.constant 16 : index
    %c0_374 = arith.constant 0 : index
    %577 = vector.load %arg12[%c16_373, %c0_374] : memref<128x512xf32, #tpu.memory_space<vmem>>, vector<8x512xf32>
    %c104_375 = arith.constant 104 : index
    %c0_376 = arith.constant 0 : index
    %578 = vector.load %arg12[%c104_375, %c0_376] : memref<128x512xf32, #tpu.memory_space<vmem>>, vector<8x512xf32>
    %579 = arith.select %18, %577, %578 : vector<8x512xi1>, vector<8x512xf32>
    %c16_377 = arith.constant 16 : index
    %c0_378 = arith.constant 0 : index
    %580 = vector.load %arg13[%c16_377, %c0_378] : memref<128x512xf32, #tpu.memory_space<vmem>>, vector<8x512xf32>
    tpu.vector_store %arg13[%c16_377, %c0_378], %579 {strides = array<i32>} : memref<128x512xf32, #tpu.memory_space<vmem>>, vector<8x512xf32>,
    %c24_379 = arith.constant 24 : index
    %c0_380 = arith.constant 0 : index
    %581 = vector.load %arg12[%c24_379, %c0_380] : memref<128x512xf32, #tpu.memory_space<vmem>>, vector<8x512xf32>
    %c96_381 = arith.constant 96 : index
    %c0_382 = arith.constant 0 : index
    %582 = vector.load %arg12[%c96_381, %c0_382] : memref<128x512xf32, #tpu.memory_space<vmem>>, vector<8x512xf32>
    %583 = arith.select %18, %581, %582 : vector<8x512xi1>, vector<8x512xf32>
    %c24_383 = arith.constant 24 : index
    %c0_384 = arith.constant 0 : index
    %584 = vector.load %arg13[%c24_383, %c0_384] : memref<128x512xf32, #tpu.memory_space<vmem>>, vector<8x512xf32>
    tpu.vector_store %arg13[%c24_383, %c0_384], %583 {strides = array<i32>} : memref<128x512xf32, #tpu.memory_space<vmem>>, vector<8x512xf32>,
    %c32_385 = arith.constant 32 : index
    %c0_386 = arith.constant 0 : index
    %585 = vector.load %arg12[%c32_385, %c0_386] : memref<128x512xf32, #tpu.memory_space<vmem>>, vector<8x512xf32>
    %c88_387 = arith.constant 88 : index
    %c0_388 = arith.constant 0 : index
    %586 = vector.load %arg12[%c88_387, %c0_388] : memref<128x512xf32, #tpu.memory_space<vmem>>, vector<8x512xf32>
    %587 = arith.select %18, %585, %586 : vector<8x512xi1>, vector<8x512xf32>
    %c32_389 = arith.constant 32 : index
    %c0_390 = arith.constant 0 : index
    %588 = vector.load %arg13[%c32_389, %c0_390] : memref<128x512xf32, #tpu.memory_space<vmem>>, vector<8x512xf32>
    tpu.vector_store %arg13[%c32_389, %c0_390], %587 {strides = array<i32>} : memref<128x512xf32, #tpu.memory_space<vmem>>, vector<8x512xf32>,
    %c40_391 = arith.constant 40 : index
    %c0_392 = arith.constant 0 : index
    %589 = vector.load %arg12[%c40_391, %c0_392] : memref<128x512xf32, #tpu.memory_space<vmem>>, vector<8x512xf32>
    %c80_393 = arith.constant 80 : index
    %c0_394 = arith.constant 0 : index
    %590 = vector.load %arg12[%c80_393, %c0_394] : memref<128x512xf32, #tpu.memory_space<vmem>>, vector<8x512xf32>
    %591 = arith.select %18, %589, %590 : vector<8x512xi1>, vector<8x512xf32>
    %c40_395 = arith.constant 40 : index
    %c0_396 = arith.constant 0 : index
    %592 = vector.load %arg13[%c40_395, %c0_396] : memref<128x512xf32, #tpu.memory_space<vmem>>, vector<8x512xf32>
    tpu.vector_store %arg13[%c40_395, %c0_396], %591 {strides = array<i32>} : memref<128x512xf32, #tpu.memory_space<vmem>>, vector<8x512xf32>,
    %c48_397 = arith.constant 48 : index
    %c0_398 = arith.constant 0 : index
    %593 = vector.load %arg12[%c48_397, %c0_398] : memref<128x512xf32, #tpu.memory_space<vmem>>, vector<8x512xf32>
    %c72_399 = arith.constant 72 : index
    %c0_400 = arith.constant 0 : index
    %594 = vector.load %arg12[%c72_399, %c0_400] : memref<128x512xf32, #tpu.memory_space<vmem>>, vector<8x512xf32>
    %595 = arith.select %18, %593, %594 : vector<8x512xi1>, vector<8x512xf32>
    %c48_401 = arith.constant 48 : index
    %c0_402 = arith.constant 0 : index
    %596 = vector.load %arg13[%c48_401, %c0_402] : memref<128x512xf32, #tpu.memory_space<vmem>>, vector<8x512xf32>
    tpu.vector_store %arg13[%c48_401, %c0_402], %595 {strides = array<i32>} : memref<128x512xf32, #tpu.memory_space<vmem>>, vector<8x512xf32>,
    %c56_403 = arith.constant 56 : index
    %c0_404 = arith.constant 0 : index
    %597 = vector.load %arg12[%c56_403, %c0_404] : memref<128x512xf32, #tpu.memory_space<vmem>>, vector<8x512xf32>
    %c64_405 = arith.constant 64 : index
    %c0_406 = arith.constant 0 : index
    %598 = vector.load %arg12[%c64_405, %c0_406] : memref<128x512xf32, #tpu.memory_space<vmem>>, vector<8x512xf32>
    %599 = arith.select %18, %597, %598 : vector<8x512xi1>, vector<8x512xf32>
    %c56_407 = arith.constant 56 : index
    %c0_408 = arith.constant 0 : index
    %600 = vector.load %arg13[%c56_407, %c0_408] : memref<128x512xf32, #tpu.memory_space<vmem>>, vector<8x512xf32>
    tpu.vector_store %arg13[%c56_407, %c0_408], %599 {strides = array<i32>} : memref<128x512xf32, #tpu.memory_space<vmem>>, vector<8x512xf32>,
    %c64_409 = arith.constant 64 : index
    %c0_410 = arith.constant 0 : index
    %601 = vector.load %arg12[%c64_409, %c0_410] : memref<128x512xf32, #tpu.memory_space<vmem>>, vector<8x512xf32>
    %c56_411 = arith.constant 56 : index
    %c0_412 = arith.constant 0 : index
    %602 = vector.load %arg12[%c56_411, %c0_412] : memref<128x512xf32, #tpu.memory_space<vmem>>, vector<8x512xf32>
    %603 = arith.select %18, %601, %602 : vector<8x512xi1>, vector<8x512xf32>
    %c64_413 = arith.constant 64 : index
    %c0_414 = arith.constant 0 : index
    %604 = vector.load %arg13[%c64_413, %c0_414] : memref<128x512xf32, #tpu.memory_space<vmem>>, vector<8x512xf32>
    tpu.vector_store %arg13[%c64_413, %c0_414], %603 {strides = array<i32>} : memref<128x512xf32, #tpu.memory_space<vmem>>, vector<8x512xf32>,
    %c72_415 = arith.constant 72 : index
    %c0_416 = arith.constant 0 : index
    %605 = vector.load %arg12[%c72_415, %c0_416] : memref<128x512xf32, #tpu.memory_space<vmem>>, vector<8x512xf32>
    %c48_417 = arith.constant 48 : index
    %c0_418 = arith.constant 0 : index
    %606 = vector.load %arg12[%c48_417, %c0_418] : memref<128x512xf32, #tpu.memory_space<vmem>>, vector<8x512xf32>
    %607 = arith.select %18, %605, %606 : vector<8x512xi1>, vector<8x512xf32>
    %c72_419 = arith.constant 72 : index
    %c0_420 = arith.constant 0 : index
    %608 = vector.load %arg13[%c72_419, %c0_420] : memref<128x512xf32, #tpu.memory_space<vmem>>, vector<8x512xf32>
    tpu.vector_store %arg13[%c72_419, %c0_420], %607 {strides = array<i32>} : memref<128x512xf32, #tpu.memory_space<vmem>>, vector<8x512xf32>,
    %c80_421 = arith.constant 80 : index
    %c0_422 = arith.constant 0 : index
    %609 = vector.load %arg12[%c80_421, %c0_422] : memref<128x512xf32, #tpu.memory_space<vmem>>, vector<8x512xf32>
    %c40_423 = arith.constant 40 : index
    %c0_424 = arith.constant 0 : index
    %610 = vector.load %arg12[%c40_423, %c0_424] : memref<128x512xf32, #tpu.memory_space<vmem>>, vector<8x512xf32>
    %611 = arith.select %18, %609, %610 : vector<8x512xi1>, vector<8x512xf32>
    %c80_425 = arith.constant 80 : index
    %c0_426 = arith.constant 0 : index
    %612 = vector.load %arg13[%c80_425, %c0_426] : memref<128x512xf32, #tpu.memory_space<vmem>>, vector<8x512xf32>
    tpu.vector_store %arg13[%c80_425, %c0_426], %611 {strides = array<i32>} : memref<128x512xf32, #tpu.memory_space<vmem>>, vector<8x512xf32>,
    %c88_427 = arith.constant 88 : index
    %c0_428 = arith.constant 0 : index
    %613 = vector.load %arg12[%c88_427, %c0_428] : memref<128x512xf32, #tpu.memory_space<vmem>>, vector<8x512xf32>
    %c32_429 = arith.constant 32 : index
    %c0_430 = arith.constant 0 : index
    %614 = vector.load %arg12[%c32_429, %c0_430] : memref<128x512xf32, #tpu.memory_space<vmem>>, vector<8x512xf32>
    %615 = arith.select %18, %613, %614 : vector<8x512xi1>, vector<8x512xf32>
    %c88_431 = arith.constant 88 : index
    %c0_432 = arith.constant 0 : index
    %616 = vector.load %arg13[%c88_431, %c0_432] : memref<128x512xf32, #tpu.memory_space<vmem>>, vector<8x512xf32>
    tpu.vector_store %arg13[%c88_431, %c0_432], %615 {strides = array<i32>} : memref<128x512xf32, #tpu.memory_space<vmem>>, vector<8x512xf32>,
    %c96_433 = arith.constant 96 : index
    %c0_434 = arith.constant 0 : index
    %617 = vector.load %arg12[%c96_433, %c0_434] : memref<128x512xf32, #tpu.memory_space<vmem>>, vector<8x512xf32>
    %c24_435 = arith.constant 24 : index
    %c0_436 = arith.constant 0 : index
    %618 = vector.load %arg12[%c24_435, %c0_436] : memref<128x512xf32, #tpu.memory_space<vmem>>, vector<8x512xf32>
    %619 = arith.select %18, %617, %618 : vector<8x512xi1>, vector<8x512xf32>
    %c96_437 = arith.constant 96 : index
    %c0_438 = arith.constant 0 : index
    %620 = vector.load %arg13[%c96_437, %c0_438] : memref<128x512xf32, #tpu.memory_space<vmem>>, vector<8x512xf32>
    tpu.vector_store %arg13[%c96_437, %c0_438], %619 {strides = array<i32>} : memref<128x512xf32, #tpu.memory_space<vmem>>, vector<8x512xf32>,
    %c104_439 = arith.constant 104 : index
    %c0_440 = arith.constant 0 : index
    %621 = vector.load %arg12[%c104_439, %c0_440] : memref<128x512xf32, #tpu.memory_space<vmem>>, vector<8x512xf32>
    %c16_441 = arith.constant 16 : index
    %c0_442 = arith.constant 0 : index
    %622 = vector.load %arg12[%c16_441, %c0_442] : memref<128x512xf32, #tpu.memory_space<vmem>>, vector<8x512xf32>
    %623 = arith.select %18, %621, %622 : vector<8x512xi1>, vector<8x512xf32>
    %c104_443 = arith.constant 104 : index
    %c0_444 = arith.constant 0 : index
    %624 = vector.load %arg13[%c104_443, %c0_444] : memref<128x512xf32, #tpu.memory_space<vmem>>, vector<8x512xf32>
    tpu.vector_store %arg13[%c104_443, %c0_444], %623 {strides = array<i32>} : memref<128x512xf32, #tpu.memory_space<vmem>>, vector<8x512xf32>,
    %c112_445 = arith.constant 112 : index
    %c0_446 = arith.constant 0 : index
    %625 = vector.load %arg12[%c112_445, %c0_446] : memref<128x512xf32, #tpu.memory_space<vmem>>, vector<8x512xf32>
    %c8_447 = arith.constant 8 : index
    %c0_448 = arith.constant 0 : index
    %626 = vector.load %arg12[%c8_447, %c0_448] : memref<128x512xf32, #tpu.memory_space<vmem>>, vector<8x512xf32>
    %627 = arith.select %18, %625, %626 : vector<8x512xi1>, vector<8x512xf32>
    %c112_449 = arith.constant 112 : index
    %c0_450 = arith.constant 0 : index
    %628 = vector.load %arg13[%c112_449, %c0_450] : memref<128x512xf32, #tpu.memory_space<vmem>>, vector<8x512xf32>
    tpu.vector_store %arg13[%c112_449, %c0_450], %627 {strides = array<i32>} : memref<128x512xf32, #tpu.memory_space<vmem>>, vector<8x512xf32>,
    %c120_451 = arith.constant 120 : index
    %c0_452 = arith.constant 0 : index
    %629 = vector.load %arg12[%c120_451, %c0_452] : memref<128x512xf32, #tpu.memory_space<vmem>>, vector<8x512xf32>
    %c0_453 = arith.constant 0 : index
    %c0_454 = arith.constant 0 : index
    %630 = vector.load %arg12[%c0_453, %c0_454] : memref<128x512xf32, #tpu.memory_space<vmem>>, vector<8x512xf32>
    %631 = arith.select %18, %629, %630 : vector<8x512xi1>, vector<8x512xf32>
    %c120_455 = arith.constant 120 : index
    %c0_456 = arith.constant 0 : index
    %632 = vector.load %arg13[%c120_455, %c0_456] : memref<128x512xf32, #tpu.memory_space<vmem>>, vector<8x512xf32>
    tpu.vector_store %arg13[%c120_455, %c0_456], %631 {strides = array<i32>} : memref<128x512xf32, #tpu.memory_space<vmem>>, vector<8x512xf32>,
    %cst_457 = arith.constant 0.000000e+00 : f32
    %633 = vector.broadcast %cst_457 : f32 to vector<8x128xf32>
    %cst_458 = arith.constant 0.000000e+00 : f32
    %634 = vector.broadcast %cst_458 : f32 to vector<8x128xf32>
    %c0_459 = arith.constant 0 : index
    %c0_460 = arith.constant 0 : index
    %635 = vector.load %arg13[%c0_459, %c0_460] : memref<128x512xf32, #tpu.memory_space<vmem>>, vector<8x512xf32>
    %636 = arith.truncf %633 : vector<8x128xf32> to vector<8x128xbf16>
    %c0_461 = arith.constant 0 : index
    %c0_462 = arith.constant 0 : index
    %637 = vector.load %arg7[%c0_461, %c0_462] : memref<128x512xbf16, #tpu.memory_space<vmem>>, vector<128x512xbf16>
    %cst_463 = arith.constant dense<0.000000e+00> : vector<8x512xf32>
    %638 = tpu.matmul %636, %637, %cst_463 {dimension_numbers = #tpu.dot_dimension_numbers<[1], [0], [0], [1], [0, 0, 1, 1], [], []>} : vector<8x128xbf16>, vector<128x512xbf16>, vector<8x512xf32> -> vector<8x512xf32>
    %639 = arith.addf %635, %638 : vector<8x512xf32>
    %640 = vector.extract_strided_slice %639 {offsets = [0, 0], sizes = [8, 384], strides = [1, 1]} : vector<8x512xf32> to vector<8x384xf32>
    %641 = arith.negf %640 : vector<8x384xf32>
    %642 = math.exp %641 : vector<8x384xf32>
    %cst_464 = arith.constant 1.000000e+00 : f32
    %643 = vector.broadcast %cst_464 : f32 to vector<8x384xf32>
    %644 = arith.addf %643, %642 : vector<8x384xf32>
    %645 = arith.divf %643, %644 : vector<8x384xf32>
    %646 = vector.extract_strided_slice %639 {offsets = [0, 384], sizes = [8, 128], strides = [1, 1]} : vector<8x512xf32> to vector<8x128xf32>
    %647 = math.tanh %646 : vector<8x128xf32>
    %648 = vector.extract_strided_slice %645 {offsets = [0, 0], sizes = [8, 128], strides = [1, 1]} : vector<8x384xf32> to vector<8x128xf32>
    %649 = vector.extract_strided_slice %645 {offsets = [0, 128], sizes = [8, 128], strides = [1, 1]} : vector<8x384xf32> to vector<8x128xf32>
    %650 = vector.extract_strided_slice %645 {offsets = [0, 256], sizes = [8, 128], strides = [1, 1]} : vector<8x384xf32> to vector<8x128xf32>
    %651 = arith.mulf %649, %634 : vector<8x128xf32>
    %652 = arith.mulf %648, %647 : vector<8x128xf32>
    %653 = arith.addf %651, %652 : vector<8x128xf32>
    %654 = math.tanh %653 : vector<8x128xf32>
    %655 = arith.mulf %650, %654 : vector<8x128xf32>
    %c8_465 = arith.constant 8 : index
    %c0_466 = arith.constant 0 : index
    %656 = vector.load %arg13[%c8_465, %c0_466] : memref<128x512xf32, #tpu.memory_space<vmem>>, vector<8x512xf32>
    %657 = arith.truncf %655 : vector<8x128xf32> to vector<8x128xbf16>
    %c0_467 = arith.constant 0 : index
    %c0_468 = arith.constant 0 : index
    %658 = vector.load %arg7[%c0_467, %c0_468] : memref<128x512xbf16, #tpu.memory_space<vmem>>, vector<128x512xbf16>
    %cst_469 = arith.constant dense<0.000000e+00> : vector<8x512xf32>
    %659 = tpu.matmul %657, %658, %cst_469 {dimension_numbers = #tpu.dot_dimension_numbers<[1], [0], [0], [1], [0, 0, 1, 1], [], []>} : vector<8x128xbf16>, vector<128x512xbf16>, vector<8x512xf32> -> vector<8x512xf32>
    %660 = arith.addf %656, %659 : vector<8x512xf32>
    %661 = vector.extract_strided_slice %660 {offsets = [0, 0], sizes = [8, 384], strides = [1, 1]} : vector<8x512xf32> to vector<8x384xf32>
    %662 = arith.negf %661 : vector<8x384xf32>
    %663 = math.exp %662 : vector<8x384xf32>
    %cst_470 = arith.constant 1.000000e+00 : f32
    %664 = vector.broadcast %cst_470 : f32 to vector<8x384xf32>
    %665 = arith.addf %664, %663 : vector<8x384xf32>
    %666 = arith.divf %664, %665 : vector<8x384xf32>
    %667 = vector.extract_strided_slice %660 {offsets = [0, 384], sizes = [8, 128], strides = [1, 1]} : vector<8x512xf32> to vector<8x128xf32>
    %668 = math.tanh %667 : vector<8x128xf32>
    %669 = vector.extract_strided_slice %666 {offsets = [0, 0], sizes = [8, 128], strides = [1, 1]} : vector<8x384xf32> to vector<8x128xf32>
    %670 = vector.extract_strided_slice %666 {offsets = [0, 128], sizes = [8, 128], strides = [1, 1]} : vector<8x384xf32> to vector<8x128xf32>
    %671 = vector.extract_strided_slice %666 {offsets = [0, 256], sizes = [8, 128], strides = [1, 1]} : vector<8x384xf32> to vector<8x128xf32>
    %672 = arith.mulf %670, %653 : vector<8x128xf32>
    %673 = arith.mulf %669, %668 : vector<8x128xf32>
    %674 = arith.addf %672, %673 : vector<8x128xf32>
    %675 = math.tanh %674 : vector<8x128xf32>
    %676 = arith.mulf %671, %675 : vector<8x128xf32>
    %c16_471 = arith.constant 16 : index
    %c0_472 = arith.constant 0 : index
    %677 = vector.load %arg13[%c16_471, %c0_472] : memref<128x512xf32, #tpu.memory_space<vmem>>, vector<8x512xf32>
    %678 = arith.truncf %676 : vector<8x128xf32> to vector<8x128xbf16>
    %c0_473 = arith.constant 0 : index
    %c0_474 = arith.constant 0 : index
    %679 = vector.load %arg7[%c0_473, %c0_474] : memref<128x512xbf16, #tpu.memory_space<vmem>>, vector<128x512xbf16>
    %cst_475 = arith.constant dense<0.000000e+00> : vector<8x512xf32>
    %680 = tpu.matmul %678, %679, %cst_475 {dimension_numbers = #tpu.dot_dimension_numbers<[1], [0], [0], [1], [0, 0, 1, 1], [], []>} : vector<8x128xbf16>, vector<128x512xbf16>, vector<8x512xf32> -> vector<8x512xf32>
    %681 = arith.addf %677, %680 : vector<8x512xf32>
    %682 = vector.extract_strided_slice %681 {offsets = [0, 0], sizes = [8, 384], strides = [1, 1]} : vector<8x512xf32> to vector<8x384xf32>
    %683 = arith.negf %682 : vector<8x384xf32>
    %684 = math.exp %683 : vector<8x384xf32>
    %cst_476 = arith.constant 1.000000e+00 : f32
    %685 = vector.broadcast %cst_476 : f32 to vector<8x384xf32>
    %686 = arith.addf %685, %684 : vector<8x384xf32>
    %687 = arith.divf %685, %686 : vector<8x384xf32>
    %688 = vector.extract_strided_slice %681 {offsets = [0, 384], sizes = [8, 128], strides = [1, 1]} : vector<8x512xf32> to vector<8x128xf32>
    %689 = math.tanh %688 : vector<8x128xf32>
    %690 = vector.extract_strided_slice %687 {offsets = [0, 0], sizes = [8, 128], strides = [1, 1]} : vector<8x384xf32> to vector<8x128xf32>
    %691 = vector.extract_strided_slice %687 {offsets = [0, 128], sizes = [8, 128], strides = [1, 1]} : vector<8x384xf32> to vector<8x128xf32>
    %692 = vector.extract_strided_slice %687 {offsets = [0, 256], sizes = [8, 128], strides = [1, 1]} : vector<8x384xf32> to vector<8x128xf32>
    %693 = arith.mulf %691, %674 : vector<8x128xf32>
    %694 = arith.mulf %690, %689 : vector<8x128xf32>
    %695 = arith.addf %693, %694 : vector<8x128xf32>
    %696 = math.tanh %695 : vector<8x128xf32>
    %697 = arith.mulf %692, %696 : vector<8x128xf32>
    %c24_477 = arith.constant 24 : index
    %c0_478 = arith.constant 0 : index
    %698 = vector.load %arg13[%c24_477, %c0_478] : memref<128x512xf32, #tpu.memory_space<vmem>>, vector<8x512xf32>
    %699 = arith.truncf %697 : vector<8x128xf32> to vector<8x128xbf16>
    %c0_479 = arith.constant 0 : index
    %c0_480 = arith.constant 0 : index
    %700 = vector.load %arg7[%c0_479, %c0_480] : memref<128x512xbf16, #tpu.memory_space<vmem>>, vector<128x512xbf16>
    %cst_481 = arith.constant dense<0.000000e+00> : vector<8x512xf32>
    %701 = tpu.matmul %699, %700, %cst_481 {dimension_numbers = #tpu.dot_dimension_numbers<[1], [0], [0], [1], [0, 0, 1, 1], [], []>} : vector<8x128xbf16>, vector<128x512xbf16>, vector<8x512xf32> -> vector<8x512xf32>
    %702 = arith.addf %698, %701 : vector<8x512xf32>
    %703 = vector.extract_strided_slice %702 {offsets = [0, 0], sizes = [8, 384], strides = [1, 1]} : vector<8x512xf32> to vector<8x384xf32>
    %704 = arith.negf %703 : vector<8x384xf32>
    %705 = math.exp %704 : vector<8x384xf32>
    %cst_482 = arith.constant 1.000000e+00 : f32
    %706 = vector.broadcast %cst_482 : f32 to vector<8x384xf32>
    %707 = arith.addf %706, %705 : vector<8x384xf32>
    %708 = arith.divf %706, %707 : vector<8x384xf32>
    %709 = vector.extract_strided_slice %702 {offsets = [0, 384], sizes = [8, 128], strides = [1, 1]} : vector<8x512xf32> to vector<8x128xf32>
    %710 = math.tanh %709 : vector<8x128xf32>
    %711 = vector.extract_strided_slice %708 {offsets = [0, 0], sizes = [8, 128], strides = [1, 1]} : vector<8x384xf32> to vector<8x128xf32>
    %712 = vector.extract_strided_slice %708 {offsets = [0, 128], sizes = [8, 128], strides = [1, 1]} : vector<8x384xf32> to vector<8x128xf32>
    %713 = vector.extract_strided_slice %708 {offsets = [0, 256], sizes = [8, 128], strides = [1, 1]} : vector<8x384xf32> to vector<8x128xf32>
    %714 = arith.mulf %712, %695 : vector<8x128xf32>
    %715 = arith.mulf %711, %710 : vector<8x128xf32>
    %716 = arith.addf %714, %715 : vector<8x128xf32>
    %717 = math.tanh %716 : vector<8x128xf32>
    %718 = arith.mulf %713, %717 : vector<8x128xf32>
    %c32_483 = arith.constant 32 : index
    %c0_484 = arith.constant 0 : index
    %719 = vector.load %arg13[%c32_483, %c0_484] : memref<128x512xf32, #tpu.memory_space<vmem>>, vector<8x512xf32>
    %720 = arith.truncf %718 : vector<8x128xf32> to vector<8x128xbf16>
    %c0_485 = arith.constant 0 : index
    %c0_486 = arith.constant 0 : index
    %721 = vector.load %arg7[%c0_485, %c0_486] : memref<128x512xbf16, #tpu.memory_space<vmem>>, vector<128x512xbf16>
    %cst_487 = arith.constant dense<0.000000e+00> : vector<8x512xf32>
    %722 = tpu.matmul %720, %721, %cst_487 {dimension_numbers = #tpu.dot_dimension_numbers<[1], [0], [0], [1], [0, 0, 1, 1], [], []>} : vector<8x128xbf16>, vector<128x512xbf16>, vector<8x512xf32> -> vector<8x512xf32>
    %723 = arith.addf %719, %722 : vector<8x512xf32>
    %724 = vector.extract_strided_slice %723 {offsets = [0, 0], sizes = [8, 384], strides = [1, 1]} : vector<8x512xf32> to vector<8x384xf32>
    %725 = arith.negf %724 : vector<8x384xf32>
    %726 = math.exp %725 : vector<8x384xf32>
    %cst_488 = arith.constant 1.000000e+00 : f32
    %727 = vector.broadcast %cst_488 : f32 to vector<8x384xf32>
    %728 = arith.addf %727, %726 : vector<8x384xf32>
    %729 = arith.divf %727, %728 : vector<8x384xf32>
    %730 = vector.extract_strided_slice %723 {offsets = [0, 384], sizes = [8, 128], strides = [1, 1]} : vector<8x512xf32> to vector<8x128xf32>
    %731 = math.tanh %730 : vector<8x128xf32>
    %732 = vector.extract_strided_slice %729 {offsets = [0, 0], sizes = [8, 128], strides = [1, 1]} : vector<8x384xf32> to vector<8x128xf32>
    %733 = vector.extract_strided_slice %729 {offsets = [0, 128], sizes = [8, 128], strides = [1, 1]} : vector<8x384xf32> to vector<8x128xf32>
    %734 = vector.extract_strided_slice %729 {offsets = [0, 256], sizes = [8, 128], strides = [1, 1]} : vector<8x384xf32> to vector<8x128xf32>
    %735 = arith.mulf %733, %716 : vector<8x128xf32>
    %736 = arith.mulf %732, %731 : vector<8x128xf32>
    %737 = arith.addf %735, %736 : vector<8x128xf32>
    %738 = math.tanh %737 : vector<8x128xf32>
    %739 = arith.mulf %734, %738 : vector<8x128xf32>
    %c40_489 = arith.constant 40 : index
    %c0_490 = arith.constant 0 : index
    %740 = vector.load %arg13[%c40_489, %c0_490] : memref<128x512xf32, #tpu.memory_space<vmem>>, vector<8x512xf32>
    %741 = arith.truncf %739 : vector<8x128xf32> to vector<8x128xbf16>
    %c0_491 = arith.constant 0 : index
    %c0_492 = arith.constant 0 : index
    %742 = vector.load %arg7[%c0_491, %c0_492] : memref<128x512xbf16, #tpu.memory_space<vmem>>, vector<128x512xbf16>
    %cst_493 = arith.constant dense<0.000000e+00> : vector<8x512xf32>
    %743 = tpu.matmul %741, %742, %cst_493 {dimension_numbers = #tpu.dot_dimension_numbers<[1], [0], [0], [1], [0, 0, 1, 1], [], []>} : vector<8x128xbf16>, vector<128x512xbf16>, vector<8x512xf32> -> vector<8x512xf32>
    %744 = arith.addf %740, %743 : vector<8x512xf32>
    %745 = vector.extract_strided_slice %744 {offsets = [0, 0], sizes = [8, 384], strides = [1, 1]} : vector<8x512xf32> to vector<8x384xf32>
    %746 = arith.negf %745 : vector<8x384xf32>
    %747 = math.exp %746 : vector<8x384xf32>
    %cst_494 = arith.constant 1.000000e+00 : f32
    %748 = vector.broadcast %cst_494 : f32 to vector<8x384xf32>
    %749 = arith.addf %748, %747 : vector<8x384xf32>
    %750 = arith.divf %748, %749 : vector<8x384xf32>
    %751 = vector.extract_strided_slice %744 {offsets = [0, 384], sizes = [8, 128], strides = [1, 1]} : vector<8x512xf32> to vector<8x128xf32>
    %752 = math.tanh %751 : vector<8x128xf32>
    %753 = vector.extract_strided_slice %750 {offsets = [0, 0], sizes = [8, 128], strides = [1, 1]} : vector<8x384xf32> to vector<8x128xf32>
    %754 = vector.extract_strided_slice %750 {offsets = [0, 128], sizes = [8, 128], strides = [1, 1]} : vector<8x384xf32> to vector<8x128xf32>
    %755 = vector.extract_strided_slice %750 {offsets = [0, 256], sizes = [8, 128], strides = [1, 1]} : vector<8x384xf32> to vector<8x128xf32>
    %756 = arith.mulf %754, %737 : vector<8x128xf32>
    %757 = arith.mulf %753, %752 : vector<8x128xf32>
    %758 = arith.addf %756, %757 : vector<8x128xf32>
    %759 = math.tanh %758 : vector<8x128xf32>
    %760 = arith.mulf %755, %759 : vector<8x128xf32>
    %c48_495 = arith.constant 48 : index
    %c0_496 = arith.constant 0 : index
    %761 = vector.load %arg13[%c48_495, %c0_496] : memref<128x512xf32, #tpu.memory_space<vmem>>, vector<8x512xf32>
    %762 = arith.truncf %760 : vector<8x128xf32> to vector<8x128xbf16>
    %c0_497 = arith.constant 0 : index
    %c0_498 = arith.constant 0 : index
    %763 = vector.load %arg7[%c0_497, %c0_498] : memref<128x512xbf16, #tpu.memory_space<vmem>>, vector<128x512xbf16>
    %cst_499 = arith.constant dense<0.000000e+00> : vector<8x512xf32>
    %764 = tpu.matmul %762, %763, %cst_499 {dimension_numbers = #tpu.dot_dimension_numbers<[1], [0], [0], [1], [0, 0, 1, 1], [], []>} : vector<8x128xbf16>, vector<128x512xbf16>, vector<8x512xf32> -> vector<8x512xf32>
    %765 = arith.addf %761, %764 : vector<8x512xf32>
    %766 = vector.extract_strided_slice %765 {offsets = [0, 0], sizes = [8, 384], strides = [1, 1]} : vector<8x512xf32> to vector<8x384xf32>
    %767 = arith.negf %766 : vector<8x384xf32>
    %768 = math.exp %767 : vector<8x384xf32>
    %cst_500 = arith.constant 1.000000e+00 : f32
    %769 = vector.broadcast %cst_500 : f32 to vector<8x384xf32>
    %770 = arith.addf %769, %768 : vector<8x384xf32>
    %771 = arith.divf %769, %770 : vector<8x384xf32>
    %772 = vector.extract_strided_slice %765 {offsets = [0, 384], sizes = [8, 128], strides = [1, 1]} : vector<8x512xf32> to vector<8x128xf32>
    %773 = math.tanh %772 : vector<8x128xf32>
    %774 = vector.extract_strided_slice %771 {offsets = [0, 0], sizes = [8, 128], strides = [1, 1]} : vector<8x384xf32> to vector<8x128xf32>
    %775 = vector.extract_strided_slice %771 {offsets = [0, 128], sizes = [8, 128], strides = [1, 1]} : vector<8x384xf32> to vector<8x128xf32>
    %776 = vector.extract_strided_slice %771 {offsets = [0, 256], sizes = [8, 128], strides = [1, 1]} : vector<8x384xf32> to vector<8x128xf32>
    %777 = arith.mulf %775, %758 : vector<8x128xf32>
    %778 = arith.mulf %774, %773 : vector<8x128xf32>
    %779 = arith.addf %777, %778 : vector<8x128xf32>
    %780 = math.tanh %779 : vector<8x128xf32>
    %781 = arith.mulf %776, %780 : vector<8x128xf32>
    %c56_501 = arith.constant 56 : index
    %c0_502 = arith.constant 0 : index
    %782 = vector.load %arg13[%c56_501, %c0_502] : memref<128x512xf32, #tpu.memory_space<vmem>>, vector<8x512xf32>
    %783 = arith.truncf %781 : vector<8x128xf32> to vector<8x128xbf16>
    %c0_503 = arith.constant 0 : index
    %c0_504 = arith.constant 0 : index
    %784 = vector.load %arg7[%c0_503, %c0_504] : memref<128x512xbf16, #tpu.memory_space<vmem>>, vector<128x512xbf16>
    %cst_505 = arith.constant dense<0.000000e+00> : vector<8x512xf32>
    %785 = tpu.matmul %783, %784, %cst_505 {dimension_numbers = #tpu.dot_dimension_numbers<[1], [0], [0], [1], [0, 0, 1, 1], [], []>} : vector<8x128xbf16>, vector<128x512xbf16>, vector<8x512xf32> -> vector<8x512xf32>
    %786 = arith.addf %782, %785 : vector<8x512xf32>
    %787 = vector.extract_strided_slice %786 {offsets = [0, 0], sizes = [8, 384], strides = [1, 1]} : vector<8x512xf32> to vector<8x384xf32>
    %788 = arith.negf %787 : vector<8x384xf32>
    %789 = math.exp %788 : vector<8x384xf32>
    %cst_506 = arith.constant 1.000000e+00 : f32
    %790 = vector.broadcast %cst_506 : f32 to vector<8x384xf32>
    %791 = arith.addf %790, %789 : vector<8x384xf32>
    %792 = arith.divf %790, %791 : vector<8x384xf32>
    %793 = vector.extract_strided_slice %786 {offsets = [0, 384], sizes = [8, 128], strides = [1, 1]} : vector<8x512xf32> to vector<8x128xf32>
    %794 = math.tanh %793 : vector<8x128xf32>
    %795 = vector.extract_strided_slice %792 {offsets = [0, 0], sizes = [8, 128], strides = [1, 1]} : vector<8x384xf32> to vector<8x128xf32>
    %796 = vector.extract_strided_slice %792 {offsets = [0, 128], sizes = [8, 128], strides = [1, 1]} : vector<8x384xf32> to vector<8x128xf32>
    %797 = vector.extract_strided_slice %792 {offsets = [0, 256], sizes = [8, 128], strides = [1, 1]} : vector<8x384xf32> to vector<8x128xf32>
    %798 = arith.mulf %796, %779 : vector<8x128xf32>
    %799 = arith.mulf %795, %794 : vector<8x128xf32>
    %800 = arith.addf %798, %799 : vector<8x128xf32>
    %801 = math.tanh %800 : vector<8x128xf32>
    %802 = arith.mulf %797, %801 : vector<8x128xf32>
    %c64_507 = arith.constant 64 : index
    %c0_508 = arith.constant 0 : index
    %803 = vector.load %arg13[%c64_507, %c0_508] : memref<128x512xf32, #tpu.memory_space<vmem>>, vector<8x512xf32>
    %804 = arith.truncf %802 : vector<8x128xf32> to vector<8x128xbf16>
    %c0_509 = arith.constant 0 : index
    %c0_510 = arith.constant 0 : index
    %805 = vector.load %arg7[%c0_509, %c0_510] : memref<128x512xbf16, #tpu.memory_space<vmem>>, vector<128x512xbf16>
    %cst_511 = arith.constant dense<0.000000e+00> : vector<8x512xf32>
    %806 = tpu.matmul %804, %805, %cst_511 {dimension_numbers = #tpu.dot_dimension_numbers<[1], [0], [0], [1], [0, 0, 1, 1], [], []>} : vector<8x128xbf16>, vector<128x512xbf16>, vector<8x512xf32> -> vector<8x512xf32>
    %807 = arith.addf %803, %806 : vector<8x512xf32>
    %808 = vector.extract_strided_slice %807 {offsets = [0, 0], sizes = [8, 384], strides = [1, 1]} : vector<8x512xf32> to vector<8x384xf32>
    %809 = arith.negf %808 : vector<8x384xf32>
    %810 = math.exp %809 : vector<8x384xf32>
    %cst_512 = arith.constant 1.000000e+00 : f32
    %811 = vector.broadcast %cst_512 : f32 to vector<8x384xf32>
    %812 = arith.addf %811, %810 : vector<8x384xf32>
    %813 = arith.divf %811, %812 : vector<8x384xf32>
    %814 = vector.extract_strided_slice %807 {offsets = [0, 384], sizes = [8, 128], strides = [1, 1]} : vector<8x512xf32> to vector<8x128xf32>
    %815 = math.tanh %814 : vector<8x128xf32>
    %816 = vector.extract_strided_slice %813 {offsets = [0, 0], sizes = [8, 128], strides = [1, 1]} : vector<8x384xf32> to vector<8x128xf32>
    %817 = vector.extract_strided_slice %813 {offsets = [0, 128], sizes = [8, 128], strides = [1, 1]} : vector<8x384xf32> to vector<8x128xf32>
    %818 = vector.extract_strided_slice %813 {offsets = [0, 256], sizes = [8, 128], strides = [1, 1]} : vector<8x384xf32> to vector<8x128xf32>
    %819 = arith.mulf %817, %800 : vector<8x128xf32>
    %820 = arith.mulf %816, %815 : vector<8x128xf32>
    %821 = arith.addf %819, %820 : vector<8x128xf32>
    %822 = math.tanh %821 : vector<8x128xf32>
    %823 = arith.mulf %818, %822 : vector<8x128xf32>
    %c72_513 = arith.constant 72 : index
    %c0_514 = arith.constant 0 : index
    %824 = vector.load %arg13[%c72_513, %c0_514] : memref<128x512xf32, #tpu.memory_space<vmem>>, vector<8x512xf32>
    %825 = arith.truncf %823 : vector<8x128xf32> to vector<8x128xbf16>
    %c0_515 = arith.constant 0 : index
    %c0_516 = arith.constant 0 : index
    %826 = vector.load %arg7[%c0_515, %c0_516] : memref<128x512xbf16, #tpu.memory_space<vmem>>, vector<128x512xbf16>
    %cst_517 = arith.constant dense<0.000000e+00> : vector<8x512xf32>
    %827 = tpu.matmul %825, %826, %cst_517 {dimension_numbers = #tpu.dot_dimension_numbers<[1], [0], [0], [1], [0, 0, 1, 1], [], []>} : vector<8x128xbf16>, vector<128x512xbf16>, vector<8x512xf32> -> vector<8x512xf32>
    %828 = arith.addf %824, %827 : vector<8x512xf32>
    %829 = vector.extract_strided_slice %828 {offsets = [0, 0], sizes = [8, 384], strides = [1, 1]} : vector<8x512xf32> to vector<8x384xf32>
    %830 = arith.negf %829 : vector<8x384xf32>
    %831 = math.exp %830 : vector<8x384xf32>
    %cst_518 = arith.constant 1.000000e+00 : f32
    %832 = vector.broadcast %cst_518 : f32 to vector<8x384xf32>
    %833 = arith.addf %832, %831 : vector<8x384xf32>
    %834 = arith.divf %832, %833 : vector<8x384xf32>
    %835 = vector.extract_strided_slice %828 {offsets = [0, 384], sizes = [8, 128], strides = [1, 1]} : vector<8x512xf32> to vector<8x128xf32>
    %836 = math.tanh %835 : vector<8x128xf32>
    %837 = vector.extract_strided_slice %834 {offsets = [0, 0], sizes = [8, 128], strides = [1, 1]} : vector<8x384xf32> to vector<8x128xf32>
    %838 = vector.extract_strided_slice %834 {offsets = [0, 128], sizes = [8, 128], strides = [1, 1]} : vector<8x384xf32> to vector<8x128xf32>
    %839 = vector.extract_strided_slice %834 {offsets = [0, 256], sizes = [8, 128], strides = [1, 1]} : vector<8x384xf32> to vector<8x128xf32>
    %840 = arith.mulf %838, %821 : vector<8x128xf32>
    %841 = arith.mulf %837, %836 : vector<8x128xf32>
    %842 = arith.addf %840, %841 : vector<8x128xf32>
    %843 = math.tanh %842 : vector<8x128xf32>
    %844 = arith.mulf %839, %843 : vector<8x128xf32>
    %c80_519 = arith.constant 80 : index
    %c0_520 = arith.constant 0 : index
    %845 = vector.load %arg13[%c80_519, %c0_520] : memref<128x512xf32, #tpu.memory_space<vmem>>, vector<8x512xf32>
    %846 = arith.truncf %844 : vector<8x128xf32> to vector<8x128xbf16>
    %c0_521 = arith.constant 0 : index
    %c0_522 = arith.constant 0 : index
    %847 = vector.load %arg7[%c0_521, %c0_522] : memref<128x512xbf16, #tpu.memory_space<vmem>>, vector<128x512xbf16>
    %cst_523 = arith.constant dense<0.000000e+00> : vector<8x512xf32>
    %848 = tpu.matmul %846, %847, %cst_523 {dimension_numbers = #tpu.dot_dimension_numbers<[1], [0], [0], [1], [0, 0, 1, 1], [], []>} : vector<8x128xbf16>, vector<128x512xbf16>, vector<8x512xf32> -> vector<8x512xf32>
    %849 = arith.addf %845, %848 : vector<8x512xf32>
    %850 = vector.extract_strided_slice %849 {offsets = [0, 0], sizes = [8, 384], strides = [1, 1]} : vector<8x512xf32> to vector<8x384xf32>
    %851 = arith.negf %850 : vector<8x384xf32>
    %852 = math.exp %851 : vector<8x384xf32>
    %cst_524 = arith.constant 1.000000e+00 : f32
    %853 = vector.broadcast %cst_524 : f32 to vector<8x384xf32>
    %854 = arith.addf %853, %852 : vector<8x384xf32>
    %855 = arith.divf %853, %854 : vector<8x384xf32>
    %856 = vector.extract_strided_slice %849 {offsets = [0, 384], sizes = [8, 128], strides = [1, 1]} : vector<8x512xf32> to vector<8x128xf32>
    %857 = math.tanh %856 : vector<8x128xf32>
    %858 = vector.extract_strided_slice %855 {offsets = [0, 0], sizes = [8, 128], strides = [1, 1]} : vector<8x384xf32> to vector<8x128xf32>
    %859 = vector.extract_strided_slice %855 {offsets = [0, 128], sizes = [8, 128], strides = [1, 1]} : vector<8x384xf32> to vector<8x128xf32>
    %860 = vector.extract_strided_slice %855 {offsets = [0, 256], sizes = [8, 128], strides = [1, 1]} : vector<8x384xf32> to vector<8x128xf32>
    %861 = arith.mulf %859, %842 : vector<8x128xf32>
    %862 = arith.mulf %858, %857 : vector<8x128xf32>
    %863 = arith.addf %861, %862 : vector<8x128xf32>
    %864 = math.tanh %863 : vector<8x128xf32>
    %865 = arith.mulf %860, %864 : vector<8x128xf32>
    %c88_525 = arith.constant 88 : index
    %c0_526 = arith.constant 0 : index
    %866 = vector.load %arg13[%c88_525, %c0_526] : memref<128x512xf32, #tpu.memory_space<vmem>>, vector<8x512xf32>
    %867 = arith.truncf %865 : vector<8x128xf32> to vector<8x128xbf16>
    %c0_527 = arith.constant 0 : index
    %c0_528 = arith.constant 0 : index
    %868 = vector.load %arg7[%c0_527, %c0_528] : memref<128x512xbf16, #tpu.memory_space<vmem>>, vector<128x512xbf16>
    %cst_529 = arith.constant dense<0.000000e+00> : vector<8x512xf32>
    %869 = tpu.matmul %867, %868, %cst_529 {dimension_numbers = #tpu.dot_dimension_numbers<[1], [0], [0], [1], [0, 0, 1, 1], [], []>} : vector<8x128xbf16>, vector<128x512xbf16>, vector<8x512xf32> -> vector<8x512xf32>
    %870 = arith.addf %866, %869 : vector<8x512xf32>
    %871 = vector.extract_strided_slice %870 {offsets = [0, 0], sizes = [8, 384], strides = [1, 1]} : vector<8x512xf32> to vector<8x384xf32>
    %872 = arith.negf %871 : vector<8x384xf32>
    %873 = math.exp %872 : vector<8x384xf32>
    %cst_530 = arith.constant 1.000000e+00 : f32
    %874 = vector.broadcast %cst_530 : f32 to vector<8x384xf32>
    %875 = arith.addf %874, %873 : vector<8x384xf32>
    %876 = arith.divf %874, %875 : vector<8x384xf32>
    %877 = vector.extract_strided_slice %870 {offsets = [0, 384], sizes = [8, 128], strides = [1, 1]} : vector<8x512xf32> to vector<8x128xf32>
    %878 = math.tanh %877 : vector<8x128xf32>
    %879 = vector.extract_strided_slice %876 {offsets = [0, 0], sizes = [8, 128], strides = [1, 1]} : vector<8x384xf32> to vector<8x128xf32>
    %880 = vector.extract_strided_slice %876 {offsets = [0, 128], sizes = [8, 128], strides = [1, 1]} : vector<8x384xf32> to vector<8x128xf32>
    %881 = vector.extract_strided_slice %876 {offsets = [0, 256], sizes = [8, 128], strides = [1, 1]} : vector<8x384xf32> to vector<8x128xf32>
    %882 = arith.mulf %880, %863 : vector<8x128xf32>
    %883 = arith.mulf %879, %878 : vector<8x128xf32>
    %884 = arith.addf %882, %883 : vector<8x128xf32>
    %885 = math.tanh %884 : vector<8x128xf32>
    %886 = arith.mulf %881, %885 : vector<8x128xf32>
    %c96_531 = arith.constant 96 : index
    %c0_532 = arith.constant 0 : index
    %887 = vector.load %arg13[%c96_531, %c0_532] : memref<128x512xf32, #tpu.memory_space<vmem>>, vector<8x512xf32>
    %888 = arith.truncf %886 : vector<8x128xf32> to vector<8x128xbf16>
    %c0_533 = arith.constant 0 : index
    %c0_534 = arith.constant 0 : index
    %889 = vector.load %arg7[%c0_533, %c0_534] : memref<128x512xbf16, #tpu.memory_space<vmem>>, vector<128x512xbf16>
    %cst_535 = arith.constant dense<0.000000e+00> : vector<8x512xf32>
    %890 = tpu.matmul %888, %889, %cst_535 {dimension_numbers = #tpu.dot_dimension_numbers<[1], [0], [0], [1], [0, 0, 1, 1], [], []>} : vector<8x128xbf16>, vector<128x512xbf16>, vector<8x512xf32> -> vector<8x512xf32>
    %891 = arith.addf %887, %890 : vector<8x512xf32>
    %892 = vector.extract_strided_slice %891 {offsets = [0, 0], sizes = [8, 384], strides = [1, 1]} : vector<8x512xf32> to vector<8x384xf32>
    %893 = arith.negf %892 : vector<8x384xf32>
    %894 = math.exp %893 : vector<8x384xf32>
    %cst_536 = arith.constant 1.000000e+00 : f32
    %895 = vector.broadcast %cst_536 : f32 to vector<8x384xf32>
    %896 = arith.addf %895, %894 : vector<8x384xf32>
    %897 = arith.divf %895, %896 : vector<8x384xf32>
    %898 = vector.extract_strided_slice %891 {offsets = [0, 384], sizes = [8, 128], strides = [1, 1]} : vector<8x512xf32> to vector<8x128xf32>
    %899 = math.tanh %898 : vector<8x128xf32>
    %900 = vector.extract_strided_slice %897 {offsets = [0, 0], sizes = [8, 128], strides = [1, 1]} : vector<8x384xf32> to vector<8x128xf32>
    %901 = vector.extract_strided_slice %897 {offsets = [0, 128], sizes = [8, 128], strides = [1, 1]} : vector<8x384xf32> to vector<8x128xf32>
    %902 = vector.extract_strided_slice %897 {offsets = [0, 256], sizes = [8, 128], strides = [1, 1]} : vector<8x384xf32> to vector<8x128xf32>
    %903 = arith.mulf %901, %884 : vector<8x128xf32>
    %904 = arith.mulf %900, %899 : vector<8x128xf32>
    %905 = arith.addf %903, %904 : vector<8x128xf32>
    %906 = math.tanh %905 : vector<8x128xf32>
    %907 = arith.mulf %902, %906 : vector<8x128xf32>
    %c104_537 = arith.constant 104 : index
    %c0_538 = arith.constant 0 : index
    %908 = vector.load %arg13[%c104_537, %c0_538] : memref<128x512xf32, #tpu.memory_space<vmem>>, vector<8x512xf32>
    %909 = arith.truncf %907 : vector<8x128xf32> to vector<8x128xbf16>
    %c0_539 = arith.constant 0 : index
    %c0_540 = arith.constant 0 : index
    %910 = vector.load %arg7[%c0_539, %c0_540] : memref<128x512xbf16, #tpu.memory_space<vmem>>, vector<128x512xbf16>
    %cst_541 = arith.constant dense<0.000000e+00> : vector<8x512xf32>
    %911 = tpu.matmul %909, %910, %cst_541 {dimension_numbers = #tpu.dot_dimension_numbers<[1], [0], [0], [1], [0, 0, 1, 1], [], []>} : vector<8x128xbf16>, vector<128x512xbf16>, vector<8x512xf32> -> vector<8x512xf32>
    %912 = arith.addf %908, %911 : vector<8x512xf32>
    %913 = vector.extract_strided_slice %912 {offsets = [0, 0], sizes = [8, 384], strides = [1, 1]} : vector<8x512xf32> to vector<8x384xf32>
    %914 = arith.negf %913 : vector<8x384xf32>
    %915 = math.exp %914 : vector<8x384xf32>
    %cst_542 = arith.constant 1.000000e+00 : f32
    %916 = vector.broadcast %cst_542 : f32 to vector<8x384xf32>
    %917 = arith.addf %916, %915 : vector<8x384xf32>
    %918 = arith.divf %916, %917 : vector<8x384xf32>
    %919 = vector.extract_strided_slice %912 {offsets = [0, 384], sizes = [8, 128], strides = [1, 1]} : vector<8x512xf32> to vector<8x128xf32>
    %920 = math.tanh %919 : vector<8x128xf32>
    %921 = vector.extract_strided_slice %918 {offsets = [0, 0], sizes = [8, 128], strides = [1, 1]} : vector<8x384xf32> to vector<8x128xf32>
    %922 = vector.extract_strided_slice %918 {offsets = [0, 128], sizes = [8, 128], strides = [1, 1]} : vector<8x384xf32> to vector<8x128xf32>
    %923 = vector.extract_strided_slice %918 {offsets = [0, 256], sizes = [8, 128], strides = [1, 1]} : vector<8x384xf32> to vector<8x128xf32>
    %924 = arith.mulf %922, %905 : vector<8x128xf32>
    %925 = arith.mulf %921, %920 : vector<8x128xf32>
    %926 = arith.addf %924, %925 : vector<8x128xf32>
    %927 = math.tanh %926 : vector<8x128xf32>
    %928 = arith.mulf %923, %927 : vector<8x128xf32>
    %c112_543 = arith.constant 112 : index
    %c0_544 = arith.constant 0 : index
    %929 = vector.load %arg13[%c112_543, %c0_544] : memref<128x512xf32, #tpu.memory_space<vmem>>, vector<8x512xf32>
    %930 = arith.truncf %928 : vector<8x128xf32> to vector<8x128xbf16>
    %c0_545 = arith.constant 0 : index
    %c0_546 = arith.constant 0 : index
    %931 = vector.load %arg7[%c0_545, %c0_546] : memref<128x512xbf16, #tpu.memory_space<vmem>>, vector<128x512xbf16>
    %cst_547 = arith.constant dense<0.000000e+00> : vector<8x512xf32>
    %932 = tpu.matmul %930, %931, %cst_547 {dimension_numbers = #tpu.dot_dimension_numbers<[1], [0], [0], [1], [0, 0, 1, 1], [], []>} : vector<8x128xbf16>, vector<128x512xbf16>, vector<8x512xf32> -> vector<8x512xf32>
    %933 = arith.addf %929, %932 : vector<8x512xf32>
    %934 = vector.extract_strided_slice %933 {offsets = [0, 0], sizes = [8, 384], strides = [1, 1]} : vector<8x512xf32> to vector<8x384xf32>
    %935 = arith.negf %934 : vector<8x384xf32>
    %936 = math.exp %935 : vector<8x384xf32>
    %cst_548 = arith.constant 1.000000e+00 : f32
    %937 = vector.broadcast %cst_548 : f32 to vector<8x384xf32>
    %938 = arith.addf %937, %936 : vector<8x384xf32>
    %939 = arith.divf %937, %938 : vector<8x384xf32>
    %940 = vector.extract_strided_slice %933 {offsets = [0, 384], sizes = [8, 128], strides = [1, 1]} : vector<8x512xf32> to vector<8x128xf32>
    %941 = math.tanh %940 : vector<8x128xf32>
    %942 = vector.extract_strided_slice %939 {offsets = [0, 0], sizes = [8, 128], strides = [1, 1]} : vector<8x384xf32> to vector<8x128xf32>
    %943 = vector.extract_strided_slice %939 {offsets = [0, 128], sizes = [8, 128], strides = [1, 1]} : vector<8x384xf32> to vector<8x128xf32>
    %944 = vector.extract_strided_slice %939 {offsets = [0, 256], sizes = [8, 128], strides = [1, 1]} : vector<8x384xf32> to vector<8x128xf32>
    %945 = arith.mulf %943, %926 : vector<8x128xf32>
    %946 = arith.mulf %942, %941 : vector<8x128xf32>
    %947 = arith.addf %945, %946 : vector<8x128xf32>
    %948 = math.tanh %947 : vector<8x128xf32>
    %949 = arith.mulf %944, %948 : vector<8x128xf32>
    %c120_549 = arith.constant 120 : index
    %c0_550 = arith.constant 0 : index
    %950 = vector.load %arg13[%c120_549, %c0_550] : memref<128x512xf32, #tpu.memory_space<vmem>>, vector<8x512xf32>
    %951 = arith.truncf %949 : vector<8x128xf32> to vector<8x128xbf16>
    %c0_551 = arith.constant 0 : index
    %c0_552 = arith.constant 0 : index
    %952 = vector.load %arg7[%c0_551, %c0_552] : memref<128x512xbf16, #tpu.memory_space<vmem>>, vector<128x512xbf16>
    %cst_553 = arith.constant dense<0.000000e+00> : vector<8x512xf32>
    %953 = tpu.matmul %951, %952, %cst_553 {dimension_numbers = #tpu.dot_dimension_numbers<[1], [0], [0], [1], [0, 0, 1, 1], [], []>} : vector<8x128xbf16>, vector<128x512xbf16>, vector<8x512xf32> -> vector<8x512xf32>
    %954 = arith.addf %950, %953 : vector<8x512xf32>
    %955 = vector.extract_strided_slice %954 {offsets = [0, 0], sizes = [8, 384], strides = [1, 1]} : vector<8x512xf32> to vector<8x384xf32>
    %956 = arith.negf %955 : vector<8x384xf32>
    %957 = math.exp %956 : vector<8x384xf32>
    %cst_554 = arith.constant 1.000000e+00 : f32
    %958 = vector.broadcast %cst_554 : f32 to vector<8x384xf32>
    %959 = arith.addf %958, %957 : vector<8x384xf32>
    %960 = arith.divf %958, %959 : vector<8x384xf32>
    %961 = vector.extract_strided_slice %954 {offsets = [0, 384], sizes = [8, 128], strides = [1, 1]} : vector<8x512xf32> to vector<8x128xf32>
    %962 = math.tanh %961 : vector<8x128xf32>
    %963 = vector.extract_strided_slice %960 {offsets = [0, 0], sizes = [8, 128], strides = [1, 1]} : vector<8x384xf32> to vector<8x128xf32>
    %964 = vector.extract_strided_slice %960 {offsets = [0, 128], sizes = [8, 128], strides = [1, 1]} : vector<8x384xf32> to vector<8x128xf32>
    %965 = vector.extract_strided_slice %960 {offsets = [0, 256], sizes = [8, 128], strides = [1, 1]} : vector<8x384xf32> to vector<8x128xf32>
    %966 = arith.mulf %964, %947 : vector<8x128xf32>
    %967 = arith.mulf %963, %962 : vector<8x128xf32>
    %968 = arith.addf %966, %967 : vector<8x128xf32>
    %969 = math.tanh %968 : vector<8x128xf32>
    %970 = arith.mulf %965, %969 : vector<8x128xf32>
    %971 = arith.select %21, %970, %655 : vector<8x128xi1>, vector<8x128xf32>
    %972 = arith.truncf %971 : vector<8x128xf32> to vector<8x128xbf16>
    %c0_555 = arith.constant 0 : index
    %c0_556 = arith.constant 0 : index
    %973 = vector.load %arg8[%c0_555, %c0_556] : memref<128x128xbf16, #tpu.memory_space<vmem>>, vector<128x128xbf16>
    %cst_557 = arith.constant dense<0.000000e+00> : vector<8x128xf32>
    %974 = tpu.matmul %972, %973, %cst_557 {dimension_numbers = #tpu.dot_dimension_numbers<[1], [0], [0], [1], [0, 0, 1, 1], [], []>} : vector<8x128xbf16>, vector<128x128xbf16>, vector<8x128xf32> -> vector<8x128xf32>
    %c0_558 = arith.constant 0 : index
    %c1792 = arith.constant 1792 : index
    %975 = vector.load %arg9[%c0_558, %c1792] : memref<1x1920xf32, #tpu.memory_space<vmem>>, vector<1x128xf32>
    %976 = vector.broadcast %975 : vector<1x128xf32> to vector<8x128xf32>
    %977 = arith.addf %974, %976 : vector<8x128xf32>
    %c0_559 = arith.constant 0 : index
    %c0_560 = arith.constant 0 : index
    %978 = vector.load %arg10[%c0_559, %c0_560] : memref<8x128xf32, #tpu.memory_space<vmem>>, vector<8x128xf32>
    tpu.vector_store %arg10[%c0_559, %c0_560], %977 {strides = array<i32>} : memref<8x128xf32, #tpu.memory_space<vmem>>, vector<8x128xf32>,
    return
  }
  func.func @transform_0(%arg0: i32) -> (i32, i32) {
    %c0_i32 = arith.constant 0 : i32
    %c0_i32_0 = arith.constant 0 : i32
    %c0_i32_1 = arith.constant 0 : i32
    return %c0_i32, %c0_i32_0 : i32, i32
  }
  func.func @transform_1(%arg0: i32) -> (i32, i32) {
    %c0_i32 = arith.constant 0 : i32
    %c0_i32_0 = arith.constant 0 : i32
    %c0_i32_1 = arith.constant 0 : i32
    return %c0_i32, %c0_i32_0 : i32, i32
  }
  func.func @transform_2(%arg0: i32) -> (i32, i32, i32) {
    %c0_i32 = arith.constant 0 : i32
    %c0_i32_0 = arith.constant 0 : i32
    %c0_i32_1 = arith.constant 0 : i32
    %c0_i32_2 = arith.constant 0 : i32
    return %c0_i32, %c0_i32_0, %c0_i32_1 : i32, i32, i32
  }
  func.func @transform_3(%arg0: i32) -> (i32, i32) {
    %c0_i32 = arith.constant 0 : i32
    %c0_i32_0 = arith.constant 0 : i32
    %c0_i32_1 = arith.constant 0 : i32
    return %c0_i32, %c0_i32_0 : i32, i32
  }
  func.func @transform_4(%arg0: i32) -> (i32, i32) {
    %c0_i32 = arith.constant 0 : i32
    %c0_i32_0 = arith.constant 0 : i32
    %c0_i32_1 = arith.constant 0 : i32
    return %c0_i32, %c0_i32_0 : i32, i32
  }
  func.func @transform_5(%arg0: i32) -> (i32, i32) {
    %c0_i32 = arith.constant 0 : i32
    %c0_i32_0 = arith.constant 0 : i32
    %c0_i32_1 = arith.constant 0 : i32
    return %c0_i32, %c0_i32_0 : i32, i32
  }
  func.func @transform_6(%arg0: i32) -> (i32, i32) {
    %c0_i32 = arith.constant 0 : i32
    %c0_i32_0 = arith.constant 0 : i32
    %c0_i32_1 = arith.constant 0 : i32
    return %c0_i32, %c0_i32_0 : i32, i32
  }
  func.func @transform_7(%arg0: i32) -> (i32, i32) {
    %c0_i32 = arith.constant 0 : i32
    %c0_i32_0 = arith.constant 0 : i32
    %c0_i32_1 = arith.constant 0 : i32
    return %c0_i32, %c0_i32_0 : i32, i32
  }
  func.func @transform_8(%arg0: i32) -> (i32, i32) {
    %c0_i32 = arith.constant 0 : i32
    %c0_i32_0 = arith.constant 0 : i32
    %c0_i32_1 = arith.constant 0 : i32
    return %c0_i32, %c0_i32_0 : i32, i32
  }
  func.func @transform_9(%arg0: i32) -> (i32, i32) {
    %c0_i32 = arith.constant 0 : i32
    %c0_i32_0 = arith.constant 0 : i32
    %c0_i32_1 = arith.constant 0 : i32
    return %c0_i32, %c0_i32_0 : i32, i32
  }
}

</mosaic_0001>

<bundles_post_ra>
// kernel: cnn_bilstm_forward.1
= control target key start
LH: loop header
LB: loop body
LE: loop exit
PB: predicated region body
PF: predicated region fallthrough
CT: control target
= control target key end

     0   :  { %vm178_vm0 = vcmask 1046528   ;;  %vm179_vm1 = vcmask 1047552   ;;  %v11665_v2 = vmov 65535   ;;  %vm153_vm2 = vcmask 515072   ;;  %s16316_s1 = inlined_call_operand.vmem [shape: bf16[63,64], index: 1, kind: input, shape index: {}]   ;;  %s16317_s0 = inlined_call_operand.vmem [shape: f32[128,63], index: 0, kind: input, shape index: {}]   ;;  %s16318_s2 = inlined_call_operand.vmem [shape: bf16[3,64,128], index: 2, kind: input, shape index: {}]   ;;  %s16319_s3 = inlined_call_operand.vmem [shape: bf16[128,512], index: 3, kind: input, shape index: {}]   ;;  %s16320_s8 = inlined_call_operand.vmem [shape: f32[1,1920], index: 8, kind: input, shape index: {}]   ;;  %s16321_s4 = inlined_call_operand.vmem [shape: bf16[128,512], index: 4, kind: input, shape index: {}]   ;;  %s16322_s5 = inlined_call_operand.vmem [shape: bf16[128,512], index: 5, kind: input, shape index: {}]   ;;  %s16323_s6 = inlined_call_operand.vmem [shape: bf16[128,512], index: 6, kind: input, shape index: {}]   ;;  %s16324_s7 = inlined_call_operand.vmem [shape: bf16[128,128], index: 7, kind: input, shape index: {}]   ;;  %s16325_s9 = inlined_call_operand.vmem [shape: f32[8,128], index: 9, kind: output, shape index: {}]  }
   0x1   :  { %v10666_v0 = vld [vmem:[%s16316_s1] sm:$0xff]   ;;  %v10667_v1 = vld [vmem:[%s16316_s1 + $0x8] sm:$0xff]   ;;  %v180_v3 = vsel %vm178_vm0, 4294967295, %v11665_v2  ;;  %v10668_v4 = vld [vmem:[%s16316_s1 + $0x10] sm:$0xff]   ;;  %vm344_vm3 = vcmask 523264   ;;  %v16326_v34 = vmov 0.0  }
   0x2   :  { %10514 = vmatprep.subr.bf16.mxu0 %v10666_v0  ;;  %v10669_v5 = vld [vmem:[%s16316_s1 + $0x18] sm:$0xff]   ;;  %v91_v6 = vld [vmem:[%s16317_s0] sm:$0xff]  ;;  %v92_v7 = vld [vmem:[%s16317_s0 + $0x8] sm:$0xff]  ;;  %v181_v8 = vsel %vm179_vm1, %v180_v3, 0  ;;  %345 = vst.msk [vmem:[#allocation2] sm:$0xff] %vm344_vm3, %v16326_v34  ;;  %vm11668_vm8 = vmmov 0  }
   0x3   :  { %10515 = vmatpush3.bf16.msra.mxu0 %v10666_v0  ;;  %v107_v9 = vpack.c.bf16 %v92_v7, %v91_v6  ;;  %v183_v10 = vand.u32 %v10669_v5, %v181_v8  ;;  %v93_v11 = vld [vmem:[%s16317_s0 + $0x10] sm:$0xff]  ;;  %v94_v12 = vld [vmem:[%s16317_s0 + $0x18] sm:$0xff]  ;;  %v95_v13 = vld [vmem:[%s16317_s0 + $0x20] sm:$0xff]  ;;  %346 = vst.msk [vmem:[#allocation2 + $0x88] sm:$0xff] %vm344_vm3, %v16326_v34 }
   0x4   :  { %10516 = vmatprep.subr.bf16.mxu0 %v10667_v1  ;;  %v96_v14 = vld [vmem:[%s16317_s0 + $0x28] sm:$0xff]  ;;  %v108_v15 = vpack.c.bf16 %v94_v12, %v93_v11  ;;  %v97_v17 = vld [vmem:[%s16317_s0 + $0x30] sm:$0xff]  ;;  %v98_v18 = vld [vmem:[%s16317_s0 + $0x38] sm:$0xff] }
   0x5   :  { %10522 = vmatprep.mubr.msk.bf16.mxu0 %vm153_vm2, %v107_v9  ;;  %v109_v16 = vpack.c.bf16 %v96_v14, %v95_v13  ;;  %v99_v19 = vld [vmem:[%s16317_s0 + $0x40] sm:$0xff]  ;;  %v100_v20 = vld [vmem:[%s16317_s0 + $0x48] sm:$0xff]  ;;  %v110_v21 = vpack.c.bf16 %v98_v18, %v97_v17  ;;  %v101_v23 = vld [vmem:[%s16317_s0 + $0x50] sm:$0xff] }
   0x6   :  { %v111_v22 = vpack.c.bf16 %v100_v20, %v99_v19  ;;  %v102_v24 = vld [vmem:[%s16317_s0 + $0x58] sm:$0xff]  ;;  %v103_v25 = vld [vmem:[%s16317_s0 + $0x60] sm:$0xff]  ;;  %v104_v26 = vld [vmem:[%s16317_s0 + $0x68] sm:$0xff] }
   0x7   :  { %10517 = vmatpush3.bf16.msra.mxu0 %v10667_v1  ;;  %v112_v27 = vpack.c.bf16 %v102_v24, %v101_v23  ;;  %v113_v28 = vpack.c.bf16 %v104_v26, %v103_v25  ;;  %v105_v29 = vld [vmem:[%s16317_s0 + $0x70] sm:$0xff]  ;;  %v106_v30 = vld [vmem:[%s16317_s0 + $0x78] sm:$0xff]  ;;  %v10670_v32 = vld [vmem:[%s16318_s2 + $0x20] sm:$0xff]  }
   0x8   :  { %10518 = vmatprep.subr.bf16.mxu0 %v10668_v4  ;;  %v114_v31 = vpack.c.bf16 %v106_v30, %v105_v29  ;;  %10538 = vmatprep.subr.bf16.mxu1 %v10670_v32  ;;  %v10671_v33 = vld [vmem:[%s16318_s2 + $0x28] sm:$0xff]   ;;  %v10672_v35 = vld [vmem:[%s16318_s2 + $0x30] sm:$0xff]   ;;  %v10673_v36 = vld [vmem:[%s16318_s2 + $0x38] sm:$0xff]  }
   0x9   :  { %10539 = vmatpush3.bf16.msra.mxu1 %v10670_v32  ;;  %v11806_v37 = vld [vmem:[%s16318_s2] sm:$0xff]  }
   0xa   :  { %10540 = vmatprep.subr.bf16.mxu1 %v10671_v33  ;;  %v10682_v38 = vld [vmem:[%s16319_s3] ss:$16 sps:$4 sm:$0xff]   ;;  %v10684_v39 = vld [vmem:[%s16319_s3 + $0x4] ss:$16 sps:$4 sm:$0xff]  }
   0xb   :  { %10519 = vmatpush3.bf16.msra.mxu0 %v10668_v4  ;;  %v10687_v40 = vld [vmem:[%s16319_s3 + $0x24] ss:$16 sps:$4 sm:$0xff]   ;;  %v10685_v41 = vld [vmem:[%s16319_s3 + $0x20] ss:$16 sps:$4 sm:$0xff]  }
   0xc   :  { %10520 = vmatprep.subr.bf16.mxu0 %v183_v10  ;;  %v10690_v42 = vld [vmem:[%s16319_s3 + $0x44] ss:$16 sps:$4 sm:$0xff]   ;;  %v10688_v43 = vld [vmem:[%s16319_s3 + $0x40] ss:$16 sps:$4 sm:$0xff]  }
   0xd   :  { %10541 = vmatpush3.bf16.msra.mxu1 %v10671_v33  ;;  %v10693_v44 = vld [vmem:[%s16319_s3 + $0x64] ss:$16 sps:$4 sm:$0xff]   ;;  %v10691_v45 = vld [vmem:[%s16319_s3 + $0x60] ss:$16 sps:$4 sm:$0xff]  }
   0xe   :  { %10542 = vmatprep.subr.bf16.mxu1 %v10672_v35  ;;  %v10696_v46 = vld [vmem:[%s16319_s3 + $0x84] ss:$16 sps:$4 sm:$0xff]   ;;  %v11839_v47 = vld [vmem:[%s16320_s8] ss:$0 sm:$0xff]  ;;  %v11848_v52 = vld [vmem:[%s16320_s8 + $0x1] ss:$0 sm:$0xff] }
   0xf   :  { %10521 = vmatpush3.bf16.msra.mxu0 %v183_v10  ;;  %v10694_v49 = vld [vmem:[%s16319_s3 + $0x80] ss:$16 sps:$4 sm:$0xff]  }
  0x10   :  { %1205 = vmatprep.subr.bf16.mxu0 %v10684_v39  ;;  %v11855_v58 = vld [vmem:[%s16320_s8 + $0x2] ss:$0 sm:$0xff] }
  0x11   :  { %10543 = vmatpush3.bf16.msra.mxu1 %v10672_v35 }
  0x12   :  { %10523 = vmatmul.mubr.msk.bf16.vlgmr.msra.gmra.mrb[0].mxu0 %vm153_vm2, %v108_v15  ;;  %10544 = vmatprep.subr.bf16.mxu1 %v10673_v36 }
  0x13   :  { %10526 = vmatprep.mubr.msk.bf16.mxu0 %vm153_vm2, %v109_v16  ;;  %1206 = vmatpush1.bf16.msra.mxu0 %v10682_v38 }
  0x14   :  { %1207 = vmatprep.subr.bf16.mxu0 %v10687_v40 }
  0x15   :  { %10545 = vmatpush3.bf16.msra.mxu1 %v10673_v36 }
  0x16   :  { %10562 = vmatprep.subr.bf16.mxu1 %v11806_v37 }
  0x17   :  { %1208 = vmatpush1.bf16.msra.mxu0 %v10685_v41 }
  0x18   :  { %1209 = vmatprep.subr.bf16.mxu0 %v10690_v42 }
  0x1a   :  { %10527 = vmatmul.mubr.msk.bf16.gmra.mrb[4].mxu0 %vm153_vm2, %v110_v21 }
  0x1b   :  { %10530 = vmatprep.mubr.msk.bf16.mxu0 %vm153_vm2, %v111_v22  ;;  %1210 = vmatpush1.bf16.msra.mxu0 %v10688_v43 }
  0x1c   :  { %1211 = vmatprep.subr.bf16.mxu0 %v10693_v44 }
  0x1f   :  { %1212 = vmatpush1.bf16.msra.mxu0 %v10691_v45 }
  0x20   :  { %1213 = vmatprep.subr.bf16.mxu0 %v10696_v46 }
  0x22   :  { %10531 = vmatmul.mubr.msk.bf16.gmra.mrb[8].mxu0 %vm153_vm2, %v112_v27 }
  0x23   :  { %10534 = vmatprep.mubr.msk.bf16.mxu0 %vm153_vm2, %v113_v28  ;;  %1214 = vmatpush1.bf16.msra.mxu0 %v10694_v49 }
  0x2a   :  { %10535 = vmatmul.mubr.msk.bf16.gmra.mrb[12].mxu0 %vm153_vm2, %v114_v31 }
  0xe5   :  { %v10524_v48 = vpop.f32.mrb[0].mxu0 }
  0xe6   :  { %v228_v50 = vadd.f32 %v10524_v48, %v11839_v47  ;;  %v219_v51 = vpop.f32.mrb[1].mxu0  ;;  %v10675_v48 = vld [vmem:[%s16318_s2 + $0x8] sm:$0xff]  }
  0xe7   :  { %v220_v53 = vadd.f32 %v11839_v47, %v219_v51  ;;  %v10525_v54 = vpop.f32.mrb[2].mxu0 }
  0xe8   :  { %v284_v55 = vmax.f32 %v228_v50, 0.0  ;;  %v231_v56 = vadd.f32 %v10525_v54, %v11839_v47  ;;  %v222_v57 = vpop.f32.mrb[3].mxu0 }
  0xe9   :  { %v282_v59 = vmax.f32 %v220_v53, 0.0  ;;  %v223_v60 = vadd.f32 %v11839_v47, %v222_v57 }
  0xea   :  { %v307_v61 = vmul.f32 %v11848_v52, %v284_v55  ;;  %v285_v62 = vmax.f32 %v231_v56, 0.0 }
  0xeb   :  { %v305_v63 = vmul.f32 %v11848_v52, %v282_v59  ;;  %v283_v0 = vmax.f32 %v223_v60, 0.0 }
  0xec   :  { %v330_v1 = vadd.f32 %v11855_v58, %v307_v61  ;;  %v308_v2 = vmul.f32 %v11848_v52, %v285_v62  ;;  %v10676_v61 = vld [vmem:[%s16318_s2 + $0x10] sm:$0xff]  }
  0xed   :  { %v328_v3 = vadd.f32 %v11855_v58, %v305_v63  ;;  %v306_v4 = vmul.f32 %v11848_v52, %v283_v0  ;;  %v10528_v5 = vpop.f32.mrb[4].mxu0 }
  0xee   :  { %349 = vst.msk [vmem:[#allocation2 + $0x18] sm:$0xff] %vm344_vm3, %v330_v1  ;;  %v331_v6 = vadd.f32 %v11855_v58, %v308_v2  ;;  %v244_v7 = vadd.f32 %v10528_v5, %v11839_v47  ;;  %v235_v8 = vpop.f32.mrb[5].mxu0 }
  0xef   :  { %347 = vst.msk [vmem:[#allocation2 + $0x8] sm:$0xff] %vm344_vm3, %v328_v3  ;;  %v329_v9 = vadd.f32 %v11855_v58, %v306_v4  ;;  %v236_v10 = vadd.f32 %v11839_v47, %v235_v8  ;;  %v10529_v11 = vpop.f32.mrb[6].mxu0 }
  0xf0   :  { %350 = vst.msk [vmem:[#allocation2 + $0x20] sm:$0xff] %vm344_vm3, %v331_v6  ;;  %v288_v12 = vmax.f32 %v244_v7, 0.0  ;;  %v247_v13 = vadd.f32 %v10529_v11, %v11839_v47  ;;  %v238_v14 = vpop.f32.mrb[7].mxu0 }
  0xf1   :  { %348 = vst.msk [vmem:[#allocation2 + $0x10] sm:$0xff] %vm344_vm3, %v329_v9  ;;  %v286_v15 = vmax.f32 %v236_v10, 0.0  ;;  %v239_v16 = vadd.f32 %v11839_v47, %v238_v14 }
  0xf2   :  { %v311_v17 = vmul.f32 %v11848_v52, %v288_v12  ;;  %v289_v18 = vmax.f32 %v247_v13, 0.0  ;;  %v10677_v13 = vld [vmem:[%s16318_s2 + $0x18] sm:$0xff]  }
  0xf3   :  { %v309_v19 = vmul.f32 %v11848_v52, %v286_v15  ;;  %v287_v20 = vmax.f32 %v239_v16, 0.0 }
  0xf4   :  { %v334_v21 = vadd.f32 %v11855_v58, %v311_v17  ;;  %v312_v22 = vmul.f32 %v11848_v52, %v289_v18 }
  0xf5   :  { %v332_v23 = vadd.f32 %v11855_v58, %v309_v19  ;;  %v310_v24 = vmul.f32 %v11848_v52, %v287_v20  ;;  %v10532_v25 = vpop.f32.mrb[8].mxu0  ;;  %v11896_v42 = vld [vmem:[#allocation2 + $0x18] sm:$0xff]  ;;  %v10678_v20 = vld [vmem:[%s16318_s2 + $0x40] sm:$0xff]  }
  0xf6   :  { %353 = vst.msk [vmem:[#allocation2 + $0x38] sm:$0xff] %vm344_vm3, %v334_v21  ;;  %v335_v26 = vadd.f32 %v11855_v58, %v312_v22  ;;  %v260_v27 = vadd.f32 %v10532_v25, %v11839_v47  ;;  %v251_v28 = vpop.f32.mrb[9].mxu0  ;;  %v11890_v38 = vld [vmem:[#allocation2 + $0x8] sm:$0xff] }
  0xf7   :  { %351 = vst.msk [vmem:[#allocation2 + $0x28] sm:$0xff] %vm344_vm3, %v332_v23  ;;  %v333_v29 = vadd.f32 %v11855_v58, %v310_v24  ;;  %v252_v30 = vadd.f32 %v11839_v47, %v251_v28  ;;  %v10533_v31 = vpop.f32.mrb[10].mxu0  ;;  %v11886_v32 = vld [vmem:[#allocation2 + $0x20] sm:$0xff] }
  0xf8   :  { %354 = vst.msk [vmem:[#allocation2 + $0x40] sm:$0xff] %vm344_vm3, %v335_v26  ;;  %v292_v33 = vmax.f32 %v260_v27, 0.0  ;;  %v263_v35 = vadd.f32 %v10533_v31, %v11839_v47  ;;  %v254_v36 = vpop.f32.mrb[11].mxu0  ;;  %v11892_v39 = vld [vmem:[#allocation2 + $0x10] sm:$0xff]  ;;  %v397_v46 = vpack.c.bf16 %v11886_v32, %v11896_v42  ;;  %v363_v28 = vld [vmem:[#allocation2] sm:$0xff] }
  0xf9   :  { %352 = vst.msk [vmem:[#allocation2 + $0x30] sm:$0xff] %vm344_vm3, %v333_v29  ;;  %v290_v40 = vmax.f32 %v252_v30, 0.0  ;;  %v255_v41 = vadd.f32 %v11839_v47, %v254_v36  ;;  %v396_v43 = vpack.c.bf16 %v11892_v39, %v11890_v38  ;;  %v380_v36 = vpack.c.bf16 %v11896_v42, %v11892_v39  ;;  %v10681_v39 = vld [vmem:[%s16318_s2 + $0x58] sm:$0xff]  }
  0xfa   :  { %v315_v44 = vmul.f32 %v11848_v52, %v292_v33  ;;  %v293_v45 = vmax.f32 %v263_v35, 0.0  ;;  %v379_v35 = vpack.c.bf16 %v11890_v38, %v363_v28  ;;  %v10680_v38 = vld [vmem:[%s16318_s2 + $0x50] sm:$0xff]   ;;  %v12208_v28 = vld [vmem:[%s16320_s8 + $0x4] ss:$0 sm:$0xff] }
  0xfb   :  { %v313_v49 = vmul.f32 %v11848_v52, %v290_v40  ;;  %v291_v50 = vmax.f32 %v255_v41, 0.0  ;;  %10546 = vmatprep.mubr.msk.bf16.mxu1 %vm344_vm3, %v396_v43  ;;  %v10679_v40 = vld [vmem:[%s16318_s2 + $0x48] sm:$0xff]  }
  0xfc   :  { %v338_v51 = vadd.f32 %v11855_v58, %v315_v44  ;;  %v316_v53 = vmul.f32 %v11848_v52, %v293_v45  ;;  %10547 = vmatmul.mubr.msk.bf16.vlgmr.msra.gmra.mrb[0].mxu1 %vm344_vm3, %v397_v46  ;;  %v718_v46 = vld [vmem:[#allocation2 + $0x88] sm:$0xff] }
  0xfd   :  { %v336_v54 = vadd.f32 %v11855_v58, %v313_v49  ;;  %v314_v55 = vmul.f32 %v11848_v52, %v291_v50  ;;  %10563 = vmatpush3.bf16.msra.mxu1 %v11806_v37  ;;  %v10536_v56 = vpop.f32.mrb[12].mxu0  ;;  %v370_v9 = vld [vmem:[#allocation2 + $0x38] sm:$0xff]  ;;  %v10699_v49 = vld [vmem:[%s16319_s3 + $0xa4] ss:$16 sps:$4 sm:$0xff]   ;;  %v10697_v50 = vld [vmem:[%s16319_s3 + $0xa0] ss:$16 sps:$4 sm:$0xff]  }
  0xfe   :  { %357 = vst.msk [vmem:[#allocation2 + $0x58] sm:$0xff] %vm344_vm3, %v338_v51  ;;  %v339_v57 = vadd.f32 %v11855_v58, %v316_v53  ;;  %v276_v59 = vadd.f32 %v10536_v56, %v11839_v47  ;;  %v267_v60 = vpop.f32.mrb[13].mxu0  ;;  %10564 = vmatprep.subr.bf16.mxu1 %v10675_v48  ;;  %v368_v4 = vld [vmem:[#allocation2 + $0x28] sm:$0xff]  ;;  %1215 = vmatprep.subr.bf16.mxu0 %v10699_v49  ;;  %v10702_v51 = vld [vmem:[%s16319_s3 + $0xc4] ss:$16 sps:$4 sm:$0xff]   ;;  %v16330_v56 = vmov 0  }
  0xff   :  { %355 = vst.msk [vmem:[#allocation2 + $0x48] sm:$0xff] %vm344_vm3, %v336_v54  ;;  %v337_v62 = vadd.f32 %v11855_v58, %v314_v55  ;;  %v268_v63 = vadd.f32 %v11839_v47, %v267_v60  ;;  %v10537_v37 = vpop.f32.mrb[14].mxu0  ;;  %v11923_v0 = vld [vmem:[#allocation2 + $0x40] sm:$0xff]  ;;  %v381_v41 = vpack.c.bf16 %v368_v4, %v11886_v32  ;;  %1216 = vmatpush1.bf16.msra.mxu0 %v10697_v50 }
 0x100   :  { %358 = vst.msk [vmem:[#allocation2 + $0x60] sm:$0xff] %vm344_vm3, %v339_v57  ;;  %v296_v1 = vmax.f32 %v276_v59, 0.0  ;;  %v279_v2 = vadd.f32 %v10537_v37, %v11839_v47  ;;  %v270_v3 = vpop.f32.mrb[15].mxu0  ;;  %v369_v5 = vld [vmem:[#allocation2 + $0x30] sm:$0xff]  ;;  %v399_v12 = vpack.c.bf16 %v11923_v0, %v370_v9  ;;  %1217 = vmatprep.subr.bf16.mxu0 %v10702_v51  ;;  %1237 = vmatprep.mubr.bf16.mxu0 %v16330_v56  ;;  %v10708_v57 = vld [vmem:[%s16319_s3 + $0xc] ss:$16 sps:$4 sm:$0xff]  }
 0x101   :  { %356 = vst.msk [vmem:[#allocation2 + $0x50] sm:$0xff] %vm344_vm3, %v337_v62  ;;  %v294_v6 = vmax.f32 %v268_v63, 0.0  ;;  %v271_v7 = vadd.f32 %v11839_v47, %v270_v3  ;;  %v398_v8 = vpack.c.bf16 %v369_v5, %v368_v4  ;;  %10565 = vmatpush3.bf16.msra.mxu1 %v10675_v48  ;;  %v382_v43 = vpack.c.bf16 %v370_v9, %v369_v5  ;;  %v10700_v53 = vld [vmem:[%s16319_s3 + $0xc0] ss:$16 sps:$4 sm:$0xff]   ;;  %v10705_v54 = vld [vmem:[%s16319_s3 + $0xe4] ss:$16 sps:$4 sm:$0xff]  }
 0x102   :  { %v319_v10 = vmul.f32 %v11848_v52, %v296_v1  ;;  %v297_v11 = vmax.f32 %v279_v2, 0.0  ;;  %10566 = vmatprep.subr.bf16.mxu1 %v10676_v61  ;;  %v10703_v55 = vld [vmem:[%s16319_s3 + $0xe0] ss:$16 sps:$4 sm:$0xff]   ;;  %v12015_v60 = vld [vmem:[%s16321_s4 + $0x4] ss:$16 sps:$4 sm:$0xff]  }
 0x103   :  { %v317_v14 = vmul.f32 %v11848_v52, %v294_v6  ;;  %v295_v15 = vmax.f32 %v271_v7, 0.0  ;;  %10550 = vmatprep.mubr.msk.bf16.mxu1 %vm344_vm3, %v398_v8  ;;  %1218 = vmatpush1.bf16.msra.mxu0 %v10700_v53  ;;  %v12010_v59 = vld [vmem:[%s16321_s4] ss:$16 sps:$4 sm:$0xff]   ;;  %v12032_v63 = vld [vmem:[%s16321_s4 + $0x44] ss:$16 sps:$4 sm:$0xff]  }
 0x104   :  { %v342_v47 = vadd.f32 %v11855_v58, %v319_v10  ;;  %v320_v16 = vmul.f32 %v11848_v52, %v297_v11  ;;  %10551 = vmatmul.mubr.msk.bf16.gmra.mrb[4].mxu1 %vm344_vm3, %v399_v12  ;;  %1219 = vmatprep.subr.bf16.mxu0 %v10705_v54  ;;  %v12027_v62 = vld [vmem:[%s16321_s4 + $0x20] ss:$16 sps:$4 sm:$0xff]   ;;  %v12056_v2 = vld [vmem:[%s16321_s4 + $0x84] ss:$16 sps:$4 sm:$0xff]   ;;  %v12108_v10 = vld [vmem:[%s16321_s4 + $0x8] ss:$16 sps:$4 sm:$0xff]  }
 0x105   :  { %v340_v17 = vadd.f32 %v11855_v58, %v317_v14  ;;  %v318_v18 = vmul.f32 %v11848_v52, %v295_v15  ;;  %10567 = vmatpush3.bf16.msra.mxu1 %v10676_v61  ;;  %v374_v25 = vld [vmem:[#allocation2 + $0x58] sm:$0xff]  ;;  %v12022_v61 = vld [vmem:[%s16321_s4 + $0x24] ss:$16 sps:$4 sm:$0xff]   ;;  %v12038_v37 = vld [vmem:[%s16321_s4 + $0x40] ss:$16 sps:$4 sm:$0xff]  }
 0x106   :  { %361 = vst.msk [vmem:[#allocation2 + $0x78] sm:$0xff] %vm344_vm3, %v342_v47  ;;  %v343_v19 = vadd.f32 %v11855_v58, %v320_v16  ;;  %10568 = vmatprep.subr.bf16.mxu1 %v10677_v13  ;;  %v372_v23 = vld [vmem:[#allocation2 + $0x48] sm:$0xff]  ;;  %v12051_v1 = vld [vmem:[%s16321_s4 + $0x60] ss:$16 sps:$4 sm:$0xff]   ;;  %v12070_v4 = vld [vmem:[%s16321_s4 + $0xa4] ss:$16 sps:$4 sm:$0xff]  }
 0x107   :  { %359 = vst.msk [vmem:[#allocation2 + $0x68] sm:$0xff] %vm344_vm3, %v340_v17  ;;  %v341_v21 = vadd.f32 %v11855_v58, %v318_v18  ;;  %v375_v22 = vld [vmem:[#allocation2 + $0x60] sm:$0xff]  ;;  %v383_v42 = vpack.c.bf16 %v372_v23, %v11923_v0  ;;  %1220 = vmatpush1.bf16.msra.mxu0 %v10703_v55  ;;  %v12113_v11 = vld [vmem:[%s16321_s4 + $0xc] ss:$16 sps:$4 sm:$0xff]   ;;  %v12132_v14 = vld [vmem:[%s16321_s4 + $0x48] ss:$16 sps:$4 sm:$0xff]  }
 0x108   :  { %362 = vst.msk [vmem:[#allocation2 + $0x80] sm:$0xff] %vm344_vm3, %v343_v19  ;;  %v373_v24 = vld [vmem:[#allocation2 + $0x50] sm:$0xff]  ;;  %v401_v26 = vpack.c.bf16 %v375_v22, %v374_v25  ;;  %1318 = vmatprep.subr.bf16.mxu0 %v10708_v57  ;;  %v12118_v12 = vld [vmem:[%s16321_s4 + $0x2c] ss:$16 sps:$4 sm:$0xff]   ;;  %v12149_v16 = vld [vmem:[%s16321_s4 + $0x68] ss:$16 sps:$4 sm:$0xff]  }
 0x109   :  { %360 = vst.msk [vmem:[#allocation2 + $0x70] sm:$0xff] %vm344_vm3, %v341_v21  ;;  %v400_v52 = vpack.c.bf16 %v373_v24, %v372_v23  ;;  %10569 = vmatpush3.bf16.msra.mxu1 %v10677_v13  ;;  %v384_v32 = vpack.c.bf16 %v374_v25, %v373_v24  ;;  %v12046_v0 = vld [vmem:[%s16321_s4 + $0x64] ss:$16 sps:$4 sm:$0xff]   ;;  %v12062_v3 = vld [vmem:[%s16321_s4 + $0x80] ss:$16 sps:$4 sm:$0xff]  }
 0x10a   :  { %10586 = vmatprep.subr.bf16.mxu1 %v10678_v20  ;;  %v12075_v5 = vld [vmem:[%s16321_s4 + $0xa0] ss:$16 sps:$4 sm:$0xff]   ;;  %v12080_v6 = vld [vmem:[%s16321_s4 + $0xc4] ss:$16 sps:$4 sm:$0xff]   ;;  %v12125_v13 = vld [vmem:[%s16321_s4 + $0x28] ss:$16 sps:$4 sm:$0xff]  }
 0x10b   :  { %10554 = vmatprep.mubr.msk.bf16.mxu1 %vm344_vm3, %v400_v52  ;;  %v12086_v7 = vld [vmem:[%s16321_s4 + $0xc0] ss:$16 sps:$4 sm:$0xff]   ;;  %v12094_v8 = vld [vmem:[%s16321_s4 + $0xe4] ss:$16 sps:$4 sm:$0xff]   ;;  %v12137_v15 = vld [vmem:[%s16321_s4 + $0x4c] ss:$16 sps:$4 sm:$0xff]  }
 0x10c   :  { %10555 = vmatmul.mubr.msk.bf16.gmra.mrb[8].mxu1 %vm344_vm3, %v401_v26  ;;  %v12099_v9 = vld [vmem:[%s16321_s4 + $0xe0] ss:$16 sps:$4 sm:$0xff]   ;;  %v12142_v47 = vld [vmem:[%s16321_s4 + $0x6c] ss:$16 sps:$4 sm:$0xff]   ;;  %v12156_v17 = vld [vmem:[%s16321_s4 + $0x88] ss:$16 sps:$4 sm:$0xff]  }
 0x10d   :  { %v378_v31 = vld [vmem:[#allocation2 + $0x78] sm:$0xff]  ;;  %v12180_v21 = vld [vmem:[%s16320_s8 + $0x3] ss:$0 sm:$0xff] }
 0x10e   :  { %v376_v29 = vld [vmem:[#allocation2 + $0x68] sm:$0xff] }
 0x10f   :  { %v395_v27 = vld [vmem:[#allocation2 + $0x80] sm:$0xff]  ;;  %v385_v44 = vpack.c.bf16 %v376_v29, %v375_v22  ;;  %v12161_v18 = vld [vmem:[%s16321_s4 + $0x8c] ss:$16 sps:$4 sm:$0xff]   ;;  %v12185_v22 = vld [vmem:[%s16321_s4 + $0xc8] ss:$16 sps:$4 sm:$0xff]  }
 0x110   :  { %v377_v58 = vld [vmem:[#allocation2 + $0x70] sm:$0xff]  ;;  %v403_v33 = vpack.c.bf16 %v395_v27, %v378_v31  ;;  %v726_v48 = vpack.c.bf16 %v718_v46, %v395_v27  ;;  %v12166_v19 = vld [vmem:[%s16321_s4 + $0xac] ss:$16 sps:$4 sm:$0xff]   ;;  %v12203_v27 = vld [vmem:[%s16321_s4 + $0xe8] ss:$16 sps:$4 sm:$0xff]  }
 0x111   :  { %v402_v30 = vpack.c.bf16 %v377_v58, %v376_v29  ;;  %v386_v45 = vpack.c.bf16 %v378_v31, %v377_v58  ;;  %v12190_v23 = vld [vmem:[%s16321_s4 + $0xcc] ss:$16 sps:$4 sm:$0xff]  }
 0x112   :  { %v12195_v24 = vld [vmem:[%s16321_s4 + $0xec] ss:$16 sps:$4 sm:$0xff]  }
 0x113   :  { %10558 = vmatprep.mubr.msk.bf16.mxu1 %vm344_vm3, %v402_v30 }
 0x114   :  { %10559 = vmatmul.mubr.msk.bf16.gmra.mrb[12].mxu1 %vm344_vm3, %v403_v33 }
 0x115   :  { %10570 = vmatprep.mubr.msk.bf16.mxu1 %vm344_vm3, %v379_v35 }
 0x11c   :  { %10571 = vmatmul.mubr.msk.bf16.vlgmr.msra.gmra.mrb[0].mxu1 %vm344_vm3, %v380_v36 }
 0x11d   :  { %10587 = vmatpush3.bf16.msra.mxu1 %v10678_v20  ;;  %10574 = vmatprep.mubr.msk.bf16.mxu1 %vm344_vm3, %v381_v41  ;;  %v12173_v20 = vld [vmem:[%s16321_s4 + $0xa8] ss:$16 sps:$4 sm:$0xff]  }
 0x11e   :  { %10588 = vmatprep.subr.bf16.mxu1 %v10679_v40 }
 0x121   :  { %10589 = vmatpush3.bf16.msra.mxu1 %v10679_v40 }
 0x122   :  { %10590 = vmatprep.subr.bf16.mxu1 %v10680_v38 }
 0x124   :  { %10575 = vmatmul.mubr.msk.bf16.gmra.mrb[4].mxu1 %vm344_vm3, %v382_v43 }
 0x125   :  { %10578 = vmatprep.mubr.msk.bf16.mxu1 %vm344_vm3, %v383_v42  ;;  %10591 = vmatpush3.bf16.msra.mxu1 %v10680_v38  ;;  %v12219_v38 = vld [vmem:[%s16320_s8 + $0x5] ss:$0 sm:$0xff] }
 0x126   :  { %10592 = vmatprep.subr.bf16.mxu1 %v10681_v39 }
 0x129   :  { %10593 = vmatpush3.bf16.msra.mxu1 %v10681_v39 }
 0x12a   :  { %1947 = vmatprep.subr.bf16.mxu1 %v12015_v60 }
 0x12c   :  { %10579 = vmatmul.mubr.msk.bf16.gmra.mrb[8].mxu1 %vm344_vm3, %v384_v32 }
 0x12d   :  { %10582 = vmatprep.mubr.msk.bf16.mxu1 %vm344_vm3, %v385_v44 }
 0x134   :  { %10583 = vmatmul.mubr.msk.bf16.gmra.mrb[12].mxu1 %vm344_vm3, %v386_v45 }
 0x135   :  { %10594 = vmatprep.mubr.msk.bf16.mxu1 %vm344_vm3, %v380_v36 }
 0x13c   :  { %10595 = vmatmul.mubr.msk.bf16.vlgmr.msra.gmra.mrb[0].mxu1 %vm344_vm3, %v381_v41 }
 0x13d   :  { %10598 = vmatprep.mubr.msk.bf16.mxu1 %vm344_vm3, %v382_v43  ;;  %1948 = vmatpush1.bf16.msra.mxu1 %v12010_v59 }
 0x13e   :  { %1949 = vmatprep.subr.bf16.mxu1 %v12022_v61 }
 0x141   :  { %1950 = vmatpush1.bf16.msra.mxu1 %v12027_v62 }
 0x142   :  { %1951 = vmatprep.subr.bf16.mxu1 %v12032_v63 }
 0x144   :  { %10599 = vmatmul.mubr.msk.bf16.gmra.mrb[4].mxu1 %vm344_vm3, %v383_v42 }
 0x145   :  { %10602 = vmatprep.mubr.msk.bf16.mxu1 %vm344_vm3, %v384_v32  ;;  %1952 = vmatpush1.bf16.msra.mxu1 %v12038_v37 }
 0x146   :  { %1953 = vmatprep.subr.bf16.mxu1 %v12046_v0 }
 0x149   :  { %1954 = vmatpush1.bf16.msra.mxu1 %v12051_v1 }
 0x14a   :  { %1955 = vmatprep.subr.bf16.mxu1 %v12056_v2 }
 0x14c   :  { %10603 = vmatmul.mubr.msk.bf16.gmra.mrb[8].mxu1 %vm344_vm3, %v385_v44 }
 0x14d   :  { %10606 = vmatprep.mubr.msk.bf16.mxu1 %vm344_vm3, %v386_v45  ;;  %1956 = vmatpush1.bf16.msra.mxu1 %v12062_v3 }
 0x14e   :  { %1957 = vmatprep.subr.bf16.mxu1 %v12070_v4 }
 0x151   :  { %1958 = vmatpush1.bf16.msra.mxu1 %v12075_v5 }
 0x152   :  { %1959 = vmatprep.subr.bf16.mxu1 %v12080_v6 }
 0x154   :  { %10607 = vmatmul.mubr.msk.bf16.gmra.mrb[12].mxu1 %vm344_vm3, %v726_v48 }
 0x155   :  { %1979 = vmatprep.mubr.bf16.mxu1 %v16330_v56  ;;  %1960 = vmatpush1.bf16.msra.mxu1 %v12086_v7 }
 0x156   :  { %1961 = vmatprep.subr.bf16.mxu1 %v12094_v8 }
 0x159   :  { %1962 = vmatpush1.bf16.msra.mxu1 %v12099_v9 }
 0x15a   :  { %1988 = vmatprep.subr.bf16.mxu1 %v12113_v11 }
 0x15c   :  { %1980 = vmatmul.mubr.bf16.vlgmr.msra.gmra.mrb[16].mxu1 %v16330_v56 }
 0x15d   :  { %2020 = vmatprep.mubr.bf16.mxu1 %v16330_v56  ;;  %1989 = vmatpush1.bf16.msra.mxu1 %v12108_v10 }
 0x15e   :  { %1990 = vmatprep.subr.bf16.mxu1 %v12118_v12 }
 0x161   :  { %1991 = vmatpush1.bf16.msra.mxu1 %v12125_v13 }
 0x162   :  { %1992 = vmatprep.subr.bf16.mxu1 %v12137_v15 }
 0x165   :  { %1993 = vmatpush1.bf16.msra.mxu1 %v12132_v14 }
 0x166   :  { %1994 = vmatprep.subr.bf16.mxu1 %v12142_v47 }
 0x169   :  { %1995 = vmatpush1.bf16.msra.mxu1 %v12149_v16 }
 0x16a   :  { %1996 = vmatprep.subr.bf16.mxu1 %v12161_v18 }
 0x16d   :  { %1997 = vmatpush1.bf16.msra.mxu1 %v12156_v17 }
 0x16e   :  { %1998 = vmatprep.subr.bf16.mxu1 %v12166_v19 }
 0x171   :  { %1999 = vmatpush1.bf16.msra.mxu1 %v12173_v20 }
 0x172   :  { %2000 = vmatprep.subr.bf16.mxu1 %v12190_v23 }
 0x175   :  { %2001 = vmatpush1.bf16.msra.mxu1 %v12185_v22 }
 0x176   :  { %2002 = vmatprep.subr.bf16.mxu1 %v12195_v24 }
 0x179   :  { %2003 = vmatpush1.bf16.msra.mxu1 %v12203_v27 }
 0x17a   :  { %2296 = vmatprep.subr.bf16.mxu1 %v12113_v11 }
 0x17c   :  { %2021 = vmatmul.mubr.bf16.vlgmr.msra.gmra.mrb[20].mxu1 %v16330_v56 }
 0x17d   :  { %2297 = vmatpush1.bf16.msra.mxu1 %v12108_v10  ;;  %2328 = vmatprep.mubr.bf16.mxu1 %v16330_v56 }
 0x17e   :  { %2298 = vmatprep.subr.bf16.mxu1 %v12118_v12 }
 0x181   :  { %2299 = vmatpush1.bf16.msra.mxu1 %v12125_v13 }
 0x182   :  { %2300 = vmatprep.subr.bf16.mxu1 %v12137_v15 }
 0x185   :  { %2301 = vmatpush1.bf16.msra.mxu1 %v12132_v14 }
 0x186   :  { %2302 = vmatprep.subr.bf16.mxu1 %v12142_v47 }
 0x189   :  { %2303 = vmatpush1.bf16.msra.mxu1 %v12149_v16 }
 0x18a   :  { %2304 = vmatprep.subr.bf16.mxu1 %v12161_v18 }
 0x18d   :  { %2305 = vmatpush1.bf16.msra.mxu1 %v12156_v17 }
 0x18e   :  { %2306 = vmatprep.subr.bf16.mxu1 %v12166_v19 }
 0x191   :  { %2307 = vmatpush1.bf16.msra.mxu1 %v12173_v20 }
 0x192   :  { %2308 = vmatprep.subr.bf16.mxu1 %v12190_v23 }
 0x195   :  { %2309 = vmatpush1.bf16.msra.mxu1 %v12185_v22 }
 0x196   :  { %2310 = vmatprep.subr.bf16.mxu1 %v12195_v24 }
 0x199   :  { %2311 = vmatpush1.bf16.msra.mxu1 %v12203_v27 }
 0x19a   :  { %2604 = vmatprep.subr.bf16.mxu1 %v12113_v11 }
 0x20f   :  { %v10596_v52 = vpop.f32.mrb[0].mxu1 }
 0x210   :  { %v906_v25 = vadd.f32 %v10596_v52, %v12180_v21  ;;  %v818_v26 = vpop.f32.mrb[1].mxu1 }
 0x211   :  { %v904_v29 = vadd.f32 %v12180_v21, %v818_v26  ;;  %v10597_v58 = vpop.f32.mrb[2].mxu1 }
 0x212   :  { %v922_v30 = vmax.f32 %v906_v25, 0.0  ;;  %v907_v31 = vadd.f32 %v10597_v58, %v12180_v21  ;;  %v821_v33 = vpop.f32.mrb[3].mxu1  ;;  %v10706_v25 = vld [vmem:[%s16319_s3 + $0x8] ss:$16 sps:$4 sm:$0xff]  }
 0x213   :  { %v920_v35 = vmax.f32 %v904_v29, 0.0  ;;  %v905_v36 = vadd.f32 %v12180_v21, %v821_v33 }
 0x214   :  { %v945_v40 = vmul.f32 %v12208_v28, %v922_v30  ;;  %v923_v41 = vmax.f32 %v907_v31, 0.0  ;;  %v10711_v31 = vld [vmem:[%s16319_s3 + $0x2c] ss:$16 sps:$4 sm:$0xff]  }
 0x215   :  { %v943_v43 = vmul.f32 %v12208_v28, %v920_v35  ;;  %v921_v39 = vmax.f32 %v905_v36, 0.0 }
 0x216   :  { %v946_v42 = vmul.f32 %v12208_v28, %v923_v41  ;;  %v968_v45 = vadd.f32 %v12219_v38, %v945_v40 }
 0x217   :  { %v944_v32 = vmul.f32 %v12208_v28, %v921_v39  ;;  %v10600_v44 = vpop.f32.mrb[4].mxu1  ;;  %v966_v50 = vadd.f32 %v12219_v38, %v943_v43  ;;  %v10709_v43 = vld [vmem:[%s16319_s3 + $0x28] ss:$16 sps:$4 sm:$0xff]  }
 0x218   :  { %v969_v46 = vadd.f32 %v12219_v38, %v946_v42  ;;  %v910_v48 = vadd.f32 %v10600_v44, %v12180_v21  ;;  %v834_v49 = vpop.f32.mrb[5].mxu1 }
 0x219   :  { %v967_v51 = vadd.f32 %v12219_v38, %v944_v32  ;;  %v908_v53 = vadd.f32 %v12180_v21, %v834_v49  ;;  %v10601_v54 = vpop.f32.mrb[6].mxu1  ;;  %v10714_v32 = vld [vmem:[%s16319_s3 + $0x4c] ss:$16 sps:$4 sm:$0xff]  }
 0x21a   :  { %v926_v55 = vmax.f32 %v910_v48, 0.0  ;;  %v911_v57 = vadd.f32 %v10601_v54, %v12180_v21  ;;  %v837_v52 = vpop.f32.mrb[7].mxu1  ;;  %v12239_v26 = vpack.c.bf16 %v969_v46, %v968_v45 }
 0x21b   :  { %v12241_v29 = vpack.c.bf16 %v967_v51, %v966_v50  ;;  %v924_v58 = vmax.f32 %v908_v53, 0.0  ;;  %v909_v30 = vadd.f32 %v12180_v21, %v837_v52  ;;  %v10712_v52 = vld [vmem:[%s16319_s3 + $0x48] ss:$16 sps:$4 sm:$0xff]  }
 0x21c   :  { %v949_v33 = vmul.f32 %v12208_v28, %v926_v55  ;;  %v927_v35 = vmax.f32 %v911_v57, 0.0 }
 0x21d   :  { %v947_v36 = vmul.f32 %v12208_v28, %v924_v58  ;;  %v925_v40 = vmax.f32 %v909_v30, 0.0  ;;  %1238 = vmatmul.mubr.bf16.vlgmr.msra.gmra.mrb[16].mxu0 %v12241_v29 }
 0x21e   :  { %v950_v41 = vmul.f32 %v12208_v28, %v927_v35  ;;  %1319 = vmatpush1.bf16.msra.mxu0 %v10706_v25  ;;  %1247 = vmatprep.mubr.bf16.mxu0 %v16330_v56  ;;  %v972_v44 = vadd.f32 %v12219_v38, %v949_v33  ;;  %v10717_v33 = vld [vmem:[%s16319_s3 + $0x6c] ss:$16 sps:$4 sm:$0xff]  }
 0x21f   :  { %v948_v39 = vmul.f32 %v12208_v28, %v925_v40  ;;  %v10604_v42 = vpop.f32.mrb[8].mxu1  ;;  %1320 = vmatprep.subr.bf16.mxu0 %v10711_v31  ;;  %v970_v49 = vadd.f32 %v12219_v38, %v947_v36 }
 0x220   :  { %v973_v45 = vadd.f32 %v12219_v38, %v950_v41  ;;  %v914_v46 = vadd.f32 %v10604_v42, %v12180_v21  ;;  %v850_v48 = vpop.f32.mrb[9].mxu1 }
 0x221   :  { %v971_v50 = vadd.f32 %v12219_v38, %v948_v39  ;;  %v912_v51 = vadd.f32 %v12180_v21, %v850_v48  ;;  %v10605_v53 = vpop.f32.mrb[10].mxu1  ;;  %v10715_v39 = vld [vmem:[%s16319_s3 + $0x68] ss:$16 sps:$4 sm:$0xff]  }
 0x222   :  { %v930_v54 = vmax.f32 %v914_v46, 0.0  ;;  %v915_v55 = vadd.f32 %v10605_v53, %v12180_v21  ;;  %v853_v57 = vpop.f32.mrb[11].mxu1  ;;  %1321 = vmatpush1.bf16.msra.mxu0 %v10709_v43  ;;  %v12273_v25 = vpack.c.bf16 %v973_v45, %v972_v44  ;;  %v10723_v44 = vld [vmem:[%s16319_s3 + $0x8c] ss:$16 sps:$4 sm:$0xff]  }
 0x223   :  { %v928_v58 = vmax.f32 %v912_v51, 0.0  ;;  %v913_v30 = vadd.f32 %v12180_v21, %v853_v57  ;;  %1322 = vmatprep.subr.bf16.mxu0 %v10714_v32  ;;  %v12276_v31 = vpack.c.bf16 %v971_v50, %v970_v49 }
 0x224   :  { %v953_v35 = vmul.f32 %v12208_v28, %v930_v54  ;;  %v931_v36 = vmax.f32 %v915_v55, 0.0 }
 0x225   :  { %v951_v40 = vmul.f32 %v12208_v28, %v928_v58  ;;  %v929_v41 = vmax.f32 %v913_v30, 0.0  ;;  %1248 = vmatmul.mubr.bf16.gmra.mrb[20].mxu0 %v12239_v26  ;;  %v10721_v58 = vld [vmem:[%s16319_s3 + $0x88] ss:$16 sps:$4 sm:$0xff]  }
 0x226   :  { %v954_v43 = vmul.f32 %v12208_v28, %v931_v36  ;;  %1257 = vmatprep.mubr.bf16.mxu0 %v16330_v56  ;;  %1323 = vmatpush1.bf16.msra.mxu0 %v10712_v52  ;;  %v976_v45 = vadd.f32 %v12219_v38, %v953_v35 }
 0x227   :  { %v952_v42 = vmul.f32 %v12208_v28, %v929_v41  ;;  %v10608_v32 = vpop.f32.mrb[12].mxu1  ;;  %1324 = vmatprep.subr.bf16.mxu0 %v10717_v33  ;;  %v974_v50 = vadd.f32 %v12219_v38, %v951_v40  ;;  %v10732_v40 = vld [vmem:[%s16319_s3 + $0xac] ss:$16 sps:$4 sm:$0xff]  }
 0x228   :  { %v977_v46 = vadd.f32 %v12219_v38, %v954_v43  ;;  %v918_v48 = vadd.f32 %v10608_v32, %v12180_v21  ;;  %v866_v49 = vpop.f32.mrb[13].mxu1  ;;  %v10730_v32 = vld [vmem:[%s16319_s3 + $0xa8] ss:$16 sps:$4 sm:$0xff]  }
 0x229   :  { %v975_v51 = vadd.f32 %v12219_v38, %v952_v42  ;;  %v916_v53 = vadd.f32 %v12180_v21, %v866_v49  ;;  %v10609_v54 = vpop.f32.mrb[14].mxu1 }
 0x22a   :  { %v934_v55 = vmax.f32 %v918_v48, 0.0  ;;  %v919_v57 = vadd.f32 %v10609_v54, %v12180_v21  ;;  %v869_v52 = vpop.f32.mrb[15].mxu1  ;;  %1325 = vmatpush1.bf16.msra.mxu0 %v10715_v39  ;;  %v12307_v30 = vpack.c.bf16 %v977_v46, %v976_v45  ;;  %v10741_v45 = vld [vmem:[%s16319_s3 + $0xcc] ss:$16 sps:$4 sm:$0xff]  }
 0x22b   :  { %v932_v33 = vmax.f32 %v916_v53, 0.0  ;;  %v917_v35 = vadd.f32 %v12180_v21, %v869_v52  ;;  %1326 = vmatprep.subr.bf16.mxu0 %v10723_v44  ;;  %v12310_v36 = vpack.c.bf16 %v975_v51, %v974_v50  ;;  %v10750_v54 = vld [vmem:[%s16319_s3 + $0xec] ss:$16 sps:$4 sm:$0xff]  }
 0x22c   :  { %v957_v41 = vmul.f32 %v12208_v28, %v934_v55  ;;  %v935_v43 = vmax.f32 %v919_v57, 0.0 }
 0x22d   :  { %v955_v39 = vmul.f32 %v12208_v28, %v932_v33  ;;  %v933_v42 = vmax.f32 %v917_v35, 0.0  ;;  %1258 = vmatmul.mubr.bf16.gmra.mrb[24].mxu0 %v12276_v31 }
 0x22e   :  { %v958_v21 = vmul.f32 %v12208_v28, %v935_v43  ;;  %1267 = vmatprep.mubr.bf16.mxu0 %v16330_v56  ;;  %1327 = vmatpush1.bf16.msra.mxu0 %v10721_v58  ;;  %v980_v46 = vadd.f32 %v12219_v38, %v957_v41 }
 0x22f   :  { %v956_v44 = vmul.f32 %v12208_v28, %v933_v42  ;;  %1328 = vmatprep.subr.bf16.mxu0 %v10732_v40  ;;  %v978_v49 = vadd.f32 %v12219_v38, %v955_v39  ;;  %v10739_v28 = vld [vmem:[%s16319_s3 + $0xc8] ss:$16 sps:$4 sm:$0xff]  }
 0x230   :  { %v981_v48 = vadd.f32 %v12219_v38, %v958_v21 }
 0x231   :  { %v979_v50 = vadd.f32 %v12219_v38, %v956_v44  ;;  %v10748_v38 = vld [vmem:[%s16319_s3 + $0xe8] ss:$16 sps:$4 sm:$0xff]  }
 0x232   :  { %1329 = vmatpush1.bf16.msra.mxu0 %v10730_v32  ;;  %v991_v51 = vpack.c.bf16 %v981_v48, %v980_v46 }
 0x233   :  { %1330 = vmatprep.subr.bf16.mxu0 %v10741_v45  ;;  %v990_v53 = vpack.c.bf16 %v979_v50, %v978_v49 }
 0x235   :  { %1268 = vmatmul.mubr.bf16.gmra.mrb[28].mxu0 %v12273_v25 }
 0x236   :  { %1277 = vmatprep.mubr.bf16.mxu0 %v16330_v56  ;;  %1331 = vmatpush1.bf16.msra.mxu0 %v10739_v28 }
 0x237   :  { %1332 = vmatprep.subr.bf16.mxu0 %v10750_v54 }
 0x23a   :  { %1333 = vmatpush1.bf16.msra.mxu0 %v10748_v38 }
 0x23b   :  { %2255 = vmatprep.subr.bf16.mxu0 %v12015_v60 }
 0x23d   :  { %1278 = vmatmul.mubr.bf16.gmra.mrb[32].mxu0 %v12310_v36 }
 0x23e   :  { %1287 = vmatprep.mubr.bf16.mxu0 %v16330_v56 }
 0x245   :  { %1288 = vmatmul.mubr.bf16.gmra.mrb[36].mxu0 %v12307_v30 }
 0x246   :  { %1297 = vmatprep.mubr.bf16.mxu0 %v16330_v56 }
 0x24d   :  { %1298 = vmatmul.mubr.bf16.gmra.mrb[40].mxu0 %v990_v53 }
 0x24e   :  { %1307 = vmatprep.mubr.bf16.mxu0 %v16330_v56 }
 0x255   :  { %1308 = vmatmul.mubr.bf16.gmra.mrb[44].mxu0 %v991_v51 }
 0x256   :  { %1350 = vmatprep.mubr.bf16.mxu0 %v16330_v56 }
 0x25d   :  { %1351 = vmatmul.mubr.bf16.vlgmr.msra.gmra.mrb[48].mxu0 %v12241_v29 }
 0x25e   :  { %1360 = vmatprep.mubr.bf16.mxu0 %v16330_v56  ;;  %2256 = vmatpush1.bf16.msra.mxu0 %v12010_v59  ;;  %v12385_v59 = vpop.f32.mrb[16].mxu1 }
 0x25f   :  { %2257 = vmatprep.subr.bf16.mxu0 %v12022_v61  ;;  %v12387_v61 = vpop.f32.mrb[17].mxu1 }
 0x262   :  { %2258 = vmatpush1.bf16.msra.mxu0 %v12027_v62  ;;  %v1985_v62 = vpop.f32.mrb[18].mxu1 }
 0x263   :  { %2259 = vmatprep.subr.bf16.mxu0 %v12032_v63  ;;  %v33_v63 = vlaneseq }
 0x265   :  { %1361 = vmatmul.mubr.bf16.gmra.mrb[52].mxu0 %v12239_v26  ;;  %v12442_v45 = vand.u32 127, %v33_v63 }
 0x266   :  { %1370 = vmatprep.mubr.bf16.mxu0 %v16330_v56  ;;  %2260 = vmatpush1.bf16.msra.mxu0 %v12038_v37  ;;  %v12389_v37 = vshrl.u32 %v33_v63, 7 }
 0x267   :  { %2261 = vmatprep.subr.bf16.mxu0 %v12046_v0  ;;  %16555 = vst [vmem:[#allocation13_spill] sm:$0xff] %v12442_v45  ;;  %v35_v50 = vadd.s32 128, %v12442_v45  ;;  %vm86_vm4 = vcmp.lt.s32.totalorder %v12442_v45, 64 }
 0x268   :  { %16549 = vst [vmem:[#allocation7_spill] sm:$0xff] %v12389_v37 }
 0x269   :  { %v49_v62 = vand.u32 127, %v35_v50 }
 0x26a   :  { %2262 = vmatpush1.bf16.msra.mxu0 %v12051_v1 }
 0x26b   :  { %2263 = vmatprep.subr.bf16.mxu0 %v12056_v2  ;;  %vm12455_vm5 = vcmp.lt.s32.totalorder %v49_v62, 64 }
 0x26d   :  { %1371 = vmatmul.mubr.bf16.gmra.mrb[56].mxu0 %v12276_v31 }
 0x26e   :  { %1380 = vmatprep.mubr.bf16.mxu0 %v16330_v56  ;;  %2264 = vmatpush1.bf16.msra.mxu0 %v12062_v3  ;;  %v16329_v3 = vsub.s32 0, %v12389_v37 }
 0x26f   :  { %2265 = vmatprep.subr.bf16.mxu0 %v12070_v4 }
 0x272   :  { %2266 = vmatpush1.bf16.msra.mxu0 %v12075_v5  ;;  %v12399_v5 = vld [vmem:[%s16320_s8 + $0x6] sm:$0xf] }
 0x273   :  { %2267 = vmatprep.subr.bf16.mxu0 %v12080_v6  ;;  %v16328_v6 = vsub.s32 1, %v12389_v37 }
 0x275   :  { %1381 = vmatmul.mubr.bf16.gmra.mrb[60].mxu0 %v12273_v25  ;;  %v12414_v11 = vrot.slane %v12399_v5, %v16328_v6 }
 0x276   :  { %1390 = vmatprep.mubr.bf16.mxu0 %v16330_v56  ;;  %2268 = vmatpush1.bf16.msra.mxu0 %v12086_v7 }
 0x277   :  { %2269 = vmatprep.subr.bf16.mxu0 %v12094_v8  ;;  %v12407_v8 = vrot.slane %v12399_v5, %v16329_v3 }
 0x27a   :  { %2270 = vmatpush1.bf16.msra.mxu0 %v12099_v9 }
 0x27b   :  { %2563 = vmatprep.subr.bf16.mxu0 %v12015_v60  ;;  %v1986_v60 = vpop.f32.mrb[19].mxu1 }
 0x27c   :  { %v12391_v0 = vpop.f32.mrb[20].mxu1 }
 0x27d   :  { %1391 = vmatmul.mubr.bf16.gmra.mrb[64].mxu0 %v12310_v36  ;;  %v12393_v1 = vpop.f32.mrb[21].mxu1 }
 0x27e   :  { %1400 = vmatprep.mubr.bf16.mxu0 %v16330_v56  ;;  %v2026_v2 = vpop.f32.mrb[22].mxu1 }
 0x27f   :  { %v2027_v4 = vpop.f32.mrb[23].mxu1 }
 0x285   :  { %1401 = vmatmul.mubr.bf16.gmra.mrb[68].mxu0 %v12307_v30 }
 0x286   :  { %1410 = vmatprep.mubr.bf16.mxu0 %v16330_v56 }
 0x28d   :  { %1411 = vmatmul.mubr.bf16.gmra.mrb[72].mxu0 %v990_v53 }
 0x28e   :  { %1420 = vmatprep.mubr.bf16.mxu0 %v16330_v56 }
 0x295   :  { %1421 = vmatmul.mubr.bf16.gmra.mrb[76].mxu0 %v991_v51 }
 0x296   :  { %2287 = vmatprep.mubr.bf16.mxu0 %v16330_v56 }
 0x2f0   :  { %v12402_v7 = vpop.f32.mrb[16].mxu0 }
 0x2f1   :  { %v12409_v9 = vpop.f32.mrb[17].mxu0 }
 0x2f2   :  { %v1243_v26 = vpop.f32.mrb[18].mxu0 }
 0x2f3   :  { %v12417_v29 = vadd.f32 %v1243_v26, %v12407_v8  ;;  %v1245_v25 = vpop.f32.mrb[19].mxu0 }
 0x2f4   :  { %v12420_v31 = vadd.f32 %v1245_v25, %v12414_v11 }
 0x2f6   :  { %16550 = vst [vmem:[#allocation8_spill] sm:$0xff] %v12420_v31 }
 0x2f8   :  { %v1249_v55 = vpop.f32.mrb[20].mxu0 }
 0x2f9   :  { %v12423_v57 = vadd.f32 %v1249_v55, %v12407_v8  ;;  %v1251_v52 = vpop.f32.mrb[21].mxu0 }
 0x2fa   :  { %v12426_v58 = vadd.f32 %v1251_v52, %v12414_v11  ;;  %v1253_v30 = vpop.f32.mrb[22].mxu0 }
 0x2fb   :  { %v12429_v33 = vadd.f32 %v1253_v30, %v12407_v8  ;;  %v1255_v35 = vpop.f32.mrb[23].mxu0 }
 0x2fc   :  { %16551 = vst [vmem:[#allocation9_spill] sm:$0xff] %v12426_v58  ;;  %v12432_v36 = vadd.f32 %v1255_v35, %v12414_v11 }
 0x2fe   :  { %16552 = vst [vmem:[#allocation10_spill] sm:$0xff] %v12432_v36 }
 0x300   :  { %v1259_v40 = vpop.f32.mrb[24].mxu0 }
 0x301   :  { %v1260_v41 = vadd.f32 %v1259_v40, %v12407_v8  ;;  %v1261_v43 = vpop.f32.mrb[25].mxu0 }
 0x302   :  { %v12436_v39 = vadd.f32 %v1261_v43, %v12414_v11  ;;  %v1263_v42 = vpop.f32.mrb[26].mxu0 }
 0x303   :  { %v1264_v21 = vadd.f32 %v1263_v42, %v12407_v8  ;;  %v1265_v32 = vpop.f32.mrb[27].mxu0 }
 0x304   :  { %16553 = vst [vmem:[#allocation11_spill] sm:$0xff] %v12436_v39  ;;  %v12440_v44 = vadd.f32 %v1265_v32, %v12414_v11 }
 0x306   :  { %16554 = vst [vmem:[#allocation12_spill] sm:$0xff] %v12440_v44 }
 0x308   :  { %v1269_v46 = vpop.f32.mrb[28].mxu0 }
 0x309   :  { %v1270_v48 = vadd.f32 %v1269_v46, %v12407_v8  ;;  %v1271_v49 = vpop.f32.mrb[29].mxu0 }
 0x30a   :  { %v12447_v28 = vadd.f32 %v1271_v49, %v12414_v11  ;;  %v1273_v51 = vpop.f32.mrb[30].mxu0 }
 0x30b   :  { %v1274_v53 = vadd.f32 %v1273_v51, %v12407_v8  ;;  %v1275_v54 = vpop.f32.mrb[31].mxu0 }
 0x30c   :  { %16556 = vst [vmem:[#allocation14_spill] sm:$0xff] %v12447_v28  ;;  %v12451_v38 = vadd.f32 %v1275_v54, %v12414_v11 }
 0x30e   :  { %16557 = vst [vmem:[#allocation15_spill] sm:$0xff] %v12451_v38 }
 0x310   :  { %v1279_v60 = vpop.f32.mrb[32].mxu0 }
 0x311   :  { %v1280_v63 = vadd.f32 %v1279_v60, %v12407_v8  ;;  %v1281_v2 = vpop.f32.mrb[33].mxu0 }
 0x312   :  { %v12460_v26 = vadd.f32 %v1281_v2, %v12414_v11  ;;  %v1283_v25 = vpop.f32.mrb[34].mxu0 }
 0x313   :  { %v1284_v55 = vadd.f32 %v1283_v25, %v12407_v8  ;;  %v1285_v52 = vpop.f32.mrb[35].mxu0  ;;  %v12465_v30 = vsel %vm86_vm4, %v1274_v53, %v1280_v63  ;;  %v12469_v35 = vsel %vm86_vm4, %v1280_v63, %v1274_v53 }
 0x314   :  { %16560 = vst [vmem:[#allocation16_spill] sm:$0xff] %v12460_v26  ;;  %16561 = vst [vmem:[#allocation17_spill] sm:$0xff] %v12465_v30  ;;  %v12472_v40 = vadd.f32 %v1285_v52, %v12414_v11 }
 0x315   :  { %16562 = vst [vmem:[#allocation18_spill] sm:$0xff] %v12469_v35  ;;  %v12484_v32 = vsel %vm86_vm4, %v1270_v48, %v1284_v55  ;;  %v12488_v46 = vsel %vm86_vm4, %v1284_v55, %v1270_v48 }
 0x316   :  { %16563 = vst [vmem:[#allocation19_spill] sm:$0xff] %v12472_v40  ;;  %16564 = vst [vmem:[#allocation20_spill] sm:$0xff] %v12484_v32 }
 0x317   :  { %16565 = vst [vmem:[#allocation21_spill] sm:$0xff] %v12488_v46  ;;  %v37_v46 = vadd.s32 384, %v12442_v45 }
 0x318   :  { %v1289_v51 = vpop.f32.mrb[36].mxu0 }
 0x319   :  { %v1290_v53 = vadd.f32 %v1289_v51, %v12407_v8  ;;  %v1291_v54 = vpop.f32.mrb[37].mxu0  ;;  %v63_v40 = vand.u32 127, %v37_v46 }
 0x31a   :  { %v12500_v62 = vadd.f32 %v1291_v54, %v12414_v11  ;;  %v1293_v60 = vpop.f32.mrb[38].mxu0 }
 0x31b   :  { %v1294_v48 = vadd.f32 %v1293_v60, %v12407_v8  ;;  %v1295_v63 = vpop.f32.mrb[39].mxu0  ;;  %v12505_v2 = vsel %vm86_vm4, %v1264_v21, %v1290_v53  ;;  %v12509_v25 = vsel %vm86_vm4, %v1290_v53, %v1264_v21  ;;  %vm12696_vm7 = vcmp.lt.s32.totalorder %v63_v40, 64 }
 0x31c   :  { %16566 = vst [vmem:[#allocation22_spill] sm:$0xff] %v12500_v62  ;;  %16567 = vst [vmem:[#allocation23_spill] sm:$0xff] %v12505_v2  ;;  %v12512_v55 = vadd.f32 %v1295_v63, %v12414_v11 }
 0x31d   :  { %16568 = vst [vmem:[#allocation24_spill] sm:$0xff] %v12509_v25  ;;  %v12524_v54 = vsel %vm86_vm4, %v1260_v41, %v1294_v48  ;;  %v12528_v21 = vsel %vm86_vm4, %v1294_v48, %v1260_v41  ;;  %v36_v25 = vadd.s32 256, %v12442_v45 }
 0x31e   :  { %16569 = vst [vmem:[#allocation25_spill] sm:$0xff] %v12512_v55  ;;  %16570 = vst [vmem:[#allocation26_spill] sm:$0xff] %v12524_v54 }
 0x31f   :  { %16571 = vst [vmem:[#allocation27_spill] sm:$0xff] %v12528_v21  ;;  %v56_v30 = vand.u32 127, %v36_v25 }
 0x320   :  { %v1299_v63 = vpop.f32.mrb[40].mxu0 }
 0x321   :  { %v1300_v34 = vadd.f32 %v1299_v63, %v12407_v8  ;;  %v1301_v6 = vpop.f32.mrb[41].mxu0  ;;  %vm12692_vm6 = vcmp.lt.s32.totalorder %v56_v30, 64 }
 0x322   :  { %v12540_v3 = vadd.f32 %v1301_v6, %v12414_v11  ;;  %v1303_v51 = vpop.f32.mrb[42].mxu0 }
 0x323   :  { %v1304_v41 = vadd.f32 %v1303_v51, %v12407_v8  ;;  %v1305_v48 = vpop.f32.mrb[43].mxu0  ;;  %v12546_v50 = vsel %vm86_vm4, %v12429_v33, %v1300_v34  ;;  %v12551_v60 = vsel %vm86_vm4, %v1300_v34, %v12429_v33 }
 0x324   :  { %16572 = vst [vmem:[#allocation28_spill] sm:$0xff] %v12540_v3  ;;  %16573 = vst [vmem:[#allocation29_spill] sm:$0xff] %v12551_v60  ;;  %v12554_v63 = vadd.f32 %v1305_v48, %v12414_v11 }
 0x325   :  { %v12567_v42 = vsel %vm86_vm4, %v12423_v57, %v1304_v41  ;;  %v12572_v34 = vsel %vm86_vm4, %v1304_v41, %v12423_v57  ;;  %v1240_v57 = vadd.f32 %v12402_v7, %v12407_v8 }
 0x326   :  { %16574 = vst [vmem:[#allocation30_spill] sm:$0xff] %v12554_v63  ;;  %16575 = vst [vmem:[#allocation31_spill] sm:$0xff] %v12572_v34 }
 0x328   :  { %v1309_v51 = vpop.f32.mrb[44].mxu0 }
 0x329   :  { %v1310_v43 = vadd.f32 %v1309_v51, %v12407_v8  ;;  %v1311_v49 = vpop.f32.mrb[45].mxu0 }
 0x32a   :  { %v12584_v52 = vadd.f32 %v1311_v49, %v12414_v11  ;;  %v1313_v53 = vpop.f32.mrb[46].mxu0  ;;  %v12601_v49 = vadd.f32 %v12409_v9, %v12414_v11 }
 0x32b   :  { %v1314_v41 = vadd.f32 %v1313_v53, %v12407_v8  ;;  %v1315_v6 = vpop.f32.mrb[47].mxu0  ;;  %v12592_v33 = vsel %vm86_vm4, %v12417_v29, %v1310_v43  ;;  %v12597_v51 = vsel %vm86_vm4, %v1310_v43, %v12417_v29  ;;  %v16333_v43 = vsub.s32 2, %v12389_v37 }
 0x32c   :  { %16576 = vst [vmem:[#allocation32_spill] sm:$0xff] %v12584_v52  ;;  %16577 = vst [vmem:[#allocation33_spill] sm:$0xff] %v12597_v51  ;;  %v12604_v48 = vadd.f32 %v1315_v6, %v12414_v11  ;;  %v16337_v6 = vsub.s32 3, %v12389_v37 }
 0x32d   :  { %16578 = vst [vmem:[#allocation34_spill] sm:$0xff] %v12601_v49  ;;  %v1503_v29 = vsel %vm86_vm4, %v1240_v57, %v1314_v41  ;;  %v12619_v9 = vsel %vm86_vm4, %v1314_v41, %v1240_v57 }
 0x32e   :  { %16579 = vst [vmem:[#allocation35_spill] sm:$0xff] %v12604_v48  ;;  %16580 = vst [vmem:[#allocation36_spill] sm:$0xff] %v12619_v9  ;;  %v12622_v11 = vadd.f32 %v12385_v59, %v1503_v29  ;;  %v1504_v53 = vsel %vm12455_vm5, %v12601_v49, %v12604_v48  ;;  %v12639_v59 = vrot.slane %v12399_v5, %v16333_v43 }
 0x32f   :  { %v2030_v7 = vadd.f32 %v12387_v61, %v1504_v53  ;;  %v12646_v41 = vrot.slane %v12399_v5, %v16337_v6 }
 0x330   :  { %v12634_v56 = vpop.f32.mrb[48].mxu0 }
 0x331   :  { %v12641_v57 = vpop.f32.mrb[49].mxu0 }
 0x332   :  { %v1356_v29 = vpop.f32.mrb[50].mxu0 }
 0x333   :  { %v12649_v9 = vadd.f32 %v1356_v29, %v12639_v59  ;;  %v1358_v8 = vpop.f32.mrb[51].mxu0 }
 0x334   :  { %v12652_v61 = vadd.f32 %v1358_v8, %v12646_v41 }
 0x335   :  { %16581 = vst [vmem:[#allocation37_spill] sm:$0xff] %v12649_v9 }
 0x336   :  { %16582 = vst [vmem:[#allocation38_spill] sm:$0xff] %v12652_v61 }
 0x338   :  { %v1362_v53 = vpop.f32.mrb[52].mxu0 }
 0x339   :  { %v12655_v49 = vadd.f32 %v1362_v53, %v12639_v59  ;;  %v1364_v43 = vpop.f32.mrb[53].mxu0 }
 0x33a   :  { %v12658_v48 = vadd.f32 %v1364_v43, %v12646_v41  ;;  %v1366_v37 = vpop.f32.mrb[54].mxu0 }
 0x33b   :  { %16583 = vst [vmem:[#allocation39_spill] sm:$0xff] %v12655_v49  ;;  %v12661_v5 = vadd.f32 %v1366_v37, %v12639_v59  ;;  %v1368_v6 = vpop.f32.mrb[55].mxu0 }
 0x33c   :  { %16584 = vst [vmem:[#allocation40_spill] sm:$0xff] %v12658_v48  ;;  %v12664_v29 = vadd.f32 %v1368_v6, %v12646_v41 }
 0x33d   :  { %16585 = vst [vmem:[#allocation41_spill] sm:$0xff] %v12661_v5 }
 0x33e   :  { %16586 = vst [vmem:[#allocation42_spill] sm:$0xff] %v12664_v29 }
 0x340   :  { %v1372_v51 = vpop.f32.mrb[56].mxu0 }
 0x341   :  { %v12667_v8 = vadd.f32 %v1372_v51, %v12639_v59  ;;  %v1374_v34 = vpop.f32.mrb[57].mxu0 }
 0x342   :  { %v12670_v53 = vadd.f32 %v1374_v34, %v12646_v41  ;;  %v1376_v60 = vpop.f32.mrb[58].mxu0 }
 0x343   :  { %16587 = vst [vmem:[#allocation43_spill] sm:$0xff] %v12667_v8  ;;  %v12673_v43 = vadd.f32 %v1376_v60, %v12639_v59  ;;  %v1378_v21 = vpop.f32.mrb[59].mxu0 }
 0x344   :  { %16588 = vst [vmem:[#allocation44_spill] sm:$0xff] %v12670_v53  ;;  %v12676_v37 = vadd.f32 %v1378_v21, %v12646_v41  ;;  %v16624_v53 = vsel %vm12455_vm5, %v12426_v58, %v12554_v63 }
 0x345   :  { %16589 = vst [vmem:[#allocation45_spill] sm:$0xff] %v12673_v43 }
 0x346   :  { %16590 = vst [vmem:[#allocation46_spill] sm:$0xff] %v12676_v37  ;;  %v12842_v37 = vadd.f32 %v12641_v57, %v12646_v41 }
 0x348   :  { %v1382_v6 = vpop.f32.mrb[60].mxu0  ;;  %16613 = vst [vmem:[#allocation65_spill] sm:$0xff] %v12842_v37 }
 0x349   :  { %v12681_v51 = vadd.f32 %v1382_v6, %v12639_v59  ;;  %v1384_v35 = vpop.f32.mrb[61].mxu0 }
 0x34a   :  { %v12684_v34 = vadd.f32 %v1384_v35, %v12646_v41  ;;  %v1386_v26 = vpop.f32.mrb[62].mxu0 }
 0x34b   :  { %16591 = vst [vmem:[#allocation47_spill] sm:$0xff] %v12681_v51  ;;  %v12687_v60 = vadd.f32 %v1386_v26, %v12639_v59  ;;  %v1388_v38 = vpop.f32.mrb[63].mxu0 }
 0x34c   :  { %16592 = vst [vmem:[#allocation48_spill] sm:$0xff] %v12684_v34  ;;  %v12690_v21 = vadd.f32 %v1388_v38, %v12646_v41 }
 0x34d   :  { %16593 = vst [vmem:[#allocation49_spill] sm:$0xff] %v12687_v60  ;;  %v9808_v60 = vmul.f32 -1.442695, %v12622_v11 }
 0x34e   :  { %16594 = vst [vmem:[#allocation50_spill] sm:$0xff] %v12690_v21  ;;  %v9809_v21 = vmul.f32 -1.442695, %v2030_v7 }
 0x350   :  { %v1392_v6 = vpop.f32.mrb[64].mxu0  ;;  %11074 = vpow2.f32 %v9809_v21 }
 0x351   :  { %v12701_v35 = vadd.f32 %v1392_v6, %v12639_v59  ;;  %v1394_v26 = vpop.f32.mrb[65].mxu0  ;;  %11076 = vpow2.f32 %v9808_v60 }
 0x352   :  { %v12704_v32 = vadd.f32 %v1394_v26, %v12646_v41  ;;  %v1396_v25 = vpop.f32.mrb[66].mxu0 }
 0x353   :  { %16599 = vst [vmem:[#allocation51_spill] sm:$0xff] %v12701_v35  ;;  %v12707_v38 = vadd.f32 %v1396_v25, %v12639_v59  ;;  %v1398_v30 = vpop.f32.mrb[67].mxu0 }
 0x354   :  { %16600 = vst [vmem:[#allocation52_spill] sm:$0xff] %v12704_v32  ;;  %v12718_v6 = vadd.f32 %v1398_v30, %v12646_v41 }
 0x355   :  { %16601 = vst [vmem:[#allocation53_spill] sm:$0xff] %v12707_v38 }
 0x356   :  { %16602 = vst [vmem:[#allocation54_spill] sm:$0xff] %v12718_v6 }
 0x358   :  { %v1402_v26 = vpop.f32.mrb[68].mxu0 }
 0x359   :  { %v12745_v32 = vadd.f32 %v1402_v26, %v12639_v59  ;;  %v1404_v40 = vpop.f32.mrb[69].mxu0 }
 0x35a   :  { %v12748_v35 = vadd.f32 %v1404_v40, %v12646_v41  ;;  %v1406_v30 = vpop.f32.mrb[70].mxu0 }
 0x35b   :  { %16603 = vst [vmem:[#allocation55_spill] sm:$0xff] %v12745_v32  ;;  %v12752_v38 = vadd.f32 %v1406_v30, %v12639_v59  ;;  %v1408_v46 = vpop.f32.mrb[71].mxu0 }
 0x35c   :  { %16604 = vst [vmem:[#allocation56_spill] sm:$0xff] %v12748_v35  ;;  %v12763_v40 = vadd.f32 %v1408_v46, %v12646_v41 }
 0x35d   :  { %16605 = vst [vmem:[#allocation57_spill] sm:$0xff] %v12752_v38 }
 0x35e   :  { %16606 = vst [vmem:[#allocation58_spill] sm:$0xff] %v12763_v40 }
 0x360   :  { %v1412_v11 = vpop.f32.mrb[72].mxu0 }
 0x361   :  { %v12790_v25 = vadd.f32 %v1412_v11, %v12639_v59  ;;  %v1414_v30 = vpop.f32.mrb[73].mxu0 }
 0x362   :  { %v12793_v6 = vadd.f32 %v1414_v30, %v12646_v41  ;;  %v1416_v21 = vpop.f32.mrb[74].mxu0  ;;  %v11075_v30 = vpop.eup %11074 }
 0x363   :  { %16607 = vst [vmem:[#allocation59_spill] sm:$0xff] %v12790_v25  ;;  %v12796_v46 = vadd.f32 %v1416_v21, %v12639_v59  ;;  %v1418_v34 = vpop.f32.mrb[75].mxu0  ;;  %v11077_v51 = vpop.eup %11076  ;;  %v2043_v21 = vadd.f32 1.0, %v11075_v30 }
 0x364   :  { %16608 = vst [vmem:[#allocation60_spill] sm:$0xff] %v12793_v6  ;;  %v12807_v11 = vadd.f32 %v1418_v34, %v12646_v41  ;;  %v12838_v34 = vadd.f32 %v12634_v56, %v12639_v59  ;;  %v2042_v57 = vadd.f32 1.0, %v11077_v51 }
 0x365   :  { %16609 = vst [vmem:[#allocation61_spill] sm:$0xff] %v12796_v46  ;;  %11078 = vrcp.f32 %v2043_v21 }
 0x366   :  { %16610 = vst [vmem:[#allocation62_spill] sm:$0xff] %v12807_v11  ;;  %16612 = vst [vmem:[#allocation64_spill] sm:$0xff] %v12838_v34  ;;  %11080 = vrcp.f32 %v2042_v57  ;;  %v16625_v39 = vsel %vm12696_vm7, %v12658_v48, %v12807_v11 }
 0x368   :  { %v1422_v7 = vpop.f32.mrb[76].mxu0 }
 0x369   :  { %v12834_v26 = vadd.f32 %v1422_v7, %v12639_v59  ;;  %v1424_v35 = vpop.f32.mrb[77].mxu0 }
 0x36a   :  { %v12845_v60 = vadd.f32 %v1424_v35, %v12646_v41  ;;  %v1426_v62 = vpop.f32.mrb[78].mxu0 }
 0x36b   :  { %16611 = vst [vmem:[#allocation63_spill] sm:$0xff] %v12834_v26  ;;  %v12848_v44 = vadd.f32 %v1426_v62, %v12639_v59  ;;  %v1428_v32 = vpop.f32.mrb[79].mxu0 }
 0x36c   :  { %16614 = vst [vmem:[#allocation66_spill] sm:$0xff] %v12845_v60  ;;  %v12859_v35 = vadd.f32 %v1428_v32, %v12646_v41 }
 0x36d   :  { %16615 = vst [vmem:[#allocation67_spill] sm:$0xff] %v12848_v44  ;;  %v1505_v30 = vsel %vm12692_vm6, %v12838_v34, %v12848_v44 }
 0x36e   :  { %16616 = vst [vmem:[#allocation68_spill] sm:$0xff] %v12859_v35  ;;  %v2031_v41 = vadd.f32 %v12391_v0, %v1505_v30  ;;  %v1506_v51 = vsel %vm12696_vm7, %v12842_v37, %v12859_v35  ;;  %v13168_v35 = vld [vmem:[%s16321_s4 + $0xe8] ss:$16 sps:$4 sm:$0xff]  }
 0x36f   :  { %v2032_v56 = vadd.f32 %v12393_v1, %v1506_v51  ;;  %v11079_v32 = vpop.eup %11078 }
 0x370   :  { %v9810_v62 = vmul.f32 -1.442695, %v2031_v41  ;;  %v11081_v7 = vpop.eup %11080  ;;  %v2052_v34 = vmul.f32 0.0, %v11079_v32 }
 0x371   :  { %11082 = vtanh.f32 %v2032_v56  ;;  %v11586_v56 = vld [vmem:[%s16321_s4] ss:$16 sps:$4 sm:$0xff]  }
 0x372   :  { %11084 = vpow2.f32 %v9810_v62 }
 0x37b   :  { %v11083_v0 = vpop.eup %11082 }
 0x37c   :  { %v11085_v30 = vpop.eup %11084  ;;  %v2053_v44 = vmul.f32 %v11083_v0, %v11081_v7  ;;  %v11591_v7 = vld [vmem:[%s16321_s4 + $0x64] ss:$16 sps:$4 sm:$0xff]  }
 0x37d   :  { %v2044_v43 = vadd.f32 1.0, %v11085_v30 }
 0x37e   :  { %v12887_v2 = vadd.f32 %v2053_v44, %v2052_v34  ;;  %v11587_v44 = vld [vmem:[%s16321_s4 + $0x24] ss:$16 sps:$4 sm:$0xff]   ;;  %v11588_v34 = vld [vmem:[%s16321_s4 + $0x20] ss:$16 sps:$4 sm:$0xff]  }
 0x37f   :  { %11086 = vrcp.f32 %v2044_v43  ;;  %v16618_v43 = vmov 0  }
 0x380   :  { %11088 = vtanh.f32 %v12887_v2 }
 0x389   :  { %v11087_v59 = vpop.eup %11086 }
 0x38a   :  { %v11089_v21 = vpop.eup %11088 }
 0x38b   :  { %v12890_v37 = vmul.f32 %v11089_v21, %v11087_v59 }
 0x38d   :  { %16617 = vst [vmem:[#allocation69_spill] sm:$0xff] %v12890_v37  ;;  %v2062_v1 = vpack.c.bf16 %v12890_v37, %v12890_v37  ;;  %v13163_v37 = vld [vmem:[%s16321_s4 + $0xe0] ss:$16 sps:$4 sm:$0xff]  }
 0x38f   :  { %2288 = vmatmul.mubr.bf16.vlgmr.msra.gmra.mrb[80].mxu0 %v2062_v1  ;;  %2329 = vmatmul.mubr.bf16.vlgmr.msra.gmra.mrb[24].mxu1 %v2062_v1 }
 0x390   :  { %2564 = vmatpush1.bf16.msra.mxu0 %v11586_v56  ;;  %2605 = vmatpush1.bf16.msra.mxu1 %v12108_v10  ;;  %v11589_v10 = vld [vmem:[%s16321_s4 + $0x44] ss:$16 sps:$4 sm:$0xff]  }
 0x391   :  { %2565 = vmatprep.subr.bf16.mxu0 %v11587_v44  ;;  %2606 = vmatprep.subr.bf16.mxu1 %v12118_v12  ;;  %v11590_v12 = vld [vmem:[%s16321_s4 + $0x40] ss:$16 sps:$4 sm:$0xff]  }
 0x392   :  { %2595 = vmatprep.mubr.bf16.mxu0 %v16618_v43  ;;  %2636 = vmatprep.mubr.bf16.mxu1 %v16618_v43 }
 0x394   :  { %2566 = vmatpush1.bf16.msra.mxu0 %v11588_v34  ;;  %2607 = vmatpush1.bf16.msra.mxu1 %v12125_v13  ;;  %v11592_v13 = vld [vmem:[%s16321_s4 + $0x60] ss:$16 sps:$4 sm:$0xff]  }
 0x395   :  { %2567 = vmatprep.subr.bf16.mxu0 %v11589_v10  ;;  %2608 = vmatprep.subr.bf16.mxu1 %v12137_v15  ;;  %v11593_v15 = vld [vmem:[%s16321_s4 + $0x84] ss:$16 sps:$4 sm:$0xff]  }
 0x398   :  { %2568 = vmatpush1.bf16.msra.mxu0 %v11590_v12  ;;  %2609 = vmatpush1.bf16.msra.mxu1 %v12132_v14  ;;  %v11594_v14 = vld [vmem:[%s16321_s4 + $0x80] ss:$16 sps:$4 sm:$0xff]  }
 0x399   :  { %2569 = vmatprep.subr.bf16.mxu0 %v11591_v7  ;;  %2610 = vmatprep.subr.bf16.mxu1 %v12142_v47  ;;  %v11595_v47 = vld [vmem:[%s16321_s4 + $0xa4] ss:$16 sps:$4 sm:$0xff]  }
 0x39c   :  { %2570 = vmatpush1.bf16.msra.mxu0 %v11592_v13  ;;  %2611 = vmatpush1.bf16.msra.mxu1 %v12149_v16  ;;  %v11596_v16 = vld [vmem:[%s16321_s4 + $0xa0] ss:$16 sps:$4 sm:$0xff]  }
 0x39d   :  { %2571 = vmatprep.subr.bf16.mxu0 %v11593_v15  ;;  %2612 = vmatprep.subr.bf16.mxu1 %v12161_v18  ;;  %v11597_v18 = vld [vmem:[%s16321_s4 + $0xc4] ss:$16 sps:$4 sm:$0xff]  }
 0x3a0   :  { %2572 = vmatpush1.bf16.msra.mxu0 %v11594_v14  ;;  %2613 = vmatpush1.bf16.msra.mxu1 %v12156_v17  ;;  %v11598_v17 = vld [vmem:[%s16321_s4 + $0xc0] ss:$16 sps:$4 sm:$0xff]  }
 0x3a1   :  { %2573 = vmatprep.subr.bf16.mxu0 %v11595_v47  ;;  %2614 = vmatprep.subr.bf16.mxu1 %v12166_v19  ;;  %v11599_v19 = vld [vmem:[%s16321_s4 + $0xe4] ss:$16 sps:$4 sm:$0xff]  }
 0x3a4   :  { %2574 = vmatpush1.bf16.msra.mxu0 %v11596_v16  ;;  %2615 = vmatpush1.bf16.msra.mxu1 %v12173_v20  ;;  %v11600_v20 = vld [vmem:[%s16321_s4 + $0xe0] ss:$16 sps:$4 sm:$0xff]  }
 0x3a5   :  { %2575 = vmatprep.subr.bf16.mxu0 %v11597_v18  ;;  %2616 = vmatprep.subr.bf16.mxu1 %v12190_v23 }
 0x3a8   :  { %2576 = vmatpush1.bf16.msra.mxu0 %v11598_v17  ;;  %2617 = vmatpush1.bf16.msra.mxu1 %v12185_v22  ;;  %v16619_v22 = vsel %vm12692_vm6, %v12649_v9, %v12834_v26 }
 0x3a9   :  { %2577 = vmatprep.subr.bf16.mxu0 %v11599_v19  ;;  %2618 = vmatprep.subr.bf16.mxu1 %v12195_v24  ;;  %v16620_v24 = vsel %vm12455_vm5, %v12420_v31, %v12584_v52  ;;  %v16623_v52 = vsel %vm12692_vm6, %v12655_v49, %v12796_v46 }
 0x3ac   :  { %2578 = vmatpush1.bf16.msra.mxu0 %v11600_v20  ;;  %2619 = vmatpush1.bf16.msra.mxu1 %v12203_v27  ;;  %v16621_v27 = vsel %vm12696_vm7, %v12652_v61, %v12845_v60 }
 0x462   :  { %v2289_v23 = vpop.f32.mrb[80].mxu0  ;;  %v2330_v57 = vpop.f32.mrb[24].mxu1 }
 0x463   :  { %v2337_v62 = vadd.f32 %v2289_v23, %v12592_v33  ;;  %v2339_v59 = vadd.f32 %v2330_v57, %v16619_v22  ;;  %v2291_v32 = vpop.f32.mrb[81].mxu0  ;;  %v2332_v41 = vpop.f32.mrb[25].mxu1 }
 0x464   :  { %v2338_v51 = vadd.f32 %v2291_v32, %v16620_v24  ;;  %v2340_v33 = vadd.f32 %v2332_v41, %v16621_v27  ;;  %v2293_v0 = vpop.f32.mrb[82].mxu0  ;;  %v2334_v30 = vpop.f32.mrb[26].mxu1  ;;  %v12995_v32 = vld [vmem:[%s16321_s4] ss:$16 sps:$4 sm:$0xff]   ;;  %v13000_v41 = vld [vmem:[%s16321_s4 + $0x8] ss:$16 sps:$4 sm:$0xff]  }
 0x465   :  { %v9843_v21 = vmul.f32 -1.442695, %v2337_v62  ;;  %v2294_v1 = vpop.f32.mrb[83].mxu0  ;;  %v2335_v56 = vpop.f32.mrb[27].mxu1  ;;  %v9845_v34 = vmul.f32 -1.442695, %v2339_v59 }
 0x466   :  { %v9844_v44 = vmul.f32 -1.442695, %v2338_v51  ;;  %v12990_v59 = vld [vmem:[%s16321_s4 + $0xc] ss:$16 sps:$4 sm:$0xff]   ;;  %v13009_v24 = vld [vmem:[%s16321_s4 + $0x24] ss:$16 sps:$4 sm:$0xff]  }
 0x467   :  { %11090 = vpow2.f32 %v9843_v21  ;;  %2912 = vmatprep.subr.bf16.mxu1 %v12990_v59  ;;  %v13014_v51 = vld [vmem:[%s16321_s4 + $0x2c] ss:$16 sps:$4 sm:$0xff]   ;;  %v13019_v27 = vld [vmem:[%s16321_s4 + $0x20] ss:$16 sps:$4 sm:$0xff]   ;;  %v13033_v0 = vld [vmem:[%s16321_s4 + $0x44] ss:$16 sps:$4 sm:$0xff]  }
 0x468   :  { %11092 = vpow2.f32 %v9844_v44  ;;  %v13038_v30 = vld [vmem:[%s16321_s4 + $0x4c] ss:$16 sps:$4 sm:$0xff]   ;;  %v13043_v21 = vld [vmem:[%s16321_s4 + $0x40] ss:$16 sps:$4 sm:$0xff]   ;;  %v13048_v1 = vld [vmem:[%s16321_s4 + $0x48] ss:$16 sps:$4 sm:$0xff]  }
 0x469   :  { %11094 = vtanh.f32 %v2340_v33  ;;  %v13024_v33 = vld [vmem:[%s16321_s4 + $0x28] ss:$16 sps:$4 sm:$0xff]   ;;  %v13057_v56 = vld [vmem:[%s16321_s4 + $0x64] ss:$16 sps:$4 sm:$0xff]   ;;  %v13062_v44 = vld [vmem:[%s16321_s4 + $0x6c] ss:$16 sps:$4 sm:$0xff]  }
 0x46a   :  { %11096 = vpow2.f32 %v9845_v34  ;;  %v13067_v34 = vld [vmem:[%s16321_s4 + $0x60] ss:$16 sps:$4 sm:$0xff]  }
 0x471   :  { %v11091_v10 = vpop.eup %11090 }
 0x472   :  { %v2350_v12 = vadd.f32 1.0, %v11091_v10  ;;  %v11093_v7 = vpop.eup %11092  ;;  %v13072_v10 = vld [vmem:[%s16321_s4 + $0x68] ss:$16 sps:$4 sm:$0xff]  }
 0x473   :  { %v2351_v13 = vadd.f32 1.0, %v11093_v7  ;;  %v11095_v15 = vpop.eup %11094  ;;  %v13086_v7 = vld [vmem:[%s16321_s4 + $0x8c] ss:$16 sps:$4 sm:$0xff]  }
 0x474   :  { %11098 = vrcp.f32 %v2350_v12  ;;  %v11097_v14 = vpop.eup %11096  ;;  %v13081_v12 = vld [vmem:[%s16321_s4 + $0x84] ss:$16 sps:$4 sm:$0xff]  }
 0x475   :  { %11100 = vrcp.f32 %v2351_v13  ;;  %v2352_v17 = vadd.f32 1.0, %v11097_v14  ;;  %v13091_v13 = vld [vmem:[%s16321_s4 + $0x80] ss:$16 sps:$4 sm:$0xff]  }
 0x476   :  { %v13105_v14 = vld [vmem:[%s16321_s4 + $0xa0] ss:$16 sps:$4 sm:$0xff]  }
 0x477   :  { %11102 = vrcp.f32 %v2352_v17  ;;  %v13125_v17 = vld [vmem:[%s16321_s4 + $0xc4] ss:$16 sps:$4 sm:$0xff]  }
 0x47e   :  { %v11099_v47 = vpop.eup %11098 }
 0x47f   :  { %v2361_v16 = vmul.f32 %v11099_v47, %v11095_v15  ;;  %v11101_v18 = vpop.eup %11100  ;;  %v13096_v15 = vld [vmem:[%s16321_s4 + $0x88] ss:$16 sps:$4 sm:$0xff]   ;;  %v13110_v47 = vld [vmem:[%s16321_s4 + $0xa4] ss:$16 sps:$4 sm:$0xff]  }
 0x480   :  { %v2360_v19 = vmul.f32 %v11101_v18, %v12887_v2  ;;  %v12985_v2 = vld [vmem:[%s16321_s4 + $0x4] ss:$16 sps:$4 sm:$0xff]   ;;  %v13120_v18 = vld [vmem:[%s16321_s4 + $0xac] ss:$16 sps:$4 sm:$0xff]  }
 0x481   :  { %v11103_v23 = vpop.eup %11102  ;;  %2871 = vmatprep.subr.bf16.mxu0 %v12985_v2 }
 0x482   :  { %v12973_v20 = vadd.f32 %v2361_v16, %v2360_v19  ;;  %v13115_v16 = vld [vmem:[%s16321_s4 + $0xa8] ss:$16 sps:$4 sm:$0xff]   ;;  %v13131_v19 = vld [vmem:[%s16321_s4 + $0xcc] ss:$16 sps:$4 sm:$0xff]  }
 0x484   :  { %11104 = vtanh.f32 %v12973_v20 }
 0x48e   :  { %v11105_v57 = vpop.eup %11104 }
 0x48f   :  { %v12976_v62 = vmul.f32 %v11105_v57, %v11103_v23  ;;  %v13139_v23 = vld [vmem:[%s16321_s4 + $0xc0] ss:$16 sps:$4 sm:$0xff]   ;;  %v13144_v57 = vld [vmem:[%s16321_s4 + $0xc8] ss:$16 sps:$4 sm:$0xff]  }
 0x491   :  { %16622 = vst [vmem:[#allocation70_spill] sm:$0xff] %v12976_v62  ;;  %v2370_v22 = vpack.c.bf16 %v12976_v62, %v12976_v62  ;;  %v13156_v62 = vld [vmem:[%s16321_s4 + $0xec] ss:$16 sps:$4 sm:$0xff]  }
 0x493   :  { %2596 = vmatmul.mubr.bf16.vlgmr.msra.gmra.mrb[84].mxu0 %v2370_v22  ;;  %2637 = vmatmul.mubr.bf16.vlgmr.msra.gmra.mrb[28].mxu1 %v2370_v22  ;;  %v13151_v22 = vld [vmem:[%s16321_s4 + $0xe4] ss:$16 sps:$4 sm:$0xff]  }
 0x494   :  { %2903 = vmatprep.mubr.bf16.mxu0 %v16618_v43  ;;  %2944 = vmatprep.mubr.bf16.mxu1 %v16618_v43 }
 0x495   :  { %2872 = vmatpush1.bf16.msra.mxu0 %v12995_v32  ;;  %2913 = vmatpush1.bf16.msra.mxu1 %v13000_v41 }
 0x496   :  { %2873 = vmatprep.subr.bf16.mxu0 %v13009_v24  ;;  %2914 = vmatprep.subr.bf16.mxu1 %v13014_v51 }
 0x499   :  { %2874 = vmatpush1.bf16.msra.mxu0 %v13019_v27  ;;  %2915 = vmatpush1.bf16.msra.mxu1 %v13024_v33 }
 0x49a   :  { %2875 = vmatprep.subr.bf16.mxu0 %v13033_v0  ;;  %2916 = vmatprep.subr.bf16.mxu1 %v13038_v30 }
 0x49d   :  { %2876 = vmatpush1.bf16.msra.mxu0 %v13043_v21  ;;  %2917 = vmatpush1.bf16.msra.mxu1 %v13048_v1 }
 0x49e   :  { %2877 = vmatprep.subr.bf16.mxu0 %v13057_v56  ;;  %2918 = vmatprep.subr.bf16.mxu1 %v13062_v44 }
 0x4a1   :  { %2878 = vmatpush1.bf16.msra.mxu0 %v13067_v34  ;;  %2919 = vmatpush1.bf16.msra.mxu1 %v13072_v10 }
 0x4a2   :  { %2879 = vmatprep.subr.bf16.mxu0 %v13081_v12  ;;  %2920 = vmatprep.subr.bf16.mxu1 %v13086_v7 }
 0x4a5   :  { %2880 = vmatpush1.bf16.msra.mxu0 %v13091_v13  ;;  %2921 = vmatpush1.bf16.msra.mxu1 %v13096_v15 }
 0x4a6   :  { %2881 = vmatprep.subr.bf16.mxu0 %v13110_v47  ;;  %2922 = vmatprep.subr.bf16.mxu1 %v13120_v18 }
 0x4a9   :  { %2882 = vmatpush1.bf16.msra.mxu0 %v13105_v14  ;;  %2923 = vmatpush1.bf16.msra.mxu1 %v13115_v16 }
 0x4aa   :  { %2883 = vmatprep.subr.bf16.mxu0 %v13125_v17  ;;  %2924 = vmatprep.subr.bf16.mxu1 %v13131_v19 }
 0x4ad   :  { %2884 = vmatpush1.bf16.msra.mxu0 %v13139_v23  ;;  %2925 = vmatpush1.bf16.msra.mxu1 %v13144_v57 }
 0x4ae   :  { %2885 = vmatprep.subr.bf16.mxu0 %v13151_v22  ;;  %2926 = vmatprep.subr.bf16.mxu1 %v13156_v62 }
 0x4b1   :  { %2886 = vmatpush1.bf16.msra.mxu0 %v13163_v37  ;;  %2927 = vmatpush1.bf16.msra.mxu1 %v13168_v35 }
 0x4b2   :  { %3179 = vmatprep.subr.bf16.mxu0 %v12985_v2  ;;  %3220 = vmatprep.subr.bf16.mxu1 %v12990_v59 }
 0x566   :  { %v2597_v61 = vpop.f32.mrb[84].mxu0  ;;  %v2638_v60 = vpop.f32.mrb[28].mxu1 }
 0x567   :  { %v2645_v31 = vadd.f32 %v2597_v61, %v12567_v42  ;;  %v2647_v9 = vadd.f32 %v2638_v60, %v16623_v52  ;;  %v2599_v26 = vpop.f32.mrb[85].mxu0  ;;  %v2640_v40 = vpop.f32.mrb[29].mxu1 }
 0x568   :  { %v2646_v55 = vadd.f32 %v2599_v26, %v16624_v53  ;;  %v2648_v42 = vadd.f32 %v2640_v40, %v16625_v39  ;;  %v2601_v61 = vpop.f32.mrb[86].mxu0  ;;  %v2642_v38 = vpop.f32.mrb[30].mxu1 }
 0x569   :  { %v9878_v8 = vmul.f32 -1.442695, %v2645_v31  ;;  %v2602_v54 = vpop.f32.mrb[87].mxu0  ;;  %v2643_v49 = vpop.f32.mrb[31].mxu1  ;;  %v9880_v60 = vmul.f32 -1.442695, %v2647_v9 }
 0x56a   :  { %v9879_v52 = vmul.f32 -1.442695, %v2646_v55 }
 0x56b   :  { %11106 = vpow2.f32 %v9878_v8 }
 0x56c   :  { %11108 = vpow2.f32 %v9879_v52 }
 0x56d   :  { %11110 = vtanh.f32 %v2648_v42 }
 0x56e   :  { %11112 = vpow2.f32 %v9880_v60  ;;  %v16628_v60 = vsel %vm12455_vm5, %v12432_v36, %v12540_v3  ;;  %v16658_v3 = vld [vmem:[#allocation14_spill] sm:$0xff] }
 0x575   :  { %v11107_v46 = vpop.eup %11106 }
 0x576   :  { %v2658_v6 = vadd.f32 1.0, %v11107_v46  ;;  %v11109_v58 = vpop.eup %11108 }
 0x577   :  { %v2659_v53 = vadd.f32 1.0, %v11109_v58  ;;  %v11111_v26 = vpop.eup %11110 }
 0x578   :  { %11114 = vrcp.f32 %v2658_v6  ;;  %v11113_v48 = vpop.eup %11112 }
 0x579   :  { %11116 = vrcp.f32 %v2659_v53  ;;  %v2660_v31 = vadd.f32 1.0, %v11113_v48 }
 0x57b   :  { %11118 = vrcp.f32 %v2660_v31 }
 0x582   :  { %v11115_v39 = vpop.eup %11114 }
 0x583   :  { %v2669_v40 = vmul.f32 %v11115_v39, %v11111_v26  ;;  %v11117_v38 = vpop.eup %11116  ;;  %v16629_v26 = vld [vmem:[#allocation60_spill] sm:$0xff] }
 0x584   :  { %v2668_v54 = vmul.f32 %v11117_v38, %v12973_v20  ;;  %v16627_v20 = vsel %vm12692_vm6, %v12661_v5, %v12790_v25  ;;  %v16630_v39 = vsel %vm12696_vm7, %v12664_v29, %v16629_v26  ;;  %v16659_v5 = vld [vmem:[#allocation19_spill] sm:$0xff] }
 0x585   :  { %v11119_v49 = vpop.eup %11118  ;;  %v16660_v25 = vsel %vm12455_vm5, %v16658_v3, %v16659_v5 }
 0x586   :  { %v13193_v55 = vadd.f32 %v2669_v40, %v2668_v54 }
 0x588   :  { %11120 = vtanh.f32 %v13193_v55 }
 0x592   :  { %v11121_v9 = vpop.eup %11120 }
 0x593   :  { %v13196_v8 = vmul.f32 %v11121_v9, %v11119_v49 }
 0x595   :  { %16626 = vst [vmem:[#allocation71_spill] sm:$0xff] %v13196_v8  ;;  %v2678_v58 = vpack.c.bf16 %v13196_v8, %v13196_v8 }
 0x597   :  { %2904 = vmatmul.mubr.bf16.vlgmr.msra.gmra.mrb[88].mxu0 %v2678_v58  ;;  %2945 = vmatmul.mubr.bf16.vlgmr.msra.gmra.mrb[32].mxu1 %v2678_v58 }
 0x598   :  { %3180 = vmatpush1.bf16.msra.mxu0 %v12995_v32  ;;  %3221 = vmatpush1.bf16.msra.mxu1 %v13000_v41 }
 0x599   :  { %3181 = vmatprep.subr.bf16.mxu0 %v13009_v24  ;;  %3222 = vmatprep.subr.bf16.mxu1 %v13014_v51 }
 0x59a   :  { %3211 = vmatprep.mubr.bf16.mxu0 %v16618_v43  ;;  %3252 = vmatprep.mubr.bf16.mxu1 %v16618_v43 }
 0x59c   :  { %3182 = vmatpush1.bf16.msra.mxu0 %v13019_v27  ;;  %3223 = vmatpush1.bf16.msra.mxu1 %v13024_v33 }
 0x59d   :  { %3183 = vmatprep.subr.bf16.mxu0 %v13033_v0  ;;  %3224 = vmatprep.subr.bf16.mxu1 %v13038_v30 }
 0x5a0   :  { %3184 = vmatpush1.bf16.msra.mxu0 %v13043_v21  ;;  %3225 = vmatpush1.bf16.msra.mxu1 %v13048_v1 }
 0x5a1   :  { %3185 = vmatprep.subr.bf16.mxu0 %v13057_v56  ;;  %3226 = vmatprep.subr.bf16.mxu1 %v13062_v44 }
 0x5a4   :  { %3186 = vmatpush1.bf16.msra.mxu0 %v13067_v34  ;;  %3227 = vmatpush1.bf16.msra.mxu1 %v13072_v10 }
 0x5a5   :  { %3187 = vmatprep.subr.bf16.mxu0 %v13081_v12  ;;  %3228 = vmatprep.subr.bf16.mxu1 %v13086_v7 }
 0x5a8   :  { %3188 = vmatpush1.bf16.msra.mxu0 %v13091_v13  ;;  %3229 = vmatpush1.bf16.msra.mxu1 %v13096_v15 }
 0x5a9   :  { %3189 = vmatprep.subr.bf16.mxu0 %v13110_v47  ;;  %3230 = vmatprep.subr.bf16.mxu1 %v13120_v18 }
 0x5ac   :  { %3190 = vmatpush1.bf16.msra.mxu0 %v13105_v14  ;;  %3231 = vmatpush1.bf16.msra.mxu1 %v13115_v16 }
 0x5ad   :  { %3191 = vmatprep.subr.bf16.mxu0 %v13125_v17  ;;  %3232 = vmatprep.subr.bf16.mxu1 %v13131_v19 }
 0x5b0   :  { %3192 = vmatpush1.bf16.msra.mxu0 %v13139_v23  ;;  %3233 = vmatpush1.bf16.msra.mxu1 %v13144_v57 }
 0x5b1   :  { %3193 = vmatprep.subr.bf16.mxu0 %v13151_v22  ;;  %3234 = vmatprep.subr.bf16.mxu1 %v13156_v62 }
 0x5b4   :  { %3194 = vmatpush1.bf16.msra.mxu0 %v13163_v37  ;;  %3235 = vmatpush1.bf16.msra.mxu1 %v13168_v35 }
 0x5b5   :  { %3487 = vmatprep.subr.bf16.mxu0 %v12985_v2  ;;  %3528 = vmatprep.subr.bf16.mxu1 %v12990_v59 }
 0x66a   :  { %v2905_v48 = vpop.f32.mrb[88].mxu0  ;;  %v2946_v6 = vpop.f32.mrb[32].mxu1 }
 0x66b   :  { %v2953_v46 = vadd.f32 %v2905_v48, %v12546_v50  ;;  %v2955_v42 = vadd.f32 %v2946_v6, %v16627_v20  ;;  %v2907_v61 = vpop.f32.mrb[89].mxu0  ;;  %v2948_v52 = vpop.f32.mrb[33].mxu1 }
 0x66c   :  { %v2954_v53 = vadd.f32 %v2907_v61, %v16628_v60  ;;  %v2956_v50 = vadd.f32 %v2948_v52, %v16630_v39  ;;  %v2909_v40 = vpop.f32.mrb[90].mxu0  ;;  %v2950_v38 = vpop.f32.mrb[34].mxu1 }
 0x66d   :  { %v9913_v31 = vmul.f32 -1.442695, %v2953_v46  ;;  %v2910_v54 = vpop.f32.mrb[91].mxu0  ;;  %v2951_v49 = vpop.f32.mrb[35].mxu1  ;;  %v9915_v58 = vmul.f32 -1.442695, %v2955_v42 }
 0x66e   :  { %v9914_v9 = vmul.f32 -1.442695, %v2954_v53  ;;  %v16632_v49 = vld [vmem:[#allocation26_spill] sm:$0xff] }
 0x66f   :  { %11122 = vpow2.f32 %v9913_v31 }
 0x670   :  { %11124 = vpow2.f32 %v9914_v9 }
 0x671   :  { %11126 = vtanh.f32 %v2956_v50 }
 0x672   :  { %11128 = vpow2.f32 %v9915_v58  ;;  %v16633_v58 = vld [vmem:[#allocation43_spill] sm:$0xff] }
 0x679   :  { %v11123_v48 = vpop.eup %11122 }
 0x67a   :  { %v2966_v6 = vadd.f32 1.0, %v11123_v48  ;;  %v11125_v20 = vpop.eup %11124  ;;  %v16634_v48 = vld [vmem:[#allocation57_spill] sm:$0xff] }
 0x67b   :  { %v2967_v61 = vadd.f32 1.0, %v11125_v20  ;;  %v11127_v60 = vpop.eup %11126 }
 0x67c   :  { %11130 = vrcp.f32 %v2966_v6  ;;  %v11129_v8 = vpop.eup %11128  ;;  %v16635_v6 = vsel %vm12692_vm6, %v16633_v58, %v16634_v48 }
 0x67d   :  { %11132 = vrcp.f32 %v2967_v61  ;;  %v2968_v46 = vadd.f32 1.0, %v11129_v8 }
 0x67f   :  { %11134 = vrcp.f32 %v2968_v46  ;;  %v16640_v46 = vld [vmem:[#allocation58_spill] sm:$0xff] }
 0x686   :  { %v11131_v52 = vpop.eup %11130 }
 0x687   :  { %v2977_v39 = vmul.f32 %v11131_v52, %v11127_v60  ;;  %v11133_v40 = vpop.eup %11132  ;;  %v16636_v52 = vld [vmem:[#allocation11_spill] sm:$0xff] }
 0x688   :  { %v2976_v38 = vmul.f32 %v11133_v40, %v13193_v55 }
 0x689   :  { %v11135_v42 = vpop.eup %11134 }
 0x68a   :  { %v13251_v53 = vadd.f32 %v2977_v39, %v2976_v38  ;;  %v16637_v39 = vld [vmem:[#allocation25_spill] sm:$0xff] }
 0x68b   :  { %v16638_v40 = vsel %vm12455_vm5, %v16636_v52, %v16637_v39 }
 0x68c   :  { %11136 = vtanh.f32 %v13251_v53 }
 0x696   :  { %v11137_v50 = vpop.eup %11136 }
 0x697   :  { %v13254_v31 = vmul.f32 %v11137_v50, %v11135_v42 }
 0x699   :  { %16631 = vst [vmem:[#allocation72_spill] sm:$0xff] %v13254_v31  ;;  %v2986_v54 = vpack.c.bf16 %v13254_v31, %v13254_v31 }
 0x69b   :  { %3212 = vmatmul.mubr.bf16.vlgmr.msra.gmra.mrb[92].mxu0 %v2986_v54  ;;  %3253 = vmatmul.mubr.bf16.vlgmr.msra.gmra.mrb[36].mxu1 %v2986_v54 }
 0x69c   :  { %3488 = vmatpush1.bf16.msra.mxu0 %v12995_v32  ;;  %3529 = vmatpush1.bf16.msra.mxu1 %v13000_v41 }
 0x69d   :  { %3489 = vmatprep.subr.bf16.mxu0 %v13009_v24  ;;  %3530 = vmatprep.subr.bf16.mxu1 %v13014_v51 }
 0x69e   :  { %3519 = vmatprep.mubr.bf16.mxu0 %v16618_v43  ;;  %3560 = vmatprep.mubr.bf16.mxu1 %v16618_v43 }
 0x6a0   :  { %3490 = vmatpush1.bf16.msra.mxu0 %v13019_v27  ;;  %3531 = vmatpush1.bf16.msra.mxu1 %v13024_v33 }
 0x6a1   :  { %3491 = vmatprep.subr.bf16.mxu0 %v13033_v0  ;;  %3532 = vmatprep.subr.bf16.mxu1 %v13038_v30 }
 0x6a4   :  { %3492 = vmatpush1.bf16.msra.mxu0 %v13043_v21  ;;  %3533 = vmatpush1.bf16.msra.mxu1 %v13048_v1 }
 0x6a5   :  { %3493 = vmatprep.subr.bf16.mxu0 %v13057_v56  ;;  %3534 = vmatprep.subr.bf16.mxu1 %v13062_v44 }
 0x6a8   :  { %3494 = vmatpush1.bf16.msra.mxu0 %v13067_v34  ;;  %3535 = vmatpush1.bf16.msra.mxu1 %v13072_v10 }
 0x6a9   :  { %3495 = vmatprep.subr.bf16.mxu0 %v13081_v12  ;;  %3536 = vmatprep.subr.bf16.mxu1 %v13086_v7 }
 0x6ac   :  { %3496 = vmatpush1.bf16.msra.mxu0 %v13091_v13  ;;  %3537 = vmatpush1.bf16.msra.mxu1 %v13096_v15 }
 0x6ad   :  { %3497 = vmatprep.subr.bf16.mxu0 %v13110_v47  ;;  %3538 = vmatprep.subr.bf16.mxu1 %v13120_v18 }
 0x6b0   :  { %3498 = vmatpush1.bf16.msra.mxu0 %v13105_v14  ;;  %3539 = vmatpush1.bf16.msra.mxu1 %v13115_v16 }
 0x6b1   :  { %3499 = vmatprep.subr.bf16.mxu0 %v13125_v17  ;;  %3540 = vmatprep.subr.bf16.mxu1 %v13131_v19 }
 0x6b4   :  { %3500 = vmatpush1.bf16.msra.mxu0 %v13139_v23  ;;  %3541 = vmatpush1.bf16.msra.mxu1 %v13144_v57 }
 0x6b5   :  { %3501 = vmatprep.subr.bf16.mxu0 %v13151_v22  ;;  %3542 = vmatprep.subr.bf16.mxu1 %v13156_v62 }
 0x6b8   :  { %3502 = vmatpush1.bf16.msra.mxu0 %v13163_v37  ;;  %3543 = vmatpush1.bf16.msra.mxu1 %v13168_v35 }
 0x6b9   :  { %3795 = vmatprep.subr.bf16.mxu0 %v12985_v2  ;;  %3836 = vmatprep.subr.bf16.mxu1 %v12990_v59  ;;  %v16639_v59 = vld [vmem:[#allocation44_spill] sm:$0xff] }
 0x6ba   :  { %v16641_v38 = vsel %vm12696_vm7, %v16639_v59, %v16640_v46  ;;  %v16662_v59 = vld [vmem:[#allocation54_spill] sm:$0xff] }
 0x76e   :  { %v3213_v55 = vpop.f32.mrb[92].mxu0  ;;  %v3254_v8 = vpop.f32.mrb[36].mxu1 }
 0x76f   :  { %v3261_v9 = vadd.f32 %v3213_v55, %v16632_v49  ;;  %v3263_v20 = vadd.f32 %v3254_v8, %v16635_v6  ;;  %v3215_v61 = vpop.f32.mrb[93].mxu0  ;;  %v3256_v60 = vpop.f32.mrb[37].mxu1 }
 0x770   :  { %v3262_v2 = vadd.f32 %v3215_v61, %v16638_v40  ;;  %v3264_v42 = vadd.f32 %v3256_v60, %v16641_v38  ;;  %v3217_v50 = vpop.f32.mrb[94].mxu0  ;;  %v3258_v54 = vpop.f32.mrb[38].mxu1 }
 0x771   :  { %v9948_v55 = vmul.f32 -1.442695, %v3261_v9  ;;  %v3218_v49 = vpop.f32.mrb[95].mxu0  ;;  %v3259_v31 = vpop.f32.mrb[39].mxu1  ;;  %v9950_v6 = vmul.f32 -1.442695, %v3263_v20 }
 0x772   :  { %v9949_v8 = vmul.f32 -1.442695, %v3262_v2 }
 0x773   :  { %11138 = vpow2.f32 %v9948_v55 }
 0x774   :  { %11140 = vpow2.f32 %v9949_v8 }
 0x775   :  { %11142 = vtanh.f32 %v3264_v42 }
 0x776   :  { %11144 = vpow2.f32 %v9950_v6 }
 0x77d   :  { %v11139_v11 = vpop.eup %11138 }
 0x77e   :  { %v3274_v63 = vadd.f32 1.0, %v11139_v11  ;;  %v11141_v29 = vpop.eup %11140 }
 0x77f   :  { %v3275_v61 = vadd.f32 1.0, %v11141_v29  ;;  %v11143_v40 = vpop.eup %11142 }
 0x780   :  { %11146 = vrcp.f32 %v3274_v63  ;;  %v11145_v26 = vpop.eup %11144 }
 0x781   :  { %11148 = vrcp.f32 %v3275_v61  ;;  %v3276_v9 = vadd.f32 1.0, %v11145_v26 }
 0x783   :  { %11150 = vrcp.f32 %v3276_v9  ;;  %v13387_v9 = vld [vmem:[%s16321_s4] ss:$16 sps:$4 sm:$0xff]  }
 0x78a   :  { %v11147_v60 = vpop.eup %11146 }
 0x78b   :  { %v3285_v38 = vmul.f32 %v11147_v60, %v11143_v40  ;;  %v11149_v50 = vpop.eup %11148 }
 0x78c   :  { %v3284_v31 = vmul.f32 %v11149_v50, %v13251_v53  ;;  %v13382_v50 = vld [vmem:[%s16321_s4 + $0xc] ss:$16 sps:$4 sm:$0xff]  }
 0x78d   :  { %v11151_v11 = vpop.eup %11150 }
 0x78e   :  { %v13309_v2 = vadd.f32 %v3285_v38, %v3284_v31  ;;  %v13377_v38 = vld [vmem:[%s16321_s4 + $0x4] ss:$16 sps:$4 sm:$0xff]   ;;  %v13392_v31 = vld [vmem:[%s16321_s4 + $0x8] ss:$16 sps:$4 sm:$0xff]  }
 0x790   :  { %11152 = vtanh.f32 %v13309_v2 }
 0x79a   :  { %v11153_v20 = vpop.eup %11152 }
 0x79b   :  { %v13312_v42 = vmul.f32 %v11153_v20, %v11151_v11  ;;  %v13406_v11 = vld [vmem:[%s16321_s4 + $0x2c] ss:$16 sps:$4 sm:$0xff]   ;;  %v13411_v20 = vld [vmem:[%s16321_s4 + $0x20] ss:$16 sps:$4 sm:$0xff]  }
 0x79d   :  { %16642 = vst [vmem:[#allocation26_spill] sm:$0xff] %v13312_v42  ;;  %v3294_v63 = vpack.c.bf16 %v13312_v42, %v13312_v42 }
 0x79f   :  { %3520 = vmatmul.mubr.bf16.vlgmr.msra.gmra.mrb[96].mxu0 %v3294_v63  ;;  %3561 = vmatmul.mubr.bf16.vlgmr.msra.gmra.mrb[40].mxu1 %v3294_v63  ;;  %v13416_v63 = vld [vmem:[%s16321_s4 + $0x28] ss:$16 sps:$4 sm:$0xff]  }
 0x7a0   :  { %3796 = vmatpush1.bf16.msra.mxu0 %v12995_v32  ;;  %3837 = vmatpush1.bf16.msra.mxu1 %v13000_v41  ;;  %v16643_v41 = vld [vmem:[#allocation23_spill] sm:$0xff] }
 0x7a1   :  { %3797 = vmatprep.subr.bf16.mxu0 %v13009_v24  ;;  %3838 = vmatprep.subr.bf16.mxu1 %v13014_v51  ;;  %v16644_v51 = vld [vmem:[#allocation45_spill] sm:$0xff] }
 0x7a2   :  { %3827 = vmatprep.mubr.bf16.mxu0 %v16618_v43  ;;  %3868 = vmatprep.mubr.bf16.mxu1 %v16618_v43 }
 0x7a4   :  { %3798 = vmatpush1.bf16.msra.mxu0 %v13019_v27  ;;  %3839 = vmatpush1.bf16.msra.mxu1 %v13024_v33  ;;  %v16645_v27 = vld [vmem:[#allocation55_spill] sm:$0xff] }
 0x7a5   :  { %3799 = vmatprep.subr.bf16.mxu0 %v13033_v0  ;;  %3840 = vmatprep.subr.bf16.mxu1 %v13038_v30  ;;  %v16646_v33 = vsel %vm12692_vm6, %v16644_v51, %v16645_v27 }
 0x7a8   :  { %3800 = vmatpush1.bf16.msra.mxu0 %v13043_v21  ;;  %3841 = vmatpush1.bf16.msra.mxu1 %v13048_v1  ;;  %v16647_v1 = vld [vmem:[#allocation12_spill] sm:$0xff] }
 0x7a9   :  { %3801 = vmatprep.subr.bf16.mxu0 %v13057_v56  ;;  %3842 = vmatprep.subr.bf16.mxu1 %v13062_v44  ;;  %v16651_v44 = vld [vmem:[#allocation56_spill] sm:$0xff] }
 0x7ac   :  { %3802 = vmatpush1.bf16.msra.mxu0 %v13067_v34  ;;  %3843 = vmatpush1.bf16.msra.mxu1 %v13072_v10 }
 0x7ad   :  { %3803 = vmatprep.subr.bf16.mxu0 %v13081_v12  ;;  %3844 = vmatprep.subr.bf16.mxu1 %v13086_v7 }
 0x7b0   :  { %3804 = vmatpush1.bf16.msra.mxu0 %v13091_v13  ;;  %3845 = vmatpush1.bf16.msra.mxu1 %v13096_v15 }
 0x7b1   :  { %3805 = vmatprep.subr.bf16.mxu0 %v13110_v47  ;;  %3846 = vmatprep.subr.bf16.mxu1 %v13120_v18 }
 0x7b4   :  { %3806 = vmatpush1.bf16.msra.mxu0 %v13105_v14  ;;  %3847 = vmatpush1.bf16.msra.mxu1 %v13115_v16 }
 0x7b5   :  { %3807 = vmatprep.subr.bf16.mxu0 %v13125_v17  ;;  %3848 = vmatprep.subr.bf16.mxu1 %v13131_v19 }
 0x7b8   :  { %3808 = vmatpush1.bf16.msra.mxu0 %v13139_v23  ;;  %3849 = vmatpush1.bf16.msra.mxu1 %v13144_v57 }
 0x7b9   :  { %3809 = vmatprep.subr.bf16.mxu0 %v13151_v22  ;;  %3850 = vmatprep.subr.bf16.mxu1 %v13156_v62  ;;  %v16648_v62 = vld [vmem:[#allocation22_spill] sm:$0xff] }
 0x7ba   :  { %v16649_v56 = vsel %vm12455_vm5, %v16647_v1, %v16648_v62 }
 0x7bc   :  { %3810 = vmatpush1.bf16.msra.mxu0 %v13163_v37  ;;  %3851 = vmatpush1.bf16.msra.mxu1 %v13168_v35  ;;  %v16650_v35 = vld [vmem:[#allocation46_spill] sm:$0xff] }
 0x7bd   :  { %v16652_v34 = vsel %vm12696_vm7, %v16650_v35, %v16651_v44  ;;  %4103 = vmatprep.subr.bf16.mxu0 %v13377_v38  ;;  %4144 = vmatprep.subr.bf16.mxu1 %v13382_v50 }
 0x872   :  { %v3521_v29 = vpop.f32.mrb[96].mxu0  ;;  %v3562_v32 = vpop.f32.mrb[40].mxu1 }
 0x873   :  { %v3569_v24 = vadd.f32 %v3521_v29, %v16643_v41  ;;  %v3571_v0 = vadd.f32 %v3562_v32, %v16646_v33  ;;  %v3523_v30 = vpop.f32.mrb[97].mxu0  ;;  %v3564_v21 = vpop.f32.mrb[41].mxu1  ;;  %v13425_v29 = vld [vmem:[%s16321_s4 + $0x44] ss:$16 sps:$4 sm:$0xff]   ;;  %v13430_v32 = vld [vmem:[%s16321_s4 + $0x4c] ss:$16 sps:$4 sm:$0xff]  }
 0x874   :  { %v3570_v37 = vadd.f32 %v3523_v30, %v16649_v56  ;;  %v3572_v10 = vadd.f32 %v3564_v21, %v16652_v34  ;;  %v3525_v12 = vpop.f32.mrb[98].mxu0  ;;  %v3566_v7 = vpop.f32.mrb[42].mxu1  ;;  %v13435_v41 = vld [vmem:[%s16321_s4 + $0x40] ss:$16 sps:$4 sm:$0xff]   ;;  %v13449_v33 = vld [vmem:[%s16321_s4 + $0x64] ss:$16 sps:$4 sm:$0xff]  }
 0x875   :  { %v9983_v13 = vmul.f32 -1.442695, %v3569_v24  ;;  %v3526_v15 = vpop.f32.mrb[99].mxu0  ;;  %v3567_v14 = vpop.f32.mrb[43].mxu1  ;;  %v9985_v16 = vmul.f32 -1.442695, %v3571_v0 }
 0x876   :  { %v9984_v47 = vmul.f32 -1.442695, %v3570_v37  ;;  %v13440_v24 = vld [vmem:[%s16321_s4 + $0x48] ss:$16 sps:$4 sm:$0xff]   ;;  %v13454_v0 = vld [vmem:[%s16321_s4 + $0x6c] ss:$16 sps:$4 sm:$0xff]  }
 0x877   :  { %11154 = vpow2.f32 %v9983_v13  ;;  %v13459_v30 = vld [vmem:[%s16321_s4 + $0x60] ss:$16 sps:$4 sm:$0xff]   ;;  %v13464_v21 = vld [vmem:[%s16321_s4 + $0x68] ss:$16 sps:$4 sm:$0xff]   ;;  %v13473_v56 = vld [vmem:[%s16321_s4 + $0x84] ss:$16 sps:$4 sm:$0xff]  }
 0x878   :  { %11156 = vpow2.f32 %v9984_v47  ;;  %v13478_v37 = vld [vmem:[%s16321_s4 + $0x8c] ss:$16 sps:$4 sm:$0xff]   ;;  %v13483_v34 = vld [vmem:[%s16321_s4 + $0x80] ss:$16 sps:$4 sm:$0xff]   ;;  %v13502_v7 = vld [vmem:[%s16321_s4 + $0xa4] ss:$16 sps:$4 sm:$0xff]  }
 0x879   :  { %11158 = vtanh.f32 %v3572_v10  ;;  %v13488_v10 = vld [vmem:[%s16321_s4 + $0x88] ss:$16 sps:$4 sm:$0xff]   ;;  %v13497_v12 = vld [vmem:[%s16321_s4 + $0xa0] ss:$16 sps:$4 sm:$0xff]   ;;  %v13512_v15 = vld [vmem:[%s16321_s4 + $0xac] ss:$16 sps:$4 sm:$0xff]  }
 0x87a   :  { %11160 = vpow2.f32 %v9985_v16  ;;  %v13507_v13 = vld [vmem:[%s16321_s4 + $0xa8] ss:$16 sps:$4 sm:$0xff]   ;;  %v13517_v14 = vld [vmem:[%s16321_s4 + $0xc4] ss:$16 sps:$4 sm:$0xff]   ;;  %v13523_v47 = vld [vmem:[%s16321_s4 + $0xcc] ss:$16 sps:$4 sm:$0xff]  }
 0x87b   :  { %v13531_v16 = vld [vmem:[%s16321_s4 + $0xc0] ss:$16 sps:$4 sm:$0xff]  }
 0x881   :  { %v11155_v18 = vpop.eup %11154 }
 0x882   :  { %v3582_v17 = vadd.f32 1.0, %v11155_v18  ;;  %v11157_v19 = vpop.eup %11156  ;;  %v13536_v18 = vld [vmem:[%s16321_s4 + $0xc8] ss:$16 sps:$4 sm:$0xff]  }
 0x883   :  { %v3583_v23 = vadd.f32 1.0, %v11157_v19  ;;  %v11159_v57 = vpop.eup %11158  ;;  %v13548_v19 = vld [vmem:[%s16321_s4 + $0xec] ss:$16 sps:$4 sm:$0xff]  }
 0x884   :  { %11162 = vrcp.f32 %v3582_v17  ;;  %v11161_v22 = vpop.eup %11160  ;;  %v13543_v17 = vld [vmem:[%s16321_s4 + $0xe4] ss:$16 sps:$4 sm:$0xff]  }
 0x885   :  { %11164 = vrcp.f32 %v3583_v23  ;;  %v3584_v55 = vadd.f32 1.0, %v11161_v22  ;;  %v13555_v23 = vld [vmem:[%s16321_s4 + $0xe0] ss:$16 sps:$4 sm:$0xff]  }
 0x887   :  { %11166 = vrcp.f32 %v3584_v55  ;;  %v16655_v55 = vld [vmem:[#allocation47_spill] sm:$0xff] }
 0x88e   :  { %v11163_v26 = vpop.eup %11162 }
 0x88f   :  { %v3593_v53 = vmul.f32 %v11163_v26, %v11159_v57  ;;  %v11165_v54 = vpop.eup %11164  ;;  %v13560_v57 = vld [vmem:[%s16321_s4 + $0xe8] ss:$16 sps:$4 sm:$0xff]  }
 0x890   :  { %v3592_v49 = vmul.f32 %v11165_v54, %v13309_v2  ;;  %v13401_v2 = vld [vmem:[%s16321_s4 + $0x24] ss:$16 sps:$4 sm:$0xff]  }
 0x891   :  { %v11167_v6 = vpop.eup %11166 }
 0x892   :  { %v13365_v8 = vadd.f32 %v3593_v53, %v3592_v49  ;;  %v16654_v53 = vld [vmem:[#allocation20_spill] sm:$0xff]  ;;  %v16656_v49 = vld [vmem:[#allocation53_spill] sm:$0xff] }
 0x894   :  { %11168 = vtanh.f32 %v13365_v8 }
 0x89e   :  { %v11169_v61 = vpop.eup %11168 }
 0x89f   :  { %v13368_v40 = vmul.f32 %v11169_v61, %v11167_v6  ;;  %v16657_v6 = vsel %vm12692_vm6, %v16655_v55, %v16656_v49 }
 0x8a1   :  { %16653 = vst [vmem:[#allocation23_spill] sm:$0xff] %v13368_v40  ;;  %v3602_v60 = vpack.c.bf16 %v13368_v40, %v13368_v40  ;;  %v16661_v40 = vld [vmem:[#allocation48_spill] sm:$0xff] }
 0x8a2   :  { %v16663_v46 = vsel %vm12696_vm7, %v16661_v40, %v16662_v59 }
 0x8a3   :  { %3828 = vmatmul.mubr.bf16.vlgmr.msra.gmra.mrb[100].mxu0 %v3602_v60  ;;  %3869 = vmatmul.mubr.bf16.vlgmr.msra.gmra.mrb[44].mxu1 %v3602_v60 }
 0x8a4   :  { %4135 = vmatprep.mubr.bf16.mxu0 %v16618_v43  ;;  %4176 = vmatprep.mubr.bf16.mxu1 %v16618_v43 }
 0x8a5   :  { %4104 = vmatpush1.bf16.msra.mxu0 %v13387_v9  ;;  %4145 = vmatpush1.bf16.msra.mxu1 %v13392_v31 }
 0x8a6   :  { %4105 = vmatprep.subr.bf16.mxu0 %v13401_v2  ;;  %4146 = vmatprep.subr.bf16.mxu1 %v13406_v11 }
 0x8a9   :  { %4106 = vmatpush1.bf16.msra.mxu0 %v13411_v20  ;;  %4147 = vmatpush1.bf16.msra.mxu1 %v13416_v63 }
 0x8aa   :  { %4107 = vmatprep.subr.bf16.mxu0 %v13425_v29  ;;  %4148 = vmatprep.subr.bf16.mxu1 %v13430_v32 }
 0x8ad   :  { %4108 = vmatpush1.bf16.msra.mxu0 %v13435_v41  ;;  %4149 = vmatpush1.bf16.msra.mxu1 %v13440_v24 }
 0x8ae   :  { %4109 = vmatprep.subr.bf16.mxu0 %v13449_v33  ;;  %4150 = vmatprep.subr.bf16.mxu1 %v13454_v0 }
 0x8b1   :  { %4110 = vmatpush1.bf16.msra.mxu0 %v13459_v30  ;;  %4151 = vmatpush1.bf16.msra.mxu1 %v13464_v21 }
 0x8b2   :  { %4111 = vmatprep.subr.bf16.mxu0 %v13473_v56  ;;  %4152 = vmatprep.subr.bf16.mxu1 %v13478_v37 }
 0x8b5   :  { %4112 = vmatpush1.bf16.msra.mxu0 %v13483_v34  ;;  %4153 = vmatpush1.bf16.msra.mxu1 %v13488_v10 }
 0x8b6   :  { %4113 = vmatprep.subr.bf16.mxu0 %v13502_v7  ;;  %4154 = vmatprep.subr.bf16.mxu1 %v13512_v15 }
 0x8b9   :  { %4114 = vmatpush1.bf16.msra.mxu0 %v13497_v12  ;;  %4155 = vmatpush1.bf16.msra.mxu1 %v13507_v13 }
 0x8ba   :  { %4115 = vmatprep.subr.bf16.mxu0 %v13517_v14  ;;  %4156 = vmatprep.subr.bf16.mxu1 %v13523_v47 }
 0x8bd   :  { %4116 = vmatpush1.bf16.msra.mxu0 %v13531_v16  ;;  %4157 = vmatpush1.bf16.msra.mxu1 %v13536_v18 }
 0x8be   :  { %4117 = vmatprep.subr.bf16.mxu0 %v13543_v17  ;;  %4158 = vmatprep.subr.bf16.mxu1 %v13548_v19 }
 0x8c1   :  { %4118 = vmatpush1.bf16.msra.mxu0 %v13555_v23  ;;  %4159 = vmatpush1.bf16.msra.mxu1 %v13560_v57 }
 0x8c2   :  { %4411 = vmatprep.subr.bf16.mxu0 %v13377_v38  ;;  %4452 = vmatprep.subr.bf16.mxu1 %v13382_v50 }
 0x976   :  { %v3829_v22 = vpop.f32.mrb[100].mxu0  ;;  %v3870_v26 = vpop.f32.mrb[44].mxu1 }
 0x977   :  { %v3877_v54 = vadd.f32 %v3829_v22, %v16654_v53  ;;  %v3879_v61 = vadd.f32 %v3870_v26, %v16657_v6  ;;  %v3831_v60 = vpop.f32.mrb[101].mxu0  ;;  %v3872_v36 = vpop.f32.mrb[45].mxu1 }
 0x978   :  { %v3878_v42 = vadd.f32 %v3831_v60, %v16660_v25  ;;  %v3880_v22 = vadd.f32 %v3872_v36, %v16663_v46  ;;  %v3833_v53 = vpop.f32.mrb[102].mxu0  ;;  %v3874_v52 = vpop.f32.mrb[46].mxu1 }
 0x979   :  { %v10018_v39 = vmul.f32 -1.442695, %v3877_v54  ;;  %v3834_v58 = vpop.f32.mrb[103].mxu0  ;;  %v3875_v48 = vpop.f32.mrb[47].mxu1  ;;  %v10020_v6 = vmul.f32 -1.442695, %v3879_v61 }
 0x97a   :  { %v10019_v26 = vmul.f32 -1.442695, %v3878_v42  ;;  %v16667_v53 = vld [vmem:[#allocation51_spill] sm:$0xff] }
 0x97b   :  { %11170 = vpow2.f32 %v10018_v39 }
 0x97c   :  { %11172 = vpow2.f32 %v10019_v26 }
 0x97d   :  { %11174 = vtanh.f32 %v3880_v22  ;;  %v16666_v22 = vld [vmem:[#allocation49_spill] sm:$0xff] }
 0x97e   :  { %11176 = vpow2.f32 %v10020_v6  ;;  %v16668_v26 = vsel %vm12692_vm6, %v16666_v22, %v16667_v53 }
 0x985   :  { %v11171_v35 = vpop.eup %11170 }
 0x986   :  { %v3890_v44 = vadd.f32 1.0, %v11171_v35  ;;  %v11173_v1 = vpop.eup %11172 }
 0x987   :  { %v3891_v25 = vadd.f32 1.0, %v11173_v1  ;;  %v11175_v60 = vpop.eup %11174 }
 0x988   :  { %11178 = vrcp.f32 %v3890_v44  ;;  %v11177_v62 = vpop.eup %11176 }
 0x989   :  { %11180 = vrcp.f32 %v3891_v25  ;;  %v3892_v54 = vadd.f32 1.0, %v11177_v62 }
 0x98b   :  { %11182 = vrcp.f32 %v3892_v54 }
 0x992   :  { %v11179_v36 = vpop.eup %11178 }
 0x993   :  { %v3901_v46 = vmul.f32 %v11179_v36, %v11175_v60  ;;  %v11181_v52 = vpop.eup %11180  ;;  %v16669_v36 = vld [vmem:[#allocation15_spill] sm:$0xff] }
 0x994   :  { %v3900_v58 = vmul.f32 %v11181_v52, %v13365_v8  ;;  %v16665_v8 = vld [vmem:[#allocation17_spill] sm:$0xff] }
 0x995   :  { %v11183_v39 = vpop.eup %11182 }
 0x996   :  { %v13585_v48 = vadd.f32 %v3901_v46, %v3900_v58  ;;  %v16670_v46 = vld [vmem:[#allocation16_spill] sm:$0xff]  ;;  %v16672_v58 = vld [vmem:[#allocation50_spill] sm:$0xff] }
 0x997   :  { %v16671_v52 = vsel %vm12455_vm5, %v16669_v36, %v16670_v46 }
 0x998   :  { %11184 = vtanh.f32 %v13585_v48 }
 0x9a2   :  { %v11185_v42 = vpop.eup %11184 }
 0x9a3   :  { %v13588_v35 = vmul.f32 %v11185_v42, %v11183_v39  ;;  %v16673_v39 = vld [vmem:[#allocation52_spill] sm:$0xff] }
 0x9a4   :  { %v16674_v42 = vsel %vm12696_vm7, %v16672_v58, %v16673_v39 }
 0x9a5   :  { %16664 = vst [vmem:[#allocation20_spill] sm:$0xff] %v13588_v35  ;;  %v3910_v1 = vpack.c.bf16 %v13588_v35, %v13588_v35 }
 0x9a7   :  { %4136 = vmatmul.mubr.bf16.vlgmr.msra.gmra.mrb[104].mxu0 %v3910_v1  ;;  %4177 = vmatmul.mubr.bf16.vlgmr.msra.gmra.mrb[48].mxu1 %v3910_v1 }
 0x9a8   :  { %4412 = vmatpush1.bf16.msra.mxu0 %v13387_v9  ;;  %4453 = vmatpush1.bf16.msra.mxu1 %v13392_v31 }
 0x9a9   :  { %4413 = vmatprep.subr.bf16.mxu0 %v13401_v2  ;;  %4454 = vmatprep.subr.bf16.mxu1 %v13406_v11 }
 0x9aa   :  { %4443 = vmatprep.mubr.bf16.mxu0 %v16618_v43  ;;  %4484 = vmatprep.mubr.bf16.mxu1 %v16618_v43 }
 0x9ac   :  { %4414 = vmatpush1.bf16.msra.mxu0 %v13411_v20  ;;  %4455 = vmatpush1.bf16.msra.mxu1 %v13416_v63 }
 0x9ad   :  { %4415 = vmatprep.subr.bf16.mxu0 %v13425_v29  ;;  %4456 = vmatprep.subr.bf16.mxu1 %v13430_v32 }
 0x9b0   :  { %4416 = vmatpush1.bf16.msra.mxu0 %v13435_v41  ;;  %4457 = vmatpush1.bf16.msra.mxu1 %v13440_v24 }
 0x9b1   :  { %4417 = vmatprep.subr.bf16.mxu0 %v13449_v33  ;;  %4458 = vmatprep.subr.bf16.mxu1 %v13454_v0 }
 0x9b4   :  { %4418 = vmatpush1.bf16.msra.mxu0 %v13459_v30  ;;  %4459 = vmatpush1.bf16.msra.mxu1 %v13464_v21 }
 0x9b5   :  { %4419 = vmatprep.subr.bf16.mxu0 %v13473_v56  ;;  %4460 = vmatprep.subr.bf16.mxu1 %v13478_v37 }
 0x9b8   :  { %4420 = vmatpush1.bf16.msra.mxu0 %v13483_v34  ;;  %4461 = vmatpush1.bf16.msra.mxu1 %v13488_v10 }
 0x9b9   :  { %4421 = vmatprep.subr.bf16.mxu0 %v13502_v7  ;;  %4462 = vmatprep.subr.bf16.mxu1 %v13512_v15 }
 0x9bc   :  { %4422 = vmatpush1.bf16.msra.mxu0 %v13497_v12  ;;  %4463 = vmatpush1.bf16.msra.mxu1 %v13507_v13 }
 0x9bd   :  { %4423 = vmatprep.subr.bf16.mxu0 %v13517_v14  ;;  %4464 = vmatprep.subr.bf16.mxu1 %v13523_v47 }
 0x9c0   :  { %4424 = vmatpush1.bf16.msra.mxu0 %v13531_v16  ;;  %4465 = vmatpush1.bf16.msra.mxu1 %v13536_v18 }
 0x9c1   :  { %4425 = vmatprep.subr.bf16.mxu0 %v13543_v17  ;;  %4466 = vmatprep.subr.bf16.mxu1 %v13548_v19 }
 0x9c4   :  { %4426 = vmatpush1.bf16.msra.mxu0 %v13555_v23  ;;  %4467 = vmatpush1.bf16.msra.mxu1 %v13560_v57 }
 0x9c5   :  { %4719 = vmatprep.subr.bf16.mxu0 %v13377_v38  ;;  %4760 = vmatprep.subr.bf16.mxu1 %v13382_v50 }
 0xa7a   :  { %v4137_v62 = vpop.f32.mrb[104].mxu0  ;;  %v4178_v44 = vpop.f32.mrb[48].mxu1 }
 0xa7b   :  { %v4185_v61 = vadd.f32 %v4137_v62, %v16665_v8  ;;  %v4187_v6 = vadd.f32 %v4178_v44, %v16668_v26  ;;  %v4139_v25 = vpop.f32.mrb[105].mxu0  ;;  %v4180_v60 = vpop.f32.mrb[49].mxu1 }
 0xa7c   :  { %v4186_v54 = vadd.f32 %v4139_v25, %v16671_v52  ;;  %v4188_v1 = vadd.f32 %v4180_v60, %v16674_v42  ;;  %v4141_v62 = vpop.f32.mrb[106].mxu0  ;;  %v4182_v8 = vpop.f32.mrb[50].mxu1 }
 0xa7d   :  { %v10053_v51 = vmul.f32 -1.442695, %v4185_v61  ;;  %v4142_v27 = vpop.f32.mrb[107].mxu0  ;;  %v4183_v35 = vpop.f32.mrb[51].mxu1  ;;  %v10055_v26 = vmul.f32 -1.442695, %v4187_v6 }
 0xa7e   :  { %v10054_v44 = vmul.f32 -1.442695, %v4186_v54 }
 0xa7f   :  { %11186 = vpow2.f32 %v10053_v51 }
 0xa80   :  { %11188 = vpow2.f32 %v10054_v44 }
 0xa81   :  { %11190 = vtanh.f32 %v4188_v1  ;;  %v16676_v1 = vsel %vm12692_vm6, %v16667_v53, %v16666_v22 }
 0xa82   :  { %11192 = vpow2.f32 %v10055_v26 }
 0xa89   :  { %v11187_v40 = vpop.eup %11186 }
 0xa8a   :  { %v4198_v59 = vadd.f32 1.0, %v11187_v40  ;;  %v11189_v3 = vpop.eup %11188 }
 0xa8b   :  { %v4199_v25 = vadd.f32 1.0, %v11189_v3  ;;  %v11191_v52 = vpop.eup %11190 }
 0xa8c   :  { %11194 = vrcp.f32 %v4198_v59  ;;  %v11193_v5 = vpop.eup %11192 }
 0xa8d   :  { %11196 = vrcp.f32 %v4199_v25  ;;  %v4200_v61 = vadd.f32 1.0, %v11193_v5  ;;  %v16677_v25 = vsel %vm12455_vm5, %v16670_v46, %v16669_v36 }
 0xa8f   :  { %11198 = vrcp.f32 %v4200_v61 }
 0xa96   :  { %v11195_v60 = vpop.eup %11194 }
 0xa97   :  { %v4209_v42 = vmul.f32 %v11195_v60, %v11191_v52  ;;  %v11197_v62 = vpop.eup %11196 }
 0xa98   :  { %v4208_v27 = vmul.f32 %v11197_v62, %v13585_v48  ;;  %v16675_v48 = vld [vmem:[#allocation18_spill] sm:$0xff] }
 0xa99   :  { %v11199_v51 = vpop.eup %11198 }
 0xa9a   :  { %v13643_v35 = vadd.f32 %v4209_v42, %v4208_v27 }
 0xa9c   :  { %11200 = vtanh.f32 %v13643_v35 }
 0xaa6   :  { %v11201_v40 = vpop.eup %11200 }
 0xaa7   :  { %v13646_v6 = vmul.f32 %v11201_v40, %v11199_v51 }
 0xaa9   :  { %v4218_v3 = vpack.c.bf16 %v13646_v6, %v13646_v6 }
 0xaab   :  { %4444 = vmatmul.mubr.bf16.vlgmr.msra.gmra.mrb[108].mxu0 %v4218_v3  ;;  %4485 = vmatmul.mubr.bf16.vlgmr.msra.gmra.mrb[52].mxu1 %v4218_v3 }
 0xaac   :  { %4720 = vmatpush1.bf16.msra.mxu0 %v13387_v9  ;;  %4761 = vmatpush1.bf16.msra.mxu1 %v13392_v31 }
 0xaad   :  { %4721 = vmatprep.subr.bf16.mxu0 %v13401_v2  ;;  %4762 = vmatprep.subr.bf16.mxu1 %v13406_v11 }
 0xaae   :  { %4751 = vmatprep.mubr.bf16.mxu0 %v16618_v43  ;;  %4792 = vmatprep.mubr.bf16.mxu1 %v16618_v43 }
 0xab0   :  { %4722 = vmatpush1.bf16.msra.mxu0 %v13411_v20  ;;  %4763 = vmatpush1.bf16.msra.mxu1 %v13416_v63 }
 0xab1   :  { %4723 = vmatprep.subr.bf16.mxu0 %v13425_v29  ;;  %4764 = vmatprep.subr.bf16.mxu1 %v13430_v32 }
 0xab4   :  { %4724 = vmatpush1.bf16.msra.mxu0 %v13435_v41  ;;  %4765 = vmatpush1.bf16.msra.mxu1 %v13440_v24 }
 0xab5   :  { %4725 = vmatprep.subr.bf16.mxu0 %v13449_v33  ;;  %4766 = vmatprep.subr.bf16.mxu1 %v13454_v0 }
 0xab8   :  { %4726 = vmatpush1.bf16.msra.mxu0 %v13459_v30  ;;  %4767 = vmatpush1.bf16.msra.mxu1 %v13464_v21 }
 0xab9   :  { %4727 = vmatprep.subr.bf16.mxu0 %v13473_v56  ;;  %4768 = vmatprep.subr.bf16.mxu1 %v13478_v37 }
 0xabc   :  { %4728 = vmatpush1.bf16.msra.mxu0 %v13483_v34  ;;  %4769 = vmatpush1.bf16.msra.mxu1 %v13488_v10 }
 0xabd   :  { %4729 = vmatprep.subr.bf16.mxu0 %v13502_v7  ;;  %4770 = vmatprep.subr.bf16.mxu1 %v13512_v15 }
 0xac0   :  { %4730 = vmatpush1.bf16.msra.mxu0 %v13497_v12  ;;  %4771 = vmatpush1.bf16.msra.mxu1 %v13507_v13 }
 0xac1   :  { %4731 = vmatprep.subr.bf16.mxu0 %v13517_v14  ;;  %4772 = vmatprep.subr.bf16.mxu1 %v13523_v47 }
 0xac4   :  { %4732 = vmatpush1.bf16.msra.mxu0 %v13531_v16  ;;  %4773 = vmatpush1.bf16.msra.mxu1 %v13536_v18 }
 0xac5   :  { %4733 = vmatprep.subr.bf16.mxu0 %v13543_v17  ;;  %4774 = vmatprep.subr.bf16.mxu1 %v13548_v19 }
 0xac8   :  { %4734 = vmatpush1.bf16.msra.mxu0 %v13555_v23  ;;  %4775 = vmatpush1.bf16.msra.mxu1 %v13560_v57 }
 0xac9   :  { %5027 = vmatprep.subr.bf16.mxu0 %v13377_v38  ;;  %5068 = vmatprep.subr.bf16.mxu1 %v13382_v50  ;;  %v16678_v50 = vsel %vm12696_vm7, %v16673_v39, %v16672_v58 }
 0xb7e   :  { %v4445_v5 = vpop.f32.mrb[108].mxu0  ;;  %v4486_v59 = vpop.f32.mrb[52].mxu1 }
 0xb7f   :  { %v4493_v54 = vadd.f32 %v4445_v5, %v16675_v48  ;;  %v4495_v8 = vadd.f32 %v4486_v59, %v16676_v1  ;;  %v4447_v44 = vpop.f32.mrb[109].mxu0  ;;  %v4488_v26 = vpop.f32.mrb[53].mxu1 }
 0xb80   :  { %v4494_v38 = vadd.f32 %v4447_v44, %v16677_v25  ;;  %v4496_v52 = vadd.f32 %v4488_v26, %v16678_v50  ;;  %v4449_v60 = vpop.f32.mrb[110].mxu0  ;;  %v4490_v42 = vpop.f32.mrb[54].mxu1 }
 0xb81   :  { %v10088_v62 = vmul.f32 -1.442695, %v4493_v54  ;;  %v4450_v61 = vpop.f32.mrb[111].mxu0  ;;  %v4491_v22 = vpop.f32.mrb[55].mxu1  ;;  %v10090_v27 = vmul.f32 -1.442695, %v4495_v8 }
 0xb82   :  { %v10089_v53 = vmul.f32 -1.442695, %v4494_v38 }
 0xb83   :  { %11202 = vpow2.f32 %v10088_v62 }
 0xb84   :  { %11204 = vpow2.f32 %v10089_v53  ;;  %v16688_v53 = vld [vmem:[#allocation20_spill] sm:$0xff] }
 0xb85   :  { %11206 = vtanh.f32 %v4496_v52 }
 0xb86   :  { %11208 = vpow2.f32 %v10090_v27 }
 0xb8d   :  { %v11203_v51 = vpop.eup %11202 }
 0xb8e   :  { %v4506_v40 = vadd.f32 1.0, %v11203_v51  ;;  %v11205_v36 = vpop.eup %11204 }
 0xb8f   :  { %v4507_v46 = vadd.f32 1.0, %v11205_v36  ;;  %v11207_v3 = vpop.eup %11206 }
 0xb90   :  { %11210 = vrcp.f32 %v4506_v40  ;;  %v11209_v58 = vpop.eup %11208 }
 0xb91   :  { %11212 = vrcp.f32 %v4507_v46  ;;  %v4508_v48 = vadd.f32 1.0, %v11209_v58  ;;  %v13793_v58 = vld [vmem:[%s16321_s4] ss:$16 sps:$4 sm:$0xff]  }
 0xb93   :  { %11214 = vrcp.f32 %v4508_v48  ;;  %v13817_v48 = vld [vmem:[%s16321_s4 + $0x20] ss:$16 sps:$4 sm:$0xff]  }
 0xb9a   :  { %v11211_v39 = vpop.eup %11210 }
 0xb9b   :  { %v4517_v5 = vmul.f32 %v11211_v39, %v11207_v3  ;;  %v11213_v59 = vpop.eup %11212  ;;  %v13783_v3 = vld [vmem:[%s16321_s4 + $0x4] ss:$16 sps:$4 sm:$0xff]   ;;  %v13798_v39 = vld [vmem:[%s16321_s4 + $0x8] ss:$16 sps:$4 sm:$0xff]  }
 0xb9c   :  { %v4516_v54 = vmul.f32 %v11213_v59, %v13643_v35  ;;  %v13812_v59 = vld [vmem:[%s16321_s4 + $0x2c] ss:$16 sps:$4 sm:$0xff]  }
 0xb9d   :  { %v11215_v8 = vpop.eup %11214 }
 0xb9e   :  { %v13701_v1 = vadd.f32 %v4517_v5, %v4516_v54  ;;  %v13807_v5 = vld [vmem:[%s16321_s4 + $0x24] ss:$16 sps:$4 sm:$0xff]   ;;  %v13822_v54 = vld [vmem:[%s16321_s4 + $0x28] ss:$16 sps:$4 sm:$0xff]  }
 0xba0   :  { %11216 = vtanh.f32 %v13701_v1 }
 0xbaa   :  { %v11217_v44 = vpop.eup %11216 }
 0xbab   :  { %v13704_v26 = vmul.f32 %v11217_v44, %v11215_v8  ;;  %v13836_v8 = vld [vmem:[%s16321_s4 + $0x4c] ss:$16 sps:$4 sm:$0xff]   ;;  %v13841_v44 = vld [vmem:[%s16321_s4 + $0x40] ss:$16 sps:$4 sm:$0xff]  }
 0xbad   :  { %v4526_v25 = vpack.c.bf16 %v13704_v26, %v13704_v26  ;;  %v6708_v61 = vsel %vm86_vm4, %v13646_v6, %v13704_v26  ;;  %v6712_v51 = vsel %vm86_vm4, %v13704_v26, %v13646_v6  ;;  %v13788_v6 = vld [vmem:[%s16321_s4 + $0xc] ss:$16 sps:$4 sm:$0xff]   ;;  %v13846_v26 = vld [vmem:[%s16321_s4 + $0x48] ss:$16 sps:$4 sm:$0xff]  }
 0xbaf   :  { %4752 = vmatmul.mubr.bf16.vlgmr.msra.gmra.mrb[112].mxu0 %v4526_v25  ;;  %4793 = vmatmul.mubr.bf16.vlgmr.msra.gmra.mrb[56].mxu1 %v4526_v25  ;;  %v13855_v25 = vld [vmem:[%s16321_s4 + $0x64] ss:$16 sps:$4 sm:$0xff]  }
 0xbb0   :  { %5028 = vmatpush1.bf16.msra.mxu0 %v13387_v9  ;;  %5069 = vmatpush1.bf16.msra.mxu1 %v13392_v31 }
 0xbb1   :  { %5029 = vmatprep.subr.bf16.mxu0 %v13401_v2  ;;  %5070 = vmatprep.subr.bf16.mxu1 %v13406_v11  ;;  %v16679_v2 = vld [vmem:[#allocation21_spill] sm:$0xff] }
 0xbb2   :  { %5059 = vmatprep.mubr.bf16.mxu0 %v16618_v43  ;;  %5100 = vmatprep.mubr.bf16.mxu1 %v16618_v43 }
 0xbb4   :  { %5030 = vmatpush1.bf16.msra.mxu0 %v13411_v20  ;;  %5071 = vmatpush1.bf16.msra.mxu1 %v13416_v63  ;;  %v16680_v20 = vsel %vm12692_vm6, %v16656_v49, %v16655_v55 }
 0xbb5   :  { %5031 = vmatprep.subr.bf16.mxu0 %v13425_v29  ;;  %5072 = vmatprep.subr.bf16.mxu1 %v13430_v32 }
 0xbb8   :  { %5032 = vmatpush1.bf16.msra.mxu0 %v13435_v41  ;;  %5073 = vmatpush1.bf16.msra.mxu1 %v13440_v24  ;;  %v16681_v41 = vld [vmem:[#allocation19_spill] sm:$0xff]  ;;  %v16682_v24 = vld [vmem:[#allocation14_spill] sm:$0xff] }
 0xbb9   :  { %5033 = vmatprep.subr.bf16.mxu0 %v13449_v33  ;;  %5074 = vmatprep.subr.bf16.mxu1 %v13454_v0  ;;  %v16683_v33 = vsel %vm12455_vm5, %v16681_v41, %v16682_v24  ;;  %v13908_v41 = vld [vmem:[%s16321_s4 + $0xa4] ss:$16 sps:$4 sm:$0xff]   ;;  %v13913_v24 = vld [vmem:[%s16321_s4 + $0xa8] ss:$16 sps:$4 sm:$0xff]  }
 0xbbc   :  { %5034 = vmatpush1.bf16.msra.mxu0 %v13459_v30  ;;  %5075 = vmatpush1.bf16.msra.mxu1 %v13464_v21  ;;  %v16684_v30 = vld [vmem:[#allocation54_spill] sm:$0xff]  ;;  %v16685_v21 = vld [vmem:[#allocation48_spill] sm:$0xff] }
 0xbbd   :  { %5035 = vmatprep.subr.bf16.mxu0 %v13473_v56  ;;  %5076 = vmatprep.subr.bf16.mxu1 %v13478_v37  ;;  %v16686_v56 = vsel %vm12696_vm7, %v16684_v30, %v16685_v21  ;;  %v13929_v30 = vld [vmem:[%s16321_s4 + $0xcc] ss:$16 sps:$4 sm:$0xff]   ;;  %v13937_v21 = vld [vmem:[%s16321_s4 + $0xc0] ss:$16 sps:$4 sm:$0xff]  }
 0xbc0   :  { %5036 = vmatpush1.bf16.msra.mxu0 %v13483_v34  ;;  %5077 = vmatpush1.bf16.msra.mxu1 %v13488_v10 }
 0xbc1   :  { %5037 = vmatprep.subr.bf16.mxu0 %v13502_v7  ;;  %5078 = vmatprep.subr.bf16.mxu1 %v13512_v15 }
 0xbc4   :  { %5038 = vmatpush1.bf16.msra.mxu0 %v13497_v12  ;;  %5079 = vmatpush1.bf16.msra.mxu1 %v13507_v13 }
 0xbc5   :  { %5039 = vmatprep.subr.bf16.mxu0 %v13517_v14  ;;  %5080 = vmatprep.subr.bf16.mxu1 %v13523_v47 }
 0xbc8   :  { %5040 = vmatpush1.bf16.msra.mxu0 %v13531_v16  ;;  %5081 = vmatpush1.bf16.msra.mxu1 %v13536_v18 }
 0xbc9   :  { %5041 = vmatprep.subr.bf16.mxu0 %v13543_v17  ;;  %5082 = vmatprep.subr.bf16.mxu1 %v13548_v19 }
 0xbcc   :  { %5042 = vmatpush1.bf16.msra.mxu0 %v13555_v23  ;;  %5083 = vmatpush1.bf16.msra.mxu1 %v13560_v57 }
 0xbcd   :  { %5335 = vmatprep.subr.bf16.mxu0 %v13783_v3  ;;  %5376 = vmatprep.subr.bf16.mxu1 %v13788_v6 }
 0xc82   :  { %v4753_v9 = vpop.f32.mrb[112].mxu0  ;;  %v4794_v31 = vpop.f32.mrb[56].mxu1 }
 0xc83   :  { %v4801_v11 = vadd.f32 %v4753_v9, %v16679_v2  ;;  %v4803_v63 = vadd.f32 %v4794_v31, %v16680_v20  ;;  %v4755_v29 = vpop.f32.mrb[113].mxu0  ;;  %v4796_v32 = vpop.f32.mrb[57].mxu1  ;;  %v13860_v9 = vld [vmem:[%s16321_s4 + $0x6c] ss:$16 sps:$4 sm:$0xff]   ;;  %v13865_v31 = vld [vmem:[%s16321_s4 + $0x60] ss:$16 sps:$4 sm:$0xff]  }
 0xc84   :  { %v4802_v0 = vadd.f32 %v4755_v29, %v16683_v33  ;;  %v4804_v37 = vadd.f32 %v4796_v32, %v16686_v56  ;;  %v4757_v34 = vpop.f32.mrb[114].mxu0  ;;  %v4798_v10 = vpop.f32.mrb[58].mxu1  ;;  %v13870_v2 = vld [vmem:[%s16321_s4 + $0x68] ss:$16 sps:$4 sm:$0xff]   ;;  %v13884_v20 = vld [vmem:[%s16321_s4 + $0x8c] ss:$16 sps:$4 sm:$0xff]  }
 0xc85   :  { %v10123_v12 = vmul.f32 -1.442695, %v4801_v11  ;;  %v4758_v7 = vpop.f32.mrb[115].mxu0  ;;  %v4799_v13 = vpop.f32.mrb[59].mxu1  ;;  %v10125_v14 = vmul.f32 -1.442695, %v4803_v63 }
 0xc86   :  { %v10124_v15 = vmul.f32 -1.442695, %v4802_v0  ;;  %v13879_v11 = vld [vmem:[%s16321_s4 + $0x84] ss:$16 sps:$4 sm:$0xff]   ;;  %v13889_v63 = vld [vmem:[%s16321_s4 + $0x80] ss:$16 sps:$4 sm:$0xff]  }
 0xc87   :  { %11218 = vpow2.f32 %v10123_v12  ;;  %v13894_v29 = vld [vmem:[%s16321_s4 + $0x88] ss:$16 sps:$4 sm:$0xff]   ;;  %v13903_v32 = vld [vmem:[%s16321_s4 + $0xa0] ss:$16 sps:$4 sm:$0xff]   ;;  %v13918_v33 = vld [vmem:[%s16321_s4 + $0xac] ss:$16 sps:$4 sm:$0xff]  }
 0xc88   :  { %11220 = vpow2.f32 %v10124_v15  ;;  %v13923_v0 = vld [vmem:[%s16321_s4 + $0xc4] ss:$16 sps:$4 sm:$0xff]   ;;  %v13942_v56 = vld [vmem:[%s16321_s4 + $0xc8] ss:$16 sps:$4 sm:$0xff]   ;;  %v13954_v34 = vld [vmem:[%s16321_s4 + $0xec] ss:$16 sps:$4 sm:$0xff]  }
 0xc89   :  { %11222 = vtanh.f32 %v4804_v37  ;;  %v13949_v37 = vld [vmem:[%s16321_s4 + $0xe4] ss:$16 sps:$4 sm:$0xff]   ;;  %v13961_v10 = vld [vmem:[%s16321_s4 + $0xe0] ss:$16 sps:$4 sm:$0xff]   ;;  %v13966_v12 = vld [vmem:[%s16321_s4 + $0xe8] ss:$16 sps:$4 sm:$0xff]  }
 0xc8a   :  { %11224 = vpow2.f32 %v10125_v14  ;;  %v16689_v15 = vld [vmem:[#allocation24_spill] sm:$0xff] }
 0xc91   :  { %v11219_v47 = vpop.eup %11218 }
 0xc92   :  { %v4814_v16 = vadd.f32 1.0, %v11219_v47  ;;  %v11221_v18 = vpop.eup %11220  ;;  %v16690_v47 = vld [vmem:[#allocation55_spill] sm:$0xff] }
 0xc93   :  { %v4815_v17 = vadd.f32 1.0, %v11221_v18  ;;  %v11223_v19 = vpop.eup %11222 }
 0xc94   :  { %11226 = vrcp.f32 %v4814_v16  ;;  %v11225_v23 = vpop.eup %11224  ;;  %v16691_v16 = vld [vmem:[#allocation45_spill] sm:$0xff] }
 0xc95   :  { %11228 = vrcp.f32 %v4815_v17  ;;  %v4816_v35 = vadd.f32 1.0, %v11225_v23  ;;  %v16692_v18 = vsel %vm12692_vm6, %v16690_v47, %v16691_v16 }
 0xc97   :  { %11230 = vrcp.f32 %v4816_v35 }
 0xc9e   :  { %v11227_v57 = vpop.eup %11226 }
 0xc9f   :  { %v4825_v55 = vmul.f32 %v11227_v57, %v11223_v19  ;;  %v11229_v49 = vpop.eup %11228  ;;  %v16693_v57 = vld [vmem:[#allocation22_spill] sm:$0xff] }
 0xca0   :  { %v4824_v38 = vmul.f32 %v11229_v49, %v13701_v1  ;;  %v13831_v1 = vld [vmem:[%s16321_s4 + $0x44] ss:$16 sps:$4 sm:$0xff]  }
 0xca1   :  { %v11231_v52 = vpop.eup %11230 }
 0xca2   :  { %v13757_v50 = vadd.f32 %v4825_v55, %v4824_v38  ;;  %v16694_v55 = vld [vmem:[#allocation12_spill] sm:$0xff] }
 0xca3   :  { %v16695_v49 = vsel %vm12455_vm5, %v16693_v57, %v16694_v55  ;;  %v16696_v38 = vld [vmem:[#allocation56_spill] sm:$0xff] }
 0xca4   :  { %11232 = vtanh.f32 %v13757_v50 }
 0xcae   :  { %v11233_v60 = vpop.eup %11232 }
 0xcaf   :  { %v4828_v42 = vmul.f32 %v11233_v60, %v11231_v52  ;;  %v16697_v52 = vld [vmem:[#allocation46_spill] sm:$0xff] }
 0xcb0   :  { %v16698_v60 = vsel %vm12696_vm7, %v16696_v38, %v16697_v52 }
 0xcb1   :  { %v4834_v22 = vpack.c.bf16 %v4828_v42, %v4828_v42  ;;  %v6704_v27 = vsel %vm86_vm4, %v16688_v53, %v4828_v42  ;;  %v6716_v40 = vsel %vm86_vm4, %v4828_v42, %v16688_v53 }
 0xcb2   :  { %v13774_v36 = vpack.c.bf16 %v6708_v61, %v6704_v27  ;;  %v13776_v46 = vpack.c.bf16 %v6716_v40, %v6712_v51 }
 0xcb3   :  { %5060 = vmatmul.mubr.bf16.vlgmr.msra.gmra.mrb[116].mxu0 %v4834_v22  ;;  %5101 = vmatmul.mubr.bf16.vlgmr.msra.gmra.mrb[60].mxu1 %v4834_v22 }
 0xcb4   :  { %5367 = vmatprep.mubr.bf16.mxu0 %v16618_v43  ;;  %5408 = vmatprep.mubr.bf16.mxu1 %v16618_v43 }
 0xcb5   :  { %5336 = vmatpush1.bf16.msra.mxu0 %v13793_v58  ;;  %5377 = vmatpush1.bf16.msra.mxu1 %v13798_v39 }
 0xcb6   :  { %5337 = vmatprep.subr.bf16.mxu0 %v13807_v5  ;;  %5378 = vmatprep.subr.bf16.mxu1 %v13812_v59 }
 0xcb9   :  { %5338 = vmatpush1.bf16.msra.mxu0 %v13817_v48  ;;  %5379 = vmatpush1.bf16.msra.mxu1 %v13822_v54 }
 0xcba   :  { %5339 = vmatprep.subr.bf16.mxu0 %v13831_v1  ;;  %5380 = vmatprep.subr.bf16.mxu1 %v13836_v8 }
 0xcbd   :  { %5340 = vmatpush1.bf16.msra.mxu0 %v13841_v44  ;;  %5381 = vmatpush1.bf16.msra.mxu1 %v13846_v26 }
 0xcbe   :  { %5341 = vmatprep.subr.bf16.mxu0 %v13855_v25  ;;  %5382 = vmatprep.subr.bf16.mxu1 %v13860_v9 }
 0xcc1   :  { %5342 = vmatpush1.bf16.msra.mxu0 %v13865_v31  ;;  %5383 = vmatpush1.bf16.msra.mxu1 %v13870_v2 }
 0xcc2   :  { %5343 = vmatprep.subr.bf16.mxu0 %v13879_v11  ;;  %5384 = vmatprep.subr.bf16.mxu1 %v13884_v20 }
 0xcc5   :  { %5344 = vmatpush1.bf16.msra.mxu0 %v13889_v63  ;;  %5385 = vmatpush1.bf16.msra.mxu1 %v13894_v29 }
 0xcc6   :  { %5345 = vmatprep.subr.bf16.mxu0 %v13908_v41  ;;  %5386 = vmatprep.subr.bf16.mxu1 %v13918_v33 }
 0xcc9   :  { %5346 = vmatpush1.bf16.msra.mxu0 %v13903_v32  ;;  %5387 = vmatpush1.bf16.msra.mxu1 %v13913_v24 }
 0xcca   :  { %5347 = vmatprep.subr.bf16.mxu0 %v13923_v0  ;;  %5388 = vmatprep.subr.bf16.mxu1 %v13929_v30 }
 0xccd   :  { %5348 = vmatpush1.bf16.msra.mxu0 %v13937_v21  ;;  %5389 = vmatpush1.bf16.msra.mxu1 %v13942_v56 }
 0xcce   :  { %5349 = vmatprep.subr.bf16.mxu0 %v13949_v37  ;;  %5390 = vmatprep.subr.bf16.mxu1 %v13954_v34 }
 0xcd1   :  { %5350 = vmatpush1.bf16.msra.mxu0 %v13961_v10  ;;  %5391 = vmatpush1.bf16.msra.mxu1 %v13966_v12 }
 0xcd2   :  { %5643 = vmatprep.subr.bf16.mxu0 %v13783_v3  ;;  %5684 = vmatprep.subr.bf16.mxu1 %v13788_v6 }
 0xd86   :  { %v5061_v7 = vpop.f32.mrb[116].mxu0  ;;  %v5102_v13 = vpop.f32.mrb[60].mxu1 }
 0xd87   :  { %v5109_v14 = vadd.f32 %v5061_v7, %v16689_v15  ;;  %v5111_v17 = vadd.f32 %v5102_v13, %v16692_v18  ;;  %v5063_v19 = vpop.f32.mrb[117].mxu0  ;;  %v5104_v23 = vpop.f32.mrb[61].mxu1 }
 0xd88   :  { %v5110_v35 = vadd.f32 %v5063_v19, %v16695_v49  ;;  %v5112_v42 = vadd.f32 %v5104_v23, %v16698_v60  ;;  %v5065_v61 = vpop.f32.mrb[118].mxu0  ;;  %v5106_v22 = vpop.f32.mrb[62].mxu1 }
 0xd89   :  { %v10158_v53 = vmul.f32 -1.442695, %v5109_v14  ;;  %v5066_v27 = vpop.f32.mrb[119].mxu0  ;;  %v5107_v51 = vpop.f32.mrb[63].mxu1  ;;  %v10160_v7 = vmul.f32 -1.442695, %v5111_v17 }
 0xd8a   :  { %v10159_v40 = vmul.f32 -1.442695, %v5110_v35  ;;  %v16699_v61 = vld [vmem:[#allocation27_spill] sm:$0xff] }
 0xd8b   :  { %11234 = vpow2.f32 %v10158_v53  ;;  %v16700_v53 = vld [vmem:[#allocation57_spill] sm:$0xff]  ;;  %v16701_v27 = vld [vmem:[#allocation43_spill] sm:$0xff] }
 0xd8c   :  { %11236 = vpow2.f32 %v10159_v40  ;;  %v16702_v51 = vsel %vm12692_vm6, %v16700_v53, %v16701_v27 }
 0xd8d   :  { %11238 = vtanh.f32 %v5112_v42 }
 0xd8e   :  { %11240 = vpow2.f32 %v10160_v7 }
 0xd95   :  { %v11235_v13 = vpop.eup %11234 }
 0xd96   :  { %v5122_v15 = vadd.f32 1.0, %v11235_v13  ;;  %v11237_v47 = vpop.eup %11236 }
 0xd97   :  { %v5123_v16 = vadd.f32 1.0, %v11237_v47  ;;  %v11239_v18 = vpop.eup %11238  ;;  %v16704_v47 = vld [vmem:[#allocation11_spill] sm:$0xff] }
 0xd98   :  { %11242 = vrcp.f32 %v5122_v15  ;;  %v11241_v19 = vpop.eup %11240  ;;  %v16703_v15 = vld [vmem:[#allocation25_spill] sm:$0xff] }
 0xd99   :  { %11244 = vrcp.f32 %v5123_v16  ;;  %v5124_v14 = vadd.f32 1.0, %v11241_v19  ;;  %v16705_v16 = vsel %vm12455_vm5, %v16703_v15, %v16704_v47  ;;  %v16706_v19 = vld [vmem:[#allocation58_spill] sm:$0xff] }
 0xd9b   :  { %11246 = vrcp.f32 %v5124_v14 }
 0xda2   :  { %v11243_v23 = vpop.eup %11242 }
 0xda3   :  { %v5133_v57 = vmul.f32 %v11243_v23, %v11239_v18  ;;  %v11245_v55 = vpop.eup %11244  ;;  %v16707_v23 = vld [vmem:[#allocation44_spill] sm:$0xff] }
 0xda4   :  { %v5132_v49 = vmul.f32 %v11245_v55, %v13757_v50 }
 0xda5   :  { %v11247_v17 = vpop.eup %11246 }
 0xda6   :  { %v13991_v35 = vadd.f32 %v5133_v57, %v5132_v49  ;;  %v16708_v57 = vsel %vm12696_vm7, %v16706_v19, %v16707_v23 }
 0xda8   :  { %11248 = vtanh.f32 %v13991_v35 }
 0xdb2   :  { %v11249_v38 = vpop.eup %11248 }
 0xdb3   :  { %v13994_v52 = vmul.f32 %v11249_v38, %v11247_v17 }
 0xdb5   :  { %v5142_v60 = vpack.c.bf16 %v13994_v52, %v13994_v52 }
 0xdb7   :  { %5368 = vmatmul.mubr.bf16.vlgmr.msra.gmra.mrb[120].mxu0 %v5142_v60  ;;  %5409 = vmatmul.mubr.bf16.vlgmr.msra.gmra.mrb[64].mxu1 %v5142_v60 }
 0xdb8   :  { %5644 = vmatpush1.bf16.msra.mxu0 %v13793_v58  ;;  %5685 = vmatpush1.bf16.msra.mxu1 %v13798_v39 }
 0xdb9   :  { %5645 = vmatprep.subr.bf16.mxu0 %v13807_v5  ;;  %5686 = vmatprep.subr.bf16.mxu1 %v13812_v59 }
 0xdba   :  { %5675 = vmatprep.mubr.bf16.mxu0 %v16618_v43  ;;  %5716 = vmatprep.mubr.bf16.mxu1 %v16618_v43 }
 0xdbc   :  { %5646 = vmatpush1.bf16.msra.mxu0 %v13817_v48  ;;  %5687 = vmatpush1.bf16.msra.mxu1 %v13822_v54 }
 0xdbd   :  { %5647 = vmatprep.subr.bf16.mxu0 %v13831_v1  ;;  %5688 = vmatprep.subr.bf16.mxu1 %v13836_v8 }
 0xdc0   :  { %5648 = vmatpush1.bf16.msra.mxu0 %v13841_v44  ;;  %5689 = vmatpush1.bf16.msra.mxu1 %v13846_v26 }
 0xdc1   :  { %5649 = vmatprep.subr.bf16.mxu0 %v13855_v25  ;;  %5690 = vmatprep.subr.bf16.mxu1 %v13860_v9 }
 0xdc4   :  { %5650 = vmatpush1.bf16.msra.mxu0 %v13865_v31  ;;  %5691 = vmatpush1.bf16.msra.mxu1 %v13870_v2 }
 0xdc5   :  { %5651 = vmatprep.subr.bf16.mxu0 %v13879_v11  ;;  %5692 = vmatprep.subr.bf16.mxu1 %v13884_v20 }
 0xdc8   :  { %5652 = vmatpush1.bf16.msra.mxu0 %v13889_v63  ;;  %5693 = vmatpush1.bf16.msra.mxu1 %v13894_v29 }
 0xdc9   :  { %5653 = vmatprep.subr.bf16.mxu0 %v13908_v41  ;;  %5694 = vmatprep.subr.bf16.mxu1 %v13918_v33 }
 0xdcc   :  { %5654 = vmatpush1.bf16.msra.mxu0 %v13903_v32  ;;  %5695 = vmatpush1.bf16.msra.mxu1 %v13913_v24 }
 0xdcd   :  { %5655 = vmatprep.subr.bf16.mxu0 %v13923_v0  ;;  %5696 = vmatprep.subr.bf16.mxu1 %v13929_v30 }
 0xdd0   :  { %5656 = vmatpush1.bf16.msra.mxu0 %v13937_v21  ;;  %5697 = vmatpush1.bf16.msra.mxu1 %v13942_v56 }
 0xdd1   :  { %5657 = vmatprep.subr.bf16.mxu0 %v13949_v37  ;;  %5698 = vmatprep.subr.bf16.mxu1 %v13954_v34 }
 0xdd4   :  { %5658 = vmatpush1.bf16.msra.mxu0 %v13961_v10  ;;  %5699 = vmatpush1.bf16.msra.mxu1 %v13966_v12 }
 0xdd5   :  { %5951 = vmatprep.subr.bf16.mxu0 %v13783_v3  ;;  %5992 = vmatprep.subr.bf16.mxu1 %v13788_v6 }
 0xe8a   :  { %v5369_v50 = vpop.f32.mrb[120].mxu0  ;;  %v5410_v42 = vpop.f32.mrb[64].mxu1 }
 0xe8b   :  { %v5417_v22 = vadd.f32 %v5369_v50, %v16699_v61  ;;  %v5419_v40 = vadd.f32 %v5410_v42, %v16702_v51  ;;  %v5371_v7 = vpop.f32.mrb[121].mxu0  ;;  %v5412_v13 = vpop.f32.mrb[65].mxu1 }
 0xe8c   :  { %v5418_v18 = vadd.f32 %v5371_v7, %v16705_v16  ;;  %v5420_v55 = vadd.f32 %v5412_v13, %v16708_v57  ;;  %v5373_v14 = vpop.f32.mrb[122].mxu0  ;;  %v5414_v49 = vpop.f32.mrb[66].mxu1 }
 0xe8d   :  { %v10193_v17 = vmul.f32 -1.442695, %v5417_v22  ;;  %v5374_v38 = vpop.f32.mrb[123].mxu0  ;;  %v5415_v60 = vpop.f32.mrb[67].mxu1  ;;  %v10195_v42 = vmul.f32 -1.442695, %v5419_v40 }
 0xe8e   :  { %v10194_v50 = vmul.f32 -1.442695, %v5418_v18 }
 0xe8f   :  { %11250 = vpow2.f32 %v10193_v17  ;;  %v16710_v17 = vld [vmem:[#allocation26_spill] sm:$0xff] }
 0xe90   :  { %11252 = vpow2.f32 %v10194_v50 }
 0xe91   :  { %11254 = vtanh.f32 %v5420_v55  ;;  %v16709_v55 = vld [vmem:[#allocation23_spill] sm:$0xff] }
 0xe92   :  { %11256 = vpow2.f32 %v10195_v42  ;;  %v6700_v14 = vsel %vm86_vm4, %v16709_v55, %v13994_v52 }
 0xe99   :  { %v11251_v61 = vpop.eup %11250 }
 0xe9a   :  { %v5430_v53 = vadd.f32 1.0, %v11251_v61  ;;  %v11253_v27 = vpop.eup %11252 }
 0xe9b   :  { %v5431_v51 = vadd.f32 1.0, %v11253_v27  ;;  %v11255_v7 = vpop.eup %11254 }
 0xe9c   :  { %11258 = vrcp.f32 %v5430_v53  ;;  %v11257_v15 = vpop.eup %11256  ;;  %v16711_v53 = vld [vmem:[#allocation29_spill] sm:$0xff] }
 0xe9d   :  { %11260 = vrcp.f32 %v5431_v51  ;;  %v5432_v22 = vadd.f32 1.0, %v11257_v15  ;;  %v16712_v51 = vld [vmem:[#allocation59_spill] sm:$0xff] }
 0xe9f   :  { %11262 = vrcp.f32 %v5432_v22  ;;  %v16715_v22 = vld [vmem:[#allocation28_spill] sm:$0xff] }
 0xea6   :  { %v11259_v13 = vpop.eup %11258 }
 0xea7   :  { %v5441_v47 = vmul.f32 %v11259_v13, %v11255_v7  ;;  %v11261_v16 = vpop.eup %11260  ;;  %v16713_v7 = vld [vmem:[#allocation41_spill] sm:$0xff] }
 0xea8   :  { %v5440_v19 = vmul.f32 %v11261_v16, %v13991_v35  ;;  %v6720_v35 = vsel %vm86_vm4, %v13994_v52, %v16709_v55  ;;  %v16714_v15 = vsel %vm12692_vm6, %v16712_v51, %v16713_v7 }
 0xea9   :  { %v11263_v40 = vpop.eup %11262 }
 0xeaa   :  { %v14049_v18 = vadd.f32 %v5441_v47, %v5440_v19  ;;  %v16716_v19 = vld [vmem:[#allocation10_spill] sm:$0xff] }
 0xeac   :  { %11264 = vtanh.f32 %v14049_v18 }
 0xeb6   :  { %v11265_v23 = vpop.eup %11264 }
 0xeb7   :  { %v5444_v57 = vmul.f32 %v11265_v23, %v11263_v40  ;;  %v16717_v40 = vsel %vm12455_vm5, %v16715_v22, %v16716_v19  ;;  %v16719_v23 = vld [vmem:[#allocation42_spill] sm:$0xff] }
 0xeb9   :  { %v5450_v49 = vpack.c.bf16 %v5444_v57, %v5444_v57  ;;  %v6696_v38 = vsel %vm86_vm4, %v16710_v17, %v5444_v57  ;;  %v6724_v60 = vsel %vm86_vm4, %v5444_v57, %v16710_v17 }
 0xeba   :  { %v14066_v50 = vpack.c.bf16 %v6700_v14, %v6696_v38  ;;  %v14068_v42 = vpack.c.bf16 %v6724_v60, %v6720_v35 }
 0xebb   :  { %5676 = vmatmul.mubr.bf16.vlgmr.msra.gmra.mrb[124].mxu0 %v5450_v49  ;;  %5717 = vmatmul.mubr.bf16.vlgmr.msra.gmra.mrb[68].mxu1 %v5450_v49 }
 0xebc   :  { %5952 = vmatpush1.bf16.msra.mxu0 %v13793_v58  ;;  %5993 = vmatpush1.bf16.msra.mxu1 %v13798_v39 }
 0xebd   :  { %5953 = vmatprep.subr.bf16.mxu0 %v13807_v5  ;;  %5994 = vmatprep.subr.bf16.mxu1 %v13812_v59 }
 0xebe   :  { %5983 = vmatprep.mubr.bf16.mxu0 %v16618_v43  ;;  %6024 = vmatprep.mubr.bf16.mxu1 %v16618_v43 }
 0xec0   :  { %5954 = vmatpush1.bf16.msra.mxu0 %v13817_v48  ;;  %5995 = vmatpush1.bf16.msra.mxu1 %v13822_v54 }
 0xec1   :  { %5955 = vmatprep.subr.bf16.mxu0 %v13831_v1  ;;  %5996 = vmatprep.subr.bf16.mxu1 %v13836_v8 }
 0xec4   :  { %5956 = vmatpush1.bf16.msra.mxu0 %v13841_v44  ;;  %5997 = vmatpush1.bf16.msra.mxu1 %v13846_v26 }
 0xec5   :  { %5957 = vmatprep.subr.bf16.mxu0 %v13855_v25  ;;  %5998 = vmatprep.subr.bf16.mxu1 %v13860_v9 }
 0xec8   :  { %5958 = vmatpush1.bf16.msra.mxu0 %v13865_v31  ;;  %5999 = vmatpush1.bf16.msra.mxu1 %v13870_v2 }
 0xec9   :  { %5959 = vmatprep.subr.bf16.mxu0 %v13879_v11  ;;  %6000 = vmatprep.subr.bf16.mxu1 %v13884_v20 }
 0xecc   :  { %5960 = vmatpush1.bf16.msra.mxu0 %v13889_v63  ;;  %6001 = vmatpush1.bf16.msra.mxu1 %v13894_v29 }
 0xecd   :  { %5961 = vmatprep.subr.bf16.mxu0 %v13908_v41  ;;  %6002 = vmatprep.subr.bf16.mxu1 %v13918_v33 }
 0xed0   :  { %5962 = vmatpush1.bf16.msra.mxu0 %v13903_v32  ;;  %6003 = vmatpush1.bf16.msra.mxu1 %v13913_v24 }
 0xed1   :  { %5963 = vmatprep.subr.bf16.mxu0 %v13923_v0  ;;  %6004 = vmatprep.subr.bf16.mxu1 %v13929_v30 }
 0xed4   :  { %5964 = vmatpush1.bf16.msra.mxu0 %v13937_v21  ;;  %6005 = vmatpush1.bf16.msra.mxu1 %v13942_v56 }
 0xed5   :  { %5965 = vmatprep.subr.bf16.mxu0 %v13949_v37  ;;  %6006 = vmatprep.subr.bf16.mxu1 %v13954_v34 }
 0xed8   :  { %5966 = vmatpush1.bf16.msra.mxu0 %v13961_v10  ;;  %6007 = vmatpush1.bf16.msra.mxu1 %v13966_v12 }
 0xed9   :  { %6259 = vmatprep.subr.bf16.mxu0 %v13783_v3  ;;  %6300 = vmatprep.subr.bf16.mxu1 %v13788_v6  ;;  %v16718_v6 = vld [vmem:[#allocation60_spill] sm:$0xff] }
 0xeda   :  { %v16720_v57 = vsel %vm12696_vm7, %v16718_v6, %v16719_v23 }
 0xf8e   :  { %v5677_v52 = vpop.f32.mrb[124].mxu0  ;;  %v5718_v61 = vpop.f32.mrb[68].mxu1 }
 0xf8f   :  { %v5725_v27 = vadd.f32 %v5677_v52, %v16711_v53  ;;  %v5727_v13 = vadd.f32 %v5718_v61, %v16714_v15  ;;  %v5679_v47 = vpop.f32.mrb[125].mxu0  ;;  %v5720_v16 = vpop.f32.mrb[69].mxu1 }
 0xf90   :  { %v5726_v3 = vadd.f32 %v5679_v47, %v16717_v40  ;;  %v5728_v55 = vadd.f32 %v5720_v16, %v16720_v57  ;;  %v5681_v14 = vpop.f32.mrb[126].mxu0  ;;  %v5722_v49 = vpop.f32.mrb[70].mxu1 }
 0xf91   :  { %v10228_v17 = vmul.f32 -1.442695, %v5725_v27  ;;  %v5682_v38 = vpop.f32.mrb[127].mxu0  ;;  %v5723_v35 = vpop.f32.mrb[71].mxu1  ;;  %v10230_v52 = vmul.f32 -1.442695, %v5727_v13 }
 0xf92   :  { %v10229_v60 = vmul.f32 -1.442695, %v5726_v3 }
 0xf93   :  { %11266 = vpow2.f32 %v10228_v17 }
 0xf94   :  { %11268 = vpow2.f32 %v10229_v60 }
 0xf95   :  { %11270 = vtanh.f32 %v5728_v55 }
 0xf96   :  { %11272 = vpow2.f32 %v10230_v52 }
 0xf9d   :  { %v11267_v61 = vpop.eup %11266 }
 0xf9e   :  { %v5738_v53 = vadd.f32 1.0, %v11267_v61  ;;  %v11269_v51 = vpop.eup %11268 }
 0xf9f   :  { %v5739_v7 = vadd.f32 1.0, %v11269_v51  ;;  %v11271_v15 = vpop.eup %11270 }
 0xfa0   :  { %11274 = vrcp.f32 %v5738_v53  ;;  %v11273_v47 = vpop.eup %11272  ;;  %v16731_v53 = vld [vmem:[#allocation72_spill] sm:$0xff] }
 0xfa1   :  { %11276 = vrcp.f32 %v5739_v7  ;;  %v5740_v27 = vadd.f32 1.0, %v11273_v47 }
 0xfa3   :  { %11278 = vrcp.f32 %v5740_v27 }
 0xfaa   :  { %v11275_v16 = vpop.eup %11274 }
 0xfab   :  { %v5749_v22 = vmul.f32 %v11275_v16, %v11271_v15  ;;  %v11277_v19 = vpop.eup %11276  ;;  %v16732_v15 = vld [vmem:[#allocation71_spill] sm:$0xff] }
 0xfac   :  { %v5748_v40 = vmul.f32 %v11277_v19, %v14049_v18 }
 0xfad   :  { %v11279_v13 = vpop.eup %11278 }
 0xfae   :  { %v14121_v3 = vadd.f32 %v5749_v22, %v5748_v40  ;;  %v10924_v40 = vld [vmem:[%s16321_s4 + $0x4] ss:$16 sps:$4 sm:$0xff]  }
 0xfb0   :  { %11280 = vtanh.f32 %v14121_v3 }
 0xfba   :  { %v11281_v6 = vpop.eup %11280 }
 0xfbb   :  { %v14124_v23 = vmul.f32 %v11281_v6, %v11279_v13  ;;  %v10922_v13 = vld [vmem:[%s16321_s4] ss:$16 sps:$4 sm:$0xff]   ;;  %v10925_v6 = vld [vmem:[%s16321_s4 + $0x8] ss:$16 sps:$4 sm:$0xff]  }
 0xfbd   :  { %v5758_v57 = vpack.c.bf16 %v14124_v23, %v14124_v23  ;;  %v6692_v51 = vsel %vm86_vm4, %v16731_v53, %v14124_v23  ;;  %v6728_v16 = vsel %vm86_vm4, %v14124_v23, %v16731_v53  ;;  %v10930_v23 = vld [vmem:[%s16321_s4 + $0x24] ss:$16 sps:$4 sm:$0xff]  }
 0xfbf   :  { %5984 = vmatmul.mubr.bf16.vlgmr.msra.gmra.mrb[128].mxu0 %v5758_v57  ;;  %6025 = vmatmul.mubr.bf16.vlgmr.msra.gmra.mrb[72].mxu1 %v5758_v57  ;;  %v10933_v57 = vld [vmem:[%s16321_s4 + $0x2c] ss:$16 sps:$4 sm:$0xff]  }
 0xfc0   :  { %6260 = vmatpush1.bf16.msra.mxu0 %v13793_v58  ;;  %6301 = vmatpush1.bf16.msra.mxu1 %v13798_v39 }
 0xfc1   :  { %6261 = vmatprep.subr.bf16.mxu0 %v13807_v5  ;;  %6302 = vmatprep.subr.bf16.mxu1 %v13812_v59  ;;  %v16721_v5 = vld [vmem:[#allocation31_spill] sm:$0xff] }
 0xfc2   :  { %6291 = vmatprep.mubr.bf16.mxu0 %v16618_v43  ;;  %6332 = vmatprep.mubr.bf16.mxu1 %v16618_v43 }
 0xfc4   :  { %6262 = vmatpush1.bf16.msra.mxu0 %v13817_v48  ;;  %6303 = vmatpush1.bf16.msra.mxu1 %v13822_v54  ;;  %v16722_v48 = vld [vmem:[#allocation61_spill] sm:$0xff]  ;;  %v16723_v54 = vld [vmem:[#allocation39_spill] sm:$0xff] }
 0xfc5   :  { %6263 = vmatprep.subr.bf16.mxu0 %v13831_v1  ;;  %6304 = vmatprep.subr.bf16.mxu1 %v13836_v8  ;;  %v16724_v1 = vsel %vm12692_vm6, %v16722_v48, %v16723_v54  ;;  %v10934_v48 = vld [vmem:[%s16321_s4 + $0x40] ss:$16 sps:$4 sm:$0xff]   ;;  %v10937_v54 = vld [vmem:[%s16321_s4 + $0x48] ss:$16 sps:$4 sm:$0xff]  }
 0xfc8   :  { %6264 = vmatpush1.bf16.msra.mxu0 %v13841_v44  ;;  %6305 = vmatpush1.bf16.msra.mxu1 %v13846_v26 }
 0xfc9   :  { %6265 = vmatprep.subr.bf16.mxu0 %v13855_v25  ;;  %6306 = vmatprep.subr.bf16.mxu1 %v13860_v9  ;;  %v16725_v25 = vld [vmem:[#allocation30_spill] sm:$0xff]  ;;  %v16726_v9 = vld [vmem:[#allocation9_spill] sm:$0xff] }
 0xfcc   :  { %6266 = vmatpush1.bf16.msra.mxu0 %v13865_v31  ;;  %6307 = vmatpush1.bf16.msra.mxu1 %v13870_v2  ;;  %v16727_v31 = vsel %vm12455_vm5, %v16725_v25, %v16726_v9  ;;  %v10948_v25 = vld [vmem:[%s16321_s4 + $0x84] ss:$16 sps:$4 sm:$0xff]   ;;  %v10951_v9 = vld [vmem:[%s16321_s4 + $0x8c] ss:$16 sps:$4 sm:$0xff]  }
 0xfcd   :  { %6267 = vmatprep.subr.bf16.mxu0 %v13879_v11  ;;  %6308 = vmatprep.subr.bf16.mxu1 %v13884_v20  ;;  %v16728_v11 = vld [vmem:[#allocation62_spill] sm:$0xff]  ;;  %v16729_v20 = vld [vmem:[#allocation40_spill] sm:$0xff] }
 0xfd0   :  { %6268 = vmatpush1.bf16.msra.mxu0 %v13889_v63  ;;  %6309 = vmatpush1.bf16.msra.mxu1 %v13894_v29  ;;  %v16730_v63 = vsel %vm12696_vm7, %v16728_v11, %v16729_v20  ;;  %v10952_v11 = vld [vmem:[%s16321_s4 + $0xa0] ss:$16 sps:$4 sm:$0xff]   ;;  %v10954_v20 = vld [vmem:[%s16321_s4 + $0xa4] ss:$16 sps:$4 sm:$0xff]  }
 0xfd1   :  { %6269 = vmatprep.subr.bf16.mxu0 %v13908_v41  ;;  %6310 = vmatprep.subr.bf16.mxu1 %v13918_v33 }
 0xfd4   :  { %6270 = vmatpush1.bf16.msra.mxu0 %v13903_v32  ;;  %6311 = vmatpush1.bf16.msra.mxu1 %v13913_v24 }
 0xfd5   :  { %6271 = vmatprep.subr.bf16.mxu0 %v13923_v0  ;;  %6312 = vmatprep.subr.bf16.mxu1 %v13929_v30 }
 0xfd8   :  { %6272 = vmatpush1.bf16.msra.mxu0 %v13937_v21  ;;  %6313 = vmatpush1.bf16.msra.mxu1 %v13942_v56 }
 0xfd9   :  { %6273 = vmatprep.subr.bf16.mxu0 %v13949_v37  ;;  %6314 = vmatprep.subr.bf16.mxu1 %v13954_v34 }
 0xfdc   :  { %6274 = vmatpush1.bf16.msra.mxu0 %v13961_v10  ;;  %6315 = vmatpush1.bf16.msra.mxu1 %v13966_v12 }
 0xfdd   :  { %6567 = vmatprep.subr.bf16.mxu0 %v10924_v40 }
0x1092   :  { %v5985_v58 = vpop.f32.mrb[128].mxu0  ;;  %v6026_v39 = vpop.f32.mrb[72].mxu1 }
0x1093   :  { %v6033_v59 = vadd.f32 %v5985_v58, %v16721_v5  ;;  %v6035_v8 = vadd.f32 %v6026_v39, %v16724_v1  ;;  %v5987_v44 = vpop.f32.mrb[129].mxu0  ;;  %v6028_v26 = vpop.f32.mrb[73].mxu1  ;;  %v10928_v58 = vld [vmem:[%s16321_s4 + $0x20] ss:$16 sps:$4 sm:$0xff]   ;;  %v10931_v39 = vld [vmem:[%s16321_s4 + $0x28] ss:$16 sps:$4 sm:$0xff]  }
0x1094   :  { %v6034_v2 = vadd.f32 %v5987_v44, %v16727_v31  ;;  %v6036_v29 = vadd.f32 %v6028_v26, %v16730_v63  ;;  %v5989_v32 = vpop.f32.mrb[130].mxu0  ;;  %v6030_v41 = vpop.f32.mrb[74].mxu1  ;;  %v10936_v5 = vld [vmem:[%s16321_s4 + $0x44] ss:$16 sps:$4 sm:$0xff]   ;;  %v10940_v44 = vld [vmem:[%s16321_s4 + $0x60] ss:$16 sps:$4 sm:$0xff]  }
0x1095   :  { %v10263_v24 = vmul.f32 -1.442695, %v6033_v59  ;;  %v5990_v33 = vpop.f32.mrb[131].mxu0  ;;  %v6031_v0 = vpop.f32.mrb[75].mxu1  ;;  %v10265_v21 = vmul.f32 -1.442695, %v6035_v8 }
0x1096   :  { %v10264_v30 = vmul.f32 -1.442695, %v6034_v2  ;;  %v10939_v59 = vld [vmem:[%s16321_s4 + $0x4c] ss:$16 sps:$4 sm:$0xff]   ;;  %v10942_v1 = vld [vmem:[%s16321_s4 + $0x64] ss:$16 sps:$4 sm:$0xff]  }
0x1097   :  { %11282 = vpow2.f32 %v10263_v24  ;;  %v10945_v8 = vld [vmem:[%s16321_s4 + $0x6c] ss:$16 sps:$4 sm:$0xff]   ;;  %v10943_v26 = vld [vmem:[%s16321_s4 + $0x68] ss:$16 sps:$4 sm:$0xff]   ;;  %v10946_v31 = vld [vmem:[%s16321_s4 + $0x80] ss:$16 sps:$4 sm:$0xff]  }
0x1098   :  { %11284 = vpow2.f32 %v10264_v30  ;;  %v10949_v2 = vld [vmem:[%s16321_s4 + $0x88] ss:$16 sps:$4 sm:$0xff]   ;;  %v10960_v32 = vld [vmem:[%s16321_s4 + $0xc4] ss:$16 sps:$4 sm:$0xff]   ;;  %v10963_v41 = vld [vmem:[%s16321_s4 + $0xcc] ss:$16 sps:$4 sm:$0xff]  }
0x1099   :  { %11286 = vtanh.f32 %v6036_v29  ;;  %v10955_v63 = vld [vmem:[%s16321_s4 + $0xa8] ss:$16 sps:$4 sm:$0xff]   ;;  %v10957_v29 = vld [vmem:[%s16321_s4 + $0xac] ss:$16 sps:$4 sm:$0xff]   ;;  %v10958_v24 = vld [vmem:[%s16321_s4 + $0xc0] ss:$16 sps:$4 sm:$0xff]  }
0x109a   :  { %11288 = vpow2.f32 %v10265_v21  ;;  %v10961_v33 = vld [vmem:[%s16321_s4 + $0xc8] ss:$16 sps:$4 sm:$0xff]   ;;  %v10966_v0 = vld [vmem:[%s16321_s4 + $0xe4] ss:$16 sps:$4 sm:$0xff]   ;;  %v10969_v30 = vld [vmem:[%s16321_s4 + $0xec] ss:$16 sps:$4 sm:$0xff]  }
0x109b   :  { %v10964_v21 = vld [vmem:[%s16321_s4 + $0xe0] ss:$16 sps:$4 sm:$0xff]  }
0x10a1   :  { %v11283_v56 = vpop.eup %11282 }
0x10a2   :  { %v6046_v37 = vadd.f32 1.0, %v11283_v56  ;;  %v11285_v34 = vpop.eup %11284  ;;  %v10967_v56 = vld [vmem:[%s16321_s4 + $0xe8] ss:$16 sps:$4 sm:$0xff]  }
0x10a3   :  { %v6047_v10 = vadd.f32 1.0, %v11285_v34  ;;  %v11287_v12 = vpop.eup %11286 }
0x10a4   :  { %11290 = vrcp.f32 %v6046_v37  ;;  %v11289_v18 = vpop.eup %11288 }
0x10a5   :  { %11292 = vrcp.f32 %v6047_v10  ;;  %v6048_v17 = vadd.f32 1.0, %v11289_v18  ;;  %v16733_v10 = vld [vmem:[#allocation33_spill] sm:$0xff]  ;;  %v16734_v18 = vld [vmem:[#allocation63_spill] sm:$0xff] }
0x10a7   :  { %11294 = vrcp.f32 %v6048_v17 }
0x10ae   :  { %v11291_v55 = vpop.eup %11290 }
0x10af   :  { %v6057_v14 = vmul.f32 %v11291_v55, %v11287_v12  ;;  %v11293_v49 = vpop.eup %11292  ;;  %v16735_v55 = vld [vmem:[#allocation37_spill] sm:$0xff] }
0x10b0   :  { %v6056_v38 = vmul.f32 %v11293_v49, %v14121_v3  ;;  %v10927_v3 = vld [vmem:[%s16321_s4 + $0xc] ss:$16 sps:$4 sm:$0xff]  }
0x10b1   :  { %v11295_v60 = vpop.eup %11294  ;;  %6608 = vmatprep.subr.bf16.mxu1 %v10927_v3 }
0x10b2   :  { %v14177_v35 = vadd.f32 %v6057_v14, %v6056_v38  ;;  %v16736_v14 = vsel %vm12692_vm6, %v16734_v18, %v16735_v55  ;;  %v10996_v18 = vld [vmem:[%s16322_s5 + $0x84] ss:$16 sps:$4 sm:$0xff]   ;;  %v10999_v55 = vld [vmem:[%s16322_s5 + $0x8c] ss:$16 sps:$4 sm:$0xff]  }
0x10b4   :  { %11296 = vtanh.f32 %v14177_v35 }
0x10be   :  { %v11297_v52 = vpop.eup %11296 }
0x10bf   :  { %v6060_v61 = vmul.f32 %v11297_v52, %v11295_v60  ;;  %v16737_v60 = vld [vmem:[#allocation32_spill] sm:$0xff] }
0x10c0   :  { %v16738_v52 = vld [vmem:[#allocation8_spill] sm:$0xff] }
0x10c1   :  { %v6066_v7 = vpack.c.bf16 %v6060_v61, %v6060_v61  ;;  %v6688_v47 = vsel %vm86_vm4, %v16732_v15, %v6060_v61  ;;  %v6732_v22 = vsel %vm86_vm4, %v6060_v61, %v16732_v15  ;;  %v16739_v61 = vsel %vm12455_vm5, %v16737_v60, %v16738_v52  ;;  %v11005_v60 = vld [vmem:[%s16322_s5 + $0xac] ss:$16 sps:$4 sm:$0xff]   ;;  %v11008_v52 = vld [vmem:[%s16322_s5 + $0xc4] ss:$16 sps:$4 sm:$0xff]  }
0x10c2   :  { %v14194_v19 = vpack.c.bf16 %v6692_v51, %v6688_v47  ;;  %v14196_v27 = vpack.c.bf16 %v6732_v22, %v6728_v16  ;;  %v16740_v51 = vld [vmem:[#allocation66_spill] sm:$0xff] }
0x10c3   :  { %6292 = vmatmul.mubr.bf16.vlgmr.msra.gmra.mrb[132].mxu0 %v6066_v7  ;;  %6333 = vmatmul.mubr.bf16.vlgmr.msra.gmra.mrb[76].mxu1 %v6066_v7  ;;  %v16741_v7 = vld [vmem:[#allocation38_spill] sm:$0xff] }
0x10c4   :  { %6599 = vmatprep.mubr.bf16.mxu0 %v16618_v43  ;;  %6640 = vmatprep.mubr.bf16.mxu1 %v16618_v43  ;;  %v16742_v15 = vsel %vm12696_vm7, %v16740_v51, %v16741_v7  ;;  %v11011_v51 = vld [vmem:[%s16322_s5 + $0xcc] ss:$16 sps:$4 sm:$0xff]   ;;  %v11014_v7 = vld [vmem:[%s16322_s5 + $0xe4] ss:$16 sps:$4 sm:$0xff]  }
0x10c5   :  { %6568 = vmatpush1.bf16.msra.mxu0 %v10922_v13  ;;  %6609 = vmatpush1.bf16.msra.mxu1 %v10925_v6 }
0x10c6   :  { %6569 = vmatprep.subr.bf16.mxu0 %v10930_v23  ;;  %6610 = vmatprep.subr.bf16.mxu1 %v10933_v57 }
0x10c9   :  { %6570 = vmatpush1.bf16.msra.mxu0 %v10928_v58  ;;  %6611 = vmatpush1.bf16.msra.mxu1 %v10931_v39 }
0x10ca   :  { %6571 = vmatprep.subr.bf16.mxu0 %v10936_v5  ;;  %6612 = vmatprep.subr.bf16.mxu1 %v10939_v59 }
0x10cd   :  { %6572 = vmatpush1.bf16.msra.mxu0 %v10934_v48  ;;  %6613 = vmatpush1.bf16.msra.mxu1 %v10937_v54 }
0x10ce   :  { %6573 = vmatprep.subr.bf16.mxu0 %v10942_v1  ;;  %6614 = vmatprep.subr.bf16.mxu1 %v10945_v8 }
0x10d1   :  { %6574 = vmatpush1.bf16.msra.mxu0 %v10940_v44  ;;  %6615 = vmatpush1.bf16.msra.mxu1 %v10943_v26 }
0x10d2   :  { %6575 = vmatprep.subr.bf16.mxu0 %v10948_v25  ;;  %6616 = vmatprep.subr.bf16.mxu1 %v10951_v9 }
0x10d5   :  { %6576 = vmatpush1.bf16.msra.mxu0 %v10946_v31  ;;  %6617 = vmatpush1.bf16.msra.mxu1 %v10949_v2 }
0x10d6   :  { %6577 = vmatprep.subr.bf16.mxu0 %v10954_v20  ;;  %6618 = vmatprep.subr.bf16.mxu1 %v10957_v29  ;;  %v10970_v20 = vld [vmem:[%s16322_s5] ss:$16 sps:$4 sm:$0xff]   ;;  %v10975_v29 = vld [vmem:[%s16322_s5 + $0xc] ss:$16 sps:$4 sm:$0xff]  }
0x10d9   :  { %6578 = vmatpush1.bf16.msra.mxu0 %v10952_v11  ;;  %6619 = vmatpush1.bf16.msra.mxu1 %v10955_v63  ;;  %v10973_v63 = vld [vmem:[%s16322_s5 + $0x8] ss:$16 sps:$4 sm:$0xff]  }
0x10da   :  { %6579 = vmatprep.subr.bf16.mxu0 %v10960_v32  ;;  %6620 = vmatprep.subr.bf16.mxu1 %v10963_v41  ;;  %v10978_v32 = vld [vmem:[%s16322_s5 + $0x24] ss:$16 sps:$4 sm:$0xff]   ;;  %v10981_v41 = vld [vmem:[%s16322_s5 + $0x2c] ss:$16 sps:$4 sm:$0xff]  }
0x10dd   :  { %6580 = vmatpush1.bf16.msra.mxu0 %v10958_v24  ;;  %6621 = vmatpush1.bf16.msra.mxu1 %v10961_v33  ;;  %v10976_v24 = vld [vmem:[%s16322_s5 + $0x20] ss:$16 sps:$4 sm:$0xff]   ;;  %v10979_v33 = vld [vmem:[%s16322_s5 + $0x28] ss:$16 sps:$4 sm:$0xff]  }
0x10de   :  { %6581 = vmatprep.subr.bf16.mxu0 %v10966_v0  ;;  %6622 = vmatprep.subr.bf16.mxu1 %v10969_v30  ;;  %v10984_v0 = vld [vmem:[%s16322_s5 + $0x44] ss:$16 sps:$4 sm:$0xff]   ;;  %v10987_v30 = vld [vmem:[%s16322_s5 + $0x4c] ss:$16 sps:$4 sm:$0xff]  }
0x10e1   :  { %6582 = vmatpush1.bf16.msra.mxu0 %v10964_v21  ;;  %6623 = vmatpush1.bf16.msra.mxu1 %v10967_v56  ;;  %v10982_v21 = vld [vmem:[%s16322_s5 + $0x40] ss:$16 sps:$4 sm:$0xff]   ;;  %v10985_v56 = vld [vmem:[%s16322_s5 + $0x48] ss:$16 sps:$4 sm:$0xff]  }
0x10e2   :  { %7092 = vmatprep.subr.bf16.mxu1 %v10975_v29 }
0x1196   :  { %v6293_v37 = vpop.f32.mrb[132].mxu0  ;;  %v6334_v34 = vpop.f32.mrb[76].mxu1 }
0x1197   :  { %v6341_v12 = vadd.f32 %v6293_v37, %v16733_v10  ;;  %v6343_v49 = vadd.f32 %v6334_v34, %v16736_v14  ;;  %v6295_v17 = vpop.f32.mrb[133].mxu0  ;;  %v6336_v38 = vpop.f32.mrb[77].mxu1  ;;  %v10990_v37 = vld [vmem:[%s16322_s5 + $0x64] ss:$16 sps:$4 sm:$0xff]   ;;  %v10993_v34 = vld [vmem:[%s16322_s5 + $0x6c] ss:$16 sps:$4 sm:$0xff]  }
0x1198   :  { %v6342_v53 = vadd.f32 %v6295_v17, %v16739_v61  ;;  %v6344_v47 = vadd.f32 %v6336_v38, %v16742_v15  ;;  %v6297_v16 = vpop.f32.mrb[134].mxu0  ;;  %v6338_v22 = vpop.f32.mrb[78].mxu1  ;;  %v10988_v10 = vld [vmem:[%s16322_s5 + $0x60] ss:$16 sps:$4 sm:$0xff]   ;;  %v11002_v17 = vld [vmem:[%s16322_s5 + $0xa4] ss:$16 sps:$4 sm:$0xff]  }
0x1199   :  { %v10298_v40 = vmul.f32 -1.442695, %v6341_v12  ;;  %v6298_v3 = vpop.f32.mrb[135].mxu0  ;;  %v6339_v13 = vpop.f32.mrb[79].mxu1  ;;  %v10300_v23 = vmul.f32 -1.442695, %v6343_v49 }
0x119a   :  { %v10299_v6 = vmul.f32 -1.442695, %v6342_v53  ;;  %v10991_v12 = vld [vmem:[%s16322_s5 + $0x68] ss:$16 sps:$4 sm:$0xff]   ;;  %v10994_v14 = vld [vmem:[%s16322_s5 + $0x80] ss:$16 sps:$4 sm:$0xff]  }
0x119b   :  { %11298 = vpow2.f32 %v10298_v40  ;;  %v10997_v49 = vld [vmem:[%s16322_s5 + $0x88] ss:$16 sps:$4 sm:$0xff]   ;;  %v11000_v38 = vld [vmem:[%s16322_s5 + $0xa0] ss:$16 sps:$4 sm:$0xff]   ;;  %v14418_v22 = vld [vmem:[%s16323_s6 + $0x4] ss:$16 sps:$4 sm:$0xff]  }
0x119c   :  { %11300 = vpow2.f32 %v10299_v6  ;;  %v11003_v61 = vld [vmem:[%s16322_s5 + $0xa8] ss:$16 sps:$4 sm:$0xff]   ;;  %v11006_v53 = vld [vmem:[%s16322_s5 + $0xc0] ss:$16 sps:$4 sm:$0xff]   ;;  %16743 = vst [vmem:[#allocation47_spill] sm:$0xff] %v14418_v22 }
0x119d   :  { %11302 = vtanh.f32 %v6344_v47  ;;  %v11009_v15 = vld [vmem:[%s16322_s5 + $0xc8] ss:$16 sps:$4 sm:$0xff]   ;;  %v11017_v47 = vld [vmem:[%s16322_s5 + $0xec] ss:$16 sps:$4 sm:$0xff]   ;;  %v11012_v16 = vld [vmem:[%s16322_s5 + $0xe0] ss:$16 sps:$4 sm:$0xff]  }
0x119e   :  { %11304 = vpow2.f32 %v10300_v23  ;;  %v11015_v40 = vld [vmem:[%s16322_s5 + $0xe8] ss:$16 sps:$4 sm:$0xff]   ;;  %v14427_v3 = vld [vmem:[%s16323_s6 + $0xc] ss:$16 sps:$4 sm:$0xff]  }
0x119f   :  { %16744 = vst [vmem:[#allocation53_spill] sm:$0xff] %v14427_v3  ;;  %v16745_v23 = vld [vmem:[#allocation36_spill] sm:$0xff] }
0x11a5   :  { %v11299_v57 = vpop.eup %11298 }
0x11a6   :  { %v6354_v58 = vadd.f32 1.0, %v11299_v57  ;;  %v11301_v39 = vpop.eup %11300 }
0x11a7   :  { %v6355_v5 = vadd.f32 1.0, %v11301_v39  ;;  %v11303_v59 = vpop.eup %11302  ;;  %v16747_v39 = vld [vmem:[#allocation64_spill] sm:$0xff] }
0x11a8   :  { %11306 = vrcp.f32 %v6354_v58  ;;  %v11305_v48 = vpop.eup %11304  ;;  %v16746_v58 = vld [vmem:[#allocation67_spill] sm:$0xff] }
0x11a9   :  { %11308 = vrcp.f32 %v6355_v5  ;;  %v6356_v44 = vadd.f32 1.0, %v11305_v48  ;;  %v16748_v5 = vsel %vm12692_vm6, %v16746_v58, %v16747_v39  ;;  %v14509_v58 = vld [vmem:[%s16323_s6 + $0x40] ss:$16 sps:$4 sm:$0xff]   ;;  %v14514_v39 = vld [vmem:[%s16323_s6 + $0x4c] ss:$16 sps:$4 sm:$0xff]  }
0x11ab   :  { %11310 = vrcp.f32 %v6356_v44 }
0x11b2   :  { %v11307_v54 = vpop.eup %11306 }
0x11b3   :  { %v6365_v1 = vmul.f32 %v11307_v54, %v11303_v59  ;;  %v11309_v8 = vpop.eup %11308 }
0x11b4   :  { %v6364_v26 = vmul.f32 %v11309_v8, %v14177_v35  ;;  %v10972_v35 = vld [vmem:[%s16322_s5 + $0x4] ss:$16 sps:$4 sm:$0xff]   ;;  %v16750_v8 = vld [vmem:[#allocation34_spill] sm:$0xff] }
0x11b5   :  { %v11311_v9 = vpop.eup %11310  ;;  %6979 = vmatprep.subr.bf16.mxu0 %v10972_v35 }
0x11b6   :  { %v14313_v25 = vadd.f32 %v6365_v1, %v6364_v26  ;;  %v16749_v1 = vld [vmem:[#allocation35_spill] sm:$0xff] }
0x11b7   :  { %v16751_v44 = vsel %vm12455_vm5, %v16749_v1, %v16750_v8  ;;  %v14553_v1 = vld [vmem:[%s16323_s6 + $0x68] ss:$16 sps:$4 sm:$0xff]   ;;  %v14560_v8 = vld [vmem:[%s16323_s6 + $0x80] ss:$16 sps:$4 sm:$0xff]  }
0x11b8   :  { %11312 = vtanh.f32 %v14313_v25  ;;  %16762 = vst [vmem:[#allocation50_spill] sm:$0xff] %v14553_v1  ;;  %16763 = vst [vmem:[#allocation52_spill] sm:$0xff] %v14560_v8 }
0x11c2   :  { %v11313_v31 = vpop.eup %11312 }
0x11c3   :  { %v14316_v2 = vmul.f32 %v11313_v31, %v11311_v9  ;;  %v16752_v9 = vld [vmem:[#allocation68_spill] sm:$0xff]  ;;  %v16753_v31 = vld [vmem:[#allocation65_spill] sm:$0xff] }
0x11c5   :  { %v6374_v11 = vpack.c.bf16 %v14316_v2, %v14316_v2 }
0x11c7   :  { %6600 = vmatmul.mubr.bf16.vlgmr.msra.gmra.mrb[136].mxu0 %v6374_v11  ;;  %6641 = vmatmul.mubr.bf16.vlgmr.msra.gmra.mrb[80].mxu1 %v6374_v11  ;;  %v16754_v11 = vsel %vm12696_vm7, %v16752_v9, %v16753_v31  ;;  %v14577_v9 = vld [vmem:[%s16323_s6 + $0x88] ss:$16 sps:$4 sm:$0xff]   ;;  %v14584_v31 = vld [vmem:[%s16323_s6 + $0xac] ss:$16 sps:$4 sm:$0xff]  }
0x11c8   :  { %7011 = vmatprep.mubr.bf16.mxu0 %v16618_v43  ;;  %7124 = vmatprep.mubr.bf16.mxu1 %v16618_v43  ;;  %16766 = vst [vmem:[#allocation19_spill] sm:$0xff] %v14577_v9  ;;  %16767 = vst [vmem:[#allocation14_spill] sm:$0xff] %v14584_v31 }
0x11c9   :  { %6980 = vmatpush1.bf16.msra.mxu0 %v10970_v20  ;;  %7093 = vmatpush1.bf16.msra.mxu1 %v10973_v63 }
0x11ca   :  { %6981 = vmatprep.subr.bf16.mxu0 %v10978_v32  ;;  %7094 = vmatprep.subr.bf16.mxu1 %v10981_v41 }
0x11cd   :  { %6982 = vmatpush1.bf16.msra.mxu0 %v10976_v24  ;;  %7095 = vmatpush1.bf16.msra.mxu1 %v10979_v33 }
0x11ce   :  { %6983 = vmatprep.subr.bf16.mxu0 %v10984_v0  ;;  %7096 = vmatprep.subr.bf16.mxu1 %v10987_v30 }
0x11d1   :  { %6984 = vmatpush1.bf16.msra.mxu0 %v10982_v21  ;;  %7097 = vmatpush1.bf16.msra.mxu1 %v10985_v56 }
0x11d2   :  { %6985 = vmatprep.subr.bf16.mxu0 %v10990_v37  ;;  %7098 = vmatprep.subr.bf16.mxu1 %v10993_v34 }
0x11d5   :  { %6986 = vmatpush1.bf16.msra.mxu0 %v10988_v10  ;;  %7099 = vmatpush1.bf16.msra.mxu1 %v10991_v12 }
0x11d6   :  { %6987 = vmatprep.subr.bf16.mxu0 %v10996_v18  ;;  %7100 = vmatprep.subr.bf16.mxu1 %v10999_v55 }
0x11d9   :  { %6988 = vmatpush1.bf16.msra.mxu0 %v10994_v14  ;;  %7101 = vmatpush1.bf16.msra.mxu1 %v10997_v49 }
0x11da   :  { %6989 = vmatprep.subr.bf16.mxu0 %v11002_v17  ;;  %7102 = vmatprep.subr.bf16.mxu1 %v11005_v60 }
0x11dd   :  { %6990 = vmatpush1.bf16.msra.mxu0 %v11000_v38  ;;  %7103 = vmatpush1.bf16.msra.mxu1 %v11003_v61 }
0x11de   :  { %6991 = vmatprep.subr.bf16.mxu0 %v11008_v52  ;;  %7104 = vmatprep.subr.bf16.mxu1 %v11011_v51  ;;  %v16755_v52 = vld [vmem:[#allocation69_spill] sm:$0xff] }
0x11e1   :  { %6992 = vmatpush1.bf16.msra.mxu0 %v11006_v53  ;;  %7105 = vmatpush1.bf16.msra.mxu1 %v11009_v15  ;;  %v16756_v53 = vld [vmem:[#allocation70_spill] sm:$0xff] }
0x11e2   :  { %6993 = vmatprep.subr.bf16.mxu0 %v11014_v7  ;;  %7106 = vmatprep.subr.bf16.mxu1 %v11017_v47  ;;  %v6684_v51 = vsel %vm86_vm4, %v16756_v53, %v14316_v2  ;;  %v14457_v7 = vld [vmem:[%s16323_s6] ss:$16 sps:$4 sm:$0xff]  }
0x11e5   :  { %6994 = vmatpush1.bf16.msra.mxu0 %v11012_v16  ;;  %7107 = vmatpush1.bf16.msra.mxu1 %v11015_v40  ;;  %v14469_v16 = vld [vmem:[%s16323_s6 + $0x24] ss:$16 sps:$4 sm:$0xff]  }
0x11e6   :  { %7721 = vmatprep.subr.bf16.mxu0 %v14418_v22  ;;  %7762 = vmatprep.subr.bf16.mxu1 %v14427_v3 }
0x129a   :  { %v6601_v13 = vpop.f32.mrb[136].mxu0  ;;  %v6642_v6 = vpop.f32.mrb[80].mxu1 }
0x129b   :  { %v6649_v57 = vadd.f32 %v6601_v13, %v16745_v23  ;;  %v6651_v59 = vadd.f32 %v6642_v6, %v16748_v5  ;;  %v6603_v48 = vpop.f32.mrb[137].mxu0  ;;  %v6644_v54 = vpop.f32.mrb[81].mxu1  ;;  %v14476_v13 = vld [vmem:[%s16323_s6 + $0x8] ss:$16 sps:$4 sm:$0xff]   ;;  %v14488_v6 = vld [vmem:[%s16323_s6 + $0x20] ss:$16 sps:$4 sm:$0xff]  }
0x129c   :  { %v6650_v26 = vadd.f32 %v6603_v48, %v16751_v44  ;;  %v6652_v35 = vadd.f32 %v6644_v54, %v16754_v11  ;;  %v6605_v20 = vpop.f32.mrb[138].mxu0  ;;  %v6646_v63 = vpop.f32.mrb[82].mxu1  ;;  %v14495_v23 = vld [vmem:[%s16323_s6 + $0x44] ss:$16 sps:$4 sm:$0xff]   ;;  %v14532_v48 = vld [vmem:[%s16323_s6 + $0x6c] ss:$16 sps:$4 sm:$0xff]  }
0x129d   :  { %v10333_v29 = vmul.f32 -1.442695, %v6649_v57  ;;  %v6606_v32 = vpop.f32.mrb[139].mxu0  ;;  %v6647_v41 = vpop.f32.mrb[83].mxu1  ;;  %v10335_v33 = vmul.f32 -1.442695, %v6651_v59 }
0x129e   :  { %v10334_v24 = vmul.f32 -1.442695, %v6650_v26  ;;  %v14501_v57 = vld [vmem:[%s16323_s6 + $0x28] ss:$16 sps:$4 sm:$0xff]   ;;  %v14519_v5 = vld [vmem:[%s16323_s6 + $0x64] ss:$16 sps:$4 sm:$0xff]  }
0x129f   :  { %11314 = vpow2.f32 %v10333_v29  ;;  %16757 = vst [vmem:[#allocation17_spill] sm:$0xff] %v14519_v5  ;;  %v14525_v59 = vld [vmem:[%s16323_s6 + $0x48] ss:$16 sps:$4 sm:$0xff]   ;;  %16759 = vst [vmem:[#allocation51_spill] sm:$0xff] %v14532_v48  ;;  %v14540_v54 = vld [vmem:[%s16323_s6 + $0x60] ss:$16 sps:$4 sm:$0xff]  }
0x12a0   :  { %11316 = vpow2.f32 %v10334_v24  ;;  %16758 = vst [vmem:[#allocation49_spill] sm:$0xff] %v14525_v59  ;;  %16760 = vst [vmem:[#allocation15_spill] sm:$0xff] %v14540_v54  ;;  %v14565_v44 = vld [vmem:[%s16323_s6 + $0x8c] ss:$16 sps:$4 sm:$0xff]   ;;  %v14571_v26 = vld [vmem:[%s16323_s6 + $0xa4] ss:$16 sps:$4 sm:$0xff]  }
0x12a1   :  { %11318 = vtanh.f32 %v6652_v35  ;;  %16764 = vst [vmem:[#allocation18_spill] sm:$0xff] %v14565_v44  ;;  %16765 = vst [vmem:[#allocation21_spill] sm:$0xff] %v14571_v26  ;;  %v14592_v11 = vld [vmem:[%s16323_s6 + $0xa0] ss:$16 sps:$4 sm:$0xff]   ;;  %v14605_v35 = vld [vmem:[%s16323_s6 + $0xa8] ss:$16 sps:$4 sm:$0xff]  }
0x12a2   :  { %11320 = vpow2.f32 %v10335_v33  ;;  %16768 = vst [vmem:[#allocation54_spill] sm:$0xff] %v14592_v11  ;;  %16770 = vst [vmem:[#allocation20_spill] sm:$0xff] %v14605_v35  ;;  %v14612_v20 = vld [vmem:[%s16323_s6 + $0xc0] ss:$16 sps:$4 sm:$0xff]   ;;  %v14617_v63 = vld [vmem:[%s16323_s6 + $0xcc] ss:$16 sps:$4 sm:$0xff]  }
0x12a3   :  { %16771 = vst [vmem:[#allocation24_spill] sm:$0xff] %v14612_v20  ;;  %16772 = vst [vmem:[#allocation55_spill] sm:$0xff] %v14617_v63  ;;  %v14624_v29 = vld [vmem:[%s16323_s6 + $0xe4] ss:$16 sps:$4 sm:$0xff]   ;;  %v14629_v32 = vld [vmem:[%s16323_s6 + $0xc8] ss:$16 sps:$4 sm:$0xff]  }
0x12a4   :  { %16773 = vst [vmem:[#allocation45_spill] sm:$0xff] %v14624_v29  ;;  %16774 = vst [vmem:[#allocation22_spill] sm:$0xff] %v14629_v32  ;;  %v14636_v41 = vld [vmem:[%s16323_s6 + $0xec] ss:$16 sps:$4 sm:$0xff]   ;;  %v14644_v24 = vld [vmem:[%s16323_s6 + $0xe0] ss:$16 sps:$4 sm:$0xff]  }
0x12a5   :  { %16775 = vst [vmem:[#allocation12_spill] sm:$0xff] %v14636_v41  ;;  %16776 = vst [vmem:[#allocation56_spill] sm:$0xff] %v14644_v24  ;;  %v16778_v33 = vld [vmem:[#allocation7_spill] sm:$0xff] }
0x12a9   :  { %v11315_v0 = vpop.eup %11314 }
0x12aa   :  { %v6662_v30 = vadd.f32 1.0, %v11315_v0  ;;  %v11317_v21 = vpop.eup %11316  ;;  %v16779_v0 = vsub.s32 0, %v16778_v33 }
0x12ab   :  { %v6663_v56 = vadd.f32 1.0, %v11317_v21  ;;  %v11319_v37 = vpop.eup %11318  ;;  %v16780_v21 = vsub.s32 2, %v16778_v33 }
0x12ac   :  { %11322 = vrcp.f32 %v6662_v30  ;;  %v11321_v34 = vpop.eup %11320 }
0x12ad   :  { %11324 = vrcp.f32 %v6663_v56  ;;  %v6664_v55 = vadd.f32 1.0, %v11321_v34 }
0x12af   :  { %11326 = vrcp.f32 %v6664_v55 }
0x12b6   :  { %v11323_v10 = vpop.eup %11322 }
0x12b7   :  { %v6673_v12 = vmul.f32 %v11323_v10, %v11319_v37  ;;  %v11325_v18 = vpop.eup %11324  ;;  %v16781_v10 = vsub.s32 1, %v16778_v33 }
0x12b8   :  { %v6672_v14 = vmul.f32 %v11325_v18, %v14313_v25  ;;  %v6736_v25 = vsel %vm86_vm4, %v14316_v2, %v16756_v53  ;;  %v14481_v2 = vld [vmem:[%s16323_s6 + $0x2c] ss:$16 sps:$4 sm:$0xff]   ;;  %v16782_v18 = vsub.s32 3, %v16778_v33 }
0x12b9   :  { %v11327_v17 = vpop.eup %11326 }
0x12ba   :  { %v6674_v49 = vadd.f32 %v6673_v12, %v6672_v14 }
0x12bc   :  { %11328 = vtanh.f32 %v6674_v49 }
0x12c6   :  { %v11329_v38 = vpop.eup %11328 }
0x12c7   :  { %v6676_v60 = vmul.f32 %v11329_v38, %v11327_v17 }
0x12c9   :  { %v6680_v61 = vsel %vm86_vm4, %v16755_v52, %v6676_v60  ;;  %v6740_v15 = vsel %vm86_vm4, %v6676_v60, %v16755_v52 }
0x12ca   :  { %v6758_v47 = vpack.c.bf16 %v6684_v51, %v6680_v61  ;;  %v14471_v40 = vpack.c.bf16 %v6740_v15, %v6736_v25 }
0x12cc   :  { %7012 = vmatmul.mubr.bf16.vlgmr.msra.gmra.mrb[140].mxu0 %v6758_v47  ;;  %7125 = vmatmul.mubr.bf16.vlgmr.msra.gmra.mrb[84].mxu1 %v6758_v47 }
0x12cd   :  { %7722 = vmatpush1.bf16.msra.mxu0 %v14457_v7  ;;  %7021 = vmatprep.mubr.bf16.mxu0 %v16618_v43 }
0x12ce   :  { %7134 = vmatprep.mubr.bf16.mxu1 %v16618_v43  ;;  %7723 = vmatprep.subr.bf16.mxu0 %v14469_v16 }
0x12cf   :  { %7763 = vmatpush1.bf16.msra.mxu1 %v14476_v13 }
0x12d0   :  { %7764 = vmatprep.subr.bf16.mxu1 %v14481_v2 }
0x12d1   :  { %7724 = vmatpush1.bf16.msra.mxu0 %v14488_v6 }
0x12d2   :  { %7725 = vmatprep.subr.bf16.mxu0 %v14495_v23 }
0x12d3   :  { %7765 = vmatpush1.bf16.msra.mxu1 %v14501_v57 }
0x12d4   :  { %7022 = vmatmul.mubr.bf16.gmra.mrb[144].mxu0 %v14194_v19  ;;  %7135 = vmatmul.mubr.bf16.gmra.mrb[88].mxu1 %v14194_v19  ;;  %v14547_v19 = vld [vmem:[%s16323_s6 + $0x84] ss:$16 sps:$4 sm:$0xff]  }
0x12d5   :  { %7031 = vmatprep.mubr.bf16.mxu0 %v16618_v43  ;;  %7144 = vmatprep.mubr.bf16.mxu1 %v16618_v43  ;;  %16761 = vst [vmem:[#allocation16_spill] sm:$0xff] %v14547_v19 }
0x12d6   :  { %7726 = vmatpush1.bf16.msra.mxu0 %v14509_v58  ;;  %7766 = vmatprep.subr.bf16.mxu1 %v14514_v39 }
0x12d7   :  { %7727 = vmatprep.subr.bf16.mxu0 %v14519_v5  ;;  %7767 = vmatpush1.bf16.msra.mxu1 %v14525_v59 }
0x12d8   :  { %7768 = vmatprep.subr.bf16.mxu1 %v14532_v48 }
0x12da   :  { %7728 = vmatpush1.bf16.msra.mxu0 %v14540_v54 }
0x12db   :  { %7729 = vmatprep.subr.bf16.mxu0 %v14547_v19  ;;  %7769 = vmatpush1.bf16.msra.mxu1 %v14553_v1 }
0x12dc   :  { %7032 = vmatmul.mubr.bf16.gmra.mrb[148].mxu0 %v14066_v50  ;;  %7145 = vmatmul.mubr.bf16.gmra.mrb[92].mxu1 %v14066_v50  ;;  %v14599_v50 = vld [vmem:[%s16323_s6 + $0xc4] ss:$16 sps:$4 sm:$0xff]  }
0x12dd   :  { %7041 = vmatprep.mubr.bf16.mxu0 %v16618_v43  ;;  %7154 = vmatprep.mubr.bf16.mxu1 %v16618_v43  ;;  %16769 = vst [vmem:[#allocation48_spill] sm:$0xff] %v14599_v50 }
0x12de   :  { %7730 = vmatpush1.bf16.msra.mxu0 %v14560_v8  ;;  %7770 = vmatprep.subr.bf16.mxu1 %v14565_v44 }
0x12df   :  { %7731 = vmatprep.subr.bf16.mxu0 %v14571_v26  ;;  %7771 = vmatpush1.bf16.msra.mxu1 %v14577_v9 }
0x12e0   :  { %7772 = vmatprep.subr.bf16.mxu1 %v14584_v31 }
0x12e2   :  { %7732 = vmatpush1.bf16.msra.mxu0 %v14592_v11 }
0x12e3   :  { %7733 = vmatprep.subr.bf16.mxu0 %v14599_v50  ;;  %7773 = vmatpush1.bf16.msra.mxu1 %v14605_v35 }
0x12e4   :  { %7042 = vmatmul.mubr.bf16.gmra.mrb[152].mxu0 %v13774_v36  ;;  %7155 = vmatmul.mubr.bf16.gmra.mrb[96].mxu1 %v13774_v36  ;;  %v14652_v36 = vld [vmem:[%s16323_s6 + $0xe8] ss:$16 sps:$4 sm:$0xff]  }
0x12e5   :  { %7051 = vmatprep.mubr.bf16.mxu0 %v16618_v43  ;;  %7164 = vmatprep.mubr.bf16.mxu1 %v16618_v43  ;;  %16777 = vst [vmem:[#allocation46_spill] sm:$0xff] %v14652_v36 }
0x12e6   :  { %7734 = vmatpush1.bf16.msra.mxu0 %v14612_v20  ;;  %7774 = vmatprep.subr.bf16.mxu1 %v14617_v63 }
0x12e7   :  { %7735 = vmatprep.subr.bf16.mxu0 %v14624_v29  ;;  %7775 = vmatpush1.bf16.msra.mxu1 %v14629_v32 }
0x12e8   :  { %7776 = vmatprep.subr.bf16.mxu1 %v14636_v41 }
0x12ea   :  { %7736 = vmatpush1.bf16.msra.mxu0 %v14644_v24 }
0x12eb   :  { %7777 = vmatpush1.bf16.msra.mxu1 %v14652_v36  ;;  %7836 = vmatprep.subr.bf16.mxu0 %v14418_v22 }
0x12ec   :  { %7052 = vmatmul.mubr.bf16.gmra.mrb[156].mxu0 %v13776_v46  ;;  %7165 = vmatmul.mubr.bf16.gmra.mrb[100].mxu1 %v13776_v46  ;;  %v983_v46 = vld [vmem:[%s16320_s8 + $0xa] sm:$0xf] }
0x12ed   :  { %7061 = vmatprep.mubr.bf16.mxu0 %v16618_v43  ;;  %7174 = vmatprep.mubr.bf16.mxu1 %v16618_v43  ;;  %v14720_v30 = vrot.slane %v983_v46, %v16779_v0  ;;  %v14724_v56 = vrot.slane %v983_v46, %v16780_v21  ;;  %v14732_v12 = vrot.slane %v983_v46, %v16781_v10 }
0x12ee   :  { %7877 = vmatprep.subr.bf16.mxu1 %v14427_v3  ;;  %v14736_v55 = vrot.slane %v983_v46, %v16782_v18 }
0x12f4   :  { %7062 = vmatmul.mubr.bf16.gmra.mrb[160].mxu0 %v14068_v42  ;;  %7175 = vmatmul.mubr.bf16.gmra.mrb[104].mxu1 %v14068_v42 }
0x12f5   :  { %7071 = vmatprep.mubr.bf16.mxu0 %v16618_v43  ;;  %7184 = vmatprep.mubr.bf16.mxu1 %v16618_v43 }
0x12fc   :  { %7072 = vmatmul.mubr.bf16.gmra.mrb[164].mxu0 %v14196_v27  ;;  %7185 = vmatmul.mubr.bf16.gmra.mrb[108].mxu1 %v14196_v27 }
0x12fd   :  { %7081 = vmatprep.mubr.bf16.mxu0 %v16618_v43  ;;  %7194 = vmatprep.mubr.bf16.mxu1 %v16618_v43 }
0x1304   :  { %7082 = vmatmul.mubr.bf16.gmra.mrb[168].mxu0 %v14471_v40  ;;  %7195 = vmatmul.mubr.bf16.gmra.mrb[112].mxu1 %v14471_v40 }
0x1305   :  { %7753 = vmatprep.mubr.bf16.mxu0 %v16618_v43  ;;  %7794 = vmatprep.mubr.bf16.mxu1 %v16618_v43 }
0x130c   :  { %7754 = vmatmul.mubr.bf16.vlgmr.msra.gmra.mrb[172].mxu0 %v16618_v43  ;;  %7795 = vmatmul.mubr.bf16.vlgmr.msra.gmra.mrb[116].mxu1 %v16618_v43 }
0x130d   :  { %7837 = vmatpush1.bf16.msra.mxu0 %v14457_v7  ;;  %7878 = vmatpush1.bf16.msra.mxu1 %v14476_v13 }
0x130e   :  { %7838 = vmatprep.subr.bf16.mxu0 %v14469_v16  ;;  %7879 = vmatprep.subr.bf16.mxu1 %v14481_v2 }
0x130f   :  { %7868 = vmatprep.mubr.bf16.mxu0 %v16618_v43  ;;  %7909 = vmatprep.mubr.bf16.mxu1 %v16618_v43 }
0x1311   :  { %7839 = vmatpush1.bf16.msra.mxu0 %v14488_v6  ;;  %7880 = vmatpush1.bf16.msra.mxu1 %v14501_v57 }
0x1312   :  { %7840 = vmatprep.subr.bf16.mxu0 %v14495_v23  ;;  %7881 = vmatprep.subr.bf16.mxu1 %v14514_v39 }
0x1315   :  { %7841 = vmatpush1.bf16.msra.mxu0 %v14509_v58  ;;  %7882 = vmatpush1.bf16.msra.mxu1 %v14525_v59 }
0x1316   :  { %7842 = vmatprep.subr.bf16.mxu0 %v14519_v5  ;;  %7883 = vmatprep.subr.bf16.mxu1 %v14532_v48 }
0x1319   :  { %7843 = vmatpush1.bf16.msra.mxu0 %v14540_v54  ;;  %7884 = vmatpush1.bf16.msra.mxu1 %v14553_v1 }
0x131a   :  { %7844 = vmatprep.subr.bf16.mxu0 %v14547_v19  ;;  %7885 = vmatprep.subr.bf16.mxu1 %v14565_v44 }
0x131d   :  { %7845 = vmatpush1.bf16.msra.mxu0 %v14560_v8  ;;  %7886 = vmatpush1.bf16.msra.mxu1 %v14577_v9 }
0x131e   :  { %7846 = vmatprep.subr.bf16.mxu0 %v14571_v26  ;;  %7887 = vmatprep.subr.bf16.mxu1 %v14584_v31 }
0x1321   :  { %7847 = vmatpush1.bf16.msra.mxu0 %v14592_v11  ;;  %7888 = vmatpush1.bf16.msra.mxu1 %v14605_v35 }
0x1322   :  { %7848 = vmatprep.subr.bf16.mxu0 %v14599_v50  ;;  %7889 = vmatprep.subr.bf16.mxu1 %v14617_v63 }
0x1325   :  { %7849 = vmatpush1.bf16.msra.mxu0 %v14612_v20  ;;  %7890 = vmatpush1.bf16.msra.mxu1 %v14629_v32 }
0x1326   :  { %7850 = vmatprep.subr.bf16.mxu0 %v14624_v29  ;;  %7891 = vmatprep.subr.bf16.mxu1 %v14636_v41 }
0x1329   :  { %7851 = vmatpush1.bf16.msra.mxu0 %v14644_v24  ;;  %7892 = vmatpush1.bf16.msra.mxu1 %v14652_v36 }
0x132a   :  { %7951 = vmatprep.subr.bf16.mxu0 %v14418_v22  ;;  %7992 = vmatprep.subr.bf16.mxu1 %v14427_v3 }
0x139f   :  { %v14714_v42 = vpop.f32.mrb[140].mxu0  ;;  %v14716_v27 = vpop.f32.mrb[84].mxu1 }
0x13a0   :  { %v14726_v37 = vpop.f32.mrb[141].mxu0  ;;  %v14728_v34 = vpop.f32.mrb[85].mxu1 }
0x13a1   :  { %v7017_v14 = vpop.f32.mrb[142].mxu0  ;;  %v7130_v49 = vpop.f32.mrb[86].mxu1 }
0x13a2   :  { %v14739_v17 = vadd.f32 %v7017_v14, %v14720_v30  ;;  %v14742_v38 = vadd.f32 %v7130_v49, %v14724_v56  ;;  %v7019_v60 = vpop.f32.mrb[143].mxu0  ;;  %v7132_v52 = vpop.f32.mrb[87].mxu1 }
0x13a3   :  { %v14745_v61 = vadd.f32 %v7019_v60, %v14732_v12  ;;  %v14748_v53 = vadd.f32 %v7132_v52, %v14736_v55 }
0x13a4   :  { %16783 = vst [vmem:[#allocation27_spill] sm:$0xff] %v14742_v38 }
0x13a5   :  { %16784 = vst [vmem:[#allocation57_spill] sm:$0xff] %v14745_v61  ;;  %16785 = vst [vmem:[#allocation43_spill] sm:$0xff] %v14748_v53 }
0x13a7   :  { %v7023_v51 = vpop.f32.mrb[144].mxu0  ;;  %v7136_v25 = vpop.f32.mrb[88].mxu1 }
0x13a8   :  { %v14751_v15 = vadd.f32 %v7023_v51, %v14720_v30  ;;  %v14754_v47 = vadd.f32 %v7136_v25, %v14724_v56  ;;  %v7025_v40 = vpop.f32.mrb[145].mxu0  ;;  %v7138_v46 = vpop.f32.mrb[89].mxu1 }
0x13a9   :  { %v14757_v33 = vadd.f32 %v7025_v40, %v14732_v12  ;;  %v14760_v0 = vadd.f32 %v7138_v46, %v14736_v55  ;;  %v7027_v21 = vpop.f32.mrb[146].mxu0  ;;  %v7140_v10 = vpop.f32.mrb[90].mxu1 }
0x13aa   :  { %16786 = vst [vmem:[#allocation25_spill] sm:$0xff] %v14754_v47  ;;  %v14763_v18 = vadd.f32 %v7027_v21, %v14720_v30  ;;  %v14766_v14 = vadd.f32 %v7140_v10, %v14724_v56  ;;  %v7029_v49 = vpop.f32.mrb[147].mxu0  ;;  %v7142_v60 = vpop.f32.mrb[91].mxu1 }
0x13ab   :  { %16787 = vst [vmem:[#allocation11_spill] sm:$0xff] %v14757_v33  ;;  %16788 = vst [vmem:[#allocation58_spill] sm:$0xff] %v14760_v0  ;;  %v14769_v52 = vadd.f32 %v7029_v49, %v14732_v12  ;;  %v14772_v51 = vadd.f32 %v7142_v60, %v14736_v55 }
0x13ac   :  { %16789 = vst [vmem:[#allocation44_spill] sm:$0xff] %v14766_v14 }
0x13ad   :  { %16790 = vst [vmem:[#allocation23_spill] sm:$0xff] %v14769_v52  ;;  %16791 = vst [vmem:[#allocation26_spill] sm:$0xff] %v14772_v51 }
0x13af   :  { %v7033_v25 = vpop.f32.mrb[148].mxu0  ;;  %v7146_v40 = vpop.f32.mrb[92].mxu1 }
0x13b0   :  { %v14775_v46 = vadd.f32 %v7033_v25, %v14720_v30  ;;  %v14778_v3 = vadd.f32 %v7146_v40, %v14724_v56  ;;  %v7035_v21 = vpop.f32.mrb[149].mxu0  ;;  %v7148_v22 = vpop.f32.mrb[93].mxu1 }
0x13b1   :  { %v14781_v10 = vadd.f32 %v7035_v21, %v14732_v12  ;;  %v14784_v36 = vadd.f32 %v7148_v22, %v14736_v55  ;;  %v7037_v49 = vpop.f32.mrb[150].mxu0  ;;  %v7150_v24 = vpop.f32.mrb[94].mxu1 }
0x13b2   :  { %16792 = vst [vmem:[#allocation29_spill] sm:$0xff] %v14778_v3  ;;  %v14787_v60 = vadd.f32 %v7037_v49, %v14720_v30  ;;  %v14790_v41 = vadd.f32 %v7150_v24, %v14724_v56  ;;  %v7039_v25 = vpop.f32.mrb[151].mxu0  ;;  %v7152_v29 = vpop.f32.mrb[95].mxu1 }
0x13b3   :  { %16793 = vst [vmem:[#allocation59_spill] sm:$0xff] %v14781_v10  ;;  %16794 = vst [vmem:[#allocation41_spill] sm:$0xff] %v14784_v36  ;;  %v14793_v40 = vadd.f32 %v7039_v25, %v14732_v12  ;;  %v14796_v32 = vadd.f32 %v7152_v29, %v14736_v55 }
0x13b4   :  { %16795 = vst [vmem:[#allocation28_spill] sm:$0xff] %v14790_v41 }
0x13b5   :  { %16796 = vst [vmem:[#allocation10_spill] sm:$0xff] %v14793_v40  ;;  %16797 = vst [vmem:[#allocation60_spill] sm:$0xff] %v14796_v32 }
0x13b7   :  { %v7043_v21 = vpop.f32.mrb[152].mxu0  ;;  %v7156_v20 = vpop.f32.mrb[96].mxu1 }
0x13b8   :  { %v7044_v22 = vadd.f32 %v7043_v21, %v14720_v30  ;;  %v14800_v63 = vadd.f32 %v7156_v20, %v14724_v56  ;;  %v7045_v49 = vpop.f32.mrb[153].mxu0  ;;  %v7158_v50 = vpop.f32.mrb[97].mxu1 }
0x13b9   :  { %v14803_v24 = vadd.f32 %v7045_v49, %v14732_v12  ;;  %v14806_v35 = vadd.f32 %v7158_v50, %v14736_v55  ;;  %v7047_v25 = vpop.f32.mrb[154].mxu0  ;;  %v7160_v11 = vpop.f32.mrb[98].mxu1 }
0x13ba   :  { %16798 = vst [vmem:[#allocation42_spill] sm:$0xff] %v14800_v63  ;;  %v7048_v29 = vadd.f32 %v7047_v25, %v14720_v30  ;;  %v14810_v31 = vadd.f32 %v7160_v11, %v14724_v56  ;;  %v7049_v26 = vpop.f32.mrb[155].mxu0  ;;  %v7162_v21 = vpop.f32.mrb[99].mxu1 }
0x13bb   :  { %16799 = vst [vmem:[#allocation31_spill] sm:$0xff] %v14803_v24  ;;  %16800 = vst [vmem:[#allocation61_spill] sm:$0xff] %v14806_v35  ;;  %v14813_v20 = vadd.f32 %v7049_v26, %v14732_v12  ;;  %v14816_v9 = vadd.f32 %v7162_v21, %v14736_v55 }
0x13bc   :  { %16801 = vst [vmem:[#allocation39_spill] sm:$0xff] %v14810_v31 }
0x13bd   :  { %16802 = vst [vmem:[#allocation30_spill] sm:$0xff] %v14813_v20  ;;  %16803 = vst [vmem:[#allocation9_spill] sm:$0xff] %v14816_v9 }
0x13bf   :  { %v7053_v49 = vpop.f32.mrb[156].mxu0  ;;  %v7166_v8 = vpop.f32.mrb[100].mxu1 }
0x13c0   :  { %v7054_v50 = vadd.f32 %v7053_v49, %v14720_v30  ;;  %v14820_v44 = vadd.f32 %v7166_v8, %v14724_v56  ;;  %v7055_v19 = vpop.f32.mrb[157].mxu0  ;;  %v7168_v25 = vpop.f32.mrb[101].mxu1 }
0x13c1   :  { %v14823_v11 = vadd.f32 %v7055_v19, %v14732_v12  ;;  %v14826_v1 = vadd.f32 %v7168_v25, %v14736_v55  ;;  %v7057_v26 = vpop.f32.mrb[158].mxu0  ;;  %v7170_v54 = vpop.f32.mrb[102].mxu1 }
0x13c2   :  { %16804 = vst [vmem:[#allocation62_spill] sm:$0xff] %v14820_v44  ;;  %v7058_v21 = vadd.f32 %v7057_v26, %v14720_v30  ;;  %v14830_v48 = vadd.f32 %v7170_v54, %v14724_v56  ;;  %v7059_v5 = vpop.f32.mrb[159].mxu0  ;;  %v7172_v49 = vpop.f32.mrb[103].mxu1  ;;  %v14834_v8 = vsel %vm86_vm4, %v7048_v29, %v7054_v50 }
0x13c3   :  { %16805 = vst [vmem:[#allocation40_spill] sm:$0xff] %v14823_v11  ;;  %16806 = vst [vmem:[#allocation72_spill] sm:$0xff] %v14826_v1  ;;  %v14841_v25 = vadd.f32 %v7059_v5, %v14732_v12  ;;  %v14844_v59 = vadd.f32 %v7172_v49, %v14736_v55  ;;  %v14864_v49 = vsel %vm86_vm4, %v7054_v50, %v7048_v29 }
0x13c4   :  { %16807 = vst [vmem:[#allocation71_spill] sm:$0xff] %v14830_v48  ;;  %16808 = vst [vmem:[#allocation33_spill] sm:$0xff] %v14834_v8  ;;  %v14856_v8 = vsel %vm86_vm4, %v7044_v22, %v7058_v21  ;;  %v14888_v54 = vsel %vm86_vm4, %v7058_v21, %v7044_v22 }
0x13c5   :  { %16809 = vst [vmem:[#allocation63_spill] sm:$0xff] %v14841_v25  ;;  %16810 = vst [vmem:[#allocation37_spill] sm:$0xff] %v14844_v59 }
0x13c6   :  { %16811 = vst [vmem:[#allocation32_spill] sm:$0xff] %v14856_v8  ;;  %16812 = vst [vmem:[#allocation8_spill] sm:$0xff] %v14864_v49  ;;  %v15090_v8 = vadd.f32 %v14726_v37, %v14732_v12 }
0x13c7   :  { %16813 = vst [vmem:[#allocation66_spill] sm:$0xff] %v14888_v54  ;;  %v7063_v50 = vpop.f32.mrb[160].mxu0  ;;  %v7176_v5 = vpop.f32.mrb[104].mxu1 }
0x13c8   :  { %v7064_v22 = vadd.f32 %v7063_v50, %v14720_v30  ;;  %v14904_v21 = vadd.f32 %v7176_v5, %v14724_v56  ;;  %v7065_v54 = vpop.f32.mrb[161].mxu0  ;;  %v7178_v49 = vpop.f32.mrb[105].mxu1  ;;  %16834 = vst [vmem:[#allocation82_spill] sm:$0xff] %v15090_v8 }
0x13c9   :  { %v14907_v26 = vadd.f32 %v7065_v54, %v14732_v12  ;;  %v14910_v1 = vadd.f32 %v7178_v49, %v14736_v55  ;;  %v7067_v19 = vpop.f32.mrb[162].mxu0  ;;  %v7180_v9 = vpop.f32.mrb[106].mxu1 }
0x13ca   :  { %16814 = vst [vmem:[#allocation38_spill] sm:$0xff] %v14904_v21  ;;  %v7068_v11 = vadd.f32 %v7067_v19, %v14720_v30  ;;  %v14914_v29 = vadd.f32 %v7180_v9, %v14724_v56  ;;  %v7069_v20 = vpop.f32.mrb[163].mxu0  ;;  %v7182_v50 = vpop.f32.mrb[107].mxu1  ;;  %v14919_v5 = vsel %vm86_vm4, %v14787_v60, %v7064_v22 }
0x13cb   :  { %16815 = vst [vmem:[#allocation36_spill] sm:$0xff] %v14907_v26  ;;  %16816 = vst [vmem:[#allocation67_spill] sm:$0xff] %v14910_v1  ;;  %v14926_v49 = vadd.f32 %v7069_v20, %v14732_v12  ;;  %v14929_v19 = vadd.f32 %v7182_v50, %v14736_v55  ;;  %v14951_v50 = vsel %vm86_vm4, %v7064_v22, %v14787_v60 }
0x13cc   :  { %16817 = vst [vmem:[#allocation64_spill] sm:$0xff] %v14914_v29  ;;  %16818 = vst [vmem:[#allocation35_spill] sm:$0xff] %v14919_v5  ;;  %v14942_v54 = vsel %vm86_vm4, %v14775_v46, %v7068_v11  ;;  %v14976_v44 = vsel %vm86_vm4, %v7068_v11, %v14775_v46 }
0x13cd   :  { %16819 = vst [vmem:[#allocation34_spill] sm:$0xff] %v14926_v49  ;;  %16820 = vst [vmem:[#allocation68_spill] sm:$0xff] %v14929_v19 }
0x13ce   :  { %16821 = vst [vmem:[#allocation65_spill] sm:$0xff] %v14942_v54  ;;  %16822 = vst [vmem:[#allocation69_spill] sm:$0xff] %v14951_v50 }
0x13cf   :  { %16823 = vst [vmem:[#allocation70_spill] sm:$0xff] %v14976_v44  ;;  %v7073_v9 = vpop.f32.mrb[164].mxu0  ;;  %v7186_v50 = vpop.f32.mrb[108].mxu1 }
0x13d0   :  { %v7074_v46 = vadd.f32 %v7073_v9, %v14720_v30  ;;  %v14992_v11 = vadd.f32 %v7186_v50, %v14724_v56  ;;  %v7075_v44 = vpop.f32.mrb[165].mxu0  ;;  %v7188_v31 = vpop.f32.mrb[109].mxu1 }
0x13d1   :  { %v14995_v20 = vadd.f32 %v7075_v44, %v14732_v12  ;;  %v14998_v59 = vadd.f32 %v7188_v31, %v14736_v55  ;;  %v7077_v60 = vpop.f32.mrb[166].mxu0  ;;  %v7190_v35 = vpop.f32.mrb[110].mxu1 }
0x13d2   :  { %16824 = vst [vmem:[#allocation7_spill] sm:$0xff] %v14992_v11  ;;  %v7078_v25 = vadd.f32 %v7077_v60, %v14720_v30  ;;  %v15002_v22 = vadd.f32 %v7190_v35, %v14724_v56  ;;  %v7079_v24 = vpop.f32.mrb[167].mxu0  ;;  %v7192_v9 = vpop.f32.mrb[111].mxu1  ;;  %v15007_v50 = vsel %vm86_vm4, %v14763_v18, %v7074_v46 }
0x13d3   :  { %16825 = vst [vmem:[#allocation73_spill] sm:$0xff] %v14995_v20  ;;  %16826 = vst [vmem:[#allocation74_spill] sm:$0xff] %v14998_v59  ;;  %v15014_v31 = vadd.f32 %v7079_v24, %v14732_v12  ;;  %v15017_v60 = vadd.f32 %v7192_v9, %v14736_v55  ;;  %v15039_v9 = vsel %vm86_vm4, %v7074_v46, %v14763_v18 }
0x13d4   :  { %16827 = vst [vmem:[#allocation75_spill] sm:$0xff] %v15002_v22  ;;  %v15030_v44 = vsel %vm86_vm4, %v14751_v15, %v7078_v25  ;;  %16830 = vst [vmem:[#allocation78_spill] sm:$0xff] %v15039_v9  ;;  %v15064_v48 = vsel %vm86_vm4, %v7078_v25, %v14751_v15  ;;  %v7014_v15 = vadd.f32 %v14714_v42, %v14720_v30 }
0x13d5   :  { %16828 = vst [vmem:[#allocation76_spill] sm:$0xff] %v15014_v31  ;;  %16829 = vst [vmem:[#allocation77_spill] sm:$0xff] %v15017_v60  ;;  %v15082_v25 = vadd.f32 %v14716_v27, %v14724_v56  ;;  %v15094_v46 = vadd.f32 %v14728_v34, %v14736_v55 }
0x13d6   :  { %16831 = vst [vmem:[#allocation79_spill] sm:$0xff] %v15064_v48 }
0x13d7   :  { %v7083_v35 = vpop.f32.mrb[168].mxu0  ;;  %v7196_v9 = vpop.f32.mrb[112].mxu1  ;;  %16832 = vst [vmem:[#allocation80_spill] sm:$0xff] %v15082_v25  ;;  %16835 = vst [vmem:[#allocation83_spill] sm:$0xff] %v15094_v46 }
0x13d8   :  { %v7084_v24 = vadd.f32 %v7083_v35, %v14720_v30  ;;  %v15086_v48 = vadd.f32 %v7196_v9, %v14724_v56  ;;  %v7085_v18 = vpop.f32.mrb[169].mxu0  ;;  %v7198_v63 = vpop.f32.mrb[113].mxu1 }
0x13d9   :  { %v15097_v42 = vadd.f32 %v7085_v18, %v14732_v12  ;;  %v15100_v27 = vadd.f32 %v7198_v63, %v14736_v55  ;;  %v7087_v35 = vpop.f32.mrb[170].mxu0  ;;  %v7200_v1 = vpop.f32.mrb[114].mxu1 }
0x13da   :  { %16833 = vst [vmem:[#allocation81_spill] sm:$0xff] %v15086_v48  ;;  %v7088_v9 = vadd.f32 %v7087_v35, %v14720_v30  ;;  %v15104_v32 = vadd.f32 %v7200_v1, %v14724_v56  ;;  %v7089_v26 = vpop.f32.mrb[171].mxu0  ;;  %v7202_v37 = vpop.f32.mrb[115].mxu1  ;;  %v15109_v34 = vsel %vm86_vm4, %v14739_v17, %v7084_v24  ;;  %v16867_v29 = vsel %vm12692_vm6, %v14742_v38, %v15086_v48 }
0x13db   :  { %16836 = vst [vmem:[#allocation84_spill] sm:$0xff] %v15097_v42  ;;  %16837 = vst [vmem:[#allocation85_spill] sm:$0xff] %v15100_v27  ;;  %v15116_v18 = vadd.f32 %v7089_v26, %v14732_v12  ;;  %v15119_v30 = vadd.f32 %v7202_v37, %v14736_v55  ;;  %v15138_v55 = vsel %vm86_vm4, %v7084_v24, %v14739_v17 }
0x13dc   :  { %16838 = vst [vmem:[#allocation86_spill] sm:$0xff] %v15104_v32  ;;  %v7277_v35 = vsel %vm86_vm4, %v7014_v15, %v7088_v9  ;;  %v7279_v12 = vsel %vm12692_vm6, %v15082_v25, %v15104_v32  ;;  %16841 = vst [vmem:[#allocation89_spill] sm:$0xff] %v15138_v55  ;;  %v15162_v26 = vsel %vm86_vm4, %v7088_v9, %v7014_v15 }
0x13dd   :  { %16839 = vst [vmem:[#allocation87_spill] sm:$0xff] %v15116_v18  ;;  %16840 = vst [vmem:[#allocation88_spill] sm:$0xff] %v15119_v30  ;;  %v7278_v37 = vsel %vm12455_vm5, %v15090_v8, %v15116_v18  ;;  %v7280_v56 = vsel %vm12696_vm7, %v15094_v46, %v15119_v30  ;;  %v16865_v46 = vld [vmem:[#allocation47_spill] sm:$0xff]  ;;  %v16866_v30 = vld [vmem:[#allocation53_spill] sm:$0xff]  ;;  %v16868_v51 = vsel %vm12455_vm5, %v14745_v61, %v15097_v42 }
0x13de   :  { %16842 = vst [vmem:[#allocation90_spill] sm:$0xff] %v15162_v26  ;;  %v16889_v42 = vld [vmem:[#allocation41_spill] sm:$0xff] }
0x13df   :  { %v7755_v24 = vpop.f32.mrb[172].mxu0  ;;  %v7796_v55 = vpop.f32.mrb[116].mxu1 }
0x13e0   :  { %v7803_v62 = vadd.f32 %v7755_v24, %v7277_v35  ;;  %v7805_v15 = vadd.f32 %v7796_v55, %v7279_v12  ;;  %v7757_v9 = vpop.f32.mrb[173].mxu0  ;;  %v7798_v26 = vpop.f32.mrb[117].mxu1  ;;  %v16850_v24 = vld [vmem:[#allocation18_spill] sm:$0xff] }
0x13e1   :  { %v7804_v40 = vadd.f32 %v7757_v9, %v7278_v37  ;;  %v7806_v21 = vadd.f32 %v7798_v26, %v7280_v56  ;;  %v7759_v41 = vpop.f32.mrb[174].mxu0  ;;  %v7800_v1 = vpop.f32.mrb[118].mxu1  ;;  %v16847_v26 = vld [vmem:[#allocation15_spill] sm:$0xff]  ;;  %v16848_v37 = vld [vmem:[#allocation50_spill] sm:$0xff] }
0x13e2   :  { %v10400_v25 = vmul.f32 -1.442695, %v7803_v62  ;;  %v7760_v32 = vpop.f32.mrb[175].mxu0  ;;  %v7801_v5 = vpop.f32.mrb[119].mxu1  ;;  %v10402_v63 = vmul.f32 -1.442695, %v7805_v15 }
0x13e3   :  { %v10401_v19 = vmul.f32 -1.442695, %v7804_v40  ;;  %v16851_v15 = vld [vmem:[#allocation52_spill] sm:$0xff]  ;;  %v16852_v9 = vld [vmem:[#allocation19_spill] sm:$0xff] }
0x13e4   :  { %11330 = vpow2.f32 %v10400_v25  ;;  %v16844_v25 = vld [vmem:[#allocation49_spill] sm:$0xff] }
0x13e5   :  { %11332 = vpow2.f32 %v10401_v19 }
0x13e6   :  { %11334 = vtanh.f32 %v7806_v21 }
0x13e7   :  { %11336 = vpow2.f32 %v10402_v63  ;;  %v16845_v63 = vld [vmem:[#allocation17_spill] sm:$0xff] }
0x13ee   :  { %v11331_v8 = vpop.eup %11330 }
0x13ef   :  { %v7816_v18 = vadd.f32 1.0, %v11331_v8  ;;  %v11333_v17 = vpop.eup %11332 }
0x13f0   :  { %v7817_v35 = vadd.f32 1.0, %v11333_v17  ;;  %v11335_v12 = vpop.eup %11334  ;;  %v16849_v17 = vld [vmem:[#allocation16_spill] sm:$0xff] }
0x13f1   :  { %11338 = vrcp.f32 %v7816_v18  ;;  %v11337_v55 = vpop.eup %11336  ;;  %v16846_v18 = vld [vmem:[#allocation51_spill] sm:$0xff] }
0x13f2   :  { %11340 = vrcp.f32 %v7817_v35  ;;  %v7818_v62 = vadd.f32 1.0, %v11337_v55  ;;  %v16853_v35 = vld [vmem:[#allocation21_spill] sm:$0xff]  ;;  %v16855_v55 = vld [vmem:[#allocation54_spill] sm:$0xff] }
0x13f4   :  { %11342 = vrcp.f32 %v7818_v62  ;;  %v16859_v62 = vld [vmem:[#allocation24_spill] sm:$0xff] }
0x13fb   :  { %v11339_v56 = vpop.eup %11338 }
0x13fc   :  { %v7827_v41 = vmul.f32 %v11339_v56, %v11335_v12  ;;  %v11341_v1 = vpop.eup %11340  ;;  %v16854_v12 = vld [vmem:[#allocation14_spill] sm:$0xff]  ;;  %v16856_v56 = vld [vmem:[#allocation20_spill] sm:$0xff] }
0x13fd   :  { %v7826_v32 = vmul.f32 0.0, %v11341_v1  ;;  %v16858_v1 = vld [vmem:[#allocation55_spill] sm:$0xff] }
0x13fe   :  { %v11343_v40 = vpop.eup %11342 }
0x13ff   :  { %v15176_v5 = vadd.f32 %v7827_v41, %v7826_v32  ;;  %v16857_v41 = vld [vmem:[#allocation48_spill] sm:$0xff]  ;;  %v16860_v32 = vld [vmem:[#allocation22_spill] sm:$0xff] }
0x1401   :  { %11344 = vtanh.f32 %v15176_v5 }
0x140b   :  { %v11345_v8 = vpop.eup %11344 }
0x140c   :  { %v15179_v21 = vmul.f32 %v11345_v8, %v11343_v40  ;;  %v16861_v40 = vld [vmem:[#allocation45_spill] sm:$0xff]  ;;  %v16862_v8 = vld [vmem:[#allocation12_spill] sm:$0xff] }
0x140e   :  { %16843 = vst [vmem:[#allocation91_spill] sm:$0xff] %v15179_v21  ;;  %v7835_v19 = vpack.c.bf16 %v15179_v21, %v15179_v21  ;;  %v16864_v21 = vld [vmem:[#allocation46_spill] sm:$0xff] }
0x1410   :  { %7869 = vmatmul.mubr.bf16.vlgmr.msra.gmra.mrb[176].mxu0 %v7835_v19  ;;  %7910 = vmatmul.mubr.bf16.vlgmr.msra.gmra.mrb[120].mxu1 %v7835_v19  ;;  %v16863_v19 = vld [vmem:[#allocation56_spill] sm:$0xff] }
0x1411   :  { %7952 = vmatpush1.bf16.msra.mxu0 %v14457_v7  ;;  %7993 = vmatpush1.bf16.msra.mxu1 %v14476_v13 }
0x1412   :  { %7953 = vmatprep.subr.bf16.mxu0 %v14469_v16  ;;  %7994 = vmatprep.subr.bf16.mxu1 %v14481_v2 }
0x1413   :  { %7983 = vmatprep.mubr.bf16.mxu0 %v16618_v43  ;;  %8024 = vmatprep.mubr.bf16.mxu1 %v16618_v43 }
0x1415   :  { %7954 = vmatpush1.bf16.msra.mxu0 %v14488_v6  ;;  %7995 = vmatpush1.bf16.msra.mxu1 %v14501_v57 }
0x1416   :  { %7955 = vmatprep.subr.bf16.mxu0 %v14495_v23  ;;  %7996 = vmatprep.subr.bf16.mxu1 %v14514_v39 }
0x1419   :  { %7956 = vmatpush1.bf16.msra.mxu0 %v14509_v58  ;;  %7997 = vmatpush1.bf16.msra.mxu1 %v16844_v25 }
0x141a   :  { %7957 = vmatprep.subr.bf16.mxu0 %v16845_v63  ;;  %7998 = vmatprep.subr.bf16.mxu1 %v16846_v18 }
0x141d   :  { %7958 = vmatpush1.bf16.msra.mxu0 %v16847_v26  ;;  %7999 = vmatpush1.bf16.msra.mxu1 %v16848_v37 }
0x141e   :  { %7959 = vmatprep.subr.bf16.mxu0 %v16849_v17  ;;  %8000 = vmatprep.subr.bf16.mxu1 %v16850_v24 }
0x1421   :  { %7960 = vmatpush1.bf16.msra.mxu0 %v16851_v15  ;;  %8001 = vmatpush1.bf16.msra.mxu1 %v16852_v9 }
0x1422   :  { %7961 = vmatprep.subr.bf16.mxu0 %v16853_v35  ;;  %8002 = vmatprep.subr.bf16.mxu1 %v16854_v12 }
0x1425   :  { %7962 = vmatpush1.bf16.msra.mxu0 %v16855_v55  ;;  %8003 = vmatpush1.bf16.msra.mxu1 %v16856_v56 }
0x1426   :  { %7963 = vmatprep.subr.bf16.mxu0 %v16857_v41  ;;  %8004 = vmatprep.subr.bf16.mxu1 %v16858_v1 }
0x1429   :  { %7964 = vmatpush1.bf16.msra.mxu0 %v16859_v62  ;;  %8005 = vmatpush1.bf16.msra.mxu1 %v16860_v32 }
0x142a   :  { %7965 = vmatprep.subr.bf16.mxu0 %v16861_v40  ;;  %8006 = vmatprep.subr.bf16.mxu1 %v16862_v8 }
0x142d   :  { %7966 = vmatpush1.bf16.msra.mxu0 %v16863_v19  ;;  %8007 = vmatpush1.bf16.msra.mxu1 %v16864_v21 }
0x142e   :  { %8066 = vmatprep.subr.bf16.mxu0 %v16865_v46  ;;  %8107 = vmatprep.subr.bf16.mxu1 %v16866_v30  ;;  %v16869_v30 = vsel %vm12696_vm7, %v14748_v53, %v15100_v27 }
0x14e3   :  { %v7870_v36 = vpop.f32.mrb[176].mxu0  ;;  %v7911_v49 = vpop.f32.mrb[120].mxu1 }
0x14e4   :  { %v7918_v10 = vadd.f32 %v7870_v36, %v15109_v34  ;;  %v7920_v3 = vadd.f32 %v7911_v49, %v16867_v29  ;;  %v7872_v54 = vpop.f32.mrb[177].mxu0  ;;  %v7913_v59 = vpop.f32.mrb[121].mxu1 }
0x14e5   :  { %v7919_v46 = vadd.f32 %v7872_v54, %v16868_v51  ;;  %v7921_v36 = vadd.f32 %v7913_v59, %v16869_v30  ;;  %v7874_v34 = vpop.f32.mrb[178].mxu0  ;;  %v7915_v20 = vpop.f32.mrb[122].mxu1 }
0x14e6   :  { %v10403_v52 = vmul.f32 -1.442695, %v7918_v10  ;;  %v7875_v11 = vpop.f32.mrb[179].mxu0  ;;  %v7916_v38 = vpop.f32.mrb[123].mxu1  ;;  %v10405_v49 = vmul.f32 -1.442695, %v7920_v3 }
0x14e7   :  { %v10404_v29 = vmul.f32 -1.442695, %v7919_v46 }
0x14e8   :  { %11346 = vpow2.f32 %v10403_v52 }
0x14e9   :  { %11348 = vpow2.f32 %v10404_v29 }
0x14ea   :  { %11350 = vtanh.f32 %v7921_v36  ;;  %v16872_v36 = vsel %vm12696_vm7, %v14760_v0, %v15017_v60  ;;  %v16890_v0 = vld [vmem:[#allocation68_spill] sm:$0xff] }
0x14eb   :  { %11352 = vpow2.f32 %v10405_v49  ;;  %v16891_v60 = vsel %vm12696_vm7, %v16889_v42, %v16890_v0 }
0x14f2   :  { %v11347_v48 = vpop.eup %11346 }
0x14f3   :  { %v7931_v14 = vadd.f32 1.0, %v11347_v48  ;;  %v11349_v61 = vpop.eup %11348 }
0x14f4   :  { %v7932_v51 = vadd.f32 1.0, %v11349_v61  ;;  %v11351_v54 = vpop.eup %11350 }
0x14f5   :  { %11354 = vrcp.f32 %v7931_v14  ;;  %v11353_v53 = vpop.eup %11352  ;;  %v16871_v14 = vsel %vm12455_vm5, %v14757_v33, %v15014_v31 }
0x14f6   :  { %11356 = vrcp.f32 %v7932_v51  ;;  %v7933_v10 = vadd.f32 1.0, %v11353_v53 }
0x14f8   :  { %11358 = vrcp.f32 %v7933_v10 }
0x14ff   :  { %v11355_v59 = vpop.eup %11354 }
0x1500   :  { %v7942_v30 = vmul.f32 %v11355_v59, %v11351_v54  ;;  %v11357_v20 = vpop.eup %11356 }
0x1501   :  { %v7941_v38 = vmul.f32 %v11357_v20, %v15176_v5 }
0x1502   :  { %v11359_v3 = vpop.eup %11358 }
0x1503   :  { %v15234_v11 = vadd.f32 %v7942_v30, %v7941_v38 }
0x1505   :  { %11360 = vtanh.f32 %v15234_v11 }
0x150f   :  { %v11361_v48 = vpop.eup %11360 }
0x1510   :  { %v7945_v52 = vmul.f32 %v11361_v48, %v11359_v3 }
0x1512   :  { %v7950_v46 = vpack.c.bf16 %v7945_v52, %v7945_v52 }
0x1514   :  { %7984 = vmatmul.mubr.bf16.vlgmr.msra.gmra.mrb[180].mxu0 %v7950_v46  ;;  %8025 = vmatmul.mubr.bf16.vlgmr.msra.gmra.mrb[124].mxu1 %v7950_v46 }
0x1515   :  { %8067 = vmatpush1.bf16.msra.mxu0 %v14457_v7  ;;  %8108 = vmatpush1.bf16.msra.mxu1 %v14476_v13  ;;  %v15272_v7 = vld [vmem:[%s16323_s6 + $0x4] ss:$16 sps:$4 sm:$0xff]  }
0x1516   :  { %8068 = vmatprep.subr.bf16.mxu0 %v14469_v16  ;;  %8109 = vmatprep.subr.bf16.mxu1 %v14481_v2  ;;  %v15278_v16 = vld [vmem:[%s16323_s6 + $0xc] ss:$16 sps:$4 sm:$0xff]  }
0x1517   :  { %8098 = vmatprep.mubr.bf16.mxu0 %v16618_v43  ;;  %8139 = vmatprep.mubr.bf16.mxu1 %v16618_v43 }
0x1519   :  { %8069 = vmatpush1.bf16.msra.mxu0 %v14488_v6  ;;  %8110 = vmatpush1.bf16.msra.mxu1 %v14501_v57 }
0x151a   :  { %8070 = vmatprep.subr.bf16.mxu0 %v14495_v23  ;;  %8111 = vmatprep.subr.bf16.mxu1 %v14514_v39  ;;  %v16870_v23 = vsel %vm12692_vm6, %v14754_v47, %v15002_v22 }
0x151d   :  { %8071 = vmatpush1.bf16.msra.mxu0 %v14509_v58  ;;  %8112 = vmatpush1.bf16.msra.mxu1 %v16844_v25 }
0x151e   :  { %8072 = vmatprep.subr.bf16.mxu0 %v16845_v63  ;;  %8113 = vmatprep.subr.bf16.mxu1 %v16846_v18 }
0x1521   :  { %8073 = vmatpush1.bf16.msra.mxu0 %v16847_v26  ;;  %8114 = vmatpush1.bf16.msra.mxu1 %v16848_v37 }
0x1522   :  { %8074 = vmatprep.subr.bf16.mxu0 %v16849_v17  ;;  %8115 = vmatprep.subr.bf16.mxu1 %v16850_v24 }
0x1525   :  { %8075 = vmatpush1.bf16.msra.mxu0 %v16851_v15  ;;  %8116 = vmatpush1.bf16.msra.mxu1 %v16852_v9 }
0x1526   :  { %8076 = vmatprep.subr.bf16.mxu0 %v16853_v35  ;;  %8117 = vmatprep.subr.bf16.mxu1 %v16854_v12 }
0x1529   :  { %8077 = vmatpush1.bf16.msra.mxu0 %v16855_v55  ;;  %8118 = vmatpush1.bf16.msra.mxu1 %v16856_v56 }
0x152a   :  { %8078 = vmatprep.subr.bf16.mxu0 %v16857_v41  ;;  %8119 = vmatprep.subr.bf16.mxu1 %v16858_v1 }
0x152d   :  { %8079 = vmatpush1.bf16.msra.mxu0 %v16859_v62  ;;  %8120 = vmatpush1.bf16.msra.mxu1 %v16860_v32 }
0x152e   :  { %8080 = vmatprep.subr.bf16.mxu0 %v16861_v40  ;;  %8121 = vmatprep.subr.bf16.mxu1 %v16862_v8 }
0x1531   :  { %8081 = vmatpush1.bf16.msra.mxu0 %v16863_v19  ;;  %8122 = vmatpush1.bf16.msra.mxu1 %v16864_v21 }
0x1532   :  { %8181 = vmatprep.subr.bf16.mxu0 %v15272_v7  ;;  %8222 = vmatprep.subr.bf16.mxu1 %v15278_v16 }
0x15e7   :  { %v7985_v13 = vpop.f32.mrb[180].mxu0  ;;  %v8026_v2 = vpop.f32.mrb[124].mxu1 }
0x15e8   :  { %v8033_v6 = vadd.f32 %v7985_v13, %v15030_v44  ;;  %v8035_v57 = vadd.f32 %v8026_v2, %v16870_v23  ;;  %v7987_v61 = vpop.f32.mrb[181].mxu0  ;;  %v8028_v53 = vpop.f32.mrb[125].mxu1 }
0x15e9   :  { %v8034_v5 = vadd.f32 %v7987_v61, %v16871_v14  ;;  %v8036_v44 = vadd.f32 %v8028_v53, %v16872_v36  ;;  %v7989_v34 = vpop.f32.mrb[182].mxu0  ;;  %v8030_v29 = vpop.f32.mrb[126].mxu1  ;;  %v15304_v36 = vld [vmem:[%s16323_s6] ss:$16 sps:$4 sm:$0xff]  }
0x15ea   :  { %v10406_v49 = vmul.f32 -1.442695, %v8033_v6  ;;  %v7990_v51 = vpop.f32.mrb[183].mxu0  ;;  %v8031_v54 = vpop.f32.mrb[127].mxu1  ;;  %v10408_v30 = vmul.f32 -1.442695, %v8035_v57 }
0x15eb   :  { %v10407_v59 = vmul.f32 -1.442695, %v8034_v5  ;;  %v15322_v34 = vld [vmem:[%s16323_s6 + $0x2c] ss:$16 sps:$4 sm:$0xff]   ;;  %v15330_v29 = vld [vmem:[%s16323_s6 + $0x20] ss:$16 sps:$4 sm:$0xff]  }
0x15ec   :  { %11362 = vpow2.f32 %v10406_v49  ;;  %v15336_v49 = vld [vmem:[%s16323_s6 + $0x28] ss:$16 sps:$4 sm:$0xff]   ;;  %v15342_v51 = vld [vmem:[%s16323_s6 + $0x44] ss:$16 sps:$4 sm:$0xff]  }
0x15ed   :  { %11364 = vpow2.f32 %v10407_v59 }
0x15ee   :  { %11366 = vtanh.f32 %v8036_v44  ;;  %v15316_v44 = vld [vmem:[%s16323_s6 + $0x24] ss:$16 sps:$4 sm:$0xff]  }
0x15ef   :  { %11368 = vpow2.f32 %v10408_v30 }
0x15f6   :  { %v11363_v20 = vpop.eup %11362 }
0x15f7   :  { %v8046_v10 = vadd.f32 1.0, %v11363_v20  ;;  %v11365_v38 = vpop.eup %11364 }
0x15f8   :  { %v8047_v3 = vadd.f32 1.0, %v11365_v38  ;;  %v11367_v48 = vpop.eup %11366 }
0x15f9   :  { %11370 = vrcp.f32 %v8046_v10  ;;  %v11369_v52 = vpop.eup %11368 }
0x15fa   :  { %11372 = vrcp.f32 %v8047_v3  ;;  %v8048_v6 = vadd.f32 1.0, %v11369_v52 }
0x15fc   :  { %11374 = vrcp.f32 %v8048_v6 }
0x1603   :  { %v11371_v46 = vpop.eup %11370 }
0x1604   :  { %v8057_v13 = vmul.f32 %v11371_v46, %v11367_v48  ;;  %v11373_v2 = vpop.eup %11372 }
0x1605   :  { %v8056_v23 = vmul.f32 %v11373_v2, %v15234_v11  ;;  %v15310_v11 = vld [vmem:[%s16323_s6 + $0x8] ss:$16 sps:$4 sm:$0xff]  }
0x1606   :  { %v11375_v57 = vpop.eup %11374 }
0x1607   :  { %v15298_v61 = vadd.f32 %v8057_v13, %v8056_v23 }
0x1609   :  { %11376 = vtanh.f32 %v15298_v61 }
0x1613   :  { %v11377_v53 = vpop.eup %11376 }
0x1614   :  { %v8060_v14 = vmul.f32 %v11377_v53, %v11375_v57 }
0x1616   :  { %v8065_v5 = vpack.c.bf16 %v8060_v14, %v8060_v14  ;;  %v15408_v14 = vld [vmem:[%s16323_s6 + $0x40] ss:$16 sps:$4 sm:$0xff]  }
0x1618   :  { %8099 = vmatmul.mubr.bf16.vlgmr.msra.gmra.mrb[184].mxu0 %v8065_v5  ;;  %8140 = vmatmul.mubr.bf16.vlgmr.msra.gmra.mrb[128].mxu1 %v8065_v5  ;;  %v15414_v5 = vld [vmem:[%s16323_s6 + $0x48] ss:$16 sps:$4 sm:$0xff]  }
0x1619   :  { %8182 = vmatpush1.bf16.msra.mxu0 %v15304_v36  ;;  %8223 = vmatpush1.bf16.msra.mxu1 %v15310_v11 }
0x161a   :  { %8183 = vmatprep.subr.bf16.mxu0 %v15316_v44  ;;  %8224 = vmatprep.subr.bf16.mxu1 %v15322_v34 }
0x161b   :  { %8213 = vmatprep.mubr.bf16.mxu0 %v16618_v43  ;;  %8254 = vmatprep.mubr.bf16.mxu1 %v16618_v43 }
0x161d   :  { %8184 = vmatpush1.bf16.msra.mxu0 %v15330_v29  ;;  %8225 = vmatpush1.bf16.msra.mxu1 %v15336_v49 }
0x161e   :  { %8185 = vmatprep.subr.bf16.mxu0 %v15342_v51  ;;  %8226 = vmatprep.subr.bf16.mxu1 %v14514_v39 }
0x1621   :  { %8186 = vmatpush1.bf16.msra.mxu0 %v14509_v58  ;;  %8227 = vmatpush1.bf16.msra.mxu1 %v16844_v25 }
0x1622   :  { %8187 = vmatprep.subr.bf16.mxu0 %v16845_v63  ;;  %8228 = vmatprep.subr.bf16.mxu1 %v16846_v18  ;;  %v16873_v63 = vld [vmem:[#allocation44_spill] sm:$0xff]  ;;  %v16874_v18 = vld [vmem:[#allocation7_spill] sm:$0xff] }
0x1625   :  { %8188 = vmatpush1.bf16.msra.mxu0 %v16847_v26  ;;  %8229 = vmatpush1.bf16.msra.mxu1 %v16848_v37  ;;  %v16875_v26 = vsel %vm12692_vm6, %v16873_v63, %v16874_v18 }
0x1626   :  { %8189 = vmatprep.subr.bf16.mxu0 %v16849_v17  ;;  %8230 = vmatprep.subr.bf16.mxu1 %v16850_v24 }
0x1629   :  { %8190 = vmatpush1.bf16.msra.mxu0 %v16851_v15  ;;  %8231 = vmatpush1.bf16.msra.mxu1 %v16852_v9  ;;  %v16876_v15 = vld [vmem:[#allocation23_spill] sm:$0xff] }
0x162a   :  { %8191 = vmatprep.subr.bf16.mxu0 %v16853_v35  ;;  %8232 = vmatprep.subr.bf16.mxu1 %v16854_v12  ;;  %v16879_v12 = vld [vmem:[#allocation26_spill] sm:$0xff] }
0x162d   :  { %8192 = vmatpush1.bf16.msra.mxu0 %v16855_v55  ;;  %8233 = vmatpush1.bf16.msra.mxu1 %v16856_v56  ;;  %v16880_v55 = vld [vmem:[#allocation74_spill] sm:$0xff] }
0x162e   :  { %8193 = vmatprep.subr.bf16.mxu0 %v16857_v41  ;;  %8234 = vmatprep.subr.bf16.mxu1 %v16858_v1  ;;  %v16881_v56 = vsel %vm12696_vm7, %v16879_v12, %v16880_v55 }
0x1631   :  { %8194 = vmatpush1.bf16.msra.mxu0 %v16859_v62  ;;  %8235 = vmatpush1.bf16.msra.mxu1 %v16860_v32 }
0x1632   :  { %8195 = vmatprep.subr.bf16.mxu0 %v16861_v40  ;;  %8236 = vmatprep.subr.bf16.mxu1 %v16862_v8 }
0x1635   :  { %8196 = vmatpush1.bf16.msra.mxu0 %v16863_v19  ;;  %8237 = vmatpush1.bf16.msra.mxu1 %v16864_v21  ;;  %v16877_v21 = vld [vmem:[#allocation73_spill] sm:$0xff] }
0x1636   :  { %8296 = vmatprep.subr.bf16.mxu0 %v15272_v7  ;;  %8337 = vmatprep.subr.bf16.mxu1 %v15278_v16  ;;  %v16878_v9 = vsel %vm12455_vm5, %v16876_v15, %v16877_v21 }
0x16eb   :  { %v8100_v58 = vpop.f32.mrb[184].mxu0  ;;  %v8141_v39 = vpop.f32.mrb[128].mxu1 }
0x16ec   :  { %v8148_v25 = vadd.f32 %v8100_v58, %v15007_v50  ;;  %v8150_v37 = vadd.f32 %v8141_v39, %v16875_v26  ;;  %v8102_v17 = vpop.f32.mrb[185].mxu0  ;;  %v8143_v24 = vpop.f32.mrb[129].mxu1  ;;  %v15420_v58 = vld [vmem:[%s16323_s6 + $0x64] ss:$16 sps:$4 sm:$0xff]   ;;  %v15426_v39 = vld [vmem:[%s16323_s6 + $0x6c] ss:$16 sps:$4 sm:$0xff]  }
0x16ed   :  { %v8149_v35 = vadd.f32 %v8102_v17, %v16878_v9  ;;  %v8151_v50 = vadd.f32 %v8143_v24, %v16881_v56  ;;  %v8104_v41 = vpop.f32.mrb[186].mxu0  ;;  %v8145_v1 = vpop.f32.mrb[130].mxu1  ;;  %v15438_v26 = vld [vmem:[%s16323_s6 + $0x68] ss:$16 sps:$4 sm:$0xff]   ;;  %v15450_v17 = vld [vmem:[%s16323_s6 + $0x8c] ss:$16 sps:$4 sm:$0xff]  }
0x16ee   :  { %v10409_v62 = vmul.f32 -1.442695, %v8148_v25  ;;  %v8105_v32 = vpop.f32.mrb[187].mxu0  ;;  %v8146_v40 = vpop.f32.mrb[131].mxu1  ;;  %v10411_v19 = vmul.f32 -1.442695, %v8150_v37 }
0x16ef   :  { %v10410_v8 = vmul.f32 -1.442695, %v8149_v35  ;;  %v15432_v25 = vld [vmem:[%s16323_s6 + $0x60] ss:$16 sps:$4 sm:$0xff]   ;;  %v15444_v37 = vld [vmem:[%s16323_s6 + $0x84] ss:$16 sps:$4 sm:$0xff]  }
0x16f0   :  { %11378 = vpow2.f32 %v10409_v62  ;;  %v15456_v24 = vld [vmem:[%s16323_s6 + $0x80] ss:$16 sps:$4 sm:$0xff]   ;;  %v15462_v9 = vld [vmem:[%s16323_s6 + $0x88] ss:$16 sps:$4 sm:$0xff]   ;;  %v15468_v35 = vld [vmem:[%s16323_s6 + $0xa4] ss:$16 sps:$4 sm:$0xff]  }
0x16f1   :  { %11380 = vpow2.f32 %v10410_v8  ;;  %v15474_v56 = vld [vmem:[%s16323_s6 + $0xac] ss:$16 sps:$4 sm:$0xff]   ;;  %v15486_v41 = vld [vmem:[%s16323_s6 + $0xa8] ss:$16 sps:$4 sm:$0xff]   ;;  %v15492_v1 = vld [vmem:[%s16323_s6 + $0xc4] ss:$16 sps:$4 sm:$0xff]  }
0x16f2   :  { %11382 = vtanh.f32 %v8151_v50  ;;  %v15480_v50 = vld [vmem:[%s16323_s6 + $0xa0] ss:$16 sps:$4 sm:$0xff]   ;;  %v15498_v62 = vld [vmem:[%s16323_s6 + $0xcc] ss:$16 sps:$4 sm:$0xff]   ;;  %v15510_v40 = vld [vmem:[%s16323_s6 + $0xc8] ss:$16 sps:$4 sm:$0xff]  }
0x16f3   :  { %11384 = vpow2.f32 %v10411_v19  ;;  %v15504_v32 = vld [vmem:[%s16323_s6 + $0xc0] ss:$16 sps:$4 sm:$0xff]   ;;  %v15516_v8 = vld [vmem:[%s16323_s6 + $0xe4] ss:$16 sps:$4 sm:$0xff]   ;;  %v15522_v19 = vld [vmem:[%s16323_s6 + $0xec] ss:$16 sps:$4 sm:$0xff]  }
0x16fa   :  { %v11379_v54 = vpop.eup %11378 }
0x16fb   :  { %v8161_v59 = vadd.f32 1.0, %v11379_v54  ;;  %v11381_v30 = vpop.eup %11380  ;;  %v15528_v54 = vld [vmem:[%s16323_s6 + $0xe0] ss:$16 sps:$4 sm:$0xff]  }
0x16fc   :  { %v8162_v20 = vadd.f32 1.0, %v11381_v30  ;;  %v11383_v10 = vpop.eup %11382 }
0x16fd   :  { %11386 = vrcp.f32 %v8161_v59  ;;  %v11385_v38 = vpop.eup %11384  ;;  %v15534_v59 = vld [vmem:[%s16323_s6 + $0xe8] ss:$16 sps:$4 sm:$0xff]  }
0x16fe   :  { %11388 = vrcp.f32 %v8162_v20  ;;  %v8163_v46 = vadd.f32 1.0, %v11385_v38 }
0x1700   :  { %11390 = vrcp.f32 %v8163_v46 }
0x1707   :  { %v11387_v3 = vpop.eup %11386 }
0x1708   :  { %v8172_v48 = vmul.f32 %v11387_v3, %v11383_v10  ;;  %v11389_v52 = vpop.eup %11388  ;;  %v16882_v10 = vld [vmem:[#allocation65_spill] sm:$0xff] }
0x1709   :  { %v8171_v13 = vmul.f32 %v11389_v52, %v15298_v61  ;;  %v15402_v61 = vld [vmem:[%s16323_s6 + $0x4c] ss:$16 sps:$4 sm:$0xff]   ;;  %v16883_v3 = vld [vmem:[#allocation29_spill] sm:$0xff] }
0x170a   :  { %v11391_v6 = vpop.eup %11390 }
0x170b   :  { %v15387_v2 = vadd.f32 %v8172_v48, %v8171_v13  ;;  %v16884_v48 = vld [vmem:[#allocation64_spill] sm:$0xff] }
0x170c   :  { %v16885_v52 = vsel %vm12692_vm6, %v16883_v3, %v16884_v48 }
0x170d   :  { %11392 = vtanh.f32 %v15387_v2 }
0x1717   :  { %v11393_v23 = vpop.eup %11392 }
0x1718   :  { %v8175_v57 = vmul.f32 %v11393_v23, %v11391_v6  ;;  %v16886_v23 = vld [vmem:[#allocation59_spill] sm:$0xff] }
0x171a   :  { %v8180_v53 = vpack.c.bf16 %v8175_v57, %v8175_v57  ;;  %v16887_v57 = vld [vmem:[#allocation34_spill] sm:$0xff] }
0x171c   :  { %8214 = vmatmul.mubr.bf16.vlgmr.msra.gmra.mrb[188].mxu0 %v8180_v53  ;;  %8255 = vmatmul.mubr.bf16.vlgmr.msra.gmra.mrb[132].mxu1 %v8180_v53  ;;  %v16888_v53 = vsel %vm12455_vm5, %v16886_v23, %v16887_v57 }
0x171d   :  { %8297 = vmatpush1.bf16.msra.mxu0 %v15304_v36  ;;  %8338 = vmatpush1.bf16.msra.mxu1 %v15310_v11 }
0x171e   :  { %8298 = vmatprep.subr.bf16.mxu0 %v15316_v44  ;;  %8339 = vmatprep.subr.bf16.mxu1 %v15322_v34 }
0x171f   :  { %8328 = vmatprep.mubr.bf16.mxu0 %v16618_v43  ;;  %8369 = vmatprep.mubr.bf16.mxu1 %v16618_v43 }
0x1721   :  { %8299 = vmatpush1.bf16.msra.mxu0 %v15330_v29  ;;  %8340 = vmatpush1.bf16.msra.mxu1 %v15336_v49 }
0x1722   :  { %8300 = vmatprep.subr.bf16.mxu0 %v15342_v51  ;;  %8341 = vmatprep.subr.bf16.mxu1 %v15402_v61 }
0x1725   :  { %8301 = vmatpush1.bf16.msra.mxu0 %v15408_v14  ;;  %8342 = vmatpush1.bf16.msra.mxu1 %v15414_v5 }
0x1726   :  { %8302 = vmatprep.subr.bf16.mxu0 %v15420_v58  ;;  %8343 = vmatprep.subr.bf16.mxu1 %v15426_v39 }
0x1729   :  { %8303 = vmatpush1.bf16.msra.mxu0 %v15432_v25  ;;  %8344 = vmatpush1.bf16.msra.mxu1 %v15438_v26 }
0x172a   :  { %8304 = vmatprep.subr.bf16.mxu0 %v15444_v37  ;;  %8345 = vmatprep.subr.bf16.mxu1 %v15450_v17 }
0x172d   :  { %8305 = vmatpush1.bf16.msra.mxu0 %v15456_v24  ;;  %8346 = vmatpush1.bf16.msra.mxu1 %v15462_v9 }
0x172e   :  { %8306 = vmatprep.subr.bf16.mxu0 %v15468_v35  ;;  %8347 = vmatprep.subr.bf16.mxu1 %v15474_v56 }
0x1731   :  { %8307 = vmatpush1.bf16.msra.mxu0 %v15480_v50  ;;  %8348 = vmatpush1.bf16.msra.mxu1 %v15486_v41 }
0x1732   :  { %8308 = vmatprep.subr.bf16.mxu0 %v15492_v1  ;;  %8349 = vmatprep.subr.bf16.mxu1 %v15498_v62 }
0x1735   :  { %8309 = vmatpush1.bf16.msra.mxu0 %v15504_v32  ;;  %8350 = vmatpush1.bf16.msra.mxu1 %v15510_v40 }
0x1736   :  { %8310 = vmatprep.subr.bf16.mxu0 %v15516_v8  ;;  %8351 = vmatprep.subr.bf16.mxu1 %v15522_v19 }
0x1739   :  { %8311 = vmatpush1.bf16.msra.mxu0 %v15528_v54  ;;  %8352 = vmatpush1.bf16.msra.mxu1 %v15534_v59 }
0x173a   :  { %8411 = vmatprep.subr.bf16.mxu0 %v15272_v7  ;;  %8452 = vmatprep.subr.bf16.mxu1 %v15278_v16 }
0x17ef   :  { %v8215_v30 = vpop.f32.mrb[188].mxu0  ;;  %v8256_v20 = vpop.f32.mrb[132].mxu1 }
0x17f0   :  { %v8263_v38 = vadd.f32 %v8215_v30, %v16882_v10  ;;  %v8265_v46 = vadd.f32 %v8256_v20, %v16885_v52  ;;  %v8217_v13 = vpop.f32.mrb[189].mxu0  ;;  %v8258_v6 = vpop.f32.mrb[133].mxu1 }
0x17f1   :  { %v8264_v27 = vadd.f32 %v8217_v13, %v16888_v53  ;;  %v8266_v30 = vadd.f32 %v8258_v6, %v16891_v60  ;;  %v8219_v10 = vpop.f32.mrb[190].mxu0  ;;  %v8260_v33 = vpop.f32.mrb[134].mxu1 }
0x17f2   :  { %v10412_v31 = vmul.f32 -1.442695, %v8263_v38  ;;  %v8220_v47 = vpop.f32.mrb[191].mxu0  ;;  %v8261_v22 = vpop.f32.mrb[135].mxu1  ;;  %v10414_v52 = vmul.f32 -1.442695, %v8265_v46 }
0x17f3   :  { %v10413_v20 = vmul.f32 -1.442695, %v8264_v27  ;;  %v16894_v10 = vld [vmem:[#allocation38_spill] sm:$0xff] }
0x17f4   :  { %11394 = vpow2.f32 %v10412_v31 }
0x17f5   :  { %11396 = vpow2.f32 %v10413_v20 }
0x17f6   :  { %11398 = vtanh.f32 %v8266_v30  ;;  %v16893_v30 = vld [vmem:[#allocation28_spill] sm:$0xff] }
0x17f7   :  { %11400 = vpow2.f32 %v10414_v52  ;;  %v16895_v20 = vsel %vm12692_vm6, %v16893_v30, %v16894_v10 }
0x17fe   :  { %v11395_v12 = vpop.eup %11394 }
0x17ff   :  { %v8276_v55 = vadd.f32 1.0, %v11395_v12  ;;  %v11397_v15 = vpop.eup %11396 }
0x1800   :  { %v8277_v13 = vadd.f32 1.0, %v11397_v15  ;;  %v11399_v53 = vpop.eup %11398 }
0x1801   :  { %11402 = vrcp.f32 %v8276_v55  ;;  %v11401_v21 = vpop.eup %11400  ;;  %v16892_v55 = vld [vmem:[#allocation35_spill] sm:$0xff] }
0x1802   :  { %11404 = vrcp.f32 %v8277_v13  ;;  %v8278_v38 = vadd.f32 1.0, %v11401_v21 }
0x1804   :  { %11406 = vrcp.f32 %v8278_v38 }
0x180b   :  { %v11403_v60 = vpop.eup %11402 }
0x180c   :  { %v8287_v6 = vmul.f32 %v11403_v60, %v11399_v53  ;;  %v11405_v33 = vpop.eup %11404  ;;  %v16896_v60 = vld [vmem:[#allocation10_spill] sm:$0xff] }
0x180d   :  { %v8286_v47 = vmul.f32 %v11405_v33, %v15387_v2 }
0x180e   :  { %v11407_v31 = vpop.eup %11406 }
0x180f   :  { %v15556_v22 = vadd.f32 %v8287_v6, %v8286_v47  ;;  %v16897_v6 = vld [vmem:[#allocation36_spill] sm:$0xff] }
0x1810   :  { %v16898_v33 = vsel %vm12455_vm5, %v16896_v60, %v16897_v6  ;;  %v16899_v47 = vld [vmem:[#allocation60_spill] sm:$0xff] }
0x1811   :  { %11408 = vtanh.f32 %v15556_v22 }
0x181b   :  { %v11409_v27 = vpop.eup %11408 }
0x181c   :  { %v8290_v12 = vmul.f32 %v11409_v27, %v11407_v31  ;;  %v16900_v31 = vld [vmem:[#allocation67_spill] sm:$0xff] }
0x181d   :  { %v16901_v27 = vsel %vm12696_vm7, %v16899_v47, %v16900_v31 }
0x181e   :  { %v8295_v46 = vpack.c.bf16 %v8290_v12, %v8290_v12 }
0x1820   :  { %8329 = vmatmul.mubr.bf16.vlgmr.msra.gmra.mrb[192].mxu0 %v8295_v46  ;;  %8370 = vmatmul.mubr.bf16.vlgmr.msra.gmra.mrb[136].mxu1 %v8295_v46 }
0x1821   :  { %8412 = vmatpush1.bf16.msra.mxu0 %v15304_v36  ;;  %8453 = vmatpush1.bf16.msra.mxu1 %v15310_v11 }
0x1822   :  { %8413 = vmatprep.subr.bf16.mxu0 %v15316_v44  ;;  %8454 = vmatprep.subr.bf16.mxu1 %v15322_v34 }
0x1823   :  { %8443 = vmatprep.mubr.bf16.mxu0 %v16618_v43  ;;  %8484 = vmatprep.mubr.bf16.mxu1 %v16618_v43 }
0x1825   :  { %8414 = vmatpush1.bf16.msra.mxu0 %v15330_v29  ;;  %8455 = vmatpush1.bf16.msra.mxu1 %v15336_v49 }
0x1826   :  { %8415 = vmatprep.subr.bf16.mxu0 %v15342_v51  ;;  %8456 = vmatprep.subr.bf16.mxu1 %v15402_v61 }
0x1829   :  { %8416 = vmatpush1.bf16.msra.mxu0 %v15408_v14  ;;  %8457 = vmatpush1.bf16.msra.mxu1 %v15414_v5 }
0x182a   :  { %8417 = vmatprep.subr.bf16.mxu0 %v15420_v58  ;;  %8458 = vmatprep.subr.bf16.mxu1 %v15426_v39 }
0x182d   :  { %8418 = vmatpush1.bf16.msra.mxu0 %v15432_v25  ;;  %8459 = vmatpush1.bf16.msra.mxu1 %v15438_v26 }
0x182e   :  { %8419 = vmatprep.subr.bf16.mxu0 %v15444_v37  ;;  %8460 = vmatprep.subr.bf16.mxu1 %v15450_v17 }
0x1831   :  { %8420 = vmatpush1.bf16.msra.mxu0 %v15456_v24  ;;  %8461 = vmatpush1.bf16.msra.mxu1 %v15462_v9 }
0x1832   :  { %8421 = vmatprep.subr.bf16.mxu0 %v15468_v35  ;;  %8462 = vmatprep.subr.bf16.mxu1 %v15474_v56 }
0x1835   :  { %8422 = vmatpush1.bf16.msra.mxu0 %v15480_v50  ;;  %8463 = vmatpush1.bf16.msra.mxu1 %v15486_v41 }
0x1836   :  { %8423 = vmatprep.subr.bf16.mxu0 %v15492_v1  ;;  %8464 = vmatprep.subr.bf16.mxu1 %v15498_v62 }
0x1839   :  { %8424 = vmatpush1.bf16.msra.mxu0 %v15504_v32  ;;  %8465 = vmatpush1.bf16.msra.mxu1 %v15510_v40 }
0x183a   :  { %8425 = vmatprep.subr.bf16.mxu0 %v15516_v8  ;;  %8466 = vmatprep.subr.bf16.mxu1 %v15522_v19 }
0x183d   :  { %8426 = vmatpush1.bf16.msra.mxu0 %v15528_v54  ;;  %8467 = vmatpush1.bf16.msra.mxu1 %v15534_v59 }
0x183e   :  { %8526 = vmatprep.subr.bf16.mxu0 %v15272_v7  ;;  %8567 = vmatprep.subr.bf16.mxu1 %v15278_v16 }
0x18f3   :  { %v8330_v15 = vpop.f32.mrb[192].mxu0  ;;  %v8371_v21 = vpop.f32.mrb[136].mxu1 }
0x18f4   :  { %v8378_v2 = vadd.f32 %v8330_v15, %v16892_v55  ;;  %v8380_v52 = vadd.f32 %v8371_v21, %v16895_v20  ;;  %v8332_v13 = vpop.f32.mrb[193].mxu0  ;;  %v8373_v53 = vpop.f32.mrb[137].mxu1 }
0x18f5   :  { %v8379_v38 = vadd.f32 %v8332_v13, %v16898_v33  ;;  %v8381_v12 = vadd.f32 %v8373_v53, %v16901_v27  ;;  %v8334_v46 = vpop.f32.mrb[194].mxu0  ;;  %v8375_v15 = vpop.f32.mrb[138].mxu1 }
0x18f6   :  { %v10415_v55 = vmul.f32 -1.442695, %v8378_v2  ;;  %v8335_v63 = vpop.f32.mrb[195].mxu0  ;;  %v8376_v18 = vpop.f32.mrb[139].mxu1  ;;  %v10417_v20 = vmul.f32 -1.442695, %v8380_v52 }
0x18f7   :  { %v10416_v21 = vmul.f32 -1.442695, %v8379_v38  ;;  %v16903_v15 = vld [vmem:[#allocation42_spill] sm:$0xff] }
0x18f8   :  { %11410 = vpow2.f32 %v10415_v55  ;;  %v16904_v55 = vld [vmem:[#allocation71_spill] sm:$0xff] }
0x18f9   :  { %11412 = vpow2.f32 %v10416_v21  ;;  %v16905_v21 = vsel %vm12692_vm6, %v16903_v15, %v16904_v55 }
0x18fa   :  { %11414 = vtanh.f32 %v8381_v12 }
0x18fb   :  { %11416 = vpow2.f32 %v10417_v20 }
0x1902   :  { %v11411_v42 = vpop.eup %11410 }
0x1903   :  { %v8391_v0 = vadd.f32 1.0, %v11411_v42  ;;  %v11413_v23 = vpop.eup %11412 }
0x1904   :  { %v8392_v13 = vadd.f32 1.0, %v11413_v23  ;;  %v11415_v33 = vpop.eup %11414 }
0x1905   :  { %11418 = vrcp.f32 %v8391_v0  ;;  %v11417_v57 = vpop.eup %11416 }
0x1906   :  { %11420 = vrcp.f32 %v8392_v13  ;;  %v8393_v2 = vadd.f32 1.0, %v11417_v57  ;;  %v16902_v57 = vld [vmem:[#allocation32_spill] sm:$0xff] }
0x1908   :  { %11422 = vrcp.f32 %v8393_v2 }
0x190f   :  { %v11419_v53 = vpop.eup %11418 }
0x1910   :  { %v8402_v27 = vmul.f32 %v11419_v53, %v11415_v33  ;;  %v11421_v46 = vpop.eup %11420  ;;  %v16906_v53 = vld [vmem:[#allocation31_spill] sm:$0xff] }
0x1911   :  { %v8401_v63 = vmul.f32 %v11421_v46, %v15556_v22 }
0x1912   :  { %v11423_v42 = vpop.eup %11422 }
0x1913   :  { %v15610_v18 = vadd.f32 %v8402_v27, %v8401_v63  ;;  %v16907_v27 = vld [vmem:[#allocation63_spill] sm:$0xff]  ;;  %v16909_v63 = vld [vmem:[#allocation61_spill] sm:$0xff] }
0x1914   :  { %v16908_v46 = vsel %vm12455_vm5, %v16906_v53, %v16907_v27 }
0x1915   :  { %11424 = vtanh.f32 %v15610_v18 }
0x191f   :  { %v11425_v52 = vpop.eup %11424 }
0x1920   :  { %v8405_v38 = vmul.f32 %v11425_v52, %v11423_v42  ;;  %v16910_v42 = vld [vmem:[#allocation37_spill] sm:$0xff] }
0x1921   :  { %v16911_v52 = vsel %vm12696_vm7, %v16909_v63, %v16910_v42 }
0x1922   :  { %v8410_v12 = vpack.c.bf16 %v8405_v38, %v8405_v38 }
0x1924   :  { %8444 = vmatmul.mubr.bf16.vlgmr.msra.gmra.mrb[196].mxu0 %v8410_v12  ;;  %8485 = vmatmul.mubr.bf16.vlgmr.msra.gmra.mrb[140].mxu1 %v8410_v12 }
0x1925   :  { %8527 = vmatpush1.bf16.msra.mxu0 %v15304_v36  ;;  %8568 = vmatpush1.bf16.msra.mxu1 %v15310_v11 }
0x1926   :  { %8528 = vmatprep.subr.bf16.mxu0 %v15316_v44  ;;  %8569 = vmatprep.subr.bf16.mxu1 %v15322_v34 }
0x1927   :  { %8558 = vmatprep.mubr.bf16.mxu0 %v16618_v43  ;;  %8599 = vmatprep.mubr.bf16.mxu1 %v16618_v43 }
0x1929   :  { %8529 = vmatpush1.bf16.msra.mxu0 %v15330_v29  ;;  %8570 = vmatpush1.bf16.msra.mxu1 %v15336_v49 }
0x192a   :  { %8530 = vmatprep.subr.bf16.mxu0 %v15342_v51  ;;  %8571 = vmatprep.subr.bf16.mxu1 %v15402_v61 }
0x192d   :  { %8531 = vmatpush1.bf16.msra.mxu0 %v15408_v14  ;;  %8572 = vmatpush1.bf16.msra.mxu1 %v15414_v5 }
0x192e   :  { %8532 = vmatprep.subr.bf16.mxu0 %v15420_v58  ;;  %8573 = vmatprep.subr.bf16.mxu1 %v15426_v39 }
0x1931   :  { %8533 = vmatpush1.bf16.msra.mxu0 %v15432_v25  ;;  %8574 = vmatpush1.bf16.msra.mxu1 %v15438_v26 }
0x1932   :  { %8534 = vmatprep.subr.bf16.mxu0 %v15444_v37  ;;  %8575 = vmatprep.subr.bf16.mxu1 %v15450_v17 }
0x1935   :  { %8535 = vmatpush1.bf16.msra.mxu0 %v15456_v24  ;;  %8576 = vmatpush1.bf16.msra.mxu1 %v15462_v9 }
0x1936   :  { %8536 = vmatprep.subr.bf16.mxu0 %v15468_v35  ;;  %8577 = vmatprep.subr.bf16.mxu1 %v15474_v56 }
0x1939   :  { %8537 = vmatpush1.bf16.msra.mxu0 %v15480_v50  ;;  %8578 = vmatpush1.bf16.msra.mxu1 %v15486_v41 }
0x193a   :  { %8538 = vmatprep.subr.bf16.mxu0 %v15492_v1  ;;  %8579 = vmatprep.subr.bf16.mxu1 %v15498_v62 }
0x193d   :  { %8539 = vmatpush1.bf16.msra.mxu0 %v15504_v32  ;;  %8580 = vmatpush1.bf16.msra.mxu1 %v15510_v40 }
0x193e   :  { %8540 = vmatprep.subr.bf16.mxu0 %v15516_v8  ;;  %8581 = vmatprep.subr.bf16.mxu1 %v15522_v19 }
0x1941   :  { %8541 = vmatpush1.bf16.msra.mxu0 %v15528_v54  ;;  %8582 = vmatpush1.bf16.msra.mxu1 %v15534_v59 }
0x1942   :  { %8641 = vmatprep.subr.bf16.mxu0 %v15272_v7  ;;  %8682 = vmatprep.subr.bf16.mxu1 %v15278_v16 }
0x19f7   :  { %v8445_v0 = vpop.f32.mrb[196].mxu0  ;;  %v8486_v23 = vpop.f32.mrb[140].mxu1 }
0x19f8   :  { %v8493_v22 = vadd.f32 %v8445_v0, %v16902_v57  ;;  %v8495_v20 = vadd.f32 %v8486_v23, %v16905_v21  ;;  %v8447_v13 = vpop.f32.mrb[197].mxu0  ;;  %v8488_v33 = vpop.f32.mrb[141].mxu1 }
0x19f9   :  { %v8494_v2 = vadd.f32 %v8447_v13, %v16908_v46  ;;  %v8496_v38 = vadd.f32 %v8488_v33, %v16911_v52  ;;  %v8449_v12 = vpop.f32.mrb[198].mxu0  ;;  %v8490_v0 = vpop.f32.mrb[142].mxu1 }
0x19fa   :  { %v10418_v57 = vmul.f32 -1.442695, %v8493_v22  ;;  %v8450_v3 = vpop.f32.mrb[199].mxu0  ;;  %v8491_v48 = vpop.f32.mrb[143].mxu1  ;;  %v10420_v21 = vmul.f32 -1.442695, %v8495_v20 }
0x19fb   :  { %v10419_v23 = vmul.f32 -1.442695, %v8494_v2  ;;  %v16913_v0 = vld [vmem:[#allocation39_spill] sm:$0xff] }
0x19fc   :  { %11426 = vpow2.f32 %v10418_v57  ;;  %v16914_v57 = vld [vmem:[#allocation62_spill] sm:$0xff] }
0x19fd   :  { %11428 = vpow2.f32 %v10419_v23  ;;  %v16915_v23 = vsel %vm12692_vm6, %v16913_v0, %v16914_v57 }
0x19fe   :  { %11430 = vtanh.f32 %v8496_v38 }
0x19ff   :  { %11432 = vpow2.f32 %v10420_v21 }
0x1a06   :  { %v11427_v47 = vpop.eup %11426 }
0x1a07   :  { %v8506_v31 = vadd.f32 1.0, %v11427_v47  ;;  %v11429_v60 = vpop.eup %11428 }
0x1a08   :  { %v8507_v13 = vadd.f32 1.0, %v11429_v60  ;;  %v11431_v46 = vpop.eup %11430 }
0x1a09   :  { %11434 = vrcp.f32 %v8506_v31  ;;  %v11433_v6 = vpop.eup %11432  ;;  %v16912_v31 = vld [vmem:[#allocation33_spill] sm:$0xff] }
0x1a0a   :  { %11436 = vrcp.f32 %v8507_v13  ;;  %v8508_v22 = vadd.f32 1.0, %v11433_v6 }
0x1a0c   :  { %11438 = vrcp.f32 %v8508_v22 }
0x1a13   :  { %v11435_v33 = vpop.eup %11434 }
0x1a14   :  { %v8517_v52 = vmul.f32 %v11435_v33, %v11431_v46  ;;  %v11437_v12 = vpop.eup %11436  ;;  %v16916_v33 = vld [vmem:[#allocation30_spill] sm:$0xff] }
0x1a15   :  { %v8516_v3 = vmul.f32 %v11437_v12, %v15610_v18 }
0x1a16   :  { %v11439_v47 = vpop.eup %11438 }
0x1a17   :  { %v15664_v48 = vadd.f32 %v8517_v52, %v8516_v3  ;;  %v16917_v52 = vld [vmem:[#allocation40_spill] sm:$0xff]  ;;  %v16919_v3 = vld [vmem:[#allocation9_spill] sm:$0xff] }
0x1a18   :  { %v16918_v12 = vsel %vm12455_vm5, %v16916_v33, %v16917_v52 }
0x1a19   :  { %11440 = vtanh.f32 %v15664_v48 }
0x1a23   :  { %v11441_v20 = vpop.eup %11440 }
0x1a24   :  { %v8520_v2 = vmul.f32 %v11441_v20, %v11439_v47  ;;  %v16920_v47 = vld [vmem:[#allocation72_spill] sm:$0xff] }
0x1a25   :  { %v16921_v20 = vsel %vm12696_vm7, %v16919_v3, %v16920_v47 }
0x1a26   :  { %v8525_v38 = vpack.c.bf16 %v8520_v2, %v8520_v2 }
0x1a28   :  { %8559 = vmatmul.mubr.bf16.vlgmr.msra.gmra.mrb[200].mxu0 %v8525_v38  ;;  %8600 = vmatmul.mubr.bf16.vlgmr.msra.gmra.mrb[144].mxu1 %v8525_v38 }
0x1a29   :  { %8642 = vmatpush1.bf16.msra.mxu0 %v15304_v36  ;;  %8683 = vmatpush1.bf16.msra.mxu1 %v15310_v11 }
0x1a2a   :  { %8643 = vmatprep.subr.bf16.mxu0 %v15316_v44  ;;  %8684 = vmatprep.subr.bf16.mxu1 %v15322_v34 }
0x1a2b   :  { %8673 = vmatprep.mubr.bf16.mxu0 %v16618_v43  ;;  %8714 = vmatprep.mubr.bf16.mxu1 %v16618_v43 }
0x1a2d   :  { %8644 = vmatpush1.bf16.msra.mxu0 %v15330_v29  ;;  %8685 = vmatpush1.bf16.msra.mxu1 %v15336_v49 }
0x1a2e   :  { %8645 = vmatprep.subr.bf16.mxu0 %v15342_v51  ;;  %8686 = vmatprep.subr.bf16.mxu1 %v15402_v61 }
0x1a31   :  { %8646 = vmatpush1.bf16.msra.mxu0 %v15408_v14  ;;  %8687 = vmatpush1.bf16.msra.mxu1 %v15414_v5 }
0x1a32   :  { %8647 = vmatprep.subr.bf16.mxu0 %v15420_v58  ;;  %8688 = vmatprep.subr.bf16.mxu1 %v15426_v39 }
0x1a35   :  { %8648 = vmatpush1.bf16.msra.mxu0 %v15432_v25  ;;  %8689 = vmatpush1.bf16.msra.mxu1 %v15438_v26 }
0x1a36   :  { %8649 = vmatprep.subr.bf16.mxu0 %v15444_v37  ;;  %8690 = vmatprep.subr.bf16.mxu1 %v15450_v17 }
0x1a39   :  { %8650 = vmatpush1.bf16.msra.mxu0 %v15456_v24  ;;  %8691 = vmatpush1.bf16.msra.mxu1 %v15462_v9 }
0x1a3a   :  { %8651 = vmatprep.subr.bf16.mxu0 %v15468_v35  ;;  %8692 = vmatprep.subr.bf16.mxu1 %v15474_v56 }
0x1a3d   :  { %8652 = vmatpush1.bf16.msra.mxu0 %v15480_v50  ;;  %8693 = vmatpush1.bf16.msra.mxu1 %v15486_v41 }
0x1a3e   :  { %8653 = vmatprep.subr.bf16.mxu0 %v15492_v1  ;;  %8694 = vmatprep.subr.bf16.mxu1 %v15498_v62 }
0x1a41   :  { %8654 = vmatpush1.bf16.msra.mxu0 %v15504_v32  ;;  %8695 = vmatpush1.bf16.msra.mxu1 %v15510_v40 }
0x1a42   :  { %8655 = vmatprep.subr.bf16.mxu0 %v15516_v8  ;;  %8696 = vmatprep.subr.bf16.mxu1 %v15522_v19 }
0x1a45   :  { %8656 = vmatpush1.bf16.msra.mxu0 %v15528_v54  ;;  %8697 = vmatpush1.bf16.msra.mxu1 %v15534_v59 }
0x1a46   :  { %8756 = vmatprep.subr.bf16.mxu0 %v15272_v7  ;;  %8797 = vmatprep.subr.bf16.mxu1 %v15278_v16 }
0x1afb   :  { %v8560_v60 = vpop.f32.mrb[200].mxu0  ;;  %v8601_v6 = vpop.f32.mrb[144].mxu1 }
0x1afc   :  { %v8608_v18 = vadd.f32 %v8560_v60, %v16912_v31  ;;  %v8610_v21 = vadd.f32 %v8601_v6, %v16915_v23  ;;  %v8562_v13 = vpop.f32.mrb[201].mxu0  ;;  %v8603_v46 = vpop.f32.mrb[145].mxu1 }
0x1afd   :  { %v8609_v22 = vadd.f32 %v8562_v13, %v16918_v12  ;;  %v8611_v2 = vadd.f32 %v8603_v46, %v16921_v20  ;;  %v8564_v38 = vpop.f32.mrb[202].mxu0  ;;  %v8605_v60 = vpop.f32.mrb[146].mxu1 }
0x1afe   :  { %v10421_v31 = vmul.f32 -1.442695, %v8608_v18  ;;  %v8565_v30 = vpop.f32.mrb[203].mxu0  ;;  %v8606_v10 = vpop.f32.mrb[147].mxu1  ;;  %v10423_v23 = vmul.f32 -1.442695, %v8610_v21  ;;  %v16923_v60 = vsel %vm12692_vm6, %v16914_v57, %v16913_v0 }
0x1aff   :  { %v10422_v6 = vmul.f32 -1.442695, %v8609_v22 }
0x1b00   :  { %11442 = vpow2.f32 %v10421_v31 }
0x1b01   :  { %11444 = vpow2.f32 %v10422_v6 }
0x1b02   :  { %11446 = vtanh.f32 %v8611_v2 }
0x1b03   :  { %11448 = vpow2.f32 %v10423_v23 }
0x1b0a   :  { %v11443_v63 = vpop.eup %11442 }
0x1b0b   :  { %v8621_v42 = vadd.f32 1.0, %v11443_v63  ;;  %v11445_v53 = vpop.eup %11444 }
0x1b0c   :  { %v8622_v13 = vadd.f32 1.0, %v11445_v53  ;;  %v11447_v12 = vpop.eup %11446 }
0x1b0d   :  { %11450 = vrcp.f32 %v8621_v42  ;;  %v11449_v27 = vpop.eup %11448  ;;  %v16922_v42 = vld [vmem:[#allocation8_spill] sm:$0xff] }
0x1b0e   :  { %11452 = vrcp.f32 %v8622_v13  ;;  %v8623_v18 = vadd.f32 1.0, %v11449_v27  ;;  %v16924_v13 = vsel %vm12455_vm5, %v16917_v52, %v16916_v33 }
0x1b10   :  { %11454 = vrcp.f32 %v8623_v18 }
0x1b17   :  { %v11451_v46 = vpop.eup %11450 }
0x1b18   :  { %v8632_v20 = vmul.f32 %v11451_v46, %v11447_v12  ;;  %v11453_v38 = vpop.eup %11452 }
0x1b19   :  { %v8631_v30 = vmul.f32 %v11453_v38, %v15664_v48 }
0x1b1a   :  { %v11455_v63 = vpop.eup %11454 }
0x1b1b   :  { %v15718_v10 = vadd.f32 %v8632_v20, %v8631_v30 }
0x1b1d   :  { %11456 = vtanh.f32 %v15718_v10 }
0x1b27   :  { %v11457_v21 = vpop.eup %11456 }
0x1b28   :  { %v8635_v22 = vmul.f32 %v11457_v21, %v11455_v63 }
0x1b2a   :  { %v8640_v2 = vpack.c.bf16 %v8635_v22, %v8635_v22 }
0x1b2c   :  { %8674 = vmatmul.mubr.bf16.vlgmr.msra.gmra.mrb[204].mxu0 %v8640_v2  ;;  %8715 = vmatmul.mubr.bf16.vlgmr.msra.gmra.mrb[148].mxu1 %v8640_v2 }
0x1b2d   :  { %8757 = vmatpush1.bf16.msra.mxu0 %v15304_v36  ;;  %8798 = vmatpush1.bf16.msra.mxu1 %v15310_v11 }
0x1b2e   :  { %8758 = vmatprep.subr.bf16.mxu0 %v15316_v44  ;;  %8799 = vmatprep.subr.bf16.mxu1 %v15322_v34 }
0x1b2f   :  { %8788 = vmatprep.mubr.bf16.mxu0 %v16618_v43  ;;  %8829 = vmatprep.mubr.bf16.mxu1 %v16618_v43 }
0x1b31   :  { %8759 = vmatpush1.bf16.msra.mxu0 %v15330_v29  ;;  %8800 = vmatpush1.bf16.msra.mxu1 %v15336_v49 }
0x1b32   :  { %8760 = vmatprep.subr.bf16.mxu0 %v15342_v51  ;;  %8801 = vmatprep.subr.bf16.mxu1 %v15402_v61 }
0x1b35   :  { %8761 = vmatpush1.bf16.msra.mxu0 %v15408_v14  ;;  %8802 = vmatpush1.bf16.msra.mxu1 %v15414_v5 }
0x1b36   :  { %8762 = vmatprep.subr.bf16.mxu0 %v15420_v58  ;;  %8803 = vmatprep.subr.bf16.mxu1 %v15426_v39 }
0x1b39   :  { %8763 = vmatpush1.bf16.msra.mxu0 %v15432_v25  ;;  %8804 = vmatpush1.bf16.msra.mxu1 %v15438_v26 }
0x1b3a   :  { %8764 = vmatprep.subr.bf16.mxu0 %v15444_v37  ;;  %8805 = vmatprep.subr.bf16.mxu1 %v15450_v17 }
0x1b3d   :  { %8765 = vmatpush1.bf16.msra.mxu0 %v15456_v24  ;;  %8806 = vmatpush1.bf16.msra.mxu1 %v15462_v9 }
0x1b3e   :  { %8766 = vmatprep.subr.bf16.mxu0 %v15468_v35  ;;  %8807 = vmatprep.subr.bf16.mxu1 %v15474_v56 }
0x1b41   :  { %8767 = vmatpush1.bf16.msra.mxu0 %v15480_v50  ;;  %8808 = vmatpush1.bf16.msra.mxu1 %v15486_v41 }
0x1b42   :  { %8768 = vmatprep.subr.bf16.mxu0 %v15492_v1  ;;  %8809 = vmatprep.subr.bf16.mxu1 %v15498_v62 }
0x1b45   :  { %8769 = vmatpush1.bf16.msra.mxu0 %v15504_v32  ;;  %8810 = vmatpush1.bf16.msra.mxu1 %v15510_v40 }
0x1b46   :  { %8770 = vmatprep.subr.bf16.mxu0 %v15516_v8  ;;  %8811 = vmatprep.subr.bf16.mxu1 %v15522_v19 }
0x1b49   :  { %8771 = vmatpush1.bf16.msra.mxu0 %v15528_v54  ;;  %8812 = vmatpush1.bf16.msra.mxu1 %v15534_v59 }
0x1b4a   :  { %8871 = vmatprep.subr.bf16.mxu0 %v15272_v7  ;;  %8912 = vmatprep.subr.bf16.mxu1 %v15278_v16  ;;  %v16925_v16 = vsel %vm12696_vm7, %v16920_v47, %v16919_v3 }
0x1bff   :  { %v8675_v53 = vpop.f32.mrb[204].mxu0  ;;  %v8716_v27 = vpop.f32.mrb[148].mxu1 }
0x1c00   :  { %v8723_v48 = vadd.f32 %v8675_v53, %v16922_v42  ;;  %v8725_v31 = vadd.f32 %v8716_v27, %v16923_v60  ;;  %v8677_v6 = vpop.f32.mrb[205].mxu0  ;;  %v8718_v23 = vpop.f32.mrb[149].mxu1 }
0x1c01   :  { %v8724_v7 = vadd.f32 %v8677_v6, %v16924_v13  ;;  %v8726_v12 = vadd.f32 %v8718_v23, %v16925_v16  ;;  %v8679_v46 = vpop.f32.mrb[206].mxu0  ;;  %v8720_v20 = vpop.f32.mrb[150].mxu1  ;;  %v16928_v16 = vld [vmem:[#allocation63_spill] sm:$0xff] }
0x1c02   :  { %v10424_v38 = vmul.f32 -1.442695, %v8723_v48  ;;  %v8680_v18 = vpop.f32.mrb[207].mxu0  ;;  %v8721_v0 = vpop.f32.mrb[151].mxu1  ;;  %v10426_v30 = vmul.f32 -1.442695, %v8725_v31 }
0x1c03   :  { %v10425_v57 = vmul.f32 -1.442695, %v8724_v7  ;;  %v16932_v18 = vld [vmem:[#allocation61_spill] sm:$0xff] }
0x1c04   :  { %11458 = vpow2.f32 %v10424_v38  ;;  %v16931_v38 = vld [vmem:[#allocation37_spill] sm:$0xff] }
0x1c05   :  { %11460 = vpow2.f32 %v10425_v57  ;;  %v16933_v0 = vsel %vm12696_vm7, %v16931_v38, %v16932_v18 }
0x1c06   :  { %11462 = vtanh.f32 %v8726_v12  ;;  %v16929_v12 = vld [vmem:[#allocation31_spill] sm:$0xff] }
0x1c07   :  { %11464 = vpow2.f32 %v10426_v30  ;;  %v16930_v46 = vsel %vm12455_vm5, %v16928_v16, %v16929_v12  ;;  %v15868_v16 = vld [vmem:[%s16323_s6 + $0x20] ss:$16 sps:$4 sm:$0xff]   ;;  %v15874_v12 = vld [vmem:[%s16323_s6 + $0x28] ss:$16 sps:$4 sm:$0xff]  }
0x1c0e   :  { %v11459_v63 = vpop.eup %11458 }
0x1c0f   :  { %v8736_v21 = vadd.f32 1.0, %v11459_v63  ;;  %v11461_v33 = vpop.eup %11460 }
0x1c10   :  { %v8737_v52 = vadd.f32 1.0, %v11461_v33  ;;  %v11463_v22 = vpop.eup %11462 }
0x1c11   :  { %11466 = vrcp.f32 %v8736_v21  ;;  %v11465_v3 = vpop.eup %11464 }
0x1c12   :  { %11468 = vrcp.f32 %v8737_v52  ;;  %v8738_v27 = vadd.f32 1.0, %v11465_v3 }
0x1c14   :  { %11470 = vrcp.f32 %v8738_v27 }
0x1c1b   :  { %v11467_v47 = vpop.eup %11466 }
0x1c1c   :  { %v8747_v2 = vmul.f32 %v11467_v47, %v11463_v22  ;;  %v11469_v53 = vpop.eup %11468 }
0x1c1d   :  { %v8746_v42 = vmul.f32 %v11469_v53, %v15718_v10 }
0x1c1e   :  { %v11471_v60 = vpop.eup %11470 }
0x1c1f   :  { %v15772_v48 = vadd.f32 %v8747_v2, %v8746_v42 }
0x1c21   :  { %11472 = vtanh.f32 %v15772_v48 }
0x1c2b   :  { %v11473_v31 = vpop.eup %11472 }
0x1c2c   :  { %v8750_v6 = vmul.f32 %v11473_v31, %v11471_v60 }
0x1c2e   :  { %v8755_v23 = vpack.c.bf16 %v8750_v6, %v8750_v6 }
0x1c30   :  { %8789 = vmatmul.mubr.bf16.vlgmr.msra.gmra.mrb[208].mxu0 %v8755_v23  ;;  %8830 = vmatmul.mubr.bf16.vlgmr.msra.gmra.mrb[152].mxu1 %v8755_v23 }
0x1c31   :  { %8872 = vmatpush1.bf16.msra.mxu0 %v15304_v36  ;;  %8913 = vmatpush1.bf16.msra.mxu1 %v15310_v11  ;;  %v15810_v36 = vld [vmem:[%s16323_s6 + $0x4] ss:$16 sps:$4 sm:$0xff]   ;;  %v15816_v11 = vld [vmem:[%s16323_s6 + $0xc] ss:$16 sps:$4 sm:$0xff]  }
0x1c32   :  { %8873 = vmatprep.subr.bf16.mxu0 %v15316_v44  ;;  %8914 = vmatprep.subr.bf16.mxu1 %v15322_v34 }
0x1c33   :  { %8903 = vmatprep.mubr.bf16.mxu0 %v16618_v43  ;;  %8944 = vmatprep.mubr.bf16.mxu1 %v16618_v43 }
0x1c35   :  { %8874 = vmatpush1.bf16.msra.mxu0 %v15330_v29  ;;  %8915 = vmatpush1.bf16.msra.mxu1 %v15336_v49  ;;  %v16926_v29 = vld [vmem:[#allocation66_spill] sm:$0xff] }
0x1c36   :  { %8875 = vmatprep.subr.bf16.mxu0 %v15342_v51  ;;  %8916 = vmatprep.subr.bf16.mxu1 %v15402_v61  ;;  %v16927_v51 = vsel %vm12692_vm6, %v16904_v55, %v16903_v15 }
0x1c39   :  { %8876 = vmatpush1.bf16.msra.mxu0 %v15408_v14  ;;  %8917 = vmatpush1.bf16.msra.mxu1 %v15414_v5 }
0x1c3a   :  { %8877 = vmatprep.subr.bf16.mxu0 %v15420_v58  ;;  %8918 = vmatprep.subr.bf16.mxu1 %v15426_v39 }
0x1c3d   :  { %8878 = vmatpush1.bf16.msra.mxu0 %v15432_v25  ;;  %8919 = vmatpush1.bf16.msra.mxu1 %v15438_v26 }
0x1c3e   :  { %8879 = vmatprep.subr.bf16.mxu0 %v15444_v37  ;;  %8920 = vmatprep.subr.bf16.mxu1 %v15450_v17 }
0x1c41   :  { %8880 = vmatpush1.bf16.msra.mxu0 %v15456_v24  ;;  %8921 = vmatpush1.bf16.msra.mxu1 %v15462_v9 }
0x1c42   :  { %8881 = vmatprep.subr.bf16.mxu0 %v15468_v35  ;;  %8922 = vmatprep.subr.bf16.mxu1 %v15474_v56 }
0x1c45   :  { %8882 = vmatpush1.bf16.msra.mxu0 %v15480_v50  ;;  %8923 = vmatpush1.bf16.msra.mxu1 %v15486_v41 }
0x1c46   :  { %8883 = vmatprep.subr.bf16.mxu0 %v15492_v1  ;;  %8924 = vmatprep.subr.bf16.mxu1 %v15498_v62 }
0x1c49   :  { %8884 = vmatpush1.bf16.msra.mxu0 %v15504_v32  ;;  %8925 = vmatpush1.bf16.msra.mxu1 %v15510_v40 }
0x1c4a   :  { %8885 = vmatprep.subr.bf16.mxu0 %v15516_v8  ;;  %8926 = vmatprep.subr.bf16.mxu1 %v15522_v19 }
0x1c4d   :  { %8886 = vmatpush1.bf16.msra.mxu0 %v15528_v54  ;;  %8927 = vmatpush1.bf16.msra.mxu1 %v15534_v59 }
0x1c4e   :  { %8986 = vmatprep.subr.bf16.mxu0 %v15810_v36  ;;  %9027 = vmatprep.subr.bf16.mxu1 %v15816_v11 }
0x1d03   :  { %v8790_v44 = vpop.f32.mrb[208].mxu0  ;;  %v8831_v34 = vpop.f32.mrb[152].mxu1 }
0x1d04   :  { %v8838_v49 = vadd.f32 %v8790_v44, %v16926_v29  ;;  %v8840_v10 = vadd.f32 %v8831_v34, %v16927_v51  ;;  %v8792_v13 = vpop.f32.mrb[209].mxu0  ;;  %v8833_v7 = vpop.f32.mrb[153].mxu1 }
0x1d05   :  { %v8839_v20 = vadd.f32 %v8792_v13, %v16930_v46  ;;  %v8841_v57 = vadd.f32 %v8833_v7, %v16933_v0  ;;  %v8794_v30 = vpop.f32.mrb[210].mxu0  ;;  %v8835_v63 = vpop.f32.mrb[154].mxu1  ;;  %v15854_v13 = vld [vmem:[%s16323_s6 + $0x24] ss:$16 sps:$4 sm:$0xff]   ;;  %v15860_v7 = vld [vmem:[%s16323_s6 + $0x2c] ss:$16 sps:$4 sm:$0xff]  }
0x1d06   :  { %v10427_v21 = vmul.f32 -1.442695, %v8838_v49  ;;  %v8795_v33 = vpop.f32.mrb[211].mxu0  ;;  %v8836_v15 = vpop.f32.mrb[155].mxu1  ;;  %v10429_v52 = vmul.f32 -1.442695, %v8840_v10 }
0x1d07   :  { %v10428_v55 = vmul.f32 -1.442695, %v8839_v20  ;;  %v15842_v10 = vld [vmem:[%s16323_s6] ss:$16 sps:$4 sm:$0xff]   ;;  %v15880_v46 = vld [vmem:[%s16323_s6 + $0x44] ss:$16 sps:$4 sm:$0xff]  }
0x1d08   :  { %11474 = vpow2.f32 %v10427_v21 }
0x1d09   :  { %11476 = vpow2.f32 %v10428_v55 }
0x1d0a   :  { %11478 = vtanh.f32 %v8841_v57 }
0x1d0b   :  { %11480 = vpow2.f32 %v10429_v52 }
0x1d12   :  { %v11475_v22 = vpop.eup %11474 }
0x1d13   :  { %v8851_v3 = vadd.f32 1.0, %v11475_v22  ;;  %v11477_v47 = vpop.eup %11476 }
0x1d14   :  { %v8852_v2 = vadd.f32 1.0, %v11477_v47  ;;  %v11479_v53 = vpop.eup %11478 }
0x1d15   :  { %11482 = vrcp.f32 %v8851_v3  ;;  %v11481_v27 = vpop.eup %11480 }
0x1d16   :  { %11484 = vrcp.f32 %v8852_v2  ;;  %v8853_v6 = vadd.f32 1.0, %v11481_v27 }
0x1d18   :  { %11486 = vrcp.f32 %v8853_v6  ;;  %v15958_v6 = vld [vmem:[%s16323_s6 + $0x64] ss:$16 sps:$4 sm:$0xff]  }
0x1d1f   :  { %v11483_v42 = vpop.eup %11482 }
0x1d20   :  { %v8862_v60 = vmul.f32 %v11483_v42, %v11479_v53  ;;  %v11485_v31 = vpop.eup %11484  ;;  %v15940_v42 = vld [vmem:[%s16323_s6 + $0x4c] ss:$16 sps:$4 sm:$0xff]  }
0x1d21   :  { %v8861_v23 = vmul.f32 %v11485_v31, %v15772_v48  ;;  %v15848_v48 = vld [vmem:[%s16323_s6 + $0x8] ss:$16 sps:$4 sm:$0xff]  }
0x1d22   :  { %v11487_v34 = vpop.eup %11486  ;;  %v15952_v31 = vld [vmem:[%s16323_s6 + $0x48] ss:$16 sps:$4 sm:$0xff]  }
0x1d23   :  { %v15836_v44 = vadd.f32 %v8862_v60, %v8861_v23  ;;  %v15946_v60 = vld [vmem:[%s16323_s6 + $0x40] ss:$16 sps:$4 sm:$0xff]   ;;  %v15964_v23 = vld [vmem:[%s16323_s6 + $0x6c] ss:$16 sps:$4 sm:$0xff]  }
0x1d25   :  { %11488 = vtanh.f32 %v15836_v44 }
0x1d2f   :  { %v11489_v29 = vpop.eup %11488 }
0x1d30   :  { %v8865_v49 = vmul.f32 %v11489_v29, %v11487_v34  ;;  %v15976_v34 = vld [vmem:[%s16323_s6 + $0x68] ss:$16 sps:$4 sm:$0xff]   ;;  %v15982_v29 = vld [vmem:[%s16323_s6 + $0x84] ss:$16 sps:$4 sm:$0xff]  }
0x1d32   :  { %v8870_v51 = vpack.c.bf16 %v8865_v49, %v8865_v49  ;;  %v15988_v49 = vld [vmem:[%s16323_s6 + $0x8c] ss:$16 sps:$4 sm:$0xff]  }
0x1d34   :  { %8904 = vmatmul.mubr.bf16.vlgmr.msra.gmra.mrb[212].mxu0 %v8870_v51  ;;  %8945 = vmatmul.mubr.bf16.vlgmr.msra.gmra.mrb[156].mxu1 %v8870_v51  ;;  %v15994_v51 = vld [vmem:[%s16323_s6 + $0x80] ss:$16 sps:$4 sm:$0xff]  }
0x1d35   :  { %8987 = vmatpush1.bf16.msra.mxu0 %v15842_v10  ;;  %9028 = vmatpush1.bf16.msra.mxu1 %v15848_v48 }
0x1d36   :  { %8988 = vmatprep.subr.bf16.mxu0 %v15854_v13  ;;  %9029 = vmatprep.subr.bf16.mxu1 %v15860_v7 }
0x1d37   :  { %9018 = vmatprep.mubr.bf16.mxu0 %v16618_v43  ;;  %9059 = vmatprep.mubr.bf16.mxu1 %v16618_v43 }
0x1d39   :  { %8989 = vmatpush1.bf16.msra.mxu0 %v15868_v16  ;;  %9030 = vmatpush1.bf16.msra.mxu1 %v15874_v12 }
0x1d3a   :  { %8990 = vmatprep.subr.bf16.mxu0 %v15880_v46  ;;  %9031 = vmatprep.subr.bf16.mxu1 %v15402_v61 }
0x1d3d   :  { %8991 = vmatpush1.bf16.msra.mxu0 %v15408_v14  ;;  %9032 = vmatpush1.bf16.msra.mxu1 %v15414_v5  ;;  %v16934_v5 = vld [vmem:[#allocation69_spill] sm:$0xff] }
0x1d3e   :  { %8992 = vmatprep.subr.bf16.mxu0 %v15420_v58  ;;  %9033 = vmatprep.subr.bf16.mxu1 %v15426_v39  ;;  %v16935_v39 = vld [vmem:[#allocation38_spill] sm:$0xff] }
0x1d41   :  { %8993 = vmatpush1.bf16.msra.mxu0 %v15432_v25  ;;  %9034 = vmatpush1.bf16.msra.mxu1 %v15438_v26  ;;  %v16936_v25 = vld [vmem:[#allocation28_spill] sm:$0xff] }
0x1d42   :  { %8994 = vmatprep.subr.bf16.mxu0 %v15444_v37  ;;  %9035 = vmatprep.subr.bf16.mxu1 %v15450_v17  ;;  %v16937_v26 = vsel %vm12692_vm6, %v16935_v39, %v16936_v25  ;;  %v16024_v39 = vld [vmem:[%s16323_s6 + $0xa8] ss:$16 sps:$4 sm:$0xff]   ;;  %v16030_v25 = vld [vmem:[%s16323_s6 + $0xc4] ss:$16 sps:$4 sm:$0xff]  }
0x1d45   :  { %8995 = vmatpush1.bf16.msra.mxu0 %v15456_v24  ;;  %9036 = vmatpush1.bf16.msra.mxu1 %v15462_v9  ;;  %v16938_v9 = vld [vmem:[#allocation36_spill] sm:$0xff] }
0x1d46   :  { %8996 = vmatprep.subr.bf16.mxu0 %v15468_v35  ;;  %9037 = vmatprep.subr.bf16.mxu1 %v15474_v56  ;;  %v16939_v35 = vld [vmem:[#allocation10_spill] sm:$0xff] }
0x1d47   :  { %v16940_v56 = vsel %vm12455_vm5, %v16938_v9, %v16939_v35  ;;  %v16060_v9 = vld [vmem:[%s16323_s6 + $0xec] ss:$16 sps:$4 sm:$0xff]   ;;  %v16066_v35 = vld [vmem:[%s16323_s6 + $0xe0] ss:$16 sps:$4 sm:$0xff]  }
0x1d49   :  { %8997 = vmatpush1.bf16.msra.mxu0 %v15480_v50  ;;  %9038 = vmatpush1.bf16.msra.mxu1 %v15486_v41  ;;  %v16941_v41 = vld [vmem:[#allocation67_spill] sm:$0xff] }
0x1d4a   :  { %8998 = vmatprep.subr.bf16.mxu0 %v15492_v1  ;;  %9039 = vmatprep.subr.bf16.mxu1 %v15498_v62  ;;  %v16942_v1 = vld [vmem:[#allocation60_spill] sm:$0xff] }
0x1d4b   :  { %v16943_v62 = vsel %vm12696_vm7, %v16941_v41, %v16942_v1  ;;  %v16944_v1 = vld [vmem:[#allocation70_spill] sm:$0xff] }
0x1d4d   :  { %8999 = vmatpush1.bf16.msra.mxu0 %v15504_v32  ;;  %9040 = vmatpush1.bf16.msra.mxu1 %v15510_v40 }
0x1d4e   :  { %9000 = vmatprep.subr.bf16.mxu0 %v15516_v8  ;;  %9041 = vmatprep.subr.bf16.mxu1 %v15522_v19 }
0x1d51   :  { %9001 = vmatpush1.bf16.msra.mxu0 %v15528_v54  ;;  %9042 = vmatpush1.bf16.msra.mxu1 %v15534_v59 }
0x1d52   :  { %9101 = vmatprep.subr.bf16.mxu0 %v15810_v36  ;;  %9142 = vmatprep.subr.bf16.mxu1 %v15816_v11 }
0x1e07   :  { %v8905_v61 = vpop.f32.mrb[212].mxu0  ;;  %v8946_v14 = vpop.f32.mrb[156].mxu1 }
0x1e08   :  { %v8953_v58 = vadd.f32 %v8905_v61, %v16934_v5  ;;  %v8955_v37 = vadd.f32 %v8946_v14, %v16937_v26  ;;  %v8907_v17 = vpop.f32.mrb[213].mxu0  ;;  %v8948_v24 = vpop.f32.mrb[157].mxu1  ;;  %v16000_v61 = vld [vmem:[%s16323_s6 + $0x88] ss:$16 sps:$4 sm:$0xff]   ;;  %v16006_v14 = vld [vmem:[%s16323_s6 + $0xa4] ss:$16 sps:$4 sm:$0xff]  }
0x1e09   :  { %v8954_v50 = vadd.f32 %v8907_v17, %v16940_v56  ;;  %v8956_v32 = vadd.f32 %v8948_v24, %v16943_v62  ;;  %v8909_v40 = vpop.f32.mrb[214].mxu0  ;;  %v8950_v8 = vpop.f32.mrb[158].mxu1  ;;  %v16012_v5 = vld [vmem:[%s16323_s6 + $0xac] ss:$16 sps:$4 sm:$0xff]   ;;  %v16048_v17 = vld [vmem:[%s16323_s6 + $0xc8] ss:$16 sps:$4 sm:$0xff]  }
0x1e0a   :  { %v10430_v19 = vmul.f32 -1.442695, %v8953_v58  ;;  %v8910_v54 = vpop.f32.mrb[215].mxu0  ;;  %v8951_v59 = vpop.f32.mrb[159].mxu1  ;;  %v10432_v38 = vmul.f32 -1.442695, %v8955_v37 }
0x1e0b   :  { %v10431_v20 = vmul.f32 -1.442695, %v8954_v50  ;;  %v16018_v58 = vld [vmem:[%s16323_s6 + $0xa0] ss:$16 sps:$4 sm:$0xff]   ;;  %v16036_v26 = vld [vmem:[%s16323_s6 + $0xcc] ss:$16 sps:$4 sm:$0xff]  }
0x1e0c   :  { %11490 = vpow2.f32 %v10430_v19  ;;  %v16042_v37 = vld [vmem:[%s16323_s6 + $0xc0] ss:$16 sps:$4 sm:$0xff]   ;;  %v16054_v24 = vld [vmem:[%s16323_s6 + $0xe4] ss:$16 sps:$4 sm:$0xff]   ;;  %v16072_v56 = vld [vmem:[%s16323_s6 + $0xe8] ss:$16 sps:$4 sm:$0xff]  }
0x1e0d   :  { %11492 = vpow2.f32 %v10431_v20  ;;  %v16946_v40 = vld [vmem:[#allocation29_spill] sm:$0xff]  ;;  %v16948_v20 = vld [vmem:[#allocation34_spill] sm:$0xff] }
0x1e0e   :  { %11494 = vtanh.f32 %v8956_v32  ;;  %v16945_v32 = vld [vmem:[#allocation64_spill] sm:$0xff] }
0x1e0f   :  { %11496 = vpow2.f32 %v10432_v38  ;;  %v16947_v8 = vsel %vm12692_vm6, %v16945_v32, %v16946_v40  ;;  %v16949_v38 = vld [vmem:[#allocation59_spill] sm:$0xff] }
0x1e16   :  { %v11491_v18 = vpop.eup %11490 }
0x1e17   :  { %v8966_v0 = vadd.f32 1.0, %v11491_v18  ;;  %v11493_v57 = vpop.eup %11492  ;;  %v16950_v18 = vsel %vm12455_vm5, %v16948_v20, %v16949_v38 }
0x1e18   :  { %v8967_v30 = vadd.f32 1.0, %v11493_v57  ;;  %v11495_v63 = vpop.eup %11494  ;;  %v16951_v57 = vld [vmem:[#allocation68_spill] sm:$0xff] }
0x1e19   :  { %11498 = vrcp.f32 %v8966_v0  ;;  %v11497_v21 = vpop.eup %11496 }
0x1e1a   :  { %11500 = vrcp.f32 %v8967_v30  ;;  %v8968_v52 = vadd.f32 1.0, %v11497_v21  ;;  %v16952_v30 = vld [vmem:[#allocation41_spill] sm:$0xff] }
0x1e1c   :  { %11502 = vrcp.f32 %v8968_v52 }
0x1e23   :  { %v11499_v33 = vpop.eup %11498 }
0x1e24   :  { %v8977_v15 = vmul.f32 %v11499_v33, %v11495_v63  ;;  %v11501_v55 = vpop.eup %11500  ;;  %v16953_v63 = vsel %vm12696_vm7, %v16951_v57, %v16952_v30  ;;  %v16954_v30 = vld [vmem:[#allocation78_spill] sm:$0xff] }
0x1e25   :  { %v8976_v22 = vmul.f32 %v11501_v55, %v15836_v44  ;;  %v15970_v44 = vld [vmem:[%s16323_s6 + $0x60] ss:$16 sps:$4 sm:$0xff]  }
0x1e26   :  { %v11503_v47 = vpop.eup %11502 }
0x1e27   :  { %v15925_v3 = vadd.f32 %v8977_v15, %v8976_v22 }
0x1e29   :  { %11504 = vtanh.f32 %v15925_v3 }
0x1e33   :  { %v11505_v2 = vpop.eup %11504 }
0x1e34   :  { %v8980_v53 = vmul.f32 %v11505_v2, %v11503_v47 }
0x1e36   :  { %v8985_v27 = vpack.c.bf16 %v8980_v53, %v8980_v53 }
0x1e38   :  { %9019 = vmatmul.mubr.bf16.vlgmr.msra.gmra.mrb[216].mxu0 %v8985_v27  ;;  %9060 = vmatmul.mubr.bf16.vlgmr.msra.gmra.mrb[160].mxu1 %v8985_v27 }
0x1e39   :  { %9102 = vmatpush1.bf16.msra.mxu0 %v15842_v10  ;;  %9143 = vmatpush1.bf16.msra.mxu1 %v15848_v48 }
0x1e3a   :  { %9103 = vmatprep.subr.bf16.mxu0 %v15854_v13  ;;  %9144 = vmatprep.subr.bf16.mxu1 %v15860_v7 }
0x1e3b   :  { %9133 = vmatprep.mubr.bf16.mxu0 %v16618_v43  ;;  %9174 = vmatprep.mubr.bf16.mxu1 %v16618_v43 }
0x1e3d   :  { %9104 = vmatpush1.bf16.msra.mxu0 %v15868_v16  ;;  %9145 = vmatpush1.bf16.msra.mxu1 %v15874_v12 }
0x1e3e   :  { %9105 = vmatprep.subr.bf16.mxu0 %v15880_v46  ;;  %9146 = vmatprep.subr.bf16.mxu1 %v15940_v42 }
0x1e41   :  { %9106 = vmatpush1.bf16.msra.mxu0 %v15946_v60  ;;  %9147 = vmatpush1.bf16.msra.mxu1 %v15952_v31 }
0x1e42   :  { %9107 = vmatprep.subr.bf16.mxu0 %v15958_v6  ;;  %9148 = vmatprep.subr.bf16.mxu1 %v15964_v23 }
0x1e45   :  { %9108 = vmatpush1.bf16.msra.mxu0 %v15970_v44  ;;  %9149 = vmatpush1.bf16.msra.mxu1 %v15976_v34 }
0x1e46   :  { %9109 = vmatprep.subr.bf16.mxu0 %v15982_v29  ;;  %9150 = vmatprep.subr.bf16.mxu1 %v15988_v49 }
0x1e49   :  { %9110 = vmatpush1.bf16.msra.mxu0 %v15994_v51  ;;  %9151 = vmatpush1.bf16.msra.mxu1 %v16000_v61 }
0x1e4a   :  { %9111 = vmatprep.subr.bf16.mxu0 %v16006_v14  ;;  %9152 = vmatprep.subr.bf16.mxu1 %v16012_v5 }
0x1e4d   :  { %9112 = vmatpush1.bf16.msra.mxu0 %v16018_v58  ;;  %9153 = vmatpush1.bf16.msra.mxu1 %v16024_v39 }
0x1e4e   :  { %9113 = vmatprep.subr.bf16.mxu0 %v16030_v25  ;;  %9154 = vmatprep.subr.bf16.mxu1 %v16036_v26 }
0x1e51   :  { %9114 = vmatpush1.bf16.msra.mxu0 %v16042_v37  ;;  %9155 = vmatpush1.bf16.msra.mxu1 %v16048_v17 }
0x1e52   :  { %9115 = vmatprep.subr.bf16.mxu0 %v16054_v24  ;;  %9156 = vmatprep.subr.bf16.mxu1 %v16060_v9 }
0x1e55   :  { %9116 = vmatpush1.bf16.msra.mxu0 %v16066_v35  ;;  %9157 = vmatpush1.bf16.msra.mxu1 %v16072_v56 }
0x1e56   :  { %9216 = vmatprep.subr.bf16.mxu0 %v15810_v36  ;;  %9257 = vmatprep.subr.bf16.mxu1 %v15816_v11 }
0x1f0b   :  { %v9020_v50 = vpop.f32.mrb[216].mxu0  ;;  %v9061_v41 = vpop.f32.mrb[160].mxu1 }
0x1f0c   :  { %v9068_v62 = vadd.f32 %v9020_v50, %v16944_v1  ;;  %v9070_v19 = vadd.f32 %v9061_v41, %v16947_v8  ;;  %v9022_v54 = vpop.f32.mrb[217].mxu0  ;;  %v9063_v59 = vpop.f32.mrb[161].mxu1 }
0x1f0d   :  { %v9069_v0 = vadd.f32 %v9022_v54, %v16950_v18  ;;  %v9071_v21 = vadd.f32 %v9063_v59, %v16953_v63  ;;  %v9024_v33 = vpop.f32.mrb[218].mxu0  ;;  %v9065_v15 = vpop.f32.mrb[162].mxu1 }
0x1f0e   :  { %v10433_v55 = vmul.f32 -1.442695, %v9068_v62  ;;  %v9025_v52 = vpop.f32.mrb[219].mxu0  ;;  %v9066_v22 = vpop.f32.mrb[163].mxu1  ;;  %v10435_v2 = vmul.f32 -1.442695, %v9070_v19 }
0x1f0f   :  { %v10434_v47 = vmul.f32 -1.442695, %v9069_v0  ;;  %v16956_v33 = vld [vmem:[#allocation44_spill] sm:$0xff] }
0x1f10   :  { %11506 = vpow2.f32 %v10433_v55 }
0x1f11   :  { %11508 = vpow2.f32 %v10434_v47  ;;  %v16958_v47 = vld [vmem:[#allocation73_spill] sm:$0xff] }
0x1f12   :  { %11510 = vtanh.f32 %v9071_v21  ;;  %v16955_v21 = vld [vmem:[#allocation7_spill] sm:$0xff] }
0x1f13   :  { %11512 = vpow2.f32 %v10435_v2  ;;  %v16957_v15 = vsel %vm12692_vm6, %v16955_v21, %v16956_v33  ;;  %v16959_v2 = vld [vmem:[#allocation23_spill] sm:$0xff] }
0x1f1a   :  { %v11507_v53 = vpop.eup %11506 }
0x1f1b   :  { %v9081_v27 = vadd.f32 1.0, %v11507_v53  ;;  %v11509_v50 = vpop.eup %11508  ;;  %v16960_v53 = vsel %vm12455_vm5, %v16958_v47, %v16959_v2 }
0x1f1c   :  { %v9082_v41 = vadd.f32 1.0, %v11509_v50  ;;  %v11511_v1 = vpop.eup %11510  ;;  %v16961_v50 = vld [vmem:[#allocation74_spill] sm:$0xff] }
0x1f1d   :  { %11514 = vrcp.f32 %v9081_v27  ;;  %v11513_v32 = vpop.eup %11512 }
0x1f1e   :  { %11516 = vrcp.f32 %v9082_v41  ;;  %v9083_v62 = vadd.f32 1.0, %v11513_v32  ;;  %v16962_v41 = vld [vmem:[#allocation26_spill] sm:$0xff] }
0x1f20   :  { %11518 = vrcp.f32 %v9083_v62 }
0x1f27   :  { %v11515_v40 = vpop.eup %11514 }
0x1f28   :  { %v9092_v8 = vmul.f32 %v11515_v40, %v11511_v1  ;;  %v11517_v54 = vpop.eup %11516  ;;  %v16963_v1 = vsel %vm12696_vm7, %v16961_v50, %v16962_v41  ;;  %v16964_v41 = vld [vmem:[#allocation79_spill] sm:$0xff] }
0x1f29   :  { %v9091_v59 = vmul.f32 %v11517_v54, %v15925_v3 }
0x1f2a   :  { %v11519_v19 = vpop.eup %11518 }
0x1f2b   :  { %v16094_v20 = vadd.f32 %v9092_v8, %v9091_v59 }
0x1f2d   :  { %11520 = vtanh.f32 %v16094_v20 }
0x1f37   :  { %v11521_v38 = vpop.eup %11520 }
0x1f38   :  { %v9095_v18 = vmul.f32 %v11521_v38, %v11519_v19 }
0x1f3a   :  { %v9100_v0 = vpack.c.bf16 %v9095_v18, %v9095_v18 }
0x1f3c   :  { %9134 = vmatmul.mubr.bf16.vlgmr.msra.gmra.mrb[220].mxu0 %v9100_v0  ;;  %9175 = vmatmul.mubr.bf16.vlgmr.msra.gmra.mrb[164].mxu1 %v9100_v0 }
0x1f3d   :  { %9217 = vmatpush1.bf16.msra.mxu0 %v15842_v10  ;;  %9258 = vmatpush1.bf16.msra.mxu1 %v15848_v48 }
0x1f3e   :  { %9218 = vmatprep.subr.bf16.mxu0 %v15854_v13  ;;  %9259 = vmatprep.subr.bf16.mxu1 %v15860_v7 }
0x1f3f   :  { %9248 = vmatprep.mubr.bf16.mxu0 %v16618_v43  ;;  %9289 = vmatprep.mubr.bf16.mxu1 %v16618_v43 }
0x1f41   :  { %9219 = vmatpush1.bf16.msra.mxu0 %v15868_v16  ;;  %9260 = vmatpush1.bf16.msra.mxu1 %v15874_v12 }
0x1f42   :  { %9220 = vmatprep.subr.bf16.mxu0 %v15880_v46  ;;  %9261 = vmatprep.subr.bf16.mxu1 %v15940_v42 }
0x1f45   :  { %9221 = vmatpush1.bf16.msra.mxu0 %v15946_v60  ;;  %9262 = vmatpush1.bf16.msra.mxu1 %v15952_v31 }
0x1f46   :  { %9222 = vmatprep.subr.bf16.mxu0 %v15958_v6  ;;  %9263 = vmatprep.subr.bf16.mxu1 %v15964_v23 }
0x1f49   :  { %9223 = vmatpush1.bf16.msra.mxu0 %v15970_v44  ;;  %9264 = vmatpush1.bf16.msra.mxu1 %v15976_v34 }
0x1f4a   :  { %9224 = vmatprep.subr.bf16.mxu0 %v15982_v29  ;;  %9265 = vmatprep.subr.bf16.mxu1 %v15988_v49 }
0x1f4d   :  { %9225 = vmatpush1.bf16.msra.mxu0 %v15994_v51  ;;  %9266 = vmatpush1.bf16.msra.mxu1 %v16000_v61 }
0x1f4e   :  { %9226 = vmatprep.subr.bf16.mxu0 %v16006_v14  ;;  %9267 = vmatprep.subr.bf16.mxu1 %v16012_v5 }
0x1f51   :  { %9227 = vmatpush1.bf16.msra.mxu0 %v16018_v58  ;;  %9268 = vmatpush1.bf16.msra.mxu1 %v16024_v39 }
0x1f52   :  { %9228 = vmatprep.subr.bf16.mxu0 %v16030_v25  ;;  %9269 = vmatprep.subr.bf16.mxu1 %v16036_v26 }
0x1f55   :  { %9229 = vmatpush1.bf16.msra.mxu0 %v16042_v37  ;;  %9270 = vmatpush1.bf16.msra.mxu1 %v16048_v17 }
0x1f56   :  { %9230 = vmatprep.subr.bf16.mxu0 %v16054_v24  ;;  %9271 = vmatprep.subr.bf16.mxu1 %v16060_v9 }
0x1f59   :  { %9231 = vmatpush1.bf16.msra.mxu0 %v16066_v35  ;;  %9272 = vmatpush1.bf16.msra.mxu1 %v16072_v56 }
0x1f5a   :  { %9331 = vmatprep.subr.bf16.mxu0 %v15810_v36  ;;  %9372 = vmatprep.subr.bf16.mxu1 %v15816_v11 }
0x200f   :  { %v9135_v3 = vpop.f32.mrb[220].mxu0  ;;  %v9176_v57 = vpop.f32.mrb[164].mxu1 }
0x2010   :  { %v9183_v63 = vadd.f32 %v9135_v3, %v16954_v30  ;;  %v9185_v55 = vadd.f32 %v9176_v57, %v16957_v15  ;;  %v9137_v52 = vpop.f32.mrb[221].mxu0  ;;  %v9178_v22 = vpop.f32.mrb[165].mxu1 }
0x2011   :  { %v9184_v27 = vadd.f32 %v9137_v52, %v16960_v53  ;;  %v9186_v32 = vadd.f32 %v9178_v22, %v16963_v1  ;;  %v9139_v40 = vpop.f32.mrb[222].mxu0  ;;  %v9180_v8 = vpop.f32.mrb[166].mxu1 }
0x2012   :  { %v10436_v54 = vmul.f32 -1.442695, %v9183_v63  ;;  %v9140_v62 = vpop.f32.mrb[223].mxu0  ;;  %v9181_v59 = vpop.f32.mrb[167].mxu1  ;;  %v10438_v38 = vmul.f32 -1.442695, %v9185_v55 }
0x2013   :  { %v10437_v19 = vmul.f32 -1.442695, %v9184_v27  ;;  %v16966_v40 = vld [vmem:[#allocation25_spill] sm:$0xff] }
0x2014   :  { %11522 = vpow2.f32 %v10436_v54 }
0x2015   :  { %11524 = vpow2.f32 %v10437_v19  ;;  %v16968_v19 = vld [vmem:[#allocation76_spill] sm:$0xff] }
0x2016   :  { %11526 = vtanh.f32 %v9186_v32  ;;  %v16965_v32 = vld [vmem:[#allocation75_spill] sm:$0xff] }
0x2017   :  { %11528 = vpow2.f32 %v10438_v38  ;;  %v16967_v8 = vsel %vm12692_vm6, %v16965_v32, %v16966_v40  ;;  %v16969_v38 = vld [vmem:[#allocation11_spill] sm:$0xff] }
0x201e   :  { %v11523_v18 = vpop.eup %11522 }
0x201f   :  { %v9196_v0 = vadd.f32 1.0, %v11523_v18  ;;  %v11525_v3 = vpop.eup %11524  ;;  %v16970_v18 = vsel %vm12455_vm5, %v16968_v19, %v16969_v38 }
0x2020   :  { %v9197_v57 = vadd.f32 1.0, %v11525_v3  ;;  %v11527_v30 = vpop.eup %11526 }
0x2021   :  { %11530 = vrcp.f32 %v9196_v0  ;;  %v11529_v21 = vpop.eup %11528  ;;  %v16972_v0 = vld [vmem:[#allocation58_spill] sm:$0xff] }
0x2022   :  { %11532 = vrcp.f32 %v9197_v57  ;;  %v9198_v63 = vadd.f32 1.0, %v11529_v21 }
0x2024   :  { %11534 = vrcp.f32 %v9198_v63 }
0x202b   :  { %v11531_v33 = vpop.eup %11530 }
0x202c   :  { %v9207_v15 = vmul.f32 %v11531_v33, %v11527_v30  ;;  %v11533_v52 = vpop.eup %11532 }
0x202d   :  { %v9206_v22 = vmul.f32 %v11533_v52, %v16094_v20 }
0x202e   :  { %v11535_v55 = vpop.eup %11534 }
0x202f   :  { %v16148_v47 = vadd.f32 %v9207_v15, %v9206_v22 }
0x2031   :  { %11536 = vtanh.f32 %v16148_v47 }
0x203b   :  { %v11537_v2 = vpop.eup %11536 }
0x203c   :  { %v9210_v53 = vmul.f32 %v11537_v2, %v11535_v55 }
0x203e   :  { %v9215_v27 = vpack.c.bf16 %v9210_v53, %v9210_v53 }
0x2040   :  { %9249 = vmatmul.mubr.bf16.vlgmr.msra.gmra.mrb[224].mxu0 %v9215_v27  ;;  %9290 = vmatmul.mubr.bf16.vlgmr.msra.gmra.mrb[168].mxu1 %v9215_v27 }
0x2041   :  { %9332 = vmatpush1.bf16.msra.mxu0 %v15842_v10  ;;  %9373 = vmatpush1.bf16.msra.mxu1 %v15848_v48 }
0x2042   :  { %9333 = vmatprep.subr.bf16.mxu0 %v15854_v13  ;;  %9374 = vmatprep.subr.bf16.mxu1 %v15860_v7 }
0x2043   :  { %9363 = vmatprep.mubr.bf16.mxu0 %v16618_v43  ;;  %9404 = vmatprep.mubr.bf16.mxu1 %v16618_v43 }
0x2045   :  { %9334 = vmatpush1.bf16.msra.mxu0 %v15868_v16  ;;  %9375 = vmatpush1.bf16.msra.mxu1 %v15874_v12 }
0x2046   :  { %9335 = vmatprep.subr.bf16.mxu0 %v15880_v46  ;;  %9376 = vmatprep.subr.bf16.mxu1 %v15940_v42 }
0x2049   :  { %9336 = vmatpush1.bf16.msra.mxu0 %v15946_v60  ;;  %9377 = vmatpush1.bf16.msra.mxu1 %v15952_v31 }
0x204a   :  { %9337 = vmatprep.subr.bf16.mxu0 %v15958_v6  ;;  %9378 = vmatprep.subr.bf16.mxu1 %v15964_v23 }
0x204d   :  { %9338 = vmatpush1.bf16.msra.mxu0 %v15970_v44  ;;  %9379 = vmatpush1.bf16.msra.mxu1 %v15976_v34 }
0x204e   :  { %9339 = vmatprep.subr.bf16.mxu0 %v15982_v29  ;;  %9380 = vmatprep.subr.bf16.mxu1 %v15988_v49 }
0x2051   :  { %9340 = vmatpush1.bf16.msra.mxu0 %v15994_v51  ;;  %9381 = vmatpush1.bf16.msra.mxu1 %v16000_v61 }
0x2052   :  { %9341 = vmatprep.subr.bf16.mxu0 %v16006_v14  ;;  %9382 = vmatprep.subr.bf16.mxu1 %v16012_v5 }
0x2055   :  { %9342 = vmatpush1.bf16.msra.mxu0 %v16018_v58  ;;  %9383 = vmatpush1.bf16.msra.mxu1 %v16024_v39 }
0x2056   :  { %9343 = vmatprep.subr.bf16.mxu0 %v16030_v25  ;;  %9384 = vmatprep.subr.bf16.mxu1 %v16036_v26 }
0x2059   :  { %9344 = vmatpush1.bf16.msra.mxu0 %v16042_v37  ;;  %9385 = vmatpush1.bf16.msra.mxu1 %v16048_v17 }
0x205a   :  { %9345 = vmatprep.subr.bf16.mxu0 %v16054_v24  ;;  %9386 = vmatprep.subr.bf16.mxu1 %v16060_v9 }
0x205d   :  { %9346 = vmatpush1.bf16.msra.mxu0 %v16066_v35  ;;  %9387 = vmatpush1.bf16.msra.mxu1 %v16072_v56 }
0x205e   :  { %9446 = vmatprep.subr.bf16.mxu0 %v15810_v36  ;;  %9487 = vmatprep.subr.bf16.mxu1 %v15816_v11  ;;  %v16971_v11 = vld [vmem:[#allocation77_spill] sm:$0xff] }
0x205f   :  { %v16973_v3 = vsel %vm12696_vm7, %v16971_v11, %v16972_v0 }
0x2113   :  { %v9250_v20 = vpop.f32.mrb[224].mxu0  ;;  %v9291_v50 = vpop.f32.mrb[168].mxu1 }
0x2114   :  { %v9298_v1 = vadd.f32 %v9250_v20, %v16964_v41  ;;  %v9300_v54 = vadd.f32 %v9291_v50, %v16967_v8  ;;  %v9252_v62 = vpop.f32.mrb[225].mxu0  ;;  %v9293_v59 = vpop.f32.mrb[169].mxu1 }
0x2115   :  { %v9299_v36 = vadd.f32 %v9252_v62, %v16970_v18  ;;  %v9301_v57 = vadd.f32 %v9293_v59, %v16973_v3  ;;  %v9254_v30 = vpop.f32.mrb[226].mxu0  ;;  %v9295_v21 = vpop.f32.mrb[170].mxu1 }
0x2116   :  { %v10439_v33 = vmul.f32 -1.442695, %v9298_v1  ;;  %v9255_v15 = vpop.f32.mrb[227].mxu0  ;;  %v9296_v52 = vpop.f32.mrb[171].mxu1  ;;  %v10441_v22 = vmul.f32 -1.442695, %v9300_v54 }
0x2117   :  { %v10440_v63 = vmul.f32 -1.442695, %v9299_v36  ;;  %v11066_v52 = vld [vmem:[%s16324_s7] sm:$0xff]  }
0x2118   :  { %11538 = vpow2.f32 %v10439_v33 }
0x2119   :  { %11540 = vpow2.f32 %v10440_v63  ;;  %v11067_v63 = vld [vmem:[%s16324_s7 + $0x8] sm:$0xff]  }
0x211a   :  { %11542 = vtanh.f32 %v9301_v57 }
0x211b   :  { %11544 = vpow2.f32 %v10441_v22  ;;  %v11068_v22 = vld [vmem:[%s16324_s7 + $0x10] sm:$0xff]  }
0x2122   :  { %v11539_v55 = vpop.eup %11538 }
0x2123   :  { %v9311_v2 = vadd.f32 1.0, %v11539_v55  ;;  %v11541_v53 = vpop.eup %11540  ;;  %v11069_v55 = vld [vmem:[%s16324_s7 + $0x18] sm:$0xff]  }
0x2124   :  { %v9312_v27 = vadd.f32 1.0, %v11541_v53  ;;  %v11543_v20 = vpop.eup %11542  ;;  %v11071_v53 = vld [vmem:[%s16324_s7 + $0x28] sm:$0xff]  }
0x2125   :  { %11546 = vrcp.f32 %v9311_v2  ;;  %v11545_v50 = vpop.eup %11544  ;;  %v11070_v2 = vld [vmem:[%s16324_s7 + $0x20] sm:$0xff]  }
0x2126   :  { %11548 = vrcp.f32 %v9312_v27  ;;  %v9313_v1 = vadd.f32 1.0, %v11545_v50  ;;  %v11072_v27 = vld [vmem:[%s16324_s7 + $0x30] sm:$0xff]  }
0x2128   :  { %11550 = vrcp.f32 %v9313_v1  ;;  %v16986_v1 = vld [vmem:[#allocation86_spill] sm:$0xff] }
0x212f   :  { %v11547_v41 = vpop.eup %11546 }
0x2130   :  { %v9322_v32 = vmul.f32 %v11547_v41, %v11543_v20  ;;  %v11549_v40 = vpop.eup %11548  ;;  %v11073_v20 = vld [vmem:[%s16324_s7 + $0x38] sm:$0xff]  }
0x2131   :  { %v9321_v8 = vmul.f32 %v11549_v40, %v16148_v47 }
0x2132   :  { %v11551_v54 = vpop.eup %11550 }
0x2133   :  { %v16202_v62 = vadd.f32 %v9322_v32, %v9321_v8  ;;  %v16985_v32 = vld [vmem:[#allocation90_spill] sm:$0xff]  ;;  %v16987_v8 = vld [vmem:[#allocation80_spill] sm:$0xff] }
0x2135   :  { %11552 = vtanh.f32 %v16202_v62 }
0x213f   :  { %v11553_v59 = vpop.eup %11552 }
0x2140   :  { %v9325_v19 = vmul.f32 %v11553_v59, %v11551_v54 }
0x2142   :  { %v9330_v38 = vpack.c.bf16 %v9325_v19, %v9325_v19 }
0x2144   :  { %9364 = vmatmul.mubr.bf16.vlgmr.msra.gmra.mrb[228].mxu0 %v9330_v38  ;;  %9405 = vmatmul.mubr.bf16.vlgmr.msra.gmra.mrb[172].mxu1 %v9330_v38  ;;  %v16989_v38 = vld [vmem:[#allocation87_spill] sm:$0xff] }
0x2145   :  { %9447 = vmatpush1.bf16.msra.mxu0 %v15842_v10  ;;  %9488 = vmatpush1.bf16.msra.mxu1 %v15848_v48 }
0x2146   :  { %9448 = vmatprep.subr.bf16.mxu0 %v15854_v13  ;;  %9489 = vmatprep.subr.bf16.mxu1 %v15860_v7  ;;  %v16975_v13 = vld [vmem:[#allocation89_spill] sm:$0xff] }
0x2147   :  { %9478 = vmatprep.mubr.bf16.mxu0 %v16618_v43  ;;  %9519 = vmatprep.mubr.bf16.mxu1 %v16618_v43  ;;  %v16974_v43 = vmov 0.0  }
0x2149   :  { %9449 = vmatpush1.bf16.msra.mxu0 %v15868_v16  ;;  %9490 = vmatpush1.bf16.msra.mxu1 %v15874_v12  ;;  %v16976_v16 = vld [vmem:[#allocation81_spill] sm:$0xff]  ;;  %v16977_v12 = vld [vmem:[#allocation27_spill] sm:$0xff] }
0x214a   :  { %9450 = vmatprep.subr.bf16.mxu0 %v15880_v46  ;;  %9491 = vmatprep.subr.bf16.mxu1 %v15940_v42  ;;  %v16978_v46 = vsel %vm12692_vm6, %v16976_v16, %v16977_v12 }
0x214d   :  { %9451 = vmatpush1.bf16.msra.mxu0 %v15946_v60  ;;  %9492 = vmatpush1.bf16.msra.mxu1 %v15952_v31 }
0x214e   :  { %9452 = vmatprep.subr.bf16.mxu0 %v15958_v6  ;;  %9493 = vmatprep.subr.bf16.mxu1 %v15964_v23  ;;  %v16979_v6 = vld [vmem:[#allocation84_spill] sm:$0xff]  ;;  %v16980_v23 = vld [vmem:[#allocation57_spill] sm:$0xff] }
0x2151   :  { %9453 = vmatpush1.bf16.msra.mxu0 %v15970_v44  ;;  %9494 = vmatpush1.bf16.msra.mxu1 %v15976_v34  ;;  %v16981_v44 = vsel %vm12455_vm5, %v16979_v6, %v16980_v23 }
0x2152   :  { %9454 = vmatprep.subr.bf16.mxu0 %v15982_v29  ;;  %9495 = vmatprep.subr.bf16.mxu1 %v15988_v49  ;;  %v16982_v29 = vld [vmem:[#allocation85_spill] sm:$0xff]  ;;  %v16983_v49 = vld [vmem:[#allocation43_spill] sm:$0xff] }
0x2155   :  { %9455 = vmatpush1.bf16.msra.mxu0 %v15994_v51  ;;  %9496 = vmatpush1.bf16.msra.mxu1 %v16000_v61  ;;  %v16984_v51 = vsel %vm12696_vm7, %v16982_v29, %v16983_v49 }
0x2156   :  { %9456 = vmatprep.subr.bf16.mxu0 %v16006_v14  ;;  %9497 = vmatprep.subr.bf16.mxu1 %v16012_v5 }
0x2159   :  { %9457 = vmatpush1.bf16.msra.mxu0 %v16018_v58  ;;  %9498 = vmatpush1.bf16.msra.mxu1 %v16024_v39 }
0x215a   :  { %9458 = vmatprep.subr.bf16.mxu0 %v16030_v25  ;;  %9499 = vmatprep.subr.bf16.mxu1 %v16036_v26 }
0x215d   :  { %9459 = vmatpush1.bf16.msra.mxu0 %v16042_v37  ;;  %9500 = vmatpush1.bf16.msra.mxu1 %v16048_v17 }
0x215e   :  { %9460 = vmatprep.subr.bf16.mxu0 %v16054_v24  ;;  %9501 = vmatprep.subr.bf16.mxu1 %v16060_v9 }
0x2161   :  { %9461 = vmatpush1.bf16.msra.mxu0 %v16066_v35  ;;  %9502 = vmatpush1.bf16.msra.mxu1 %v16072_v56 }
0x2162   :  { %10610 = vmatprep.subr.bf16.mxu0 %v16974_v43 }
0x2217   :  { %v9365_v10 = vpop.f32.mrb[228].mxu0  ;;  %v9406_v48 = vpop.f32.mrb[172].mxu1 }
0x2218   :  { %v9413_v7 = vadd.f32 %v9365_v10, %v16975_v13  ;;  %v9415_v42 = vadd.f32 %v9406_v48, %v16978_v46  ;;  %v9367_v60 = vpop.f32.mrb[229].mxu0  ;;  %v9408_v31 = vpop.f32.mrb[173].mxu1  ;;  %v16990_v10 = vld [vmem:[#allocation82_spill] sm:$0xff] }
0x2219   :  { %v9414_v34 = vadd.f32 %v9367_v60, %v16981_v44  ;;  %v9416_v61 = vadd.f32 %v9408_v31, %v16984_v51  ;;  %v9369_v14 = vpop.f32.mrb[230].mxu0  ;;  %v9410_v5 = vpop.f32.mrb[174].mxu1  ;;  %v16991_v48 = vsel %vm12455_vm5, %v16989_v38, %v16990_v10 }
0x221a   :  { %v10442_v58 = vmul.f32 -1.442695, %v9413_v7  ;;  %v9370_v39 = vpop.f32.mrb[231].mxu0  ;;  %v9411_v25 = vpop.f32.mrb[175].mxu1  ;;  %v10444_v37 = vmul.f32 -1.442695, %v9415_v42 }
0x221b   :  { %v10443_v26 = vmul.f32 -1.442695, %v9414_v34  ;;  %v16993_v7 = vld [vmem:[#allocation83_spill] sm:$0xff] }
0x221c   :  { %11554 = vpow2.f32 %v10442_v58 }
0x221d   :  { %11556 = vpow2.f32 %v10443_v26 }
0x221e   :  { %11558 = vtanh.f32 %v9416_v61 }
0x221f   :  { %11560 = vpow2.f32 %v10444_v37 }
0x2226   :  { %v11555_v17 = vpop.eup %11554 }
0x2227   :  { %v9426_v24 = vadd.f32 1.0, %v11555_v17  ;;  %v11557_v9 = vpop.eup %11556  ;;  %v16995_v17 = vld [vmem:[#allocation91_spill] sm:$0xff] }
0x2228   :  { %v9427_v35 = vadd.f32 1.0, %v11557_v9  ;;  %v11559_v56 = vpop.eup %11558 }
0x2229   :  { %11562 = vrcp.f32 %v9426_v24  ;;  %v11561_v47 = vpop.eup %11560 }
0x222a   :  { %11564 = vrcp.f32 %v9427_v35  ;;  %v9428_v0 = vadd.f32 1.0, %v11561_v47 }
0x222c   :  { %11566 = vrcp.f32 %v9428_v0 }
0x2233   :  { %v11563_v18 = vpop.eup %11562 }
0x2234   :  { %v9437_v36 = vmul.f32 %v11563_v18, %v11559_v56  ;;  %v11565_v11 = vpop.eup %11564  ;;  %v10448_v56 = vld [vmem:[%s16320_s8 + $0xe] ss:$0 sm:$0xff] }
0x2235   :  { %v9436_v3 = vmul.f32 %v11565_v11, %v16202_v62  ;;  %v16988_v62 = vsel %vm12692_vm6, %v16986_v1, %v16987_v8 }
0x2236   :  { %v11567_v30 = vpop.eup %11566 }
0x2237   :  { %v16255_v57 = vadd.f32 %v9437_v36, %v9436_v3 }
0x2239   :  { %11568 = vtanh.f32 %v16255_v57 }
0x2243   :  { %v11569_v21 = vpop.eup %11568 }
0x2244   :  { %v9440_v33 = vmul.f32 %v11569_v21, %v11567_v30 }
0x2246   :  { %v9445_v15 = vpack.c.bf16 %v9440_v33, %v9440_v33 }
0x2248   :  { %9479 = vmatmul.mubr.bf16.vlgmr.msra.gmra.mrb[232].mxu0 %v9445_v15  ;;  %9520 = vmatmul.mubr.bf16.vlgmr.msra.gmra.mrb[176].mxu1 %v9445_v15 }
0x2249   :  { %10611 = vmatpush3.bf16.msra.mxu0 %v11066_v52  ;;  %10626 = vmatprep.mubr.msk.bf16.mxu0 %vm11668_vm8, %v16974_v43 }
0x224a   :  { %10612 = vmatprep.subr.bf16.mxu0 %v16974_v43 }
0x224d   :  { %10613 = vmatpush3.bf16.msra.mxu0 %v11067_v63 }
0x224e   :  { %10614 = vmatprep.subr.bf16.mxu0 %v16974_v43 }
0x2251   :  { %10615 = vmatpush3.bf16.msra.mxu0 %v11068_v22 }
0x2252   :  { %10616 = vmatprep.subr.bf16.mxu0 %v16974_v43 }
0x2255   :  { %10617 = vmatpush3.bf16.msra.mxu0 %v11069_v55 }
0x2256   :  { %10618 = vmatprep.subr.bf16.mxu0 %v16974_v43 }
0x2259   :  { %10619 = vmatpush3.bf16.msra.mxu0 %v11070_v2 }
0x225a   :  { %10620 = vmatprep.subr.bf16.mxu0 %v16974_v43 }
0x225d   :  { %10621 = vmatpush3.bf16.msra.mxu0 %v11071_v53 }
0x225e   :  { %10622 = vmatprep.subr.bf16.mxu0 %v16974_v43 }
0x2261   :  { %10623 = vmatpush3.bf16.msra.mxu0 %v11072_v27 }
0x2262   :  { %10624 = vmatprep.subr.bf16.mxu0 %v16974_v43  ;;  %v16992_v43 = vld [vmem:[#allocation88_spill] sm:$0xff] }
0x2263   :  { %v16994_v16 = vsel %vm12696_vm7, %v16992_v43, %v16993_v7 }
0x2265   :  { %10625 = vmatpush3.bf16.msra.mxu0 %v11073_v20 }
0x231b   :  { %v9480_v50 = vpop.f32.mrb[232].mxu0  ;;  %v9521_v41 = vpop.f32.mrb[176].mxu1 }
0x231c   :  { %v9528_v40 = vadd.f32 %v9480_v50, %v16985_v32  ;;  %v9530_v54 = vadd.f32 %v9521_v41, %v16988_v62  ;;  %v9482_v59 = vpop.f32.mrb[233].mxu0  ;;  %v9523_v19 = vpop.f32.mrb[177].mxu1 }
0x231d   :  { %v9529_v13 = vadd.f32 %v9482_v59, %v16991_v48  ;;  %v9531_v12 = vadd.f32 %v9523_v19, %v16994_v16  ;;  %v9484_v46 = vpop.f32.mrb[234].mxu0  ;;  %v9525_v28 = vpop.f32.mrb[178].mxu1 }
0x231e   :  { %v10445_v42 = vmul.f32 -1.442695, %v9528_v40  ;;  %v9485_v60 = vpop.f32.mrb[235].mxu0  ;;  %v9526_v31 = vpop.f32.mrb[179].mxu1  ;;  %v10447_v23 = vmul.f32 -1.442695, %v9530_v54 }
0x231f   :  { %v10446_v6 = vmul.f32 -1.442695, %v9529_v13 }
0x2320   :  { %11570 = vpow2.f32 %v10445_v42 }
0x2321   :  { %11572 = vpow2.f32 %v10446_v6 }
0x2322   :  { %11574 = vtanh.f32 %v9531_v12 }
0x2323   :  { %11576 = vpow2.f32 %v10447_v23 }
0x232a   :  { %v11571_v4 = vpop.eup %11570 }
0x232b   :  { %v9541_v44 = vadd.f32 1.0, %v11571_v4  ;;  %v11573_v34 = vpop.eup %11572 }
0x232c   :  { %v9542_v45 = vadd.f32 1.0, %v11573_v34  ;;  %v11575_v29 = vpop.eup %11574 }
0x232d   :  { %11578 = vrcp.f32 %v9541_v44  ;;  %v11577_v49 = vpop.eup %11576 }
0x232e   :  { %11580 = vrcp.f32 %v9542_v45  ;;  %v9543_v5 = vadd.f32 1.0, %v11577_v49 }
0x2330   :  { %11582 = vrcp.f32 %v9543_v5 }
0x2337   :  { %v11579_v51 = vpop.eup %11578 }
0x2338   :  { %v9552_v61 = vmul.f32 %v11579_v51, %v11575_v29  ;;  %v11581_v14 = vpop.eup %11580 }
0x2339   :  { %v9551_v58 = vmul.f32 %v11581_v14, %v16255_v57 }
0x233a   :  { %v11583_v25 = vpop.eup %11582 }
0x233b   :  { %v9553_v39 = vadd.f32 %v9552_v61, %v9551_v58 }
0x233d   :  { %11584 = vtanh.f32 %v9553_v39 }
0x2347   :  { %v11585_v26 = vpop.eup %11584 }
0x2348   :  { %v9555_v37 = vmul.f32 %v11585_v26, %v11583_v25 }
0x234a   :  { %v9556_v9 = vsel %vm86_vm4, %v9555_v37, %v16995_v17 }
0x234b   :  { %v9557_v35 = vpack.c.bf16 %v9556_v9, %v9556_v9 }
0x234d   :  { %10627 = vmatmul.mubr.bf16.vlgmr.msra.gmra.mrb[236].mxu0 %v9557_v35 }
0x2420   :  { %v9663_v47 = vpop.f32.mrb[236].mxu0 }
0x2421   :  { %v9664_v18 = vadd.f32 %v10448_v56, %v9663_v47  ;;  %v10628_v36 = vpop.f32.mrb[237].mxu0 }
0x2422   :  { %v9666_v11 = vpop.f32.mrb[238].mxu0 }
0x2423   :  { %9669 = vst [vmem:[%s16325_s9] sm:$0xff] %v9664_v18  ;;  %v10629_v0 = vpop.f32.mrb[239].mxu0 }

</bundles_post_ra>
